<compile_context>
chip_gen: v6e
topology: v6e:2x2x1
jax: 0.10.0
libtpu: 0.0.40
codegen_flags: <defaults>
</compile_context>

<pallas_src>
import numpy as np
import jax
import jax.numpy as jnp
from jax import lax
from jax.experimental import pallas as pl
from jax.experimental.pallas import tpu as pltpu


# --------------------- host-side weight / BN folding --------------------- #
def _fold_1x1(w2d, W):
    """Per-voxel (Cin, Cout) weight -> (W*Cin, W*Cout) block-diagonal."""
    return np.kron(np.eye(W, dtype=np.float32), np.asarray(w2d, np.float32))


def _fold_3x3(w, W, dilation):
    """(KD,KH,KW,Cin,Cout) -> (KD*KH, W*Cin, W*Cout).

    The KW taps and the 'same' padding along W are folded into a banded block
    matrix so the in-kernel matmul contracts over (w_in, c_in) at once.
    """
    w = np.asarray(w, np.float32)
    KD, KH, KW, Cin, Cout = w.shape
    _, _, dx = dilation
    pw = (KW - 1) // 2 * dx
    ww = np.zeros((KD * KH, W * Cin, W * Cout), np.float32)
    for kz in range(KD):
        for ky in range(KH):
            t = kz * KH + ky
            for kx in range(KW):
                for wo in range(W):
                    wi = wo + kx * dx - pw
                    if 0 <= wi < W:
                        ww[t, wi * Cin:(wi + 1) * Cin,
                           wo * Cout:(wo + 1) * Cout] += w[kz, ky, kx]
    return ww


def _tile_bn(scale, shift, W):
    """Tile per-channel BN affine params over the folded W axis -> (2, W*C)."""
    s = np.tile(np.asarray(scale, np.float32).reshape(-1), W)
    b = np.tile(np.asarray(shift, np.float32).reshape(-1), W)
    return np.stack([s, b], axis=0)


def _pick_batch_block(n, a, min_rows=128):
    """Smallest divisor B of n with B*a >= min_rows matmul rows per grid step
    (fills MXU rows on v5e/v6e); keeps B=1 (grid=n, megacore-friendly) when a
    single batch already provides enough rows; folds everything otherwise."""
    for b in range(1, n + 1):
        if n % b == 0 and b * a >= min_rows:
            return b
    return n


# ------------------------------ fused kernel ------------------------------ #
def make_mfunit(N, D, H, W, Cin, Cout, d=(1, 1), batch_block=None):
    num_mid = Cin if Cin <= Cout else Cout
    Cq = Cin // 4
    A = D * H
    d0, d1 = d
    pd1 = ph1 = d0                      # 3x3x3 "same" padding (D, H)
    pd2 = ph2 = d1                      # 3x3x1 "same" padding (D, H)
    Dp1, Hp1 = D + 2 * pd1, H + 2 * ph1
    Dp2, Hp2 = D + 2 * pd2, H + 2 * ph2
    WCi, WCq, WCm, WCo = W * Cin, W * Cq, W * num_mid, W * Cout

    B = _pick_batch_block(N, A) if batch_block is None else batch_block
    assert N % B == 0, "batch block must divide the batch size"
    BA = B * A

    def kernel(x_ref, sb1, sb2, sb3, sb4, sb5,
               w1, w2, w3, w4, w5, o_ref, pad_m, pad_o):
        bf16 = jnp.bfloat16
        f32 = jnp.float32
        x = x_ref[...].reshape(BA, WCi)                          # (BA, WCi) f32

        # conv1x1x1_in1: BN + ReLU (f32) + 1x1 conv (W folded into the matmul)
        h0 = jnp.maximum(x * sb1[0:1, :] + sb1[1:2, :], 0.0)
        x1 = jnp.dot(h0.astype(bf16), w1[...],
                     preferred_element_type=f32)                 # (BA, WCq)

        # conv1x1x1_in2
        h1 = jnp.maximum(x1 * sb2[0:1, :] + sb2[1:2, :], 0.0)
        x2 = jnp.dot(h1.astype(bf16), w2[...],
                     preferred_element_type=f32)                 # (BA, WCm)

        # 1x1 shortcut (used below as the accumulator init of the last conv)
        hs = jnp.maximum(x * sb5[0:1, :] + sb5[1:2, :], 0.0)
        sc = jnp.dot(hs.astype(bf16), w5[...],
                     preferred_element_type=f32)                 # (BA, WCo)

        # conv3x3x3_m1: stage BN+ReLU output as bf16 in a D/H-padded VMEM
        # scratch (halo-only zeroing), then 9 (kz,ky) taps, each a
        # (BA, WCm) @ (WCm, WCo) bf16 matmul with f32 accumulation.
        h2 = jnp.maximum(x2 * sb3[0:1, :] + sb3[1:2, :], 0.0)
        pad_m[:, 0:pd1, :, :] = jnp.zeros((B, pd1, Hp1, WCm), bf16)
        pad_m[:, pd1 + D:, :, :] = jnp.zeros((B, pd1, Hp1, WCm), bf16)
        pad_m[:, pd1:pd1 + D, 0:ph1, :] = jnp.zeros((B, D, ph1, WCm), bf16)
        pad_m[:, pd1:pd1 + D, ph1 + H:, :] = jnp.zeros((B, D, ph1, WCm), bf16)
        pad_m[:, pd1:pd1 + D, ph1:ph1 + H, :] = (
            h2.astype(bf16).reshape(B, D, H, WCm))
        acc = None
        for kz in range(3):
            for ky in range(3):
                sl = pad_m[:, kz * d0:kz * d0 + D, ky * d0:ky * d0 + H, :]
                t = jnp.dot(sl.reshape(BA, WCm), w3[kz * 3 + ky],
                            preferred_element_type=f32)
                acc = t if acc is None else acc + t              # (BA, WCo)

        # conv3x3x1_m2 (+ fused residual: accumulator starts at the shortcut)
        h3 = jnp.maximum(acc * sb4[0:1, :] + sb4[1:2, :], 0.0)
        pad_o[:, 0:pd2, :, :] = jnp.zeros((B, pd2, Hp2, WCo), bf16)
        pad_o[:, pd2 + D:, :, :] = jnp.zeros((B, pd2, Hp2, WCo), bf16)
        pad_o[:, pd2:pd2 + D, 0:ph2, :] = jnp.zeros((B, D, ph2, WCo), bf16)
        pad_o[:, pd2:pd2 + D, ph2 + H:, :] = jnp.zeros((B, D, ph2, WCo), bf16)
        pad_o[:, pd2:pd2 + D, ph2:ph2 + H, :] = (
            h3.astype(bf16).reshape(B, D, H, WCo))
        out = sc
        for kz in range(3):
            for ky in range(3):
                sl = pad_o[:, kz * d1:kz * d1 + D, ky * d1:ky * d1 + H, :]
                out = out + jnp.dot(sl.reshape(BA, WCo), w4[kz * 3 + ky],
                                    preferred_element_type=f32)
        o_ref[...] = out.reshape(B, A, WCo).astype(o_ref.dtype)

    in_specs = [
        pl.BlockSpec((B, A, WCi), lambda n: (n, 0, 0)),     # x (B batches/step)
        pl.BlockSpec((2, WCi), lambda n: (0, 0)),           # bn1
        pl.BlockSpec((2, WCq), lambda n: (0, 0)),           # bn2
        pl.BlockSpec((2, WCm), lambda n: (0, 0)),           # bn3
        pl.BlockSpec((2, WCo), lambda n: (0, 0)),           # bn4
        pl.BlockSpec((2, WCi), lambda n: (0, 0)),           # bn shortcut
        pl.BlockSpec((WCi, WCq), lambda n: (0, 0)),         # w1 folded
        pl.BlockSpec((WCq, WCm), lambda n: (0, 0)),         # w2 folded
        pl.BlockSpec((9, WCm, WCo), lambda n: (0, 0, 0)),   # w3 folded
        pl.BlockSpec((9, WCo, WCo), lambda n: (0, 0, 0)),   # w4 folded
        pl.BlockSpec((WCi, WCo), lambda n: (0, 0)),         # w5 folded
    ]
    grid_spec = pltpu.PrefetchScalarGridSpec(
        num_scalar_prefetch=0,
        grid=(N // B,),
        in_specs=in_specs,
        out_specs=pl.BlockSpec((B, A, WCo), lambda n: (n, 0, 0)),
        scratch_shapes=[pltpu.VMEM((B, Dp1, Hp1, WCm), jnp.bfloat16),
                        pltpu.VMEM((B, Dp2, Hp2, WCo), jnp.bfloat16)],
    )
    return pl.pallas_call(
        kernel,
        out_shape=jax.ShapeDtypeStruct((N, A, WCo), jnp.float32),
        grid_spec=grid_spec,
        compiler_params=pltpu.CompilerParams(
            dimension_semantics=("parallel",)),
    )


# ------------------------- pure-JAX reference ---------------------------- #
def ref_block(x, scale, shift, w, dilation=(1, 1, 1)):
    """BN(affine) + ReLU + conv, with the same bf16-operand / f32-accum math
    as the kernel's MXU path."""
    C = x.shape[-1]
    h = jnp.maximum(x * scale.reshape(1, 1, 1, 1, C) +
                    shift.reshape(1, 1, 1, 1, C), 0.0)
    KD, KH, KW = w.shape[:3]
    dz, dy, dx = dilation
    pad = [((KD - 1) // 2 * dz,) * 2,
           ((KH - 1) // 2 * dy,) * 2,
           ((KW - 1) // 2 * dx,) * 2]
    return lax.conv_general_dilated(
        h.astype(jnp.bfloat16), w.astype(jnp.bfloat16),
        window_strides=(1, 1, 1), padding=pad, rhs_dilation=dilation,
        dimension_numbers=('NDHWC', 'DHWIO', 'NDHWC'),
        preferred_element_type=jnp.float32)


# --------------------- deterministic parameter setup --------------------- #
def bn_params(key, c, eps=1e-5):
    k1, k2, k3, k4 = jax.random.split(key, 4)
    gamma = 1.0 + 0.1 * jax.random.normal(k1, (c,))
    beta = 0.1 * jax.random.normal(k2, (c,))
    mean = 0.1 * jax.random.normal(k3, (c,))
    var = 1.0 + 0.2 * jax.random.uniform(k4, (c,))
    scale = gamma / jnp.sqrt(var + eps)
    shift = beta - mean * scale
    return scale.astype(jnp.float32), shift.astype(jnp.float32)


def conv_w(key, kd, kh, kw, cin, cout):
    return (0.1 * jax.random.normal(key, (kd, kh, kw, cin, cout))).astype(jnp.float32)


if __name__ == "__main__":
    # MFunit(num_in=8, num_out=16, g=1, stride=1, d=(1,1), norm='bn')
    N, Cin, Cout = 2, 8, 16
    D = H = W = 8
    d = (1, 1)
    num_mid = Cin if Cin <= Cout else Cout        # 8
    Cq = Cin // 4                                 # 2

    keys = jax.random.split(jax.random.PRNGKey(0), 12)

    s1, b1 = bn_params(keys[0], Cin)
    w1 = conv_w(keys[1], 1, 1, 1, Cin, Cq)                # conv1x1x1_in1
    s2, b2 = bn_params(keys[2], Cq)
    w2 = conv_w(keys[3], 1, 1, 1, Cq, num_mid)            # conv1x1x1_in2
    s3, b3 = bn_params(keys[4], num_mid)
    w3 = conv_w(keys[5], 3, 3, 3, num_mid, Cout)          # conv3x3x3_m1
    s4, b4 = bn_params(keys[6], Cout)
    w4 = conv_w(keys[7], 3, 3, 1, Cout, Cout)             # conv3x3x3_m2 (3,3,1)
    s5, b5 = bn_params(keys[8], Cin)
    w5 = conv_w(keys[9], 1, 1, 1, Cin, Cout)              # conv1x1x1_shortcut

    # PyTorch-style NCDHW input -> channels-last -> lane-dense (N, D*H, W*C).
    x_ncdhw = jax.random.normal(keys[10], (N, Cin, D, H, W), jnp.float32)
    x_ndhwc = jnp.transpose(x_ncdhw, (0, 2, 3, 4, 1))
    x_flat = x_ndhwc.reshape(N, D * H, W * Cin)

    # Host-side folding: W (and its padding) into the matmul dims; bf16 weights.
    bf16 = jnp.bfloat16
    w1f = jnp.asarray(_fold_1x1(w1[0, 0, 0], W), bf16)                    # (64, 16)
    w2f = jnp.asarray(_fold_1x1(w2[0, 0, 0], W), bf16)                    # (16, 64)
    w5f = jnp.asarray(_fold_1x1(w5[0, 0, 0], W), bf16)                    # (64, 128)
    w3f = jnp.asarray(_fold_3x3(w3, W, (d[0], d[0], d[0])), bf16)         # (9, 64, 128)
    w4f = jnp.asarray(_fold_3x3(w4, W, (d[1], d[1], 1)), bf16)            # (9, 128, 128)
    sb1 = jnp.asarray(_tile_bn(s1, b1, W))
    sb2 = jnp.asarray(_tile_bn(s2, b2, W))
    sb3 = jnp.asarray(_tile_bn(s3, b3, W))
    sb4 = jnp.asarray(_tile_bn(s4, b4, W))
    sb5 = jnp.asarray(_tile_bn(s5, b5, W))

    # --- fused Pallas MFunit forward ---
    mfunit = make_mfunit(N, D, H, W, Cin, Cout, d)
    out_flat = mfunit(x_flat, sb1, sb2, sb3, sb4, sb5, w1f, w2f, w3f, w4f, w5f)
    out_flat = jax.block_until_ready(out_flat)
    out = out_flat.reshape(N, D, H, W, Cout)

    # --- reference check (same bf16-operand / f32-accumulation math) ---
    r1 = ref_block(x_ndhwc, s1, b1, w1)
    r2 = ref_block(r1, s2, b2, w2)
    r3 = ref_block(r2, s3, b3, w3, dilation=(d[0], d[0], d[0]))
    r4 = ref_block(r3, s4, b4, w4, dilation=(d[1], d[1], 1))
    r_short = ref_block(x_ndhwc, s5, b5, w5)
    ref = r4 + r_short

    err = float(jnp.max(jnp.abs(out - ref)))
    assert err < 1e-3, f"max abs error too large: {err}"

    # Back to PyTorch NCDHW output layout (N, Cout, D, H, W).
    out_ncdhw = jnp.transpose(out, (0, 4, 1, 2, 3))
    assert out_ncdhw.shape == (N, Cout, D, H, W)

    print("KERNEL_OK")
</pallas_src>

<mosaic_0001>
module attributes {stable_mosaic.version = 11 : i64} {
  func.func @kernel(%arg0: i32, %arg1: memref<2x64x64xf32, #tpu.memory_space<vmem>>, %arg2: memref<2x64xf32, #tpu.memory_space<vmem>>, %arg3: memref<2x16xf32, #tpu.memory_space<vmem>>, %arg4: memref<2x64xf32, #tpu.memory_space<vmem>>, %arg5: memref<2x128xf32, #tpu.memory_space<vmem>>, %arg6: memref<2x64xf32, #tpu.memory_space<vmem>>, %arg7: memref<64x16xbf16, #tpu.memory_space<vmem>>, %arg8: memref<16x64xbf16, #tpu.memory_space<vmem>>, %arg9: memref<9x64x128xbf16, #tpu.memory_space<vmem>>, %arg10: memref<9x128x128xbf16, #tpu.memory_space<vmem>>, %arg11: memref<64x128xbf16, #tpu.memory_space<vmem>>, %arg12: memref<2x64x128xf32, #tpu.memory_space<vmem>>, %arg13: memref<2x10x10x64xbf16, #tpu.memory_space<vmem>>, %arg14: memref<2x10x10x128xbf16, #tpu.memory_space<vmem>>) attributes {dimension_semantics = [#tpu.dimension_semantics<parallel>], iteration_bounds = array<i64: 1>, scalar_prefetch = 0 : i64, scratch_operands = 2 : i64, tpu.core_type = #tpu.core_type<tc>, window_params = [{transform_indices = @transform_0, window_bounds = array<i64: 2, 64, 64>}, {pipeline_mode = #tpu.pipeline_mode<synchronous>, transform_indices = @transform_1, window_bounds = array<i64: 2, 64>}, {pipeline_mode = #tpu.pipeline_mode<synchronous>, transform_indices = @transform_2, window_bounds = array<i64: 2, 16>}, {pipeline_mode = #tpu.pipeline_mode<synchronous>, transform_indices = @transform_3, window_bounds = array<i64: 2, 64>}, {pipeline_mode = #tpu.pipeline_mode<synchronous>, transform_indices = @transform_4, window_bounds = array<i64: 2, 128>}, {pipeline_mode = #tpu.pipeline_mode<synchronous>, transform_indices = @transform_5, window_bounds = array<i64: 2, 64>}, {pipeline_mode = #tpu.pipeline_mode<synchronous>, transform_indices = @transform_6, window_bounds = array<i64: 64, 16>}, {pipeline_mode = #tpu.pipeline_mode<synchronous>, transform_indices = @transform_7, window_bounds = array<i64: 16, 64>}, {pipeline_mode = #tpu.pipeline_mode<synchronous>, transform_indices = @transform_8, window_bounds = array<i64: 9, 64, 128>}, {pipeline_mode = #tpu.pipeline_mode<synchronous>, transform_indices = @transform_9, window_bounds = array<i64: 9, 128, 128>}, {pipeline_mode = #tpu.pipeline_mode<synchronous>, transform_indices = @transform_10, window_bounds = array<i64: 64, 128>}, {transform_indices = @transform_11, window_bounds = array<i64: 2, 64, 128>}]} {
    %c0 = arith.constant 0 : index
    %c0_0 = arith.constant 0 : index
    %c0_1 = arith.constant 0 : index
    %0 = vector.load %arg1[%c0, %c0_0, %c0_1] : memref<2x64x64xf32, #tpu.memory_space<vmem>>, vector<2x64x64xf32>
    %1 = vector.shape_cast %0 : vector<2x64x64xf32> to vector<128x64xf32>
    %c0_2 = arith.constant 0 : index
    %c0_3 = arith.constant 0 : index
    %2 = vector.load %arg2[%c0_2, %c0_3] : memref<2x64xf32, #tpu.memory_space<vmem>>, vector<1x64xf32>
    %3 = vector.broadcast %2 : vector<1x64xf32> to vector<128x64xf32>
    %4 = arith.mulf %1, %3 : vector<128x64xf32>
    %c1 = arith.constant 1 : index
    %c0_4 = arith.constant 0 : index
    %5 = vector.load %arg2[%c1, %c0_4] : memref<2x64xf32, #tpu.memory_space<vmem>>, vector<1x64xf32>
    %6 = vector.broadcast %5 : vector<1x64xf32> to vector<128x64xf32>
    %7 = arith.addf %4, %6 : vector<128x64xf32>
    %cst = arith.constant 0.000000e+00 : f32
    %8 = vector.broadcast %cst : f32 to vector<128x64xf32>
    %9 = arith.maximumf %7, %8 : vector<128x64xf32>
    %10 = arith.truncf %9 : vector<128x64xf32> to vector<128x64xbf16>
    %c0_5 = arith.constant 0 : index
    %c0_6 = arith.constant 0 : index
    %11 = vector.load %arg7[%c0_5, %c0_6] : memref<64x16xbf16, #tpu.memory_space<vmem>>, vector<64x16xbf16>
    %cst_7 = arith.constant dense<0.000000e+00> : vector<128x16xf32>
    %12 = tpu.matmul %10, %11, %cst_7 {dimension_numbers = #tpu.dot_dimension_numbers<[1], [0], [0], [1], [0, 0, 1, 1], [], []>} : vector<128x64xbf16>, vector<64x16xbf16>, vector<128x16xf32> -> vector<128x16xf32>
    %c0_8 = arith.constant 0 : index
    %c0_9 = arith.constant 0 : index
    %13 = vector.load %arg3[%c0_8, %c0_9] : memref<2x16xf32, #tpu.memory_space<vmem>>, vector<1x16xf32>
    %14 = vector.broadcast %13 : vector<1x16xf32> to vector<128x16xf32>
    %15 = arith.mulf %12, %14 : vector<128x16xf32>
    %c1_10 = arith.constant 1 : index
    %c0_11 = arith.constant 0 : index
    %16 = vector.load %arg3[%c1_10, %c0_11] : memref<2x16xf32, #tpu.memory_space<vmem>>, vector<1x16xf32>
    %17 = vector.broadcast %16 : vector<1x16xf32> to vector<128x16xf32>
    %18 = arith.addf %15, %17 : vector<128x16xf32>
    %cst_12 = arith.constant 0.000000e+00 : f32
    %19 = vector.broadcast %cst_12 : f32 to vector<128x16xf32>
    %20 = arith.maximumf %18, %19 : vector<128x16xf32>
    %21 = arith.truncf %20 : vector<128x16xf32> to vector<128x16xbf16>
    %c0_13 = arith.constant 0 : index
    %c0_14 = arith.constant 0 : index
    %22 = vector.load %arg8[%c0_13, %c0_14] : memref<16x64xbf16, #tpu.memory_space<vmem>>, vector<16x64xbf16>
    %cst_15 = arith.constant dense<0.000000e+00> : vector<128x64xf32>
    %23 = tpu.matmul %21, %22, %cst_15 {dimension_numbers = #tpu.dot_dimension_numbers<[1], [0], [0], [1], [0, 0, 1, 1], [], []>} : vector<128x16xbf16>, vector<16x64xbf16>, vector<128x64xf32> -> vector<128x64xf32>
    %c0_16 = arith.constant 0 : index
    %c0_17 = arith.constant 0 : index
    %24 = vector.load %arg6[%c0_16, %c0_17] : memref<2x64xf32, #tpu.memory_space<vmem>>, vector<1x64xf32>
    %25 = vector.broadcast %24 : vector<1x64xf32> to vector<128x64xf32>
    %26 = arith.mulf %1, %25 : vector<128x64xf32>
    %c1_18 = arith.constant 1 : index
    %c0_19 = arith.constant 0 : index
    %27 = vector.load %arg6[%c1_18, %c0_19] : memref<2x64xf32, #tpu.memory_space<vmem>>, vector<1x64xf32>
    %28 = vector.broadcast %27 : vector<1x64xf32> to vector<128x64xf32>
    %29 = arith.addf %26, %28 : vector<128x64xf32>
    %cst_20 = arith.constant 0.000000e+00 : f32
    %30 = vector.broadcast %cst_20 : f32 to vector<128x64xf32>
    %31 = arith.maximumf %29, %30 : vector<128x64xf32>
    %32 = arith.truncf %31 : vector<128x64xf32> to vector<128x64xbf16>
    %c0_21 = arith.constant 0 : index
    %c0_22 = arith.constant 0 : index
    %33 = vector.load %arg11[%c0_21, %c0_22] : memref<64x128xbf16, #tpu.memory_space<vmem>>, vector<64x128xbf16>
    %cst_23 = arith.constant dense<0.000000e+00> : vector<128x128xf32>
    %34 = tpu.matmul %32, %33, %cst_23 {dimension_numbers = #tpu.dot_dimension_numbers<[1], [0], [0], [1], [0, 0, 1, 1], [], []>} : vector<128x64xbf16>, vector<64x128xbf16>, vector<128x128xf32> -> vector<128x128xf32>
    %c0_24 = arith.constant 0 : index
    %c0_25 = arith.constant 0 : index
    %35 = vector.load %arg4[%c0_24, %c0_25] : memref<2x64xf32, #tpu.memory_space<vmem>>, vector<1x64xf32>
    %36 = vector.broadcast %35 : vector<1x64xf32> to vector<128x64xf32>
    %37 = arith.mulf %23, %36 : vector<128x64xf32>
    %c1_26 = arith.constant 1 : index
    %c0_27 = arith.constant 0 : index
    %38 = vector.load %arg4[%c1_26, %c0_27] : memref<2x64xf32, #tpu.memory_space<vmem>>, vector<1x64xf32>
    %39 = vector.broadcast %38 : vector<1x64xf32> to vector<128x64xf32>
    %40 = arith.addf %37, %39 : vector<128x64xf32>
    %cst_28 = arith.constant 0.000000e+00 : f32
    %41 = vector.broadcast %cst_28 : f32 to vector<128x64xf32>
    %42 = arith.maximumf %40, %41 : vector<128x64xf32>
    %cst_29 = arith.constant 0.000000e+00 : bf16
    %43 = vector.broadcast %cst_29 : bf16 to vector<2x1x10x64xbf16>
    %c0_30 = arith.constant 0 : index
    %c0_31 = arith.constant 0 : index
    %c0_32 = arith.constant 0 : index
    %c0_33 = arith.constant 0 : index
    %44 = vector.load %arg13[%c0_30, %c0_31, %c0_32, %c0_33] : memref<2x10x10x64xbf16, #tpu.memory_space<vmem>>, vector<2x1x10x64xbf16>
    tpu.vector_store %arg13[%c0_30, %c0_31, %c0_32, %c0_33], %43 {strides = array<i32>} : memref<2x10x10x64xbf16, #tpu.memory_space<vmem>>, vector<2x1x10x64xbf16>,
    %cst_34 = arith.constant 0.000000e+00 : bf16
    %45 = vector.broadcast %cst_34 : bf16 to vector<2x1x10x64xbf16>
    %c0_35 = arith.constant 0 : index
    %c9 = arith.constant 9 : index
    %c0_36 = arith.constant 0 : index
    %c0_37 = arith.constant 0 : index
    %46 = vector.load %arg13[%c0_35, %c9, %c0_36, %c0_37] : memref<2x10x10x64xbf16, #tpu.memory_space<vmem>>, vector<2x1x10x64xbf16>
    tpu.vector_store %arg13[%c0_35, %c9, %c0_36, %c0_37], %45 {strides = array<i32>} : memref<2x10x10x64xbf16, #tpu.memory_space<vmem>>, vector<2x1x10x64xbf16>,
    %cst_38 = arith.constant 0.000000e+00 : bf16
    %47 = vector.broadcast %cst_38 : bf16 to vector<2x8x1x64xbf16>
    %c0_39 = arith.constant 0 : index
    %c1_40 = arith.constant 1 : index
    %c0_41 = arith.constant 0 : index
    %c0_42 = arith.constant 0 : index
    %48 = vector.load %arg13[%c0_39, %c1_40, %c0_41, %c0_42] : memref<2x10x10x64xbf16, #tpu.memory_space<vmem>>, vector<2x8x1x64xbf16>
    tpu.vector_store %arg13[%c0_39, %c1_40, %c0_41, %c0_42], %47 {strides = array<i32>} : memref<2x10x10x64xbf16, #tpu.memory_space<vmem>>, vector<2x8x1x64xbf16>,
    %cst_43 = arith.constant 0.000000e+00 : bf16
    %49 = vector.broadcast %cst_43 : bf16 to vector<2x8x1x64xbf16>
    %c0_44 = arith.constant 0 : index
    %c1_45 = arith.constant 1 : index
    %c9_46 = arith.constant 9 : index
    %c0_47 = arith.constant 0 : index
    %50 = vector.load %arg13[%c0_44, %c1_45, %c9_46, %c0_47] : memref<2x10x10x64xbf16, #tpu.memory_space<vmem>>, vector<2x8x1x64xbf16>
    tpu.vector_store %arg13[%c0_44, %c1_45, %c9_46, %c0_47], %49 {strides = array<i32>} : memref<2x10x10x64xbf16, #tpu.memory_space<vmem>>, vector<2x8x1x64xbf16>,
    %51 = arith.truncf %42 : vector<128x64xf32> to vector<128x64xbf16>
    %52 = vector.shape_cast %51 : vector<128x64xbf16> to vector<2x8x8x64xbf16>
    %c0_48 = arith.constant 0 : index
    %c1_49 = arith.constant 1 : index
    %c1_50 = arith.constant 1 : index
    %c0_51 = arith.constant 0 : index
    %53 = vector.load %arg13[%c0_48, %c1_49, %c1_50, %c0_51] : memref<2x10x10x64xbf16, #tpu.memory_space<vmem>>, vector<2x8x8x64xbf16>
    tpu.vector_store %arg13[%c0_48, %c1_49, %c1_50, %c0_51], %52 {strides = array<i32>} : memref<2x10x10x64xbf16, #tpu.memory_space<vmem>>, vector<2x8x8x64xbf16>,
    %c0_52 = arith.constant 0 : index
    %c0_53 = arith.constant 0 : index
    %c0_54 = arith.constant 0 : index
    %c0_55 = arith.constant 0 : index
    %54 = vector.load %arg13[%c0_52, %c0_53, %c0_54, %c0_55] : memref<2x10x10x64xbf16, #tpu.memory_space<vmem>>, vector<2x8x8x64xbf16>
    %55 = vector.shape_cast %54 : vector<2x8x8x64xbf16> to vector<128x64xbf16>
    %c0_56 = arith.constant 0 : index
    %c0_57 = arith.constant 0 : index
    %c0_58 = arith.constant 0 : index
    %56 = vector.load %arg9[%c0_56, %c0_57, %c0_58] : memref<9x64x128xbf16, #tpu.memory_space<vmem>>, vector<1x64x128xbf16>
    %57 = vector.shape_cast %56 : vector<1x64x128xbf16> to vector<64x128xbf16>
    %cst_59 = arith.constant dense<0.000000e+00> : vector<128x128xf32>
    %58 = tpu.matmul %55, %57, %cst_59 {dimension_numbers = #tpu.dot_dimension_numbers<[1], [0], [0], [1], [0, 0, 1, 1], [], []>} : vector<128x64xbf16>, vector<64x128xbf16>, vector<128x128xf32> -> vector<128x128xf32>
    %c0_60 = arith.constant 0 : index
    %c0_61 = arith.constant 0 : index
    %c1_62 = arith.constant 1 : index
    %c0_63 = arith.constant 0 : index
    %59 = vector.load %arg13[%c0_60, %c0_61, %c1_62, %c0_63] : memref<2x10x10x64xbf16, #tpu.memory_space<vmem>>, vector<2x8x8x64xbf16>
    %60 = vector.shape_cast %59 : vector<2x8x8x64xbf16> to vector<128x64xbf16>
    %c1_64 = arith.constant 1 : index
    %c0_65 = arith.constant 0 : index
    %c0_66 = arith.constant 0 : index
    %61 = vector.load %arg9[%c1_64, %c0_65, %c0_66] : memref<9x64x128xbf16, #tpu.memory_space<vmem>>, vector<1x64x128xbf16>
    %62 = vector.shape_cast %61 : vector<1x64x128xbf16> to vector<64x128xbf16>
    %cst_67 = arith.constant dense<0.000000e+00> : vector<128x128xf32>
    %63 = tpu.matmul %60, %62, %cst_67 {dimension_numbers = #tpu.dot_dimension_numbers<[1], [0], [0], [1], [0, 0, 1, 1], [], []>} : vector<128x64xbf16>, vector<64x128xbf16>, vector<128x128xf32> -> vector<128x128xf32>
    %64 = arith.addf %58, %63 : vector<128x128xf32>
    %c0_68 = arith.constant 0 : index
    %c0_69 = arith.constant 0 : index
    %c2 = arith.constant 2 : index
    %c0_70 = arith.constant 0 : index
    %65 = vector.load %arg13[%c0_68, %c0_69, %c2, %c0_70] : memref<2x10x10x64xbf16, #tpu.memory_space<vmem>>, vector<2x8x8x64xbf16>
    %66 = vector.shape_cast %65 : vector<2x8x8x64xbf16> to vector<128x64xbf16>
    %c2_71 = arith.constant 2 : index
    %c0_72 = arith.constant 0 : index
    %c0_73 = arith.constant 0 : index
    %67 = vector.load %arg9[%c2_71, %c0_72, %c0_73] : memref<9x64x128xbf16, #tpu.memory_space<vmem>>, vector<1x64x128xbf16>
    %68 = vector.shape_cast %67 : vector<1x64x128xbf16> to vector<64x128xbf16>
    %cst_74 = arith.constant dense<0.000000e+00> : vector<128x128xf32>
    %69 = tpu.matmul %66, %68, %cst_74 {dimension_numbers = #tpu.dot_dimension_numbers<[1], [0], [0], [1], [0, 0, 1, 1], [], []>} : vector<128x64xbf16>, vector<64x128xbf16>, vector<128x128xf32> -> vector<128x128xf32>
    %70 = arith.addf %64, %69 : vector<128x128xf32>
    %c0_75 = arith.constant 0 : index
    %c1_76 = arith.constant 1 : index
    %c0_77 = arith.constant 0 : index
    %c0_78 = arith.constant 0 : index
    %71 = vector.load %arg13[%c0_75, %c1_76, %c0_77, %c0_78] : memref<2x10x10x64xbf16, #tpu.memory_space<vmem>>, vector<2x8x8x64xbf16>
    %72 = vector.shape_cast %71 : vector<2x8x8x64xbf16> to vector<128x64xbf16>
    %c3 = arith.constant 3 : index
    %c0_79 = arith.constant 0 : index
    %c0_80 = arith.constant 0 : index
    %73 = vector.load %arg9[%c3, %c0_79, %c0_80] : memref<9x64x128xbf16, #tpu.memory_space<vmem>>, vector<1x64x128xbf16>
    %74 = vector.shape_cast %73 : vector<1x64x128xbf16> to vector<64x128xbf16>
    %cst_81 = arith.constant dense<0.000000e+00> : vector<128x128xf32>
    %75 = tpu.matmul %72, %74, %cst_81 {dimension_numbers = #tpu.dot_dimension_numbers<[1], [0], [0], [1], [0, 0, 1, 1], [], []>} : vector<128x64xbf16>, vector<64x128xbf16>, vector<128x128xf32> -> vector<128x128xf32>
    %76 = arith.addf %70, %75 : vector<128x128xf32>
    %c0_82 = arith.constant 0 : index
    %c1_83 = arith.constant 1 : index
    %c1_84 = arith.constant 1 : index
    %c0_85 = arith.constant 0 : index
    %77 = vector.load %arg13[%c0_82, %c1_83, %c1_84, %c0_85] : memref<2x10x10x64xbf16, #tpu.memory_space<vmem>>, vector<2x8x8x64xbf16>
    %78 = vector.shape_cast %77 : vector<2x8x8x64xbf16> to vector<128x64xbf16>
    %c4 = arith.constant 4 : index
    %c0_86 = arith.constant 0 : index
    %c0_87 = arith.constant 0 : index
    %79 = vector.load %arg9[%c4, %c0_86, %c0_87] : memref<9x64x128xbf16, #tpu.memory_space<vmem>>, vector<1x64x128xbf16>
    %80 = vector.shape_cast %79 : vector<1x64x128xbf16> to vector<64x128xbf16>
    %cst_88 = arith.constant dense<0.000000e+00> : vector<128x128xf32>
    %81 = tpu.matmul %78, %80, %cst_88 {dimension_numbers = #tpu.dot_dimension_numbers<[1], [0], [0], [1], [0, 0, 1, 1], [], []>} : vector<128x64xbf16>, vector<64x128xbf16>, vector<128x128xf32> -> vector<128x128xf32>
    %82 = arith.addf %76, %81 : vector<128x128xf32>
    %c0_89 = arith.constant 0 : index
    %c1_90 = arith.constant 1 : index
    %c2_91 = arith.constant 2 : index
    %c0_92 = arith.constant 0 : index
    %83 = vector.load %arg13[%c0_89, %c1_90, %c2_91, %c0_92] : memref<2x10x10x64xbf16, #tpu.memory_space<vmem>>, vector<2x8x8x64xbf16>
    %84 = vector.shape_cast %83 : vector<2x8x8x64xbf16> to vector<128x64xbf16>
    %c5 = arith.constant 5 : index
    %c0_93 = arith.constant 0 : index
    %c0_94 = arith.constant 0 : index
    %85 = vector.load %arg9[%c5, %c0_93, %c0_94] : memref<9x64x128xbf16, #tpu.memory_space<vmem>>, vector<1x64x128xbf16>
    %86 = vector.shape_cast %85 : vector<1x64x128xbf16> to vector<64x128xbf16>
    %cst_95 = arith.constant dense<0.000000e+00> : vector<128x128xf32>
    %87 = tpu.matmul %84, %86, %cst_95 {dimension_numbers = #tpu.dot_dimension_numbers<[1], [0], [0], [1], [0, 0, 1, 1], [], []>} : vector<128x64xbf16>, vector<64x128xbf16>, vector<128x128xf32> -> vector<128x128xf32>
    %88 = arith.addf %82, %87 : vector<128x128xf32>
    %c0_96 = arith.constant 0 : index
    %c2_97 = arith.constant 2 : index
    %c0_98 = arith.constant 0 : index
    %c0_99 = arith.constant 0 : index
    %89 = vector.load %arg13[%c0_96, %c2_97, %c0_98, %c0_99] : memref<2x10x10x64xbf16, #tpu.memory_space<vmem>>, vector<2x8x8x64xbf16>
    %90 = vector.shape_cast %89 : vector<2x8x8x64xbf16> to vector<128x64xbf16>
    %c6 = arith.constant 6 : index
    %c0_100 = arith.constant 0 : index
    %c0_101 = arith.constant 0 : index
    %91 = vector.load %arg9[%c6, %c0_100, %c0_101] : memref<9x64x128xbf16, #tpu.memory_space<vmem>>, vector<1x64x128xbf16>
    %92 = vector.shape_cast %91 : vector<1x64x128xbf16> to vector<64x128xbf16>
    %cst_102 = arith.constant dense<0.000000e+00> : vector<128x128xf32>
    %93 = tpu.matmul %90, %92, %cst_102 {dimension_numbers = #tpu.dot_dimension_numbers<[1], [0], [0], [1], [0, 0, 1, 1], [], []>} : vector<128x64xbf16>, vector<64x128xbf16>, vector<128x128xf32> -> vector<128x128xf32>
    %94 = arith.addf %88, %93 : vector<128x128xf32>
    %c0_103 = arith.constant 0 : index
    %c2_104 = arith.constant 2 : index
    %c1_105 = arith.constant 1 : index
    %c0_106 = arith.constant 0 : index
    %95 = vector.load %arg13[%c0_103, %c2_104, %c1_105, %c0_106] : memref<2x10x10x64xbf16, #tpu.memory_space<vmem>>, vector<2x8x8x64xbf16>
    %96 = vector.shape_cast %95 : vector<2x8x8x64xbf16> to vector<128x64xbf16>
    %c7 = arith.constant 7 : index
    %c0_107 = arith.constant 0 : index
    %c0_108 = arith.constant 0 : index
    %97 = vector.load %arg9[%c7, %c0_107, %c0_108] : memref<9x64x128xbf16, #tpu.memory_space<vmem>>, vector<1x64x128xbf16>
    %98 = vector.shape_cast %97 : vector<1x64x128xbf16> to vector<64x128xbf16>
    %cst_109 = arith.constant dense<0.000000e+00> : vector<128x128xf32>
    %99 = tpu.matmul %96, %98, %cst_109 {dimension_numbers = #tpu.dot_dimension_numbers<[1], [0], [0], [1], [0, 0, 1, 1], [], []>} : vector<128x64xbf16>, vector<64x128xbf16>, vector<128x128xf32> -> vector<128x128xf32>
    %100 = arith.addf %94, %99 : vector<128x128xf32>
    %c0_110 = arith.constant 0 : index
    %c2_111 = arith.constant 2 : index
    %c2_112 = arith.constant 2 : index
    %c0_113 = arith.constant 0 : index
    %101 = vector.load %arg13[%c0_110, %c2_111, %c2_112, %c0_113] : memref<2x10x10x64xbf16, #tpu.memory_space<vmem>>, vector<2x8x8x64xbf16>
    %102 = vector.shape_cast %101 : vector<2x8x8x64xbf16> to vector<128x64xbf16>
    %c8 = arith.constant 8 : index
    %c0_114 = arith.constant 0 : index
    %c0_115 = arith.constant 0 : index
    %103 = vector.load %arg9[%c8, %c0_114, %c0_115] : memref<9x64x128xbf16, #tpu.memory_space<vmem>>, vector<1x64x128xbf16>
    %104 = vector.shape_cast %103 : vector<1x64x128xbf16> to vector<64x128xbf16>
    %cst_116 = arith.constant dense<0.000000e+00> : vector<128x128xf32>
    %105 = tpu.matmul %102, %104, %cst_116 {dimension_numbers = #tpu.dot_dimension_numbers<[1], [0], [0], [1], [0, 0, 1, 1], [], []>} : vector<128x64xbf16>, vector<64x128xbf16>, vector<128x128xf32> -> vector<128x128xf32>
    %106 = arith.addf %100, %105 : vector<128x128xf32>
    %c0_117 = arith.constant 0 : index
    %c0_118 = arith.constant 0 : index
    %107 = vector.load %arg5[%c0_117, %c0_118] : memref<2x128xf32, #tpu.memory_space<vmem>>, vector<1x128xf32>
    %108 = vector.broadcast %107 : vector<1x128xf32> to vector<128x128xf32>
    %109 = arith.mulf %106, %108 : vector<128x128xf32>
    %c1_119 = arith.constant 1 : index
    %c0_120 = arith.constant 0 : index
    %110 = vector.load %arg5[%c1_119, %c0_120] : memref<2x128xf32, #tpu.memory_space<vmem>>, vector<1x128xf32>
    %111 = vector.broadcast %110 : vector<1x128xf32> to vector<128x128xf32>
    %112 = arith.addf %109, %111 : vector<128x128xf32>
    %cst_121 = arith.constant 0.000000e+00 : f32
    %113 = vector.broadcast %cst_121 : f32 to vector<128x128xf32>
    %114 = arith.maximumf %112, %113 : vector<128x128xf32>
    %cst_122 = arith.constant 0.000000e+00 : bf16
    %115 = vector.broadcast %cst_122 : bf16 to vector<2x1x10x128xbf16>
    %c0_123 = arith.constant 0 : index
    %c0_124 = arith.constant 0 : index
    %c0_125 = arith.constant 0 : index
    %c0_126 = arith.constant 0 : index
    %116 = vector.load %arg14[%c0_123, %c0_124, %c0_125, %c0_126] : memref<2x10x10x128xbf16, #tpu.memory_space<vmem>>, vector<2x1x10x128xbf16>
    tpu.vector_store %arg14[%c0_123, %c0_124, %c0_125, %c0_126], %115 {strides = array<i32>} : memref<2x10x10x128xbf16, #tpu.memory_space<vmem>>, vector<2x1x10x128xbf16>,
    %cst_127 = arith.constant 0.000000e+00 : bf16
    %117 = vector.broadcast %cst_127 : bf16 to vector<2x1x10x128xbf16>
    %c0_128 = arith.constant 0 : index
    %c9_129 = arith.constant 9 : index
    %c0_130 = arith.constant 0 : index
    %c0_131 = arith.constant 0 : index
    %118 = vector.load %arg14[%c0_128, %c9_129, %c0_130, %c0_131] : memref<2x10x10x128xbf16, #tpu.memory_space<vmem>>, vector<2x1x10x128xbf16>
    tpu.vector_store %arg14[%c0_128, %c9_129, %c0_130, %c0_131], %117 {strides = array<i32>} : memref<2x10x10x128xbf16, #tpu.memory_space<vmem>>, vector<2x1x10x128xbf16>,
    %cst_132 = arith.constant 0.000000e+00 : bf16
    %119 = vector.broadcast %cst_132 : bf16 to vector<2x8x1x128xbf16>
    %c0_133 = arith.constant 0 : index
    %c1_134 = arith.constant 1 : index
    %c0_135 = arith.constant 0 : index
    %c0_136 = arith.constant 0 : index
    %120 = vector.load %arg14[%c0_133, %c1_134, %c0_135, %c0_136] : memref<2x10x10x128xbf16, #tpu.memory_space<vmem>>, vector<2x8x1x128xbf16>
    tpu.vector_store %arg14[%c0_133, %c1_134, %c0_135, %c0_136], %119 {strides = array<i32>} : memref<2x10x10x128xbf16, #tpu.memory_space<vmem>>, vector<2x8x1x128xbf16>,
    %cst_137 = arith.constant 0.000000e+00 : bf16
    %121 = vector.broadcast %cst_137 : bf16 to vector<2x8x1x128xbf16>
    %c0_138 = arith.constant 0 : index
    %c1_139 = arith.constant 1 : index
    %c9_140 = arith.constant 9 : index
    %c0_141 = arith.constant 0 : index
    %122 = vector.load %arg14[%c0_138, %c1_139, %c9_140, %c0_141] : memref<2x10x10x128xbf16, #tpu.memory_space<vmem>>, vector<2x8x1x128xbf16>
    tpu.vector_store %arg14[%c0_138, %c1_139, %c9_140, %c0_141], %121 {strides = array<i32>} : memref<2x10x10x128xbf16, #tpu.memory_space<vmem>>, vector<2x8x1x128xbf16>,
    %123 = arith.truncf %114 : vector<128x128xf32> to vector<128x128xbf16>
    %124 = vector.shape_cast %123 : vector<128x128xbf16> to vector<2x8x8x128xbf16>
    %c0_142 = arith.constant 0 : index
    %c1_143 = arith.constant 1 : index
    %c1_144 = arith.constant 1 : index
    %c0_145 = arith.constant 0 : index
    %125 = vector.load %arg14[%c0_142, %c1_143, %c1_144, %c0_145] : memref<2x10x10x128xbf16, #tpu.memory_space<vmem>>, vector<2x8x8x128xbf16>
    tpu.vector_store %arg14[%c0_142, %c1_143, %c1_144, %c0_145], %124 {strides = array<i32>} : memref<2x10x10x128xbf16, #tpu.memory_space<vmem>>, vector<2x8x8x128xbf16>,
    %c0_146 = arith.constant 0 : index
    %c0_147 = arith.constant 0 : index
    %c0_148 = arith.constant 0 : index
    %c0_149 = arith.constant 0 : index
    %126 = vector.load %arg14[%c0_146, %c0_147, %c0_148, %c0_149] : memref<2x10x10x128xbf16, #tpu.memory_space<vmem>>, vector<2x8x8x128xbf16>
    %127 = vector.shape_cast %126 : vector<2x8x8x128xbf16> to vector<128x128xbf16>
    %c0_150 = arith.constant 0 : index
    %c0_151 = arith.constant 0 : index
    %c0_152 = arith.constant 0 : index
    %128 = vector.load %arg10[%c0_150, %c0_151, %c0_152] : memref<9x128x128xbf16, #tpu.memory_space<vmem>>, vector<1x128x128xbf16>
    %129 = vector.shape_cast %128 : vector<1x128x128xbf16> to vector<128x128xbf16>
    %cst_153 = arith.constant dense<0.000000e+00> : vector<128x128xf32>
    %130 = tpu.matmul %127, %129, %cst_153 {dimension_numbers = #tpu.dot_dimension_numbers<[1], [0], [0], [1], [0, 0, 1, 1], [], []>} : vector<128x128xbf16>, vector<128x128xbf16>, vector<128x128xf32> -> vector<128x128xf32>
    %131 = arith.addf %34, %130 : vector<128x128xf32>
    %c0_154 = arith.constant 0 : index
    %c0_155 = arith.constant 0 : index
    %c1_156 = arith.constant 1 : index
    %c0_157 = arith.constant 0 : index
    %132 = vector.load %arg14[%c0_154, %c0_155, %c1_156, %c0_157] : memref<2x10x10x128xbf16, #tpu.memory_space<vmem>>, vector<2x8x8x128xbf16>
    %133 = vector.shape_cast %132 : vector<2x8x8x128xbf16> to vector<128x128xbf16>
    %c1_158 = arith.constant 1 : index
    %c0_159 = arith.constant 0 : index
    %c0_160 = arith.constant 0 : index
    %134 = vector.load %arg10[%c1_158, %c0_159, %c0_160] : memref<9x128x128xbf16, #tpu.memory_space<vmem>>, vector<1x128x128xbf16>
    %135 = vector.shape_cast %134 : vector<1x128x128xbf16> to vector<128x128xbf16>
    %cst_161 = arith.constant dense<0.000000e+00> : vector<128x128xf32>
    %136 = tpu.matmul %133, %135, %cst_161 {dimension_numbers = #tpu.dot_dimension_numbers<[1], [0], [0], [1], [0, 0, 1, 1], [], []>} : vector<128x128xbf16>, vector<128x128xbf16>, vector<128x128xf32> -> vector<128x128xf32>
    %137 = arith.addf %131, %136 : vector<128x128xf32>
    %c0_162 = arith.constant 0 : index
    %c0_163 = arith.constant 0 : index
    %c2_164 = arith.constant 2 : index
    %c0_165 = arith.constant 0 : index
    %138 = vector.load %arg14[%c0_162, %c0_163, %c2_164, %c0_165] : memref<2x10x10x128xbf16, #tpu.memory_space<vmem>>, vector<2x8x8x128xbf16>
    %139 = vector.shape_cast %138 : vector<2x8x8x128xbf16> to vector<128x128xbf16>
    %c2_166 = arith.constant 2 : index
    %c0_167 = arith.constant 0 : index
    %c0_168 = arith.constant 0 : index
    %140 = vector.load %arg10[%c2_166, %c0_167, %c0_168] : memref<9x128x128xbf16, #tpu.memory_space<vmem>>, vector<1x128x128xbf16>
    %141 = vector.shape_cast %140 : vector<1x128x128xbf16> to vector<128x128xbf16>
    %cst_169 = arith.constant dense<0.000000e+00> : vector<128x128xf32>
    %142 = tpu.matmul %139, %141, %cst_169 {dimension_numbers = #tpu.dot_dimension_numbers<[1], [0], [0], [1], [0, 0, 1, 1], [], []>} : vector<128x128xbf16>, vector<128x128xbf16>, vector<128x128xf32> -> vector<128x128xf32>
    %143 = arith.addf %137, %142 : vector<128x128xf32>
    %c0_170 = arith.constant 0 : index
    %c1_171 = arith.constant 1 : index
    %c0_172 = arith.constant 0 : index
    %c0_173 = arith.constant 0 : index
    %144 = vector.load %arg14[%c0_170, %c1_171, %c0_172, %c0_173] : memref<2x10x10x128xbf16, #tpu.memory_space<vmem>>, vector<2x8x8x128xbf16>
    %145 = vector.shape_cast %144 : vector<2x8x8x128xbf16> to vector<128x128xbf16>
    %c3_174 = arith.constant 3 : index
    %c0_175 = arith.constant 0 : index
    %c0_176 = arith.constant 0 : index
    %146 = vector.load %arg10[%c3_174, %c0_175, %c0_176] : memref<9x128x128xbf16, #tpu.memory_space<vmem>>, vector<1x128x128xbf16>
    %147 = vector.shape_cast %146 : vector<1x128x128xbf16> to vector<128x128xbf16>
    %cst_177 = arith.constant dense<0.000000e+00> : vector<128x128xf32>
    %148 = tpu.matmul %145, %147, %cst_177 {dimension_numbers = #tpu.dot_dimension_numbers<[1], [0], [0], [1], [0, 0, 1, 1], [], []>} : vector<128x128xbf16>, vector<128x128xbf16>, vector<128x128xf32> -> vector<128x128xf32>
    %149 = arith.addf %143, %148 : vector<128x128xf32>
    %c0_178 = arith.constant 0 : index
    %c1_179 = arith.constant 1 : index
    %c1_180 = arith.constant 1 : index
    %c0_181 = arith.constant 0 : index
    %150 = vector.load %arg14[%c0_178, %c1_179, %c1_180, %c0_181] : memref<2x10x10x128xbf16, #tpu.memory_space<vmem>>, vector<2x8x8x128xbf16>
    %151 = vector.shape_cast %150 : vector<2x8x8x128xbf16> to vector<128x128xbf16>
    %c4_182 = arith.constant 4 : index
    %c0_183 = arith.constant 0 : index
    %c0_184 = arith.constant 0 : index
    %152 = vector.load %arg10[%c4_182, %c0_183, %c0_184] : memref<9x128x128xbf16, #tpu.memory_space<vmem>>, vector<1x128x128xbf16>
    %153 = vector.shape_cast %152 : vector<1x128x128xbf16> to vector<128x128xbf16>
    %cst_185 = arith.constant dense<0.000000e+00> : vector<128x128xf32>
    %154 = tpu.matmul %151, %153, %cst_185 {dimension_numbers = #tpu.dot_dimension_numbers<[1], [0], [0], [1], [0, 0, 1, 1], [], []>} : vector<128x128xbf16>, vector<128x128xbf16>, vector<128x128xf32> -> vector<128x128xf32>
    %155 = arith.addf %149, %154 : vector<128x128xf32>
    %c0_186 = arith.constant 0 : index
    %c1_187 = arith.constant 1 : index
    %c2_188 = arith.constant 2 : index
    %c0_189 = arith.constant 0 : index
    %156 = vector.load %arg14[%c0_186, %c1_187, %c2_188, %c0_189] : memref<2x10x10x128xbf16, #tpu.memory_space<vmem>>, vector<2x8x8x128xbf16>
    %157 = vector.shape_cast %156 : vector<2x8x8x128xbf16> to vector<128x128xbf16>
    %c5_190 = arith.constant 5 : index
    %c0_191 = arith.constant 0 : index
    %c0_192 = arith.constant 0 : index
    %158 = vector.load %arg10[%c5_190, %c0_191, %c0_192] : memref<9x128x128xbf16, #tpu.memory_space<vmem>>, vector<1x128x128xbf16>
    %159 = vector.shape_cast %158 : vector<1x128x128xbf16> to vector<128x128xbf16>
    %cst_193 = arith.constant dense<0.000000e+00> : vector<128x128xf32>
    %160 = tpu.matmul %157, %159, %cst_193 {dimension_numbers = #tpu.dot_dimension_numbers<[1], [0], [0], [1], [0, 0, 1, 1], [], []>} : vector<128x128xbf16>, vector<128x128xbf16>, vector<128x128xf32> -> vector<128x128xf32>
    %161 = arith.addf %155, %160 : vector<128x128xf32>
    %c0_194 = arith.constant 0 : index
    %c2_195 = arith.constant 2 : index
    %c0_196 = arith.constant 0 : index
    %c0_197 = arith.constant 0 : index
    %162 = vector.load %arg14[%c0_194, %c2_195, %c0_196, %c0_197] : memref<2x10x10x128xbf16, #tpu.memory_space<vmem>>, vector<2x8x8x128xbf16>
    %163 = vector.shape_cast %162 : vector<2x8x8x128xbf16> to vector<128x128xbf16>
    %c6_198 = arith.constant 6 : index
    %c0_199 = arith.constant 0 : index
    %c0_200 = arith.constant 0 : index
    %164 = vector.load %arg10[%c6_198, %c0_199, %c0_200] : memref<9x128x128xbf16, #tpu.memory_space<vmem>>, vector<1x128x128xbf16>
    %165 = vector.shape_cast %164 : vector<1x128x128xbf16> to vector<128x128xbf16>
    %cst_201 = arith.constant dense<0.000000e+00> : vector<128x128xf32>
    %166 = tpu.matmul %163, %165, %cst_201 {dimension_numbers = #tpu.dot_dimension_numbers<[1], [0], [0], [1], [0, 0, 1, 1], [], []>} : vector<128x128xbf16>, vector<128x128xbf16>, vector<128x128xf32> -> vector<128x128xf32>
    %167 = arith.addf %161, %166 : vector<128x128xf32>
    %c0_202 = arith.constant 0 : index
    %c2_203 = arith.constant 2 : index
    %c1_204 = arith.constant 1 : index
    %c0_205 = arith.constant 0 : index
    %168 = vector.load %arg14[%c0_202, %c2_203, %c1_204, %c0_205] : memref<2x10x10x128xbf16, #tpu.memory_space<vmem>>, vector<2x8x8x128xbf16>
    %169 = vector.shape_cast %168 : vector<2x8x8x128xbf16> to vector<128x128xbf16>
    %c7_206 = arith.constant 7 : index
    %c0_207 = arith.constant 0 : index
    %c0_208 = arith.constant 0 : index
    %170 = vector.load %arg10[%c7_206, %c0_207, %c0_208] : memref<9x128x128xbf16, #tpu.memory_space<vmem>>, vector<1x128x128xbf16>
    %171 = vector.shape_cast %170 : vector<1x128x128xbf16> to vector<128x128xbf16>
    %cst_209 = arith.constant dense<0.000000e+00> : vector<128x128xf32>
    %172 = tpu.matmul %169, %171, %cst_209 {dimension_numbers = #tpu.dot_dimension_numbers<[1], [0], [0], [1], [0, 0, 1, 1], [], []>} : vector<128x128xbf16>, vector<128x128xbf16>, vector<128x128xf32> -> vector<128x128xf32>
    %173 = arith.addf %167, %172 : vector<128x128xf32>
    %c0_210 = arith.constant 0 : index
    %c2_211 = arith.constant 2 : index
    %c2_212 = arith.constant 2 : index
    %c0_213 = arith.constant 0 : index
    %174 = vector.load %arg14[%c0_210, %c2_211, %c2_212, %c0_213] : memref<2x10x10x128xbf16, #tpu.memory_space<vmem>>, vector<2x8x8x128xbf16>
    %175 = vector.shape_cast %174 : vector<2x8x8x128xbf16> to vector<128x128xbf16>
    %c8_214 = arith.constant 8 : index
    %c0_215 = arith.constant 0 : index
    %c0_216 = arith.constant 0 : index
    %176 = vector.load %arg10[%c8_214, %c0_215, %c0_216] : memref<9x128x128xbf16, #tpu.memory_space<vmem>>, vector<1x128x128xbf16>
    %177 = vector.shape_cast %176 : vector<1x128x128xbf16> to vector<128x128xbf16>
    %cst_217 = arith.constant dense<0.000000e+00> : vector<128x128xf32>
    %178 = tpu.matmul %175, %177, %cst_217 {dimension_numbers = #tpu.dot_dimension_numbers<[1], [0], [0], [1], [0, 0, 1, 1], [], []>} : vector<128x128xbf16>, vector<128x128xbf16>, vector<128x128xf32> -> vector<128x128xf32>
    %179 = arith.addf %173, %178 : vector<128x128xf32>
    %180 = vector.shape_cast %179 : vector<128x128xf32> to vector<2x64x128xf32>
    %c0_218 = arith.constant 0 : index
    %c0_219 = arith.constant 0 : index
    %c0_220 = arith.constant 0 : index
    %181 = vector.load %arg12[%c0_218, %c0_219, %c0_220] : memref<2x64x128xf32, #tpu.memory_space<vmem>>, vector<2x64x128xf32>
    tpu.vector_store %arg12[%c0_218, %c0_219, %c0_220], %180 {strides = array<i32>} : memref<2x64x128xf32, #tpu.memory_space<vmem>>, vector<2x64x128xf32>,
    return
  }
  func.func @transform_0(%arg0: i32) -> (i32, i32, i32) {
    %c0_i32 = arith.constant 0 : i32
    %c0_i32_0 = arith.constant 0 : i32
    %c0_i32_1 = arith.constant 0 : i32
    return %arg0, %c0_i32, %c0_i32_0 : i32, i32, i32
  }
  func.func @transform_1(%arg0: i32) -> (i32, i32) {
    %c0_i32 = arith.constant 0 : i32
    %c0_i32_0 = arith.constant 0 : i32
    %c0_i32_1 = arith.constant 0 : i32
    return %c0_i32, %c0_i32_0 : i32, i32
  }
  func.func @transform_2(%arg0: i32) -> (i32, i32) {
    %c0_i32 = arith.constant 0 : i32
    %c0_i32_0 = arith.constant 0 : i32
    %c0_i32_1 = arith.constant 0 : i32
    return %c0_i32, %c0_i32_0 : i32, i32
  }
  func.func @transform_3(%arg0: i32) -> (i32, i32) {
    %c0_i32 = arith.constant 0 : i32
    %c0_i32_0 = arith.constant 0 : i32
    %c0_i32_1 = arith.constant 0 : i32
    return %c0_i32, %c0_i32_0 : i32, i32
  }
  func.func @transform_4(%arg0: i32) -> (i32, i32) {
    %c0_i32 = arith.constant 0 : i32
    %c0_i32_0 = arith.constant 0 : i32
    %c0_i32_1 = arith.constant 0 : i32
    return %c0_i32, %c0_i32_0 : i32, i32
  }
  func.func @transform_5(%arg0: i32) -> (i32, i32) {
    %c0_i32 = arith.constant 0 : i32
    %c0_i32_0 = arith.constant 0 : i32
    %c0_i32_1 = arith.constant 0 : i32
    return %c0_i32, %c0_i32_0 : i32, i32
  }
  func.func @transform_6(%arg0: i32) -> (i32, i32) {
    %c0_i32 = arith.constant 0 : i32
    %c0_i32_0 = arith.constant 0 : i32
    %c0_i32_1 = arith.constant 0 : i32
    return %c0_i32, %c0_i32_0 : i32, i32
  }
  func.func @transform_7(%arg0: i32) -> (i32, i32) {
    %c0_i32 = arith.constant 0 : i32
    %c0_i32_0 = arith.constant 0 : i32
    %c0_i32_1 = arith.constant 0 : i32
    return %c0_i32, %c0_i32_0 : i32, i32
  }
  func.func @transform_8(%arg0: i32) -> (i32, i32, i32) {
    %c0_i32 = arith.constant 0 : i32
    %c0_i32_0 = arith.constant 0 : i32
    %c0_i32_1 = arith.constant 0 : i32
    %c0_i32_2 = arith.constant 0 : i32
    return %c0_i32, %c0_i32_0, %c0_i32_1 : i32, i32, i32
  }
  func.func @transform_9(%arg0: i32) -> (i32, i32, i32) {
    %c0_i32 = arith.constant 0 : i32
    %c0_i32_0 = arith.constant 0 : i32
    %c0_i32_1 = arith.constant 0 : i32
    %c0_i32_2 = arith.constant 0 : i32
    return %c0_i32, %c0_i32_0, %c0_i32_1 : i32, i32, i32
  }
  func.func @transform_10(%arg0: i32) -> (i32, i32) {
    %c0_i32 = arith.constant 0 : i32
    %c0_i32_0 = arith.constant 0 : i32
    %c0_i32_1 = arith.constant 0 : i32
    return %c0_i32, %c0_i32_0 : i32, i32
  }
  func.func @transform_11(%arg0: i32) -> (i32, i32, i32) {
    %c0_i32 = arith.constant 0 : i32
    %c0_i32_0 = arith.constant 0 : i32
    %c0_i32_1 = arith.constant 0 : i32
    return %arg0, %c0_i32, %c0_i32_0 : i32, i32, i32
  }
}

</mosaic_0001>

<bundles_post_ra>
// kernel: tpu_custom_call.1
= control target key start
LH: loop header
LB: loop body
LE: loop exit
PB: predicated region body
PF: predicated region fallthrough
CT: control target
= control target key end

     0   :  { %16 = vsyncpa [#allocation5], 0  ;;  %s11916_s0 = inlined_call_operand.hbm [shape: f32[2,64,64], index: 0, kind: input, shape index: {}]   ;;  %s11917_s1 = inlined_call_operand.vmem [shape: f32[2,64], index: 1, kind: input, shape index: {}]   ;;  %s11918_s2 = inlined_call_operand.vmem [shape: f32[2,16], index: 2, kind: input, shape index: {}]   ;;  %s11919_s3 = inlined_call_operand.vmem [shape: f32[2,64], index: 3, kind: input, shape index: {}]   ;;  %s11920_s4 = inlined_call_operand.vmem [shape: f32[2,128], index: 4, kind: input, shape index: {}]   ;;  %s11921_s5 = inlined_call_operand.vmem [shape: f32[2,64], index: 5, kind: input, shape index: {}]   ;;  %s11922_s6 = inlined_call_operand.vmem [shape: bf16[64,16], index: 6, kind: input, shape index: {}]   ;;  %s11923_s7 = inlined_call_operand.vmem [shape: bf16[16,64], index: 7, kind: input, shape index: {}]   ;;  %s11924_s8 = inlined_call_operand.hbm [shape: bf16[9,64,128], index: 8, kind: input, shape index: {}]   ;;  %s11925_s9 = inlined_call_operand.hbm [shape: bf16[9,128,128], index: 9, kind: input, shape index: {}]   ;;  %s11926_s10 = inlined_call_operand.vmem [shape: bf16[64,128], index: 10, kind: input, shape index: {}]   ;;  %s11927_s11 = inlined_call_operand.hbm [shape: f32[2,64,128], index: 11, kind: output, shape index: {}]  }
   0x1   :  { %17 = vsyncpa [#allocation8], 0 }
   0x2   :  { %18 = vsyncpa [#allocation6], 0  ;;  %s9371_s17 = smov [#allocation7]  }
   0x3   :  { %s50_s18 = sshll.u32 %s9371_s17, 4  ;;  %s51_s18 = int_to_ptr.vmem [resolvable:$true] %s50_s18 }
   0x4   :  { %s9293_s19 = scalar_lea.vmem %s51_s18, 4608  ;;  %p9298_p1 = scmp.lt.s32.totalorder %s51_s18, %s51_s18 }
   0x5   :  { %p9294_p0 = scmp.ne.s32.totalorder %s51_s18, %s9293_s19  ;;  %p9299_p2 = scmp.lt.s32.totalorder %s9293_s19, %s9293_s19 }
   0x7   :  { %p9300_p3 = por %p9299_p2, %p9298_p1 }
   0x9   :  { %p9301_p4 = pnand %p9300_p3, %p9294_p0 }
   0xb   :  { %9304 = shalt.err (!%p9301_p4)
}
   0xc   :  { %s9372_s20 = smov 64   ;;  %s9373_s21 = smov 4  }
   0xd   :  { %56 = dma.hbm_to_vmem [thread:$0]  %s11924_s8, 4608, %s51_s18, [#allocation8], %s9372_s20, %s9372_s20, %s9373_s21  }
   0xe   :  { %s9374_s24 = smov [#allocation4]  }
   0xf   :  { %s24_s25 = sshll.u32 %s9374_s24, 4  ;;  %s25_s25 = int_to_ptr.vmem [resolvable:$true] %s24_s25 }
  0x10   :  { %s9313_s26 = scalar_lea.vmem %s25_s25, 2048  ;;  %p9318_p6 = scmp.lt.s32.totalorder %s25_s25, %s25_s25 }
  0x11   :  { %p9314_p5 = scmp.ne.s32.totalorder %s25_s25, %s9313_s26  ;;  %p9319_p7 = scmp.lt.s32.totalorder %s9313_s26, %s9313_s26 }
  0x13   :  { %p9320_p8 = por %p9319_p7, %p9318_p6 }
  0x15   :  { %p9321_p9 = pnand %p9320_p8, %p9314_p5 }
  0x17   :  { %9324 = shalt.err (!%p9321_p9)
}
  0x18   :  { %s9375_s27 = smov 128   ;;  %s9376_s28 = smov 8  }
  0x19   :  { %30 = dma.hbm_to_vmem [thread:$0]  %s11916_s0, 2048, %s25_s25, [#allocation5], %s9375_s27, %s9375_s27, %s9376_s28  }
  0x1a   :  { %s9377_s8 = smov [#allocation9]  }
  0x1b   :  { %s62_s12 = sshll.u32 %s9377_s8, 4  ;;  %s63_s12 = int_to_ptr.vmem [resolvable:$true] %s62_s12 }
  0x1c   :  { %s9333_s13 = scalar_lea.vmem %s63_s12, 9216  ;;  %p9338_p11 = scmp.lt.s32.totalorder %s63_s12, %s63_s12 }
  0x1d   :  { %p9334_p10 = scmp.ne.s32.totalorder %s63_s12, %s9333_s13  ;;  %p9339_p12 = scmp.lt.s32.totalorder %s9333_s13, %s9333_s13 }
  0x1f   :  { %p9340_p13 = por %p9339_p12, %p9338_p11 }
  0x21   :  { %p9341_p0 = pnand %p9340_p13, %p9334_p10 }
  0x23   :  { %9344 = shalt.err (!%p9341_p0)
}
  0x24   :  { %68 = dma.hbm_to_vmem [thread:$0]  %s11925_s9, 9216, %s63_s12, [#allocation8], %s9372_s20, %s9372_s20, %s9373_s21  }
  0x25   :  { %9365 = dma.done.wait [#allocation5], 2048  }
  0x26   :  { %9366 = vsyncadd [#allocation5], 4294965248 }
  0x27   :  { %9367 = dma.done.wait [#allocation8], 13824  }
  0x28   :  { %9368 = vsyncadd [#allocation8], 4294953472  ;;  %v9101_v0 = vld [vmem:[%s11922_s6 + $0x18] sm:$0xff]   ;;  %v9102_v1 = vld [vmem:[%s11922_s6 + $0x10] sm:$0xff]   ;;  %vm195_vm0 = vcmask 523264   ;;  %vm391_vm1 = vcmask 130048  }
  0x29   :  { %8506 = vmatprep.subr.bf16.mxu0 %v9101_v0  ;;  %v9103_v2 = vld [vmem:[%s11922_s6 + $0x8] sm:$0xff]   ;;  %v81_v3 = vld [vmem:[#allocation4] sm:$0xff]  ;;  %v83_v9 = vld [vmem:[#allocation4 + $0x10] sm:$0xff]  ;;  %vm647_vm2 = vcmask 516096   ;;  %vm658_vm3 = vsmask.f32 256 }
  0x2a   :  { %8507 = vmatpush3.bf16.msra.mxu0 %v9101_v0  ;;  %v82_v4 = vld [vmem:[#allocation4 + $0x8] sm:$0xff]  ;;  %v9464_v5 = vld [vmem:[%s11917_s1] ss:$0 sm:$0xff]  ;;  %v9471_v8 = vld [vmem:[%s11917_s1 + $0x1] ss:$0 sm:$0xff]  ;;  %vm645_vm7 = vcmask 519168  }
  0x2b   :  { %8508 = vmatprep.subr.bf16.mxu0 %v9102_v1  ;;  %v102_v6 = vmul.f32 %v9464_v5, %v81_v3  ;;  %v103_v7 = vmul.f32 %v9464_v5, %v82_v4  ;;  %v84_v10 = vld [vmem:[#allocation4 + $0x18] sm:$0xff]  ;;  %v104_v11 = vmul.f32 %v9464_v5, %v83_v9  ;;  %v85_v12 = vld [vmem:[#allocation4 + $0x20] sm:$0xff]  ;;  %v86_v16 = vld [vmem:[#allocation4 + $0x28] sm:$0xff]  ;;  %vm708_vm4 = vsmask.f32 7938 }
  0x2c   :  { %v105_v15 = vmul.f32 %v9464_v5, %v84_v10  ;;  %v9104_v17 = vld [vmem:[%s11922_s6] sm:$0xff]   ;;  %v106_v19 = vmul.f32 %v9464_v5, %v85_v12  ;;  %v107_v20 = vmul.f32 %v9464_v5, %v86_v16  ;;  %v87_v21 = vld [vmem:[#allocation4 + $0x30] sm:$0xff]  ;;  %v88_v22 = vld [vmem:[#allocation4 + $0x38] sm:$0xff]  ;;  %vm1104_vm8 = vsmask.f32 3328 }
  0x2d   :  { %v123_v13 = vadd.f32 %v9471_v8, %v102_v6  ;;  %v124_v14 = vadd.f32 %v9471_v8, %v103_v7  ;;  %v125_v18 = vadd.f32 %v9471_v8, %v104_v11  ;;  %v89_v26 = vld [vmem:[#allocation4 + $0x40] sm:$0xff]  ;;  %v90_v27 = vld [vmem:[#allocation4 + $0x48] sm:$0xff]  ;;  %v91_v28 = vld [vmem:[#allocation4 + $0x50] sm:$0xff]  ;;  %v108_v36 = vmul.f32 %v9464_v5, %v87_v21 }
  0x2e   :  { %8509 = vmatpush3.bf16.msra.mxu0 %v9102_v1  ;;  %v126_v25 = vadd.f32 %v9471_v8, %v105_v15  ;;  %v127_v30 = vadd.f32 %v9471_v8, %v106_v19  ;;  %v128_v31 = vadd.f32 %v9471_v8, %v107_v20  ;;  %v92_v32 = vld [vmem:[#allocation4 + $0x58] sm:$0xff]  ;;  %v93_v33 = vld [vmem:[#allocation4 + $0x60] sm:$0xff]  ;;  %v94_v37 = vld [vmem:[#allocation4 + $0x68] sm:$0xff]  ;;  %v109_v40 = vmul.f32 %v9464_v5, %v88_v22 }
  0x2f   :  { %8510 = vmatprep.subr.bf16.mxu0 %v9103_v2  ;;  %v139_v23 = vmax.f32 %v123_v13, 0.0  ;;  %v140_v24 = vmax.f32 %v124_v14, 0.0  ;;  %v141_v29 = vmax.f32 %v125_v18, 0.0  ;;  %v110_v41 = vmul.f32 %v9464_v5, %v89_v26  ;;  %v95_v42 = vld [vmem:[#allocation4 + $0x70] sm:$0xff]  ;;  %v96_v53 = vld [vmem:[#allocation4 + $0x78] sm:$0xff]  ;;  %vm9569_vm5 = vmand %vm647_vm2, %vm658_vm3 }
  0x30   :  { %v142_v35 = vmax.f32 %v126_v25, 0.0  ;;  %v143_v38 = vmax.f32 %v127_v30, 0.0  ;;  %v144_v39 = vmax.f32 %v128_v31, 0.0  ;;  %v111_v43 = vmul.f32 %v9464_v5, %v90_v27  ;;  %v9520_v16 = vld [vmem:[%s11918_s2] ss:$0 sm:$0xff]  ;;  %vm9577_vm6 = vmand %vm647_vm2, %vm708_vm4 }
  0x31   :  { %v155_v34 = vpack.c.bf16 %v140_v24, %v139_v23  ;;  %v112_v44 = vmul.f32 %v9464_v5, %v91_v28  ;;  %v129_v46 = vadd.f32 %v9471_v8, %v108_v36  ;;  %v130_v47 = vadd.f32 %v9471_v8, %v109_v40  ;;  %v9527_v21 = vld [vmem:[%s11918_s2 + $0x1] ss:$0 sm:$0xff]  ;;  %vm9724_vm14 = vmand %vm645_vm7, %vm708_vm4 }
  0x32   :  { %8511 = vmatpush3.bf16.msra.mxu0 %v9103_v2  ;;  %v156_v45 = vpack.c.bf16 %v142_v35, %v141_v29  ;;  %v113_v48 = vmul.f32 %v9464_v5, %v92_v32  ;;  %v157_v49 = vpack.c.bf16 %v144_v39, %v143_v38  ;;  %v131_v50 = vadd.f32 %v9471_v8, %v110_v41 }
  0x33   :  { %8512 = vmatprep.subr.bf16.mxu0 %v9104_v17  ;;  %8514 = vmatprep.mubr.msk.bf16.mxu0 %vm195_vm0, %v155_v34  ;;  %v132_v51 = vadd.f32 %v9471_v8, %v111_v43  ;;  %v114_v52 = vmul.f32 %v9464_v5, %v93_v33  ;;  %v133_v54 = vadd.f32 %v9471_v8, %v112_v44  ;;  %v145_v59 = vmax.f32 %v129_v46, 0.0 }
  0x34   :  { %v134_v55 = vadd.f32 %v9471_v8, %v113_v48  ;;  %v115_v56 = vmul.f32 %v9464_v5, %v94_v37  ;;  %v116_v58 = vmul.f32 %v9464_v5, %v95_v42  ;;  %v146_v60 = vmax.f32 %v130_v47, 0.0 }
  0x35   :  { %v135_v57 = vadd.f32 %v9471_v8, %v114_v52  ;;  %v117_v62 = vmul.f32 %v9464_v5, %v96_v53  ;;  %v147_v63 = vmax.f32 %v131_v50, 0.0  ;;  %v148_v0 = vmax.f32 %v132_v51, 0.0 }
  0x36   :  { %8513 = vmatpush3.bf16.msra.mxu0 %v9104_v17  ;;  %v136_v61 = vadd.f32 %v9471_v8, %v115_v56  ;;  %v137_v1 = vadd.f32 %v9471_v8, %v116_v58  ;;  %v149_v2 = vmax.f32 %v133_v54, 0.0  ;;  %v150_v3 = vmax.f32 %v134_v55, 0.0 }
  0x37   :  { %v138_v4 = vadd.f32 %v9471_v8, %v117_v62  ;;  %v151_v6 = vmax.f32 %v135_v57, 0.0  ;;  %v158_v9 = vpack.c.bf16 %v146_v60, %v145_v59  ;;  %v159_v12 = vpack.c.bf16 %v148_v0, %v147_v63  ;;  %v9105_v8 = vld [vmem:[%s11923_s7] sm:$0xff]  }
  0x38   :  { %v152_v7 = vmax.f32 %v136_v61, 0.0  ;;  %v153_v10 = vmax.f32 %v137_v1, 0.0  ;;  %v160_v5 = vpack.c.bf16 %v150_v3, %v149_v2  ;;  %8530 = vmatprep.subr.bf16.mxu1 %v9105_v8  ;;  %vm1105_vm9 = vsmask.f32 7440 }
  0x39   :  { %8515 = vmatmul.mubr.msk.bf16.vlgmr.msra.gmra.mxu0 %vm195_vm0, %v156_v45  ;;  %v154_v11 = vmax.f32 %v138_v4, 0.0  ;;  %8531 = vmatpush3.bf16.msra.mxu1 %v9105_v8  ;;  %vm1742_vm10 = vcmask 1042432   ;;  %vm1743_vm11 = vcmask 1046532   ;;  %vm9693_vm12 = vmor %vm1104_vm8, %vm1105_vm9  ;;  %vm4036_vm15 = vcmask 1040384  }
  0x3a   :  { %8518 = vmatprep.mubr.msk.bf16.mxu0 %vm195_vm0, %v157_v49  ;;  %v161_v13 = vpack.c.bf16 %v152_v7, %v151_v6  ;;  %vm9700_vm13 = vmor %vm1742_vm10, %vm1743_vm11 }
  0x3b   :  { %v162_v14 = vpack.c.bf16 %v154_v11, %v153_v10 }
  0x41   :  { %8519 = vmatmul.mubr.msk.bf16.gmra.mxu0 %vm195_vm0, %v158_v9 }
  0x42   :  { %8522 = vmatprep.mubr.msk.bf16.mxu0 %vm195_vm0, %v159_v12 }
  0x49   :  { %8523 = vmatmul.mubr.msk.bf16.gmra.mxu0 %vm195_vm0, %v160_v5 }
  0x4a   :  { %8526 = vmatprep.mubr.msk.bf16.mxu0 %vm195_vm0, %v161_v13 }
  0x51   :  { %8527 = vmatmul.mubr.msk.bf16.gmra.mxu0 %vm195_vm0, %v162_v14 }
  0xf9   :  { %v8516_v15 = vpop.f32.mrf.mxu0 }
  0xfa   :  { %v324_v19 = vmul.f32 %v8516_v15, %v9520_v16 }
  0xfb   :  { %v254_v17 = vpop.f32.mrf.mxu0 }
  0xfc   :  { %v322_v18 = vmul.f32 %v9520_v16, %v254_v17  ;;  %v345_v27 = vadd.f32 %v9527_v21, %v324_v19 }
  0xfd   :  { %v8517_v20 = vpop.f32.mrf.mxu0 }
  0xfe   :  { %v325_v22 = vmul.f32 %v8517_v20, %v9520_v16  ;;  %v343_v24 = vadd.f32 %v9527_v21, %v322_v18  ;;  %v361_v35 = vmax.f32 %v345_v27, 0.0  ;;  %v716_v27 = vld [vmem:[#allocation2 + $0x1c] sm:$0x1] }
  0xff   :  { %v257_v23 = vpop.f32.mrf.mxu0 }
 0x100   :  { %v346_v25 = vadd.f32 %v9527_v21, %v325_v22  ;;  %v323_v26 = vmul.f32 %v9520_v16, %v257_v23  ;;  %v359_v32 = vmax.f32 %v343_v24, 0.0 }
 0x101   :  { %v8520_v28 = vpop.f32.mrf.mxu0 }
 0x102   :  { %v344_v29 = vadd.f32 %v9527_v21, %v323_v26  ;;  %v362_v30 = vmax.f32 %v346_v25, 0.0  ;;  %v328_v36 = vmul.f32 %v8520_v28, %v9520_v16 }
 0x103   :  { %v270_v31 = vpop.f32.mrf.mxu0 }
 0x104   :  { %v326_v33 = vmul.f32 %v9520_v16, %v270_v31  ;;  %v360_v34 = vmax.f32 %v344_v29, 0.0  ;;  %v376_v40 = vpack.c.bf16 %v362_v30, %v361_v35  ;;  %v349_v45 = vadd.f32 %v9527_v21, %v328_v36  ;;  %v660_v31 = vld [vmem:[#allocation2 + $0x8] sm:$0x1]  ;;  %v669_v35 = vld [vmem:[#allocation2 + $0x20] sm:$0x1] }
 0x105   :  { %v8521_v37 = vpop.f32.mrf.mxu0  ;;  %v717_v30 = vsel %vm9577_vm6, 0, %v716_v27  ;;  %v719_v36 = vld [vmem:[#allocation2 + $0x24] sm:$0x1] }
 0x106   :  { %v329_v38 = vmul.f32 %v8521_v37, %v9520_v16  ;;  %v375_v39 = vpack.c.bf16 %v360_v34, %v359_v32  ;;  %v347_v42 = vadd.f32 %v9527_v21, %v326_v33  ;;  %v365_v53 = vmax.f32 %v349_v45, 0.0  ;;  %v710_v32 = vld [vmem:[#allocation2 + $0xc] sm:$0x1]  ;;  %718 = vst [vmem:[#allocation2 + $0x1c] sm:$0x1] %v717_v30 }
 0x107   :  { %v273_v41 = vpop.f32.mrf.mxu0  ;;  %v661_v33 = vsel %vm9569_vm5, 0, %v660_v31  ;;  %v711_v34 = vsel %vm9577_vm6, 0, %v710_v32  ;;  %v670_v37 = vsel %vm9569_vm5, 0, %v669_v35  ;;  %v755_v31 = vld [vmem:[#allocation2 + $0x94] sm:$0x1]  ;;  %v9114_v35 = vld [vmem:[#allocation7 + $0x20] sm:$0xff]  }
 0x108   :  { %v350_v43 = vadd.f32 %v9527_v21, %v329_v38  ;;  %v327_v44 = vmul.f32 %v9520_v16, %v273_v41  ;;  %8532 = vmatprep.mubr.msk.bf16.mxu1 %vm391_vm1, %v375_v39  ;;  %v363_v50 = vmax.f32 %v347_v42, 0.0  ;;  %662 = vst [vmem:[#allocation2 + $0x8] sm:$0x1] %v661_v33  ;;  %712 = vst [vmem:[#allocation2 + $0xc] sm:$0x1] %v711_v34  ;;  %v720_v38 = vsel %vm9577_vm6, 0, %v719_v36 }
 0x109   :  { %v8524_v46 = vpop.f32.mrf.mxu0  ;;  %8533 = vmatmul.mubr.msk.bf16.vlgmr.msra.gmra.mxu1 %vm391_vm1, %v376_v40  ;;  %671 = vst [vmem:[#allocation2 + $0x20] sm:$0x1] %v670_v37  ;;  %721 = vst [vmem:[#allocation2 + $0x24] sm:$0x1] %v720_v38  ;;  %v663_v39 = vld [vmem:[#allocation2 + $0x10] sm:$0x1] }
 0x10a   :  { %v348_v47 = vadd.f32 %v9527_v21, %v327_v44  ;;  %v366_v48 = vmax.f32 %v350_v43, 0.0  ;;  %v332_v54 = vmul.f32 %v8524_v46, %v9520_v16  ;;  %v713_v40 = vld [vmem:[#allocation2 + $0x14] sm:$0x1]  ;;  %v664_v41 = vsel %vm9569_vm5, 0, %v663_v39  ;;  %v678_v43 = vld [vmem:[#allocation2 + $0x38] sm:$0x1] }
 0x10b   :  { %v286_v49 = vpop.f32.mrf.mxu0  ;;  %v714_v42 = vsel %vm9577_vm6, 0, %v713_v40  ;;  %665 = vst [vmem:[#allocation2 + $0x10] sm:$0x1] %v664_v41  ;;  %v728_v44 = vld [vmem:[#allocation2 + $0x3c] sm:$0x1]  ;;  %v679_v45 = vsel %vm9569_vm5, 0, %v678_v43 }
 0x10c   :  { %v364_v51 = vmax.f32 %v348_v47, 0.0  ;;  %v330_v52 = vmul.f32 %v9520_v16, %v286_v49  ;;  %v378_v58 = vpack.c.bf16 %v366_v48, %v365_v53  ;;  %v353_v63 = vadd.f32 %v9527_v21, %v332_v54  ;;  %715 = vst [vmem:[#allocation2 + $0x14] sm:$0x1] %v714_v42  ;;  %680 = vst [vmem:[#allocation2 + $0x38] sm:$0x1] %v679_v45  ;;  %v9651_v38 = vld [vmem:[#allocation7 + $0x58] sm:$0xff]  }
 0x10d   :  { %v8525_v55 = vpop.f32.mrf.mxu0  ;;  %v729_v46 = vsel %vm9577_vm6, 0, %v728_v44  ;;  %v672_v47 = vld [vmem:[#allocation2 + $0x28] sm:$0x1]  ;;  %v722_v48 = vld [vmem:[#allocation2 + $0x2c] sm:$0x1]  ;;  %v756_v32 = vsel %vm9577_vm6, 0, %v755_v31 }
 0x10e   :  { %v377_v56 = vpack.c.bf16 %v364_v51, %v363_v50  ;;  %v333_v57 = vmul.f32 %v8525_v55, %v9520_v16  ;;  %v351_v60 = vadd.f32 %v9527_v21, %v330_v52  ;;  %v369_v9 = vmax.f32 %v353_v63, 0.0  ;;  %730 = vst [vmem:[#allocation2 + $0x3c] sm:$0x1] %v729_v46  ;;  %v9108_v51 = vld [vmem:[#allocation7 + $0x18] sm:$0xff]   ;;  %v681_v52 = vld [vmem:[#allocation2 + $0x40] sm:$0x1] }
 0x10f   :  { %v289_v59 = vpop.f32.mrf.mxu0  ;;  %v673_v49 = vsel %vm9569_vm5, 0, %v672_v47  ;;  %v723_v50 = vsel %vm9577_vm6, 0, %v722_v48  ;;  %v682_v53 = vsel %vm9569_vm5, 0, %v681_v52  ;;  %v731_v54 = vld [vmem:[#allocation2 + $0x44] sm:$0x1]  ;;  %8572 = vmatprep.subr.bf16.mxu0 %v9108_v51  ;;  %v9654_v39 = vld [vmem:[#allocation7 + $0x78] sm:$0xff]  }
 0x110   :  { %v354_v61 = vadd.f32 %v9527_v21, %v333_v57  ;;  %v331_v62 = vmul.f32 %v9520_v16, %v289_v59  ;;  %8536 = vmatprep.mubr.msk.bf16.mxu1 %vm391_vm1, %v377_v56  ;;  %v367_v4 = vmax.f32 %v351_v60, 0.0  ;;  %674 = vst [vmem:[#allocation2 + $0x28] sm:$0x1] %v673_v49  ;;  %724 = vst [vmem:[#allocation2 + $0x2c] sm:$0x1] %v723_v50  ;;  %v732_v55 = vsel %vm9577_vm6, 0, %v731_v54 }
 0x111   :  { %v8528_v0 = vpop.f32.mrf.mxu0  ;;  %8537 = vmatmul.mubr.msk.bf16.gmra.mxu1 %vm391_vm1, %v378_v58  ;;  %683 = vst [vmem:[#allocation2 + $0x40] sm:$0x1] %v682_v53  ;;  %8573 = vmatpush3.bf16.msra.mxu0 %v9108_v51  ;;  %733 = vst [vmem:[#allocation2 + $0x44] sm:$0x1] %v732_v55  ;;  %v675_v56 = vld [vmem:[#allocation2 + $0x30] sm:$0x1] }
 0x112   :  { %v352_v1 = vadd.f32 %v9527_v21, %v331_v62  ;;  %v370_v2 = vmax.f32 %v354_v61, 0.0  ;;  %v336_v10 = vmul.f32 %v8528_v0, %v9520_v16  ;;  %v725_v57 = vld [vmem:[#allocation2 + $0x34] sm:$0x1]  ;;  %v9106_v58 = vld [vmem:[#allocation7 + $0x38] sm:$0xff]   ;;  %v676_v59 = vsel %vm9569_vm5, 0, %v675_v56 }
 0x113   :  { %v302_v3 = vpop.f32.mrf.mxu0  ;;  %v726_v60 = vsel %vm9577_vm6, 0, %v725_v57  ;;  %v9109_v61 = vld [vmem:[#allocation7 + $0x10] sm:$0xff]   ;;  %677 = vst [vmem:[#allocation2 + $0x30] sm:$0x1] %v676_v59  ;;  %v690_v62 = vld [vmem:[#allocation2 + $0x68] sm:$0x1]  ;;  %8548 = vmatprep.subr.bf16.mxu1 %v9106_v58 }
 0x114   :  { %v368_v6 = vmax.f32 %v352_v1, 0.0  ;;  %v334_v7 = vmul.f32 %v9520_v16, %v302_v3  ;;  %v380_v13 = vpack.c.bf16 %v370_v2, %v369_v9  ;;  %v357_v18 = vadd.f32 %v9527_v21, %v336_v10  ;;  %727 = vst [vmem:[#allocation2 + $0x34] sm:$0x1] %v726_v60  ;;  %v740_v0 = vld [vmem:[#allocation2 + $0x6c] sm:$0x1]  ;;  %8574 = vmatprep.subr.bf16.mxu0 %v9109_v61 }
 0x115   :  { %v8529_v11 = vpop.f32.mrf.mxu0  ;;  %v691_v63 = vsel %vm9569_vm5, 0, %v690_v62  ;;  %8549 = vmatpush3.bf16.msra.mxu1 %v9106_v58  ;;  %v741_v1 = vsel %vm9577_vm6, 0, %v740_v0  ;;  %8575 = vmatpush3.bf16.msra.mxu0 %v9109_v61  ;;  %v9378_v2 = vmov 0   ;;  %v684_v3 = vld [vmem:[#allocation2 + $0x58] sm:$0x1] }
 0x116   :  { %v379_v12 = vpack.c.bf16 %v368_v6, %v367_v4  ;;  %v337_v5 = vmul.f32 %v8529_v11, %v9520_v16  ;;  %v355_v8 = vadd.f32 %v9527_v21, %v334_v7  ;;  %v373_v24 = vmax.f32 %v357_v18, 0.0  ;;  %692 = vst [vmem:[#allocation2 + $0x68] sm:$0x1] %v691_v63  ;;  %646 = vst.msk [vmem:[#allocation2] sm:$0xf] %vm645_vm7, %v9378_v2  ;;  %v9112_v18 = vld [vmem:[#allocation7] sm:$0xff]  }
 0x117   :  { %v305_v14 = vpop.f32.mrf.mxu0  ;;  %648 = vst.msk [vmem:[#allocation2 + $0x4] sm:$0x1] %vm647_vm2, %v9378_v2  ;;  %650 = vst.msk [vmem:[#allocation2 + $0x54] sm:$0x1] %vm647_vm2, %v9378_v2  ;;  %v734_v4 = vld [vmem:[#allocation2 + $0x5c] sm:$0x1] }
 0x118   :  { %v358_v15 = vadd.f32 %v9527_v21, %v337_v5  ;;  %v335_v17 = vmul.f32 %v9520_v16, %v305_v14  ;;  %8540 = vmatprep.mubr.msk.bf16.mxu1 %vm391_vm1, %v379_v12  ;;  %v371_v22 = vmax.f32 %v355_v8, 0.0  ;;  %649 = vst.msk [vmem:[#allocation2 + $0x50] sm:$0xf] %vm645_vm7, %v9378_v2  ;;  %652 = vst.msk [vmem:[#allocation2 + $0x48] sm:$0xf] %vm645_vm7, %v9378_v2  ;;  %v685_v6 = vsel %vm9569_vm5, 0, %v684_v3 }
 0x119   :  { %8541 = vmatmul.mubr.msk.bf16.gmra.mxu1 %vm391_vm1, %v380_v13  ;;  %653 = vst.msk [vmem:[#allocation2 + $0x4c] sm:$0x1] %vm647_vm2, %v9378_v2  ;;  %655 = vst.msk [vmem:[#allocation2 + $0x9c] sm:$0x1] %vm647_vm2, %v9378_v2  ;;  %v735_v7 = vsel %vm9577_vm6, 0, %v734_v4  ;;  %v9111_v5 = vld [vmem:[#allocation7 + $0x8] sm:$0xff]  }
 0x11a   :  { %v356_v19 = vadd.f32 %v9527_v21, %v335_v17  ;;  %v374_v20 = vmax.f32 %v358_v15, 0.0  ;;  %v666_v21 = vld [vmem:[#allocation2 + $0x18] sm:$0x1]  ;;  %654 = vst.msk [vmem:[#allocation2 + $0x98] sm:$0xf] %vm645_vm7, %v9378_v2  ;;  %v9107_v13 = vld [vmem:[#allocation7 + $0x30] sm:$0xff]   ;;  %8576 = vmatprep.subr.bf16.mxu0 %v9111_v5  ;;  %vm10526_vm2 = vmand %vm4036_vm15, %vm708_vm4 }
 0x11b   :  { %v667_v28 = vsel %vm9569_vm5, 0, %v666_v21  ;;  %4026 = vst [vmem:[#allocation3] sm:$0xf] %v9378_v2  ;;  %4027 = vst [vmem:[#allocation3 + $0x4] sm:$0x1] %v9378_v2  ;;  %8550 = vmatprep.subr.bf16.mxu1 %v9107_v13  ;;  %8577 = vmatpush3.bf16.msra.mxu0 %v9111_v5 }
 0x11c   :  { %v372_v23 = vmax.f32 %v356_v19, 0.0  ;;  %v382_v26 = vpack.c.bf16 %v374_v20, %v373_v24  ;;  %668 = vst [vmem:[#allocation2 + $0x18] sm:$0x1] %v667_v28  ;;  %4028 = vst [vmem:[#allocation3 + $0x50] sm:$0xf] %v9378_v2  ;;  %8551 = vmatpush3.bf16.msra.mxu1 %v9107_v13  ;;  %8578 = vmatprep.subr.bf16.mxu0 %v9112_v18  ;;  %v9110_v24 = vld [vmem:[#allocation7 + $0x28] sm:$0xff]  }
 0x11d   :  { %4029 = vst [vmem:[#allocation3 + $0x54] sm:$0x1] %v9378_v2  ;;  %4031 = vst [vmem:[#allocation3 + $0x48] sm:$0xf] %v9378_v2  ;;  %v693_v9 = vld [vmem:[#allocation2 + $0x70] sm:$0x1]  ;;  %8552 = vmatprep.subr.bf16.mxu1 %v9110_v24 }
 0x11e   :  { %v381_v25 = vpack.c.bf16 %v372_v23, %v371_v22  ;;  %4032 = vst [vmem:[#allocation3 + $0x4c] sm:$0x1] %v9378_v2  ;;  %4033 = vst [vmem:[#allocation3 + $0x98] sm:$0xf] %v9378_v2  ;;  %v743_v10 = vld [vmem:[#allocation2 + $0x74] sm:$0x1] }
 0x11f   :  { %4034 = vst [vmem:[#allocation3 + $0x9c] sm:$0x1] %v9378_v2  ;;  %742 = vst [vmem:[#allocation2 + $0x6c] sm:$0x1] %v741_v1  ;;  %v694_v11 = vsel %vm9569_vm5, 0, %v693_v9  ;;  %v744_v12 = vsel %vm9577_vm6, 0, %v743_v10  ;;  %8579 = vmatpush3.bf16.msra.mxu0 %v9112_v18 }
 0x120   :  { %8544 = vmatprep.mubr.msk.bf16.mxu1 %vm391_vm1, %v381_v25  ;;  %686 = vst [vmem:[#allocation2 + $0x58] sm:$0x1] %v685_v6  ;;  %736 = vst [vmem:[#allocation2 + $0x5c] sm:$0x1] %v735_v7  ;;  %v687_v14 = vld [vmem:[#allocation2 + $0x60] sm:$0x1]  ;;  %8553 = vmatpush3.bf16.msra.mxu1 %v9110_v24 }
 0x121   :  { %8545 = vmatmul.mubr.msk.bf16.gmra.mxu1 %vm391_vm1, %v382_v26  ;;  %695 = vst [vmem:[#allocation2 + $0x70] sm:$0x1] %v694_v11  ;;  %745 = vst [vmem:[#allocation2 + $0x74] sm:$0x1] %v744_v12  ;;  %v737_v8 = vld [vmem:[#allocation2 + $0x64] sm:$0x1]  ;;  %8554 = vmatprep.subr.bf16.mxu1 %v9114_v35 }
 0x122   :  { %v688_v15 = vsel %vm9569_vm5, 0, %v687_v14  ;;  %v738_v17 = vsel %vm9577_vm6, 0, %v737_v8  ;;  %v702_v19 = vld [vmem:[#allocation2 + $0x88] sm:$0x1]  ;;  %v752_v20 = vld [vmem:[#allocation2 + $0x8c] sm:$0x1]  ;;  %8620 = vmatprep.subr.bf16.mxu0 %v9654_v39  ;;  %vm10517_vm1 = vmand %vm4036_vm15, %vm658_vm3 }
 0x123   :  { %689 = vst [vmem:[#allocation2 + $0x60] sm:$0x1] %v688_v15  ;;  %739 = vst [vmem:[#allocation2 + $0x64] sm:$0x1] %v738_v17  ;;  %v703_v22 = vsel %vm9569_vm5, 0, %v702_v19  ;;  %v753_v23 = vsel %vm9577_vm6, 0, %v752_v20 }
 0x124   :  { %704 = vst [vmem:[#allocation2 + $0x88] sm:$0x1] %v703_v22  ;;  %754 = vst [vmem:[#allocation2 + $0x8c] sm:$0x1] %v753_v23  ;;  %v696_v25 = vld [vmem:[#allocation2 + $0x78] sm:$0x1]  ;;  %8555 = vmatpush3.bf16.msra.mxu1 %v9114_v35 }
 0x125   :  { %v746_v26 = vld [vmem:[#allocation2 + $0x7c] sm:$0x1]  ;;  %v697_v21 = vsel %vm9569_vm5, 0, %v696_v25  ;;  %v705_v28 = vld [vmem:[#allocation2 + $0x90] sm:$0x1]  ;;  %8596 = vmatprep.subr.bf16.mxu1 %v9651_v38  ;;  %v11941_v12 = vmov 0 }
 0x126   :  { %v747_v27 = vsel %vm9577_vm6, 0, %v746_v26  ;;  %698 = vst [vmem:[#allocation2 + $0x78] sm:$0x1] %v697_v21  ;;  %v706_v30 = vsel %vm9569_vm5, 0, %v705_v28  ;;  %757 = vst [vmem:[#allocation2 + $0x94] sm:$0x1] %v756_v32 }
 0x127   :  { %748 = vst [vmem:[#allocation2 + $0x7c] sm:$0x1] %v747_v27  ;;  %707 = vst [vmem:[#allocation2 + $0x90] sm:$0x1] %v706_v30  ;;  %v699_v33 = vld [vmem:[#allocation2 + $0x80] sm:$0x1] }
 0x128   :  { %v749_v34 = vld [vmem:[#allocation2 + $0x84] sm:$0x1]  ;;  %v700_v36 = vsel %vm9569_vm5, 0, %v699_v33  ;;  %v9657_v40 = vld [vmem:[#allocation2] sm:$0xf]  ;;  %v11942_v12 = vsel %vm9693_vm12, 4294967295, %v11941_v12 }
 0x129   :  { %v750_v37 = vsel %vm9577_vm6, 0, %v749_v34  ;;  %701 = vst [vmem:[#allocation2 + $0x80] sm:$0x1] %v700_v36  ;;  %v9659_v41 = vld [vmem:[#allocation2 + $0x50] sm:$0xf]  ;;  %v1108_v42 = vshrl.u32 %v9657_v40, 16 }
 0x12a   :  { %751 = vst [vmem:[#allocation2 + $0x84] sm:$0x1] %v750_v37  ;;  %v1111_v29 = vshll.u32 %v9657_v40, 16  ;;  %v1220_v43 = vshrl.u32 %v9659_v41, 16  ;;  %v1223_v44 = vshll.u32 %v9659_v41, 16  ;;  %11943 = vst [vmem:[#allocation14_spill] sm:$0xff] %v11942_v12 }
 0x12b   :  { %v1110_v45 = vrot.slane %v1108_v42, 4  ;;  %v9668_v49 = vld [vmem:[%s11919_s3] ss:$0 sm:$0xff]  ;;  %v1088_v50 = vld [vmem:[#allocation2 + $0x4] sm:$0x1]  ;;  %v11944_v15 = vmov 0 }
 0x12c   :  { %v1113_v46 = vrot.slane %v1111_v29, 5  ;;  %v1222_v47 = vrot.slane %v1220_v43, 4  ;;  %v1225_v48 = vrot.slane %v1223_v44, 5  ;;  %v1117_v52 = vshll.u32 %v1088_v50, 16  ;;  %v9673_v54 = vld [vmem:[%s11919_s3 + $0x1] ss:$0 sm:$0xff] }
 0x12d   :  { %v9675_v55 = vld [vmem:[#allocation2 + $0x54] sm:$0x1]  ;;  %v1694_v59 = vld [vmem:[#allocation2] sm:$0xe]  ;;  %v1747_v4 = vrot.slane %v1088_v50, 5  ;;  %v11945_v15 = vsel %vm9700_vm13, 4294967295, %v11944_v15 }
 0x12e   :  { %v1114_v51 = vor.u32 %v1113_v46, %v1110_v45  ;;  %v1226_v56 = vor.u32 %v1225_v48, %v1222_v47  ;;  %v1229_v58 = vshll.u32 %v9675_v55, 16  ;;  %v9683_v0 = vrot.slane %v1117_v52, 5  ;;  %11946 = vst [vmem:[#allocation15_spill] sm:$0xff] %v11945_v15  ;;  %v9704_v17 = vld [vmem:[#allocation2 + $0x50] sm:$0xe] }
 0x12f   :  { %v7779_v3 = vrot.slane %v1694_v59, 9  ;;  %v7787_v28 = vrot.slane %v9704_v17, 9  ;;  %v1779_v30 = vrot.slane %v9675_v55, 5  ;;  %v980_v36 = vld [vmem:[#allocation2 + $0x18] sm:$0xf] }
 0x130   :  { %v9679_v61 = vrot.slane %v1114_v51, 4  ;;  %v9685_v2 = vrot.slane %v1226_v56, 4  ;;  %v9689_v10 = vrot.slane %v1229_v58, 5  ;;  %v983_v37 = vld [vmem:[#allocation2 + $0x1c] sm:$0x1] }
 0x131   :  { %v9712_v20 = vsel %vm9700_vm13, %v7779_v3, %v1747_v4  ;;  %v968_v51 = vld [vmem:[#allocation2 + $0x8] sm:$0xf]  ;;  %v971_v52 = vld [vmem:[#allocation2 + $0xc] sm:$0x1] }
 0x132   :  { %v1120_v19 = vsel %vm9693_vm12, %v9679_v61, %v9683_v0  ;;  %v1232_v25 = vsel %vm9693_vm12, %v9685_v2, %v9689_v10  ;;  %v4068_v12 = vld [vmem:[#allocation3 + $0x68] sm:$0x1] }
 0x1c9   :  { %v8534_v53 = vpop.f32.mrf.mxu1 }
 0x1ca   :  { %v594_v57 = vmul.f32 %v8534_v53, %v9668_v49 }
 0x1cb   :  { %v450_v60 = vpop.f32.mrf.mxu1 }
 0x1cc   :  { %v615_v62 = vadd.f32 %v9673_v54, %v594_v57  ;;  %v592_v63 = vmul.f32 %v9668_v49, %v450_v60 }
 0x1cd   :  { %v8535_v1 = vpop.f32.mrf.mxu1 }
 0x1ce   :  { %v631_v6 = vmax.f32 %v615_v62, 0.0  ;;  %v613_v7 = vadd.f32 %v9673_v54, %v592_v63  ;;  %v595_v9 = vmul.f32 %v8535_v1, %v9668_v49 }
 0x1cf   :  { %v453_v11 = vpop.f32.mrf.mxu1 }
 0x1d0   :  { %v8191_v5 = vpack.c.bf16 %v631_v6, %v631_v6  ;;  %v629_v13 = vmax.f32 %v613_v7, 0.0  ;;  %v616_v14 = vadd.f32 %v9673_v54, %v595_v9  ;;  %v593_v8 = vmul.f32 %v9668_v49, %v453_v11 }
 0x1d1   :  { %v8538_v18 = vpop.f32.mrf.mxu1 }
 0x1d2   :  { %v823_v22 = vshrl.u32 %v8191_v5, 16  ;;  %v8189_v23 = vpack.c.bf16 %v629_v13, %v629_v13  ;;  %v632_v24 = vmax.f32 %v616_v14, 0.0  ;;  %v614_v26 = vadd.f32 %v9673_v54, %v593_v8  ;;  %v986_v13 = vld [vmem:[#allocation2 + $0x20] sm:$0xf]  ;;  %v989_v14 = vld [vmem:[#allocation2 + $0x24] sm:$0x1] }
 0x1d3   :  { %v598_v21 = vmul.f32 %v8538_v18, %v9668_v49  ;;  %v466_v27 = vpop.f32.mrf.mxu1  ;;  %v826_v32 = vshll.u32 %v8191_v5, 16 }
 0x1d4   :  { %v825_v31 = vrot.slane %v823_v22, 7  ;;  %v807_v33 = vshrl.u32 %v8189_v23, 16  ;;  %v8192_v34 = vpack.c.bf16 %v632_v24, %v632_v24  ;;  %v810_v42 = vshll.u32 %v8189_v23, 16 }
 0x1d5   :  { %v630_v29 = vmax.f32 %v614_v26, 0.0  ;;  %v619_v43 = vadd.f32 %v9673_v54, %v598_v21  ;;  %v596_v44 = vmul.f32 %v9668_v49, %v466_v27  ;;  %v8539_v45 = vpop.f32.mrf.mxu1  ;;  %v974_v27 = vld [vmem:[#allocation2 + $0x10] sm:$0xf] }
 0x1d6   :  { %v828_v46 = vor.u32 %v826_v32, %v825_v31  ;;  %v829_v47 = vrot.slane %v825_v31, 4  ;;  %v809_v48 = vrot.slane %v807_v33, 7  ;;  %v831_v50 = vshrl.u32 %v8192_v34, 16  ;;  %v977_v31 = vld [vmem:[#allocation2 + $0x14] sm:$0x1] }
 0x1d7   :  { %v834_v53 = vshll.u32 %v8192_v34, 16  ;;  %v8190_v56 = vpack.c.bf16 %v630_v29, %v630_v29  ;;  %v635_v57 = vmax.f32 %v619_v43, 0.0  ;;  %v617_v58 = vadd.f32 %v9673_v54, %v596_v44  ;;  %v469_v59 = vpop.f32.mrf.mxu1 }
 0x1d8   :  { %v981_v60 = vsel %vm9724_vm14, %v828_v46, %v980_v36  ;;  %v984_v62 = vsel %vm9569_vm5, %v829_v47, %v983_v37  ;;  %v812_v63 = vor.u32 %v810_v42, %v809_v48  ;;  %v813_v1 = vrot.slane %v809_v48, 4 }
 0x1d9   :  { %982 = vst [vmem:[#allocation2 + $0x18] sm:$0xf] %v981_v60  ;;  %985 = vst [vmem:[#allocation2 + $0x1c] sm:$0x1] %v984_v62  ;;  %v833_v3 = vrot.slane %v831_v50, 7  ;;  %v815_v4 = vshrl.u32 %v8190_v56, 16  ;;  %v8195_v7 = vpack.c.bf16 %v635_v57, %v635_v57  ;;  %v8542_v9 = vpop.f32.mrf.mxu1  ;;  %v599_v18 = vmul.f32 %v8539_v45, %v9668_v49 }
 0x1da   :  { %v818_v6 = vshll.u32 %v8190_v56, 16  ;;  %v969_v11 = vsel %vm9724_vm14, %v812_v63, %v968_v51  ;;  %v972_v5 = vsel %vm9569_vm5, %v813_v1, %v971_v52  ;;  %v633_v8 = vmax.f32 %v617_v58, 0.0  ;;  %v1004_v52 = vld [vmem:[#allocation2 + $0x38] sm:$0xf]  ;;  %v992_v63 = vld [vmem:[#allocation2 + $0x28] sm:$0xf] }
 0x1db   :  { %970 = vst [vmem:[#allocation2 + $0x8] sm:$0xf] %v969_v11  ;;  %973 = vst [vmem:[#allocation2 + $0xc] sm:$0x1] %v972_v5  ;;  %v836_v22 = vor.u32 %v834_v53, %v833_v3  ;;  %v837_v23 = vrot.slane %v833_v3, 4  ;;  %v817_v24 = vrot.slane %v815_v4, 7  ;;  %v482_v21 = vpop.f32.mrf.mxu1  ;;  %v620_v34 = vadd.f32 %v9673_v54, %v599_v18 }
 0x1dc   :  { %v855_v26 = vshrl.u32 %v8195_v7, 16  ;;  %v858_v32 = vshll.u32 %v8195_v7, 16  ;;  %v8193_v33 = vpack.c.bf16 %v633_v8, %v633_v8  ;;  %v597_v36 = vmul.f32 %v9668_v49, %v469_v59  ;;  %v1007_v53 = vld [vmem:[#allocation2 + $0x3c] sm:$0x1]  ;;  %v995_v3 = vld [vmem:[#allocation2 + $0x2c] sm:$0x1] }
 0x1dd   :  { %v987_v37 = vsel %vm9724_vm14, %v836_v22, %v986_v13  ;;  %v990_v42 = vsel %vm9569_vm5, %v837_v23, %v989_v14  ;;  %v820_v29 = vor.u32 %v818_v6, %v817_v24  ;;  %v821_v43 = vrot.slane %v817_v24, 4  ;;  %v8543_v44 = vpop.f32.mrf.mxu1 }
 0x1de   :  { %988 = vst [vmem:[#allocation2 + $0x20] sm:$0xf] %v987_v37  ;;  %991 = vst [vmem:[#allocation2 + $0x24] sm:$0x1] %v990_v42  ;;  %v857_v45 = vrot.slane %v855_v26, 7  ;;  %v839_v46 = vshrl.u32 %v8193_v33, 16  ;;  %v618_v56 = vadd.f32 %v9673_v54, %v597_v36  ;;  %v602_v57 = vmul.f32 %v8542_v9, %v9668_v49 }
 0x1df   :  { %v842_v47 = vshll.u32 %v8193_v33, 16  ;;  %v636_v48 = vmax.f32 %v620_v34, 0.0  ;;  %v975_v50 = vsel %vm9724_vm14, %v820_v29, %v974_v27  ;;  %v978_v51 = vsel %vm9569_vm5, %v821_v43, %v977_v31  ;;  %v485_v58 = vpop.f32.mrf.mxu1  ;;  %v1010_v33 = vld [vmem:[#allocation2 + $0x40] sm:$0xf]  ;;  %v1013_v42 = vld [vmem:[#allocation2 + $0x44] sm:$0x1] }
 0x1e0   :  { %976 = vst [vmem:[#allocation2 + $0x10] sm:$0xf] %v975_v50  ;;  %979 = vst [vmem:[#allocation2 + $0x14] sm:$0x1] %v978_v51  ;;  %v860_v59 = vor.u32 %v858_v32, %v857_v45  ;;  %v861_v60 = vrot.slane %v857_v45, 4  ;;  %v841_v62 = vrot.slane %v839_v46, 7  ;;  %v623_v6 = vadd.f32 %v9673_v54, %v602_v57 }
 0x1e1   :  { %v8196_v1 = vpack.c.bf16 %v636_v48, %v636_v48  ;;  %v634_v4 = vmax.f32 %v618_v56, 0.0  ;;  %v600_v7 = vmul.f32 %v9668_v49, %v482_v21  ;;  %v603_v11 = vmul.f32 %v8543_v44, %v9668_v49  ;;  %v8546_v8 = vpop.f32.mrf.mxu1  ;;  %v998_v51 = vld [vmem:[#allocation2 + $0x30] sm:$0xf] }
 0x1e2   :  { %v1005_v5 = vsel %vm9724_vm14, %v860_v59, %v1004_v52  ;;  %v1008_v9 = vsel %vm9569_vm5, %v861_v60, %v1007_v53  ;;  %v844_v13 = vor.u32 %v842_v47, %v841_v62  ;;  %v845_v14 = vrot.slane %v841_v62, 4  ;;  %v1001_v53 = vld [vmem:[#allocation2 + $0x34] sm:$0x1] }
 0x1e3   :  { %1006 = vst [vmem:[#allocation2 + $0x38] sm:$0xf] %v1005_v5  ;;  %1009 = vst [vmem:[#allocation2 + $0x3c] sm:$0x1] %v1008_v9  ;;  %v863_v18 = vshrl.u32 %v8196_v1, 16  ;;  %v866_v22 = vshll.u32 %v8196_v1, 16  ;;  %v8194_v23 = vpack.c.bf16 %v634_v4, %v634_v4  ;;  %v621_v27 = vadd.f32 %v9673_v54, %v600_v7  ;;  %v498_v46 = vpop.f32.mrf.mxu1 }
 0x1e4   :  { %v639_v24 = vmax.f32 %v623_v6, 0.0  ;;  %v993_v26 = vsel %vm9724_vm14, %v844_v13, %v992_v63  ;;  %v996_v21 = vsel %vm9569_vm5, %v845_v14, %v995_v3  ;;  %v624_v31 = vadd.f32 %v9673_v54, %v603_v11  ;;  %v1028_v4 = vld [vmem:[#allocation2 + $0x68] sm:$0xf]  ;;  %v1031_v14 = vld [vmem:[#allocation2 + $0x6c] sm:$0x1] }
 0x1e5   :  { %994 = vst [vmem:[#allocation2 + $0x28] sm:$0xf] %v993_v26  ;;  %997 = vst [vmem:[#allocation2 + $0x2c] sm:$0x1] %v996_v21  ;;  %v865_v32 = vrot.slane %v863_v18, 7  ;;  %v847_v34 = vshrl.u32 %v8194_v23, 16  ;;  %v601_v44 = vmul.f32 %v9668_v49, %v485_v58  ;;  %v606_v45 = vmul.f32 %v8546_v8, %v9668_v49  ;;  %v8547_v5 = vpop.f32.mrf.mxu1 }
 0x1e6   :  { %v850_v36 = vshll.u32 %v8194_v23, 16  ;;  %v8199_v37 = vpack.c.bf16 %v639_v24, %v639_v24  ;;  %v637_v29 = vmax.f32 %v621_v27, 0.0  ;;  %v640_v43 = vmax.f32 %v624_v31, 0.0  ;;  %v1016_v21 = vld [vmem:[#allocation2 + $0x58] sm:$0xf] }
 0x1e7   :  { %v868_v47 = vor.u32 %v866_v22, %v865_v32  ;;  %v869_v48 = vrot.slane %v865_v32, 4  ;;  %v849_v50 = vrot.slane %v847_v34, 7  ;;  %v622_v60 = vadd.f32 %v9673_v54, %v601_v44  ;;  %v1019_v27 = vld [vmem:[#allocation2 + $0x5c] sm:$0x1]  ;;  %v1037_v44 = vld [vmem:[#allocation2 + $0x74] sm:$0x1] }
 0x1e8   :  { %v887_v52 = vshrl.u32 %v8199_v37, 16  ;;  %v890_v56 = vshll.u32 %v8199_v37, 16  ;;  %v8197_v57 = vpack.c.bf16 %v637_v29, %v637_v29  ;;  %v8200_v59 = vpack.c.bf16 %v640_v43, %v640_v43  ;;  %v1034_v43 = vld [vmem:[#allocation2 + $0x70] sm:$0xf] }
 0x1e9   :  { %v1011_v62 = vsel %vm9724_vm14, %v868_v47, %v1010_v33  ;;  %v1014_v58 = vsel %vm9569_vm5, %v869_v48, %v1013_v42  ;;  %v852_v63 = vor.u32 %v850_v36, %v849_v50  ;;  %v853_v1 = vrot.slane %v849_v50, 4 }
 0x1ea   :  { %1012 = vst [vmem:[#allocation2 + $0x40] sm:$0xf] %v1011_v62  ;;  %1015 = vst [vmem:[#allocation2 + $0x44] sm:$0x1] %v1014_v58  ;;  %v889_v3 = vrot.slane %v887_v52, 7  ;;  %v871_v6 = vshrl.u32 %v8197_v57, 16  ;;  %v627_v32 = vadd.f32 %v9673_v54, %v606_v45  ;;  %v604_v33 = vmul.f32 %v9668_v49, %v498_v46 }
 0x1eb   :  { %v874_v7 = vshll.u32 %v8197_v57, 16  ;;  %v895_v11 = vshrl.u32 %v8200_v59, 16  ;;  %v999_v9 = vsel %vm9724_vm14, %v852_v63, %v998_v51  ;;  %v1002_v13 = vsel %vm9569_vm5, %v853_v1, %v1001_v53  ;;  %v1065_v51 = vld [vmem:[#allocation2 + $0x8] sm:$0xf]  ;;  %v1022_v62 = vld [vmem:[#allocation2 + $0x60] sm:$0xf] }
 0x1ec   :  { %v898_v8 = vshll.u32 %v8200_v59, 16  ;;  %v638_v18 = vmax.f32 %v622_v60, 0.0  ;;  %1000 = vst [vmem:[#allocation2 + $0x30] sm:$0xf] %v999_v9  ;;  %1003 = vst [vmem:[#allocation2 + $0x34] sm:$0x1] %v1002_v13  ;;  %v892_v22 = vor.u32 %v890_v56, %v889_v3  ;;  %v607_v34 = vmul.f32 %v8547_v5, %v9668_v49  ;;  %v501_v13 = vpop.f32.mrf.mxu1 }
 0x1ed   :  { %v893_v23 = vrot.slane %v889_v3, 4  ;;  %v873_v24 = vrot.slane %v871_v6, 7  ;;  %v897_v26 = vrot.slane %v895_v11, 7  ;;  %v643_v53 = vmax.f32 %v627_v32, 0.0  ;;  %v1025_v63 = vld [vmem:[#allocation2 + $0x64] sm:$0x1] }
 0x1ee   :  { %v8198_v31 = vpack.c.bf16 %v638_v18, %v638_v18  ;;  %v1029_v36 = vsel %vm9724_vm14, %v892_v22, %v1028_v4  ;;  %v625_v56 = vadd.f32 %v9673_v54, %v604_v33  ;;  %v628_v58 = vadd.f32 %v9673_v54, %v607_v34 }
 0x1ef   :  { %v1032_v37 = vsel %vm9569_vm5, %v893_v23, %v1031_v14  ;;  %v876_v42 = vor.u32 %v874_v7, %v873_v24  ;;  %v877_v29 = vrot.slane %v873_v24, 4  ;;  %1030 = vst [vmem:[#allocation2 + $0x68] sm:$0xf] %v1029_v36  ;;  %v900_v47 = vor.u32 %v898_v8, %v897_v26  ;;  %v9794_v14 = vld [vmem:[#allocation2 + $0x10] sm:$0xf] }
 0x1f0   :  { %1033 = vst [vmem:[#allocation2 + $0x6c] sm:$0x1] %v1032_v37  ;;  %v901_v48 = vrot.slane %v897_v26, 4  ;;  %v879_v50 = vshrl.u32 %v8198_v31, 16  ;;  %v882_v45 = vshll.u32 %v8198_v31, 16  ;;  %v8203_v1 = vpack.c.bf16 %v643_v53, %v643_v53 }
 0x1f1   :  { %v1017_v46 = vsel %vm9724_vm14, %v876_v42, %v1016_v21  ;;  %v1020_v52 = vsel %vm9569_vm5, %v877_v29, %v1019_v27  ;;  %v1035_v57 = vsel %vm9724_vm14, %v900_v47, %v1034_v43  ;;  %v641_v3 = vmax.f32 %v625_v56, 0.0  ;;  %v1052_v21 = vld [vmem:[#allocation2 + $0x88] sm:$0xf]  ;;  %v1055_v27 = vld [vmem:[#allocation2 + $0x8c] sm:$0x1] }
 0x1f2   :  { %1018 = vst [vmem:[#allocation2 + $0x58] sm:$0xf] %v1017_v46  ;;  %1021 = vst [vmem:[#allocation2 + $0x5c] sm:$0x1] %v1020_v52  ;;  %v1038_v59 = vsel %vm9569_vm5, %v901_v48, %v1037_v44  ;;  %v881_v60 = vrot.slane %v879_v50, 7  ;;  %v1122_v4 = vshrl.u32 %v1065_v51, 16  ;;  %v7759_v9 = vcombine.low %v9657_v40, %v1065_v51 }
 0x1f3   :  { %1036 = vst [vmem:[#allocation2 + $0x70] sm:$0xf] %v1035_v57  ;;  %1039 = vst [vmem:[#allocation2 + $0x74] sm:$0x1] %v1038_v59  ;;  %v1125_v6 = vshll.u32 %v1065_v51, 16  ;;  %v644_v5 = vmax.f32 %v628_v58, 0.0  ;;  %v8201_v22 = vpack.c.bf16 %v641_v3, %v641_v3  ;;  %v605_v36 = vmul.f32 %v9668_v49, %v501_v13 }
 0x1f4   :  { %v884_v7 = vor.u32 %v882_v45, %v881_v60  ;;  %v885_v11 = vrot.slane %v881_v60, 4  ;;  %v919_v8 = vshrl.u32 %v8203_v1, 16  ;;  %v922_v18 = vshll.u32 %v8203_v1, 16  ;;  %8580 = vmatprep.mubr.msk.bf16.mxu0 %vm195_vm0, %v7759_v9  ;;  %v1067_v37 = vld [vmem:[#allocation2 + $0x18] sm:$0xf] }
 0x1f5   :  { %v9796_v23 = vrot.slane %v1122_v4, 4  ;;  %v8204_v31 = vpack.c.bf16 %v644_v5, %v644_v5  ;;  %v9802_v32 = vrot.slane %v1125_v6, 5  ;;  %v903_v33 = vshrl.u32 %v8201_v22, 16  ;;  %v1040_v42 = vld [vmem:[#allocation2 + $0x78] sm:$0xf] }
 0x1f6   :  { %v1023_v24 = vsel %vm9724_vm14, %v884_v7, %v1022_v62  ;;  %v1026_v26 = vsel %vm9569_vm5, %v885_v11, %v1025_v63  ;;  %v921_v40 = vrot.slane %v919_v8, 7  ;;  %v906_v34 = vshll.u32 %v8201_v22, 16  ;;  %v1043_v29 = vld [vmem:[#allocation2 + $0x7c] sm:$0x1]  ;;  %v1058_v46 = vld [vmem:[#allocation2 + $0x90] sm:$0xf] }
 0x1f7   :  { %1024 = vst [vmem:[#allocation2 + $0x60] sm:$0xf] %v1023_v24  ;;  %1027 = vst [vmem:[#allocation2 + $0x64] sm:$0x1] %v1026_v26  ;;  %v927_v43 = vshrl.u32 %v8204_v31, 16  ;;  %v930_v44 = vshll.u32 %v8204_v31, 16  ;;  %v626_v53 = vadd.f32 %v9673_v54, %v605_v36  ;;  %v7760_v13 = vcombine.low %v9794_v14, %v1067_v37 }
 0x1f8   :  { %v1136_v47 = vshrl.u32 %v9794_v14, 16  ;;  %v1139_v48 = vshll.u32 %v9794_v14, 16  ;;  %v924_v50 = vor.u32 %v922_v18, %v921_v40  ;;  %v925_v45 = vrot.slane %v921_v40, 4  ;;  %v1061_v52 = vld [vmem:[#allocation2 + $0x94] sm:$0x1] }
 0x1f9   :  { %v905_v51 = vrot.slane %v903_v33, 7  ;;  %v929_v56 = vrot.slane %v927_v43, 7  ;;  %v1150_v59 = vshrl.u32 %v1067_v37, 16  ;;  %v1068_v60 = vld [vmem:[#allocation2 + $0x20] sm:$0xf]  ;;  %v642_v6 = vmax.f32 %v626_v53, 0.0  ;;  %8581 = vmatmul.mubr.msk.bf16.vlgmr.msra.gmra.mxu0 %vm195_vm0, %v7760_v13 }
 0x1fa   :  { %v9809_v57 = vrot.slane %v1136_v47, 4  ;;  %v9811_v49 = vrot.slane %v1139_v48, 5  ;;  %v1053_v62 = vsel %vm9724_vm14, %v924_v50, %v1052_v21  ;;  %v1056_v58 = vsel %vm9569_vm5, %v925_v45, %v1055_v27  ;;  %v1069_v3 = vld [vmem:[#allocation2 + $0x28] sm:$0xf]  ;;  %v9124_v8 = vld [vmem:[#allocation7 + $0x70] sm:$0xff]   ;;  %8621 = vmatpush3.bf16.msra.mxu0 %v9654_v39 }
 0x1fb   :  { %v908_v63 = vor.u32 %v906_v34, %v905_v51  ;;  %v909_v1 = vrot.slane %v905_v51, 4  ;;  %1054 = vst [vmem:[#allocation2 + $0x88] sm:$0xf] %v1053_v62  ;;  %1057 = vst [vmem:[#allocation2 + $0x8c] sm:$0x1] %v1056_v58  ;;  %v932_v4 = vor.u32 %v930_v44, %v929_v56  ;;  %v933_v54 = vrot.slane %v929_v56, 4  ;;  %8622 = vmatprep.subr.bf16.mxu0 %v9124_v8 }
 0x1fc   :  { %v9817_v7 = vrot.slane %v1150_v59, 4  ;;  %v1153_v9 = vshll.u32 %v1067_v37, 16  ;;  %v8202_v24 = vpack.c.bf16 %v642_v6, %v642_v6  ;;  %v1164_v26 = vshrl.u32 %v1068_v60, 16  ;;  %v9828_v21 = vld [vmem:[#allocation2 + $0xc] sm:$0x1] }
 0x1fd   :  { %v1041_v11 = vsel %vm9724_vm14, %v908_v63, %v1040_v42  ;;  %v1044_v5 = vsel %vm9569_vm5, %v909_v1, %v1043_v29  ;;  %v1059_v18 = vsel %vm9724_vm14, %v932_v4, %v1058_v46  ;;  %v1062_v22 = vsel %vm9569_vm5, %v933_v54, %v1061_v52  ;;  %v1070_v27 = vld [vmem:[#allocation2 + $0x30] sm:$0xf]  ;;  %v1071_v29 = vld [vmem:[#allocation2 + $0x38] sm:$0xf]  ;;  %v1046_v43 = vld [vmem:[#allocation2 + $0x80] sm:$0xf] }
 0x1fe   :  { %1042 = vst [vmem:[#allocation2 + $0x78] sm:$0xf] %v1041_v11  ;;  %1045 = vst [vmem:[#allocation2 + $0x7c] sm:$0x1] %v1044_v5  ;;  %v1155_v31 = vrot.slane %v1153_v9, 5  ;;  %v1167_v14 = vshll.u32 %v1068_v60, 16  ;;  %v7761_v42 = vcombine.low %v1068_v60, %v1069_v3  ;;  %v1128_v50 = vor.u32 %v9802_v32, %v9796_v23  ;;  %8623 = vmatpush3.bf16.msra.mxu0 %v9124_v8 }
 0x1ff   :  { %1060 = vst [vmem:[#allocation2 + $0x90] sm:$0xf] %v1059_v18  ;;  %1063 = vst [vmem:[#allocation2 + $0x94] sm:$0x1] %v1062_v22  ;;  %v1178_v40 = vshrl.u32 %v1069_v3, 16  ;;  %v1181_v33 = vshll.u32 %v1069_v3, 16  ;;  %v7762_v62 = vcombine.low %v1070_v27, %v1071_v29  ;;  %v1142_v11 = vor.u32 %v9811_v49, %v9809_v57 }
 0x200   :  { %v911_v34 = vshrl.u32 %v8202_v24, 16  ;;  %v914_v36 = vshll.u32 %v8202_v24, 16  ;;  %v9831_v37 = vrot.slane %v1164_v26, 4  ;;  %v9834_v44 = vrot.slane %v1167_v14, 5  ;;  %v9127_v45 = vld [vmem:[#allocation7 + $0x68] sm:$0xff]   ;;  %8584 = vmatprep.mubr.msk.bf16.mxu0 %vm195_vm0, %v7761_v42  ;;  %v9129_v9 = vld [vmem:[#allocation7 + $0x60] sm:$0xff]  }
 0x201   :  { %v9836_v47 = vrot.slane %v1178_v40, 4  ;;  %v9838_v48 = vrot.slane %v1181_v33, 5  ;;  %v1049_v46 = vld [vmem:[#allocation2 + $0x84] sm:$0x1]  ;;  %v1131_v52 = vshll.u32 %v9828_v21, 16  ;;  %v1192_v53 = vshrl.u32 %v1070_v27, 16  ;;  %8624 = vmatprep.subr.bf16.mxu0 %v9127_v45  ;;  %8585 = vmatmul.mubr.msk.bf16.gmra.mxu0 %vm195_vm0, %v7762_v62 }
 0x202   :  { %v913_v51 = vrot.slane %v911_v34, 7  ;;  %v1195_v39 = vshll.u32 %v1070_v27, 16  ;;  %v1129_v56 = vrot.slane %v1128_v50, 4  ;;  %v1206_v59 = vshrl.u32 %v1071_v29, 16  ;;  %v9844_v58 = vld [vmem:[#allocation2 + $0x14] sm:$0x1]  ;;  %8625 = vmatpush3.bf16.msra.mxu0 %v9127_v45 }
 0x203   :  { %v1209_v60 = vshll.u32 %v1071_v29, 16  ;;  %v1133_v3 = vrot.slane %v1131_v52, 5  ;;  %v9846_v23 = vrot.slane %v1192_v53, 4  ;;  %v9848_v32 = vld [vmem:[#allocation2 + $0x1c] sm:$0x1]  ;;  %v1145_v22 = vshll.u32 %v9844_v58, 16  ;;  %8626 = vmatprep.subr.bf16.mxu0 %v9129_v9 }
 0x204   :  { %v916_v63 = vor.u32 %v914_v36, %v913_v51  ;;  %v917_v1 = vrot.slane %v913_v51, 4  ;;  %v9850_v4 = vrot.slane %v1195_v39, 5  ;;  %v9852_v54 = vrot.slane %v1206_v59, 4  ;;  %v1073_v5 = vld [vmem:[#allocation2 + $0x58] sm:$0xf]  ;;  %v9121_v39 = vld [vmem:[#allocation7 + $0x50] sm:$0xff]  }
 0x205   :  { %v9854_v6 = vrot.slane %v1209_v60, 5  ;;  %v1134_v8 = vsel %vm9693_vm12, %v1129_v56, %v1133_v3  ;;  %v9865_v24 = vld [vmem:[#allocation2 + $0x24] sm:$0x1]  ;;  %v1143_v35 = vrot.slane %v1142_v11, 4  ;;  %v1156_v16 = vor.u32 %v1155_v31, %v9817_v7  ;;  %v9876_v33 = vld [vmem:[#allocation2 + $0x2c] sm:$0x1] }
 0x206   :  { %v1047_v13 = vsel %vm9724_vm14, %v916_v63, %v1046_v43  ;;  %v1050_v18 = vsel %vm9569_vm5, %v917_v1, %v1049_v46  ;;  %v7739_v57 = vcombine.low %v1120_v19, %v1134_v8  ;;  %v1159_v49 = vshll.u32 %v9848_v32, 16  ;;  %v1074_v7 = vld [vmem:[#allocation2 + $0x60] sm:$0xf]  ;;  %v9882_v31 = vld [vmem:[#allocation7 + $0xb8] sm:$0xff]   ;;  %v1075_v43 = vld [vmem:[#allocation2 + $0x68] sm:$0xf]  ;;  %8627 = vmatpush3.bf16.msra.mxu0 %v9129_v9 }
 0x207   :  { %1048 = vst [vmem:[#allocation2 + $0x80] sm:$0xf] %v1047_v13  ;;  %1051 = vst [vmem:[#allocation2 + $0x84] sm:$0x1] %v1050_v18  ;;  %v1147_v26 = vrot.slane %v1145_v22, 5  ;;  %v1234_v27 = vshrl.u32 %v1073_v5, 16  ;;  %v7763_v40 = vcombine.low %v9659_v41, %v1073_v5  ;;  %v1170_v0 = vor.u32 %v9834_v44, %v9831_v37  ;;  %8668 = vmatprep.subr.bf16.mxu0 %v9882_v31 }
 0x208   :  { %v1237_v14 = vshll.u32 %v1073_v5, 16  ;;  %8556 = vmatprep.mubr.msk.bf16.mxu1 %vm195_vm0, %v7739_v57  ;;  %v1157_v34 = vrot.slane %v1156_v16, 4  ;;  %v1161_v61 = vrot.slane %v1159_v49, 5  ;;  %v1173_v19 = vshll.u32 %v9865_v24, 16  ;;  %v9896_v56 = vld [vmem:[#allocation2 + $0x34] sm:$0x1] }
 0x209   :  { %v1148_v36 = vsel %vm9693_vm12, %v1143_v35, %v1147_v26  ;;  %v9886_v41 = vrot.slane %v1234_v27, 4  ;;  %8588 = vmatprep.mubr.msk.bf16.mxu0 %vm195_vm0, %v7763_v40  ;;  %v1184_v29 = vor.u32 %v9838_v48, %v9836_v47  ;;  %v1171_v44 = vrot.slane %v1170_v0, 4  ;;  %v9900_v62 = vld [vmem:[#allocation2 + $0x3c] sm:$0x1]  ;;  %v1076_v5 = vld [vmem:[#allocation2 + $0x70] sm:$0xf] }
 0x20a   :  { %v9888_v42 = vrot.slane %v1237_v14, 5  ;;  %v1162_v37 = vsel %vm9693_vm12, %v1157_v34, %v1161_v61  ;;  %v1175_v50 = vrot.slane %v1173_v19, 5  ;;  %v1187_v45 = vshll.u32 %v9876_v33, 16  ;;  %v1077_v9 = vld [vmem:[#allocation2 + $0x78] sm:$0xf]  ;;  %v9126_v16 = vld [vmem:[#allocation7 + $0x48] sm:$0xff]  }
 0x20b   :  { %v7740_v51 = vcombine.low %v1148_v36, %v1162_v37  ;;  %v1185_v46 = vrot.slane %v1184_v29, 4  ;;  %v1248_v52 = vshrl.u32 %v1074_v7, 16  ;;  %v1251_v53 = vshll.u32 %v1074_v7, 16  ;;  %v1079_v40 = vld [vmem:[#allocation2 + $0x88] sm:$0xf] }
 0x20c   :  { %v1176_v59 = vsel %vm9693_vm12, %v1171_v44, %v1175_v50  ;;  %v1189_v47 = vrot.slane %v1187_v45, 5  ;;  %v1262_v48 = vshrl.u32 %v1075_v43, 16  ;;  %v1265_v60 = vshll.u32 %v1075_v43, 16 }
 0x20d   :  { %8557 = vmatmul.mubr.msk.bf16.vlgmr.msra.gmra.mxu1 %vm195_vm0, %v7740_v51  ;;  %v9904_v63 = vrot.slane %v1248_v52, 4  ;;  %v9906_v1 = vrot.slane %v1251_v53, 5  ;;  %v7764_v3 = vcombine.low %v1074_v7, %v1075_v43  ;;  %v1198_v11 = vor.u32 %v9850_v4, %v9846_v23  ;;  %v9933_v53 = vld [vmem:[#allocation2 + $0x64] sm:$0x1] }
 0x20e   :  { %8597 = vmatpush3.bf16.msra.mxu1 %v9651_v38  ;;  %v1190_v13 = vsel %vm9693_vm12, %v1185_v46, %v1189_v47  ;;  %v9913_v18 = vrot.slane %v1262_v48, 4  ;;  %v9915_v8 = vrot.slane %v1265_v60, 5  ;;  %v1201_v22 = vshll.u32 %v9896_v56, 16  ;;  %v9922_v38 = vld [vmem:[#allocation2 + $0x5c] sm:$0x1] }
 0x20f   :  { %v7741_v57 = vcombine.low %v1176_v59, %v1190_v13  ;;  %8589 = vmatmul.mubr.msk.bf16.gmra.mxu0 %vm195_vm0, %v7764_v3  ;;  %8598 = vmatprep.subr.bf16.mxu1 %v9121_v39  ;;  %v1199_v35 = vrot.slane %v1198_v11, 4  ;;  %v1212_v23 = vor.u32 %v9854_v6, %v9852_v54  ;;  %v1215_v4 = vshll.u32 %v9900_v62, 16  ;;  %v1078_v7 = vld [vmem:[#allocation2 + $0x80] sm:$0xf]  ;;  %v9935_v11 = vld [vmem:[#allocation2 + $0x6c] sm:$0x1] }
 0x210   :  { %v1203_v49 = vrot.slane %v1201_v22, 5  ;;  %v1276_v26 = vshrl.u32 %v1076_v5, 16  ;;  %v1279_v27 = vshll.u32 %v1076_v5, 16  ;;  %v1290_v14 = vshrl.u32 %v1077_v9, 16  ;;  %v9130_v59 = vld [vmem:[#allocation7 + $0x40] sm:$0xff]  }
 0x211   :  { %8560 = vmatprep.mubr.msk.bf16.mxu1 %vm195_vm0, %v7741_v57  ;;  %v1213_v34 = vrot.slane %v1212_v23, 4  ;;  %v1217_v61 = vrot.slane %v1215_v4, 5  ;;  %v1293_v0 = vshll.u32 %v1077_v9, 16  ;;  %v7765_v19 = vcombine.low %v1076_v5, %v1077_v9  ;;  %v9940_v13 = vld [vmem:[#allocation2 + $0x74] sm:$0x1] }
 0x212   :  { %v1204_v54 = vsel %vm9693_vm12, %v1199_v35, %v1203_v49  ;;  %8599 = vmatpush3.bf16.msra.mxu1 %v9121_v39  ;;  %v1278_v6 = vrot.slane %v1276_v26, 4  ;;  %v1281_v36 = vrot.slane %v1279_v27, 5  ;;  %v1292_v29 = vrot.slane %v1290_v14, 4  ;;  %v9128_v39 = vld [vmem:[#allocation2 + $0x8] ss:$8 sps:$4 sm:$0xff]   ;;  %v9959_v14 = vld [vmem:[#allocation7 + $0x98] sm:$0xff]  }
 0x213   :  { %v1218_v43 = vsel %vm9693_vm12, %v1213_v34, %v1217_v61  ;;  %v1295_v37 = vrot.slane %v1293_v0, 5  ;;  %8592 = vmatprep.mubr.msk.bf16.mxu0 %vm195_vm0, %v7765_v19  ;;  %v1240_v44 = vor.u32 %v9888_v42, %v9886_v41  ;;  %v1243_v50 = vshll.u32 %v9922_v38, 16  ;;  %8600 = vmatprep.subr.bf16.mxu1 %v9126_v16  ;;  %v9948_v4 = vld [vmem:[#allocation2 + $0x7c] sm:$0x1]  ;;  %v9957_v27 = vld [vmem:[#allocation2 + $0x84] sm:$0x1] }
 0x214   :  { %v7742_v45 = vcombine.low %v1204_v54, %v1218_v43  ;;  %v1304_v51 = vshrl.u32 %v1078_v7, 16  ;;  %v1307_v46 = vshll.u32 %v1078_v7, 16  ;;  %v1318_v52 = vshrl.u32 %v1079_v40, 16  ;;  %v9964_v34 = vld [vmem:[#allocation2 + $0x8c] sm:$0x1] }
 0x215   :  { %v1241_v47 = vrot.slane %v1240_v44, 4  ;;  %v1245_v48 = vrot.slane %v1243_v50, 5  ;;  %v1321_v60 = vshll.u32 %v1079_v40, 16  ;;  %v7766_v3 = vcombine.low %v1078_v7, %v1079_v40  ;;  %v1696_v50 = vld [vmem:[#allocation2 + $0x10] sm:$0xe] }
 0x216   :  { %8561 = vmatmul.mubr.msk.bf16.gmra.mxu1 %vm195_vm0, %v7742_v45  ;;  %v1306_v41 = vrot.slane %v1304_v51, 4  ;;  %v1309_v42 = vrot.slane %v1307_v46, 5  ;;  %v1320_v5 = vrot.slane %v1318_v52, 4  ;;  %v1254_v9 = vor.u32 %v9906_v1, %v9904_v63  ;;  %v1697_v45 = vld [vmem:[#allocation2 + $0x18] sm:$0xe] }
 0x217   :  { %v1246_v22 = vsel %vm9693_vm12, %v1241_v47, %v1245_v48  ;;  %v1323_v57 = vrot.slane %v1321_v60, 5  ;;  %8593 = vmatmul.mubr.msk.bf16.gmra.mxu0 %vm195_vm0, %v7766_v3  ;;  %v1257_v35 = vshll.u32 %v9933_v53, 16  ;;  %v1268_v23 = vor.u32 %v9915_v8, %v9913_v18  ;;  %8601 = vmatpush3.bf16.msra.mxu1 %v9126_v16  ;;  %v9131_v52 = vld [vmem:[#allocation2 + $0x18] ss:$8 sps:$4 sm:$0xff]   ;;  %v9132_v3 = vld [vmem:[#allocation2 + $0x28] ss:$8 sps:$4 sm:$0xff]  }
 0x218   :  { %v7743_v63 = vcombine.low %v1232_v25, %v1246_v22  ;;  %v1255_v1 = vrot.slane %v1254_v9, 4  ;;  %v1271_v49 = vshll.u32 %v9935_v11, 16  ;;  %8628 = vmatprep.mubr.msk.bf16.mxu0 %vm195_vm0, %v9128_v39  ;;  %v1282_v26 = vor.u32 %v1281_v36, %v1278_v6  ;;  %8602 = vmatprep.subr.bf16.mxu1 %v9130_v59  ;;  %v1695_v6 = vld [vmem:[#allocation2 + $0x8] sm:$0xe]  ;;  %v9140_v36 = vld [vmem:[#allocation7 + $0xb0] sm:$0xff]  }
 0x219   :  { %v1259_v18 = vrot.slane %v1257_v35, 5  ;;  %v1269_v8 = vrot.slane %v1268_v23, 4  ;;  %v1285_v16 = vshll.u32 %v9940_v13, 16  ;;  %v1296_v40 = vor.u32 %v1295_v37, %v1292_v29  ;;  %v1698_v47 = vld [vmem:[#allocation2 + $0x20] sm:$0xe] }
 0x21a   :  { %8564 = vmatprep.mubr.msk.bf16.mxu1 %vm195_vm0, %v7743_v63  ;;  %v1273_v2 = vrot.slane %v1271_v49, 5  ;;  %v1283_v10 = vrot.slane %v1282_v26, 4  ;;  %v1299_v25 = vshll.u32 %v9948_v4, 16  ;;  %v1310_v61 = vor.u32 %v1309_v42, %v1306_v41  ;;  %v1699_v35 = vld [vmem:[#allocation2 + $0x28] sm:$0xe] }
 0x21b   :  { %v1260_v0 = vsel %vm9693_vm12, %v1255_v1, %v1259_v18  ;;  %v1287_v19 = vrot.slane %v1285_v16, 5  ;;  %v1297_v7 = vrot.slane %v1296_v40, 4  ;;  %v1313_v54 = vshll.u32 %v9957_v27, 16  ;;  %8603 = vmatpush3.bf16.msra.mxu1 %v9130_v59  ;;  %v1700_v49 = vld [vmem:[#allocation2 + $0x30] sm:$0xe]  ;;  %v9143_v26 = vld [vmem:[#allocation7 + $0xa8] sm:$0xff]  }
 0x21c   :  { %v1274_v29 = vsel %vm9693_vm12, %v1269_v8, %v1273_v2  ;;  %v1301_v43 = vrot.slane %v1299_v25, 5  ;;  %v1311_v37 = vrot.slane %v1310_v61, 4  ;;  %v1324_v44 = vor.u32 %v1323_v57, %v1320_v5  ;;  %8644 = vmatprep.subr.bf16.mxu1 %v9959_v14  ;;  %v1701_v40 = vld [vmem:[#allocation2 + $0x38] sm:$0xe] }
 0x21d   :  { %v7744_v51 = vcombine.low %v1260_v0, %v1274_v29  ;;  %v1288_v46 = vsel %vm9693_vm12, %v1283_v10, %v1287_v19  ;;  %v1315_v39 = vrot.slane %v1313_v54, 5  ;;  %v1327_v59 = vshll.u32 %v9964_v34, 16  ;;  %v1703_v2 = vld [vmem:[#allocation2 + $0x58] sm:$0xe]  ;;  %v10014_v0 = vld [vmem:[#allocation2 + $0xc] sm:$0x1] }
 0x21e   :  { %v1302_v48 = vsel %vm9693_vm12, %v1297_v7, %v1301_v43  ;;  %v1325_v60 = vrot.slane %v1324_v44, 4  ;;  %v7780_v41 = vrot.slane %v1695_v6, 9  ;;  %v1751_v42 = vrot.slane %v9828_v21, 5  ;;  %v10018_v29 = vld [vmem:[#allocation2 + $0x14] sm:$0x1] }
 0x21f   :  { %8565 = vmatmul.mubr.msk.bf16.gmra.mxu1 %vm195_vm0, %v7744_v51  ;;  %v7745_v5 = vcombine.low %v1288_v46, %v1302_v48  ;;  %8629 = vmatmul.mubr.msk.bf16.vlgmr.msra.gmra.mxu0 %vm195_vm0, %v9131_v52  ;;  %v1316_v9 = vsel %vm9693_vm12, %v1311_v37, %v1315_v39  ;;  %v1329_v22 = vrot.slane %v1327_v59, 5  ;;  %v7781_v57 = vrot.slane %v1696_v50, 9  ;;  %v2680_v43 = vld [vmem:[#allocation2 + $0x10] sm:$0xe]  ;;  %v9133_v37 = vld [vmem:[#allocation2 + $0x38] ss:$8 sps:$4 sm:$0xff]  }
 0x220   :  { %8632 = vmatprep.mubr.msk.bf16.mxu0 %vm195_vm0, %v9132_v3  ;;  %v1752_v23 = vsel %vm9700_vm13, %v7780_v41, %v1751_v42  ;;  %v1755_v63 = vrot.slane %v9844_v58, 5  ;;  %v7782_v1 = vrot.slane %v1697_v45, 9  ;;  %v1759_v21 = vrot.slane %v9848_v32, 5  ;;  %8669 = vmatpush3.bf16.msra.mxu0 %v9882_v31  ;;  %v1706_v52 = vld [vmem:[#allocation2 + $0x70] sm:$0xe]  ;;  %v9144_v39 = vld [vmem:[#allocation7 + $0xa0] sm:$0xff]  }
 0x221   :  { %8568 = vmatprep.mubr.msk.bf16.mxu1 %vm195_vm0, %v7745_v5  ;;  %v1330_v18 = vsel %vm9693_vm12, %v1325_v60, %v1329_v22  ;;  %v7783_v8 = vrot.slane %v1698_v47, 9  ;;  %v1763_v16 = vrot.slane %v9865_v24, 5  ;;  %v9998_v58 = vsel %vm9700_vm13, %v7787_v28, %v1779_v30  ;;  %8670 = vmatprep.subr.bf16.mxu0 %v9140_v36  ;;  %v1704_v24 = vld [vmem:[#allocation2 + $0x60] sm:$0xe]  ;;  %v1705_v30 = vld [vmem:[#allocation2 + $0x68] sm:$0xe] }
 0x222   :  { %v7746_v32 = vcombine.low %v1316_v9, %v1330_v18  ;;  %v7795_v31 = vcombine.low %v9712_v20, %v1752_v23  ;;  %v10003_v10 = vsel %vm9700_vm13, %v7781_v57, %v1755_v63  ;;  %v7784_v25 = vrot.slane %v1699_v35, 9  ;;  %v2679_v20 = vld [vmem:[#allocation2 + $0x8] sm:$0xe]  ;;  %v10034_v59 = vld [vmem:[#allocation2 + $0x1c] sm:$0x1] }
 0x223   :  { %v10007_v61 = vsel %vm9700_vm13, %v7782_v1, %v1759_v21  ;;  %v10011_v55 = vsel %vm9700_vm13, %v7783_v8, %v1763_v16  ;;  %v1767_v17 = vrot.slane %v9876_v33, 5  ;;  %v7785_v28 = vrot.slane %v1700_v49, 9  ;;  %v1707_v60 = vld [vmem:[#allocation2 + $0x78] sm:$0xe]  ;;  %v10051_v3 = vld [vmem:[#allocation2 + $0x24] sm:$0x1] }
 0x224   :  { %v1771_v19 = vrot.slane %v9896_v56, 5  ;;  %v7786_v7 = vrot.slane %v1701_v40, 9  ;;  %v1775_v54 = vrot.slane %v9900_v62, 5  ;;  %v7788_v6 = vrot.slane %v1703_v2, 9  ;;  %8671 = vmatpush3.bf16.msra.mxu0 %v9140_v36  ;;  %v9135_v62 = vld [vmem:[#allocation2 + $0x58] ss:$8 sps:$4 sm:$0xff]  }
 0x225   :  { %v10022_v44 = vsel %vm9700_vm13, %v7784_v25, %v1767_v17  ;;  %v1783_v33 = vrot.slane %v9922_v38, 5  ;;  %8672 = vmatprep.subr.bf16.mxu0 %v9143_v26  ;;  %v7789_v50 = vrot.slane %v1704_v24, 9  ;;  %v1787_v45 = vrot.slane %v9933_v53, 5  ;;  %v2681_v22 = vld [vmem:[#allocation2 + $0x18] sm:$0xe]  ;;  %v9137_v40 = vld [vmem:[#allocation7 + $0x90] sm:$0xff]  }
 0x226   :  { %v7796_v56 = vcombine.low %v10003_v10, %v10007_v61  ;;  %v7797_v36 = vcombine.low %v10011_v55, %v10022_v44  ;;  %v10032_v51 = vsel %vm9700_vm13, %v7785_v28, %v1771_v19  ;;  %v7790_v46 = vrot.slane %v1705_v30, 9  ;;  %v2682_v63 = vld [vmem:[#allocation2 + $0x20] sm:$0xe]  ;;  %v10069_v16 = vld [vmem:[#allocation7 + $0xf8] sm:$0xff]   ;;  %v1709_v25 = vld [vmem:[#allocation2 + $0x88] sm:$0xe] }
 0x227   :  { %8569 = vmatmul.mubr.msk.bf16.gmra.mxu1 %vm195_vm0, %v7746_v32  ;;  %8633 = vmatmul.mubr.msk.bf16.gmra.mxu0 %vm195_vm0, %v9133_v37  ;;  %v10040_v38 = vsel %vm9700_vm13, %v7786_v7, %v1775_v54  ;;  %v10044_v53 = vsel %vm9700_vm13, %v7788_v6, %v1783_v33  ;;  %v10048_v47 = vsel %vm9700_vm13, %v7789_v50, %v1787_v45  ;;  %v1791_v48 = vrot.slane %v9935_v11, 5  ;;  %v1708_v8 = vld [vmem:[#allocation2 + $0x80] sm:$0xe]  ;;  %v2683_v24 = vld [vmem:[#allocation2 + $0x28] sm:$0xe] }
 0x228   :  { %8604 = vmatprep.mubr.msk.bf16.mxu1 %vm195_vm0, %v7795_v31  ;;  %8636 = vmatprep.mubr.msk.bf16.mxu0 %vm195_vm0, %v9135_v62  ;;  %v7798_v41 = vcombine.low %v10032_v51, %v10040_v38  ;;  %v7855_v42 = vrot.slane %v2679_v20, 9  ;;  %v2729_v5 = vrot.slane %v10014_v0, 5  ;;  %v7856_v9 = vrot.slane %v2680_v43, 9  ;;  %v10089_v20 = vld [vmem:[#allocation2 + $0x2c] sm:$0x1] }
 0x229   :  { %v10060_v57 = vsel %vm9700_vm13, %v7790_v46, %v1791_v48  ;;  %8673 = vmatpush3.bf16.msra.mxu0 %v9143_v26  ;;  %v2733_v11 = vrot.slane %v10018_v29, 5  ;;  %v7791_v35 = vrot.slane %v1706_v52, 9  ;;  %v1795_v23 = vrot.slane %v9940_v13, 5  ;;  %v9136_v26 = vld [vmem:[#allocation2 + $0x68] ss:$8 sps:$4 sm:$0xff]  }
 0x22a   :  { %v7799_v1 = vcombine.low %v9998_v58, %v10044_v53  ;;  %v7800_v21 = vcombine.low %v10048_v47, %v10060_v57  ;;  %v7792_v49 = vrot.slane %v1707_v60, 9  ;;  %v1799_v18 = vrot.slane %v9948_v4, 5  ;;  %8674 = vmatprep.subr.bf16.mxu0 %v9144_v39  ;;  %v2684_v19 = vld [vmem:[#allocation2 + $0x30] sm:$0xe]  ;;  %v10098_v37 = vld [vmem:[#allocation2 + $0x34] sm:$0x1] }
 0x22b   :  { %v10073_v2 = vsel %vm9700_vm13, %v7855_v42, %v2729_v5  ;;  %v10077_v13 = vsel %vm9700_vm13, %v7856_v9, %v2733_v11  ;;  %v7857_v32 = vrot.slane %v2681_v22, 9  ;;  %v2737_v31 = vrot.slane %v10034_v59, 5  ;;  %v2229_v33 = vld [vmem:[#allocation2 + $0x8] sm:$0xf]  ;;  %v2231_v52 = vld [vmem:[#allocation2 + $0x10] sm:$0xf] }
 0x22c   :  { %v10082_v4 = vsel %vm9700_vm13, %v7791_v35, %v1795_v23  ;;  %v10086_v17 = vsel %vm9700_vm13, %v7792_v49, %v1799_v18  ;;  %v7858_v28 = vrot.slane %v2682_v63, 9  ;;  %v2741_v30 = vrot.slane %v10051_v3, 5  ;;  %v10116_v42 = vld [vmem:[#allocation2 + $0x3c] sm:$0x1]  ;;  %v9142_v10 = vld [vmem:[#allocation7 + $0x88] sm:$0xff]  }
 0x22d   :  { %v7871_v7 = vcombine.low %v10073_v2, %v10077_v13  ;;  %8675 = vmatpush3.bf16.msra.mxu0 %v9144_v39  ;;  %v10095_v54 = vsel %vm9700_vm13, %v7857_v32, %v2737_v31  ;;  %v7793_v6 = vrot.slane %v1708_v8, 9  ;;  %v1803_v43 = vrot.slane %v9957_v27, 5  ;;  %v9139_v27 = vld [vmem:[#allocation2 + $0x78] ss:$8 sps:$4 sm:$0xff]   ;;  %v10128_v22 = vld [vmem:[#allocation2 + $0x44] sm:$0x1] }
 0x22e   :  { %v10102_v50 = vsel %vm9700_vm13, %v7858_v28, %v2741_v30  ;;  %v7794_v45 = vrot.slane %v1709_v25, 9  ;;  %v1807_v62 = vrot.slane %v9964_v34, 5  ;;  %v7859_v46 = vrot.slane %v2683_v24, 9  ;;  %8716 = vmatprep.subr.bf16.mxu0 %v10069_v16  ;;  %v2685_v11 = vld [vmem:[#allocation2 + $0x38] sm:$0xe]  ;;  %v9145_v28 = vld [vmem:[#allocation7 + $0x80] sm:$0xff]  }
 0x22f   :  { %8605 = vmatmul.mubr.msk.bf16.vlgmr.msra.gmra.mxu1 %vm195_vm0, %v7796_v56  ;;  %8637 = vmatmul.mubr.msk.bf16.gmra.mxu0 %vm195_vm0, %v9136_v26  ;;  %v7801_v39 = vcombine.low %v10082_v4, %v10086_v17  ;;  %v7872_v48 = vcombine.low %v10095_v54, %v10102_v50  ;;  %v2745_v34 = vrot.slane %v10089_v20, 5  ;;  %v7860_v60 = vrot.slane %v2684_v19, 9  ;;  %v2686_v35 = vld [vmem:[#allocation2 + $0x40] sm:$0xe]  ;;  %v2233_v8 = vld [vmem:[#allocation2 + $0x18] sm:$0xf] }
 0x230   :  { %8645 = vmatpush3.bf16.msra.mxu1 %v9959_v14  ;;  %8608 = vmatprep.mubr.msk.bf16.mxu1 %vm195_vm0, %v7797_v36  ;;  %v10125_v61 = vsel %vm9700_vm13, %v7793_v6, %v1803_v43  ;;  %v2749_v56 = vrot.slane %v10098_v37, 5  ;;  %v2262_v5 = vshrl.u32 %v2229_v33, 16  ;;  %v2265_v9 = vshll.u32 %v2229_v33, 16  ;;  %v9141_v26 = vld [vmem:[#allocation2 + $0x88] ss:$8 sps:$4 sm:$0xff]   ;;  %v10181_v53 = vld [vmem:[#allocation7 + $0xd8] sm:$0xff]  }
 0x231   :  { %8646 = vmatprep.subr.bf16.mxu1 %v9137_v40  ;;  %8640 = vmatprep.mubr.msk.bf16.mxu0 %vm195_vm0, %v9139_v27  ;;  %v10133_v14 = vsel %vm9700_vm13, %v7794_v45, %v1807_v62  ;;  %v10137_v55 = vsel %vm9700_vm13, %v7859_v46, %v2745_v34  ;;  %v2271_v44 = vshll.u32 %v10014_v0, 16  ;;  %v2276_v36 = vshrl.u32 %v2231_v52, 16  ;;  %v2235_v24 = vld [vmem:[#allocation2 + $0x20] sm:$0xf]  ;;  %v2239_v2 = vld [vmem:[#allocation2 + $0x30] sm:$0xf] }
 0x232   :  { %v10142_v23 = vsel %vm9700_vm13, %v7860_v60, %v2749_v56  ;;  %v2264_v63 = vrot.slane %v2262_v5, 4  ;;  %v2267_v49 = vrot.slane %v2265_v9, 5  ;;  %v2279_v18 = vshll.u32 %v2231_v52, 16  ;;  %v10151_v56 = vld [vmem:[#allocation2 + $0x5c] sm:$0x1] }
 0x233   :  { %v7802_v32 = vcombine.low %v10125_v61, %v10133_v14  ;;  %v7873_v31 = vcombine.low %v10137_v55, %v10142_v23  ;;  %v2278_v25 = vrot.slane %v2276_v36, 4  ;;  %v2285_v0 = vshll.u32 %v10018_v29, 16  ;;  %v2687_v36 = vld [vmem:[#allocation2 + $0x58] sm:$0xe]  ;;  %v2243_v17 = vld [vmem:[#allocation2 + $0x40] sm:$0xf] }
 0x234   :  { %8647 = vmatpush3.bf16.msra.mxu1 %v9137_v40  ;;  %v2268_v30 = vor.u32 %v2267_v49, %v2264_v63  ;;  %v2281_v19 = vrot.slane %v2279_v18, 5  ;;  %v7861_v6 = vrot.slane %v2685_v11, 9  ;;  %v2753_v43 = vrot.slane %v10116_v42, 5  ;;  %v2241_v50 = vld [vmem:[#allocation2 + $0x38] sm:$0xf] }
 0x235   :  { %8648 = vmatprep.subr.bf16.mxu1 %v9142_v10  ;;  %v2273_v33 = vrot.slane %v2271_v44, 5  ;;  %v7862_v45 = vrot.slane %v2686_v35, 9  ;;  %v2757_v62 = vrot.slane %v10128_v22, 5  ;;  %v2290_v46 = vshrl.u32 %v2233_v8, 16  ;;  %v10163_v44 = vld [vmem:[#allocation2 + $0x64] sm:$0x1] }
 0x236   :  { %v2269_v52 = vrot.slane %v2268_v30, 4  ;;  %v2282_v27 = vor.u32 %v2281_v19, %v2278_v25  ;;  %v2287_v34 = vrot.slane %v2285_v0, 5  ;;  %v2293_v60 = vshll.u32 %v2233_v8, 16  ;;  %v2237_v35 = vld [vmem:[#allocation2 + $0x28] sm:$0xf] }
 0x237   :  { %8609 = vmatmul.mubr.msk.bf16.gmra.mxu1 %vm195_vm0, %v7798_v41  ;;  %8641 = vmatmul.mubr.msk.bf16.gmra.mxu0 %vm195_vm0, %v9141_v26  ;;  %v10160_v29 = vsel %vm9700_vm13, %v7862_v45, %v2757_v62  ;;  %v2292_v40 = vrot.slane %v2290_v46, 4  ;;  %v2299_v5 = vshll.u32 %v10034_v59, 16  ;;  %v2304_v9 = vshrl.u32 %v2235_v24, 16  ;;  %v2688_v59 = vld [vmem:[#allocation2 + $0x60] sm:$0xe] }
 0x238   :  { %8612 = vmatprep.mubr.msk.bf16.mxu1 %vm195_vm0, %v7799_v1  ;;  %8649 = vmatpush3.bf16.msra.mxu1 %v9142_v10  ;;  %v2274_v51 = vsel %vm9693_vm12, %v2269_v52, %v2273_v33  ;;  %v2283_v38 = vrot.slane %v2282_v27, 4  ;;  %v10173_v41 = vsel %vm9700_vm13, %v7861_v6, %v2753_v43  ;;  %v2295_v11 = vrot.slane %v2293_v60, 5  ;;  %v2689_v46 = vld [vmem:[#allocation2 + $0x68] sm:$0xe]  ;;  %v2690_v52 = vld [vmem:[#allocation2 + $0x70] sm:$0xe] }
 0x239   :  { %8676 = vmatprep.mubr.msk.bf16.mxu0 %vm195_vm0, %v7871_v7  ;;  %8650 = vmatprep.subr.bf16.mxu1 %v9145_v28  ;;  %v7874_v58 = vcombine.low %v10173_v41, %v10160_v29  ;;  %v2306_v1 = vrot.slane %v2304_v9, 4  ;;  %v2307_v10 = vshll.u32 %v2235_v24, 16  ;;  %v2313_v63 = vshll.u32 %v10051_v3, 16  ;;  %v10190_v3 = vld [vmem:[#allocation2 + $0x6c] sm:$0x1] }
 0x23a   :  { %v2288_v49 = vsel %vm9693_vm12, %v2283_v38, %v2287_v34  ;;  %v2296_v18 = vor.u32 %v2295_v11, %v2292_v40  ;;  %v7863_v8 = vrot.slane %v2687_v36, 9  ;;  %v2761_v26 = vrot.slane %v10151_v56, 5  ;;  %v9149_v40 = vld [vmem:[#allocation7 + $0xf0] sm:$0xff]   ;;  %v2247_v41 = vld [vmem:[#allocation2 + $0x60] sm:$0xf] }
 0x23b   :  { %v10187_v13 = vcombine.low %v2274_v51, %v2288_v49  ;;  %v2301_v7 = vrot.slane %v2299_v5, 5  ;;  %v2309_v25 = vrot.slane %v2307_v10, 5  ;;  %v7864_v0 = vrot.slane %v2688_v59, 9  ;;  %v10214_v51 = vld [vmem:[#allocation2 + $0x74] sm:$0x1] }
 0x23c   :  { %8651 = vmatpush3.bf16.msra.mxu1 %v9145_v28  ;;  %v2297_v30 = vrot.slane %v2296_v18, 4  ;;  %v2315_v19 = vrot.slane %v2313_v63, 5  ;;  %v2765_v24 = vrot.slane %v10163_v44, 5  ;;  %v2318_v6 = vshrl.u32 %v2237_v35, 16  ;;  %v10232_v63 = vld [vmem:[#allocation2 + $0x7c] sm:$0x1] }
 0x23d   :  { %8692 = vmatprep.subr.bf16.mxu1 %v10181_v53  ;;  %v2310_v43 = vor.u32 %v2309_v25, %v2306_v1  ;;  %v10195_v33 = vsel %vm9700_vm13, %v7863_v8, %v2761_v26  ;;  %v2321_v45 = vshll.u32 %v2237_v35, 16  ;;  %v2332_v62 = vshrl.u32 %v2239_v2, 16  ;;  %v2691_v26 = vld [vmem:[#allocation2 + $0x78] sm:$0xe] }
 0x23e   :  { %v10199_v28 = vsel %vm9700_vm13, %v7864_v0, %v2765_v24  ;;  %v2320_v27 = vrot.slane %v2318_v6, 4  ;;  %v2327_v34 = vshll.u32 %v10089_v20, 16  ;;  %v2335_v60 = vshll.u32 %v2239_v2, 16 }
 0x23f   :  { %8613 = vmatmul.mubr.msk.bf16.gmra.mxu1 %vm195_vm0, %v7800_v21  ;;  %8677 = vmatmul.mubr.msk.bf16.vlgmr.msra.gmra.mxu0 %vm195_vm0, %v7872_v48  ;;  %v2302_v5 = vsel %vm9693_vm12, %v2297_v30, %v2301_v7  ;;  %v2311_v9 = vrot.slane %v2310_v43, 4  ;;  %v7875_v36 = vcombine.low %v10195_v33, %v10199_v28  ;;  %v2323_v20 = vrot.slane %v2321_v45, 5  ;;  %v10243_v30 = vld [vmem:[#allocation2 + $0x84] sm:$0x1]  ;;  %v2245_v33 = vld [vmem:[#allocation2 + $0x58] sm:$0xf] }
 0x240   :  { %8616 = vmatprep.mubr.msk.bf16.mxu1 %vm195_vm0, %v7801_v39  ;;  %8680 = vmatprep.mubr.msk.bf16.mxu0 %vm195_vm0, %v7873_v31  ;;  %v2334_v47 = vrot.slane %v2332_v62, 4  ;;  %v2337_v57 = vrot.slane %v2335_v60, 5  ;;  %v2341_v21 = vshll.u32 %v10098_v37, 16  ;;  %v7865_v54 = vrot.slane %v2689_v46, 9  ;;  %v9151_v37 = vld [vmem:[#allocation7 + $0xe8] sm:$0xff]   ;;  %v9152_v45 = vld [vmem:[#allocation7 + $0xe0] sm:$0xff]  }
 0x241   :  { %v2316_v48 = vsel %vm9693_vm12, %v2311_v9, %v2315_v19  ;;  %v2324_v38 = vor.u32 %v2323_v20, %v2320_v27  ;;  %v2769_v11 = vrot.slane %v10190_v3, 5  ;;  %v7866_v4 = vrot.slane %v2690_v52, 9  ;;  %8717 = vmatpush3.bf16.msra.mxu0 %v10069_v16  ;;  %v2692_v19 = vld [vmem:[#allocation2 + $0x80] sm:$0xe]  ;;  %v10265_v9 = vld [vmem:[#allocation2 + $0x8c] sm:$0x1] }
 0x242   :  { %v10229_v39 = vcombine.low %v2302_v5, %v2316_v48  ;;  %v2329_v55 = vrot.slane %v2327_v34, 5  ;;  %v2338_v23 = vor.u32 %v2337_v57, %v2334_v47  ;;  %v2773_v31 = vrot.slane %v10214_v51, 5  ;;  %8718 = vmatprep.subr.bf16.mxu0 %v9149_v40  ;;  %v2249_v48 = vld [vmem:[#allocation2 + $0x68] sm:$0xf] }
 0x243   :  { %v2325_v59 = vrot.slane %v2324_v38, 4  ;;  %v2343_v35 = vrot.slane %v2341_v21, 5  ;;  %v2346_v1 = vshrl.u32 %v2241_v50, 16  ;;  %v2349_v10 = vshll.u32 %v2241_v50, 16  ;;  %v2694_v50 = vld [vmem:[#allocation2 + $0x90] sm:$0xe] }
 0x244   :  { %v2339_v49 = vrot.slane %v2338_v23, 4  ;;  %v10236_v18 = vsel %vm9700_vm13, %v7866_v4, %v2773_v31  ;;  %v2355_v16 = vshll.u32 %v10116_v42, 16  ;;  %v2360_v8 = vshrl.u32 %v2243_v17, 16 }
 0x245   :  { %v2330_v2 = vsel %vm9693_vm12, %v2325_v59, %v2329_v55  ;;  %v2770_v7 = vsel %vm9700_vm13, %v7865_v54, %v2769_v11  ;;  %v2348_v25 = vrot.slane %v2346_v1, 4  ;;  %v2351_v0 = vrot.slane %v2349_v10, 5  ;;  %8719 = vmatpush3.bf16.msra.mxu0 %v9149_v40  ;;  %v10271_v54 = vld [vmem:[#allocation2 + $0x94] sm:$0x1] }
 0x246   :  { %v2344_v24 = vsel %vm9693_vm12, %v2339_v49, %v2343_v35  ;;  %v7876_v6 = vcombine.low %v2770_v7, %v10236_v18  ;;  %v2362_v42 = vrot.slane %v2360_v8, 4  ;;  %v2363_v43 = vshll.u32 %v2243_v17, 16  ;;  %8720 = vmatprep.subr.bf16.mxu0 %v9151_v37  ;;  %v9147_v17 = vld [vmem:[#allocation7 + $0xd0] sm:$0xff]  }
 0x247   :  { %8617 = vmatmul.mubr.msk.bf16.gmra.mxu1 %vm195_vm0, %v7802_v32  ;;  %8681 = vmatmul.mubr.msk.bf16.gmra.mxu0 %vm195_vm0, %v7874_v58  ;;  %v2352_v62 = vor.u32 %v2351_v0, %v2348_v25  ;;  %v2357_v46 = vrot.slane %v2355_v16, 5  ;;  %v2369_v52 = vshll.u32 %v10128_v22, 16  ;;  %v7867_v28 = vrot.slane %v2691_v26, 9  ;;  %v2251_v49 = vld [vmem:[#allocation2 + $0x70] sm:$0xf] }
 0x248   :  { %8652 = vmatprep.mubr.msk.bf16.mxu1 %vm195_vm0, %v10187_v13  ;;  %8684 = vmatprep.mubr.msk.bf16.mxu0 %vm195_vm0, %v7875_v36  ;;  %v2365_v27 = vrot.slane %v2363_v43, 5  ;;  %v2777_v61 = vrot.slane %v10232_v63, 5  ;;  %v7868_v14 = vrot.slane %v2692_v19, 9  ;;  %v2781_v32 = vrot.slane %v10243_v30, 5  ;;  %v2693_v36 = vld [vmem:[#allocation2 + $0x88] sm:$0xe] }
 0x249   :  { %v7837_v34 = vcombine.low %v2330_v2, %v2344_v24  ;;  %v2353_v29 = vrot.slane %v2352_v62, 4  ;;  %v2374_v58 = vshrl.u32 %v2245_v33, 16  ;;  %v2377_v60 = vshll.u32 %v2245_v33, 16  ;;  %8721 = vmatpush3.bf16.msra.mxu0 %v9151_v37  ;;  %v3212_v0 = vld [vmem:[#allocation2 + $0x10] sm:$0xf]  ;;  %v9150_v19 = vld [vmem:[#allocation7 + $0xc8] sm:$0xff]  }
 0x24a   :  { %v2366_v40 = vor.u32 %v2365_v27, %v2362_v42  ;;  %v2371_v22 = vrot.slane %v2369_v52, 5  ;;  %v2778_v5 = vsel %vm9700_vm13, %v7867_v28, %v2777_v61  ;;  %v2383_v13 = vshll.u32 %v10151_v56, 16  ;;  %8722 = vmatprep.subr.bf16.mxu0 %v9152_v45  ;;  %v10291_v27 = vld [vmem:[#allocation2 + $0x14] sm:$0x1]  ;;  %v3214_v61 = vld [vmem:[#allocation2 + $0x18] sm:$0xf] }
 0x24b   :  { %v2358_v20 = vsel %vm9693_vm12, %v2353_v29, %v2357_v46  ;;  %v2782_v47 = vsel %vm9700_vm13, %v7868_v14, %v2781_v32  ;;  %v2376_v57 = vrot.slane %v2374_v58, 4  ;;  %v2379_v21 = vrot.slane %v2377_v60, 5  ;;  %v9153_v29 = vld [vmem:[#allocation7 + $0xc0] sm:$0xff]  }
 0x24c   :  { %v2367_v38 = vrot.slane %v2366_v40, 4  ;;  %v2385_v11 = vrot.slane %v2383_v13, 5  ;;  %v2388_v4 = vshrl.u32 %v2247_v41, 16  ;;  %v2391_v56 = vshll.u32 %v2247_v41, 16  ;;  %v10296_v40 = vld [vmem:[#allocation2 + $0x1c] sm:$0x1] }
 0x24d   :  { %v2380_v55 = vor.u32 %v2379_v21, %v2376_v57  ;;  %v2397_v23 = vshll.u32 %v10163_v44, 16  ;;  %v7869_v31 = vrot.slane %v2693_v36, 9  ;;  %v2785_v37 = vrot.slane %v10265_v9, 5  ;;  %8723 = vmatpush3.bf16.msra.mxu0 %v9152_v45 }
 0x24e   :  { %v2372_v59 = vsel %vm9693_vm12, %v2367_v38, %v2371_v22  ;;  %v2390_v35 = vrot.slane %v2388_v4, 4  ;;  %v2393_v1 = vrot.slane %v2391_v56, 5  ;;  %v7870_v10 = vrot.slane %v2694_v50, 9  ;;  %v2255_v4 = vld [vmem:[#allocation2 + $0x80] sm:$0xf] }
 0x24f   :  { %8653 = vmatmul.mubr.msk.bf16.vlgmr.msra.gmra.mxu1 %vm195_vm0, %v10229_v39  ;;  %8685 = vmatmul.mubr.msk.bf16.gmra.mxu0 %vm195_vm0, %v7876_v6  ;;  %v7838_v18 = vcombine.low %v2358_v20, %v2372_v59  ;;  %v7877_v16 = vcombine.low %v2778_v5, %v2782_v47  ;;  %v2381_v8 = vrot.slane %v2380_v55, 4  ;;  %v2399_v44 = vrot.slane %v2397_v23, 5  ;;  %v2253_v5 = vld [vmem:[#allocation2 + $0x78] sm:$0xf] }
 0x250   :  { %8693 = vmatpush3.bf16.msra.mxu1 %v10181_v53  ;;  %8656 = vmatprep.mubr.msk.bf16.mxu1 %vm195_vm0, %v7837_v34  ;;  %v2394_v26 = vor.u32 %v2393_v1, %v2390_v35  ;;  %v2789_v2 = vrot.slane %v10271_v54, 5  ;;  %v2402_v7 = vshrl.u32 %v2249_v48, 16  ;;  %v2405_v25 = vshll.u32 %v2249_v48, 16  ;;  %v10307_v59 = vld [vmem:[#allocation7 + $0x118] sm:$0xff]  }
 0x251   :  { %8694 = vmatprep.subr.bf16.mxu1 %v9147_v17  ;;  %8688 = vmatprep.mubr.msk.bf16.mxu0 %vm195_vm0, %v7877_v16  ;;  %v2786_v39 = vsel %vm9700_vm13, %v7869_v31, %v2785_v37  ;;  %v2411_v24 = vshll.u32 %v10190_v3, 16  ;;  %v2416_v6 = vshrl.u32 %v2251_v49, 16  ;;  %v2419_v42 = vshll.u32 %v2251_v49, 16  ;;  %v3216_v37 = vld [vmem:[#allocation2 + $0x20] sm:$0xf] }
 0x252   :  { %v2395_v53 = vrot.slane %v2394_v26, 4  ;;  %v2790_v43 = vsel %vm9700_vm13, %v7870_v10, %v2789_v2  ;;  %v2404_v33 = vrot.slane %v2402_v7, 4  ;;  %v2407_v45 = vrot.slane %v2405_v25, 5  ;;  %v10310_v26 = vld [vmem:[#allocation2 + $0x24] sm:$0x1] }
 0x253   :  { %v2386_v62 = vsel %vm9693_vm12, %v2381_v8, %v2385_v11  ;;  %v7878_v46 = vcombine.low %v2786_v39, %v2790_v43  ;;  %v2418_v52 = vrot.slane %v2416_v6, 4  ;;  %v2421_v28 = vrot.slane %v2419_v42, 5  ;;  %v10316_v43 = vld [vmem:[#allocation2 + $0x2c] sm:$0x1] }
 0x254   :  { %8695 = vmatpush3.bf16.msra.mxu1 %v9147_v17  ;;  %v2400_v3 = vsel %vm9693_vm12, %v2395_v53, %v2399_v44  ;;  %v2408_v14 = vor.u32 %v2407_v45, %v2404_v33  ;;  %v2425_v32 = vshll.u32 %v10214_v51, 16  ;;  %v3245_v34 = vshrl.u32 %v3212_v0, 16 }
 0x255   :  { %v7839_v41 = vcombine.low %v2386_v62, %v2400_v3  ;;  %8696 = vmatprep.subr.bf16.mxu1 %v9150_v19  ;;  %v2413_v58 = vrot.slane %v2411_v24, 5  ;;  %v2422_v60 = vor.u32 %v2421_v28, %v2418_v52  ;;  %v3248_v22 = vshll.u32 %v3212_v0, 16  ;;  %v3218_v0 = vld [vmem:[#allocation2 + $0x28] sm:$0xf] }
 0x256   :  { %v2409_v13 = vrot.slane %v2408_v14, 4  ;;  %v3247_v36 = vrot.slane %v3245_v34, 4  ;;  %v3254_v20 = vshll.u32 %v10291_v27, 16  ;;  %v3259_v47 = vshrl.u32 %v3214_v61, 16  ;;  %v2257_v28 = vld [vmem:[#allocation2 + $0x88] sm:$0xf] }
 0x257   :  { %8657 = vmatmul.mubr.msk.bf16.gmra.mxu1 %vm195_vm0, %v7838_v18  ;;  %8689 = vmatmul.mubr.msk.bf16.gmra.mxu0 %vm195_vm0, %v7878_v46  ;;  %v2423_v51 = vrot.slane %v2422_v60, 4  ;;  %v2427_v57 = vrot.slane %v2425_v32, 5  ;;  %v3250_v21 = vrot.slane %v3248_v22, 5  ;;  %v3262_v50 = vshll.u32 %v3214_v61, 16  ;;  %v2259_v34 = vld [vmem:[#allocation2 + $0x90] sm:$0xf] }
 0x258   :  { %8660 = vmatprep.mubr.msk.bf16.mxu1 %vm195_vm0, %v7839_v41  ;;  %v2414_v48 = vsel %vm9693_vm12, %v2409_v13, %v2413_v58  ;;  %8697 = vmatpush3.bf16.msra.mxu1 %v9150_v19  ;;  %v3261_v38 = vrot.slane %v3259_v47, 4  ;;  %v3268_v11 = vshll.u32 %v10296_v40, 16  ;;  %v2430_v56 = vshrl.u32 %v2253_v5, 16 }
 0x259   :  { %v2428_v17 = vsel %vm9693_vm12, %v2423_v51, %v2427_v57  ;;  %v3251_v55 = vor.u32 %v3250_v21, %v3247_v36  ;;  %v3264_v23 = vrot.slane %v3262_v50, 5  ;;  %v2433_v31 = vshll.u32 %v2253_v5, 16  ;;  %8698 = vmatprep.subr.bf16.mxu1 %v9153_v29 }
 0x25a   :  { %v7840_v35 = vcombine.low %v2414_v48, %v2428_v17  ;;  %v3256_v1 = vrot.slane %v3254_v20, 5  ;;  %v2432_v10 = vrot.slane %v2430_v56, 4  ;;  %v2439_v49 = vshll.u32 %v10232_v63, 16 }
 0x25b   :  { %v3252_v18 = vrot.slane %v3251_v55, 4  ;;  %v3265_v16 = vor.u32 %v3264_v23, %v3261_v38  ;;  %v2435_v8 = vrot.slane %v2433_v31, 5  ;;  %v2444_v44 = vshrl.u32 %v2255_v4, 16  ;;  %v3222_v31 = vld [vmem:[#allocation2 + $0x38] sm:$0xf] }
 0x25c   :  { %v3270_v2 = vrot.slane %v3268_v11, 5  ;;  %v2447_v7 = vshll.u32 %v2255_v4, 16  ;;  %v2453_v25 = vshll.u32 %v10243_v30, 16  ;;  %v3273_v39 = vshrl.u32 %v3216_v37, 16  ;;  %8699 = vmatpush3.bf16.msra.mxu1 %v9153_v29  ;;  %v3220_v11 = vld [vmem:[#allocation2 + $0x30] sm:$0xf] }
 0x25d   :  { %v3257_v19 = vsel %vm9693_vm12, %v3252_v18, %v3256_v1  ;;  %v3266_v24 = vrot.slane %v3265_v16, 4  ;;  %v2436_v6 = vor.u32 %v2435_v8, %v2432_v10  ;;  %v2446_v42 = vrot.slane %v2444_v44, 4  ;;  %8740 = vmatprep.subr.bf16.mxu1 %v10307_v59  ;;  %v10329_v4 = vld [vmem:[#allocation2 + $0x34] sm:$0x1] }
 0x25e   :  { %v2441_v63 = vrot.slane %v2439_v49, 5  ;;  %v2449_v53 = vrot.slane %v2447_v7, 5  ;;  %v3275_v33 = vrot.slane %v3273_v39, 4  ;;  %v3276_v45 = vshll.u32 %v3216_v37, 16  ;;  %v10338_v7 = vld [vmem:[#allocation2 + $0x3c] sm:$0x1] }
 0x25f   :  { %8661 = vmatmul.mubr.msk.bf16.gmra.mxu1 %vm195_vm0, %v7840_v35  ;;  %v3271_v30 = vsel %vm9693_vm12, %v3266_v24, %v3270_v2  ;;  %v2437_v62 = vrot.slane %v2436_v6, 4  ;;  %v3282_v46 = vshll.u32 %v10310_v26, 16  ;;  %v3287_v52 = vshrl.u32 %v3218_v0, 16  ;;  %v10340_v6 = vld [vmem:[#allocation2 + $0x44] sm:$0x1] }
 0x260   :  { %v7911_v61 = vcombine.low %v3257_v19, %v3271_v30  ;;  %v2450_v3 = vor.u32 %v2449_v53, %v2446_v42  ;;  %v3278_v14 = vrot.slane %v3276_v45, 5  ;;  %v3290_v32 = vshll.u32 %v3218_v0, 16  ;;  %v3224_v0 = vld [vmem:[#allocation2 + $0x40] sm:$0xf]  ;;  %v3226_v45 = vld [vmem:[#allocation2 + $0x48] sm:$0xf] }
 0x261   :  { %v2442_v29 = vsel %vm9693_vm12, %v2437_v62, %v2441_v63  ;;  %v2455_v41 = vrot.slane %v2453_v25, 5  ;;  %v3289_v58 = vrot.slane %v3287_v52, 4  ;;  %v3296_v60 = vshll.u32 %v10316_v43, 16 }
 0x262   :  { %8724 = vmatprep.mubr.msk.bf16.mxu0 %vm195_vm0, %v7911_v61  ;;  %v2451_v22 = vrot.slane %v2450_v3, 4  ;;  %v3279_v5 = vor.u32 %v3278_v14, %v3275_v33  ;;  %v3292_v13 = vrot.slane %v3290_v32, 5  ;;  %v2458_v36 = vshrl.u32 %v2257_v28, 16 }
 0x263   :  { %v3284_v20 = vrot.slane %v3282_v46, 5  ;;  %v2461_v47 = vshll.u32 %v2257_v28, 16  ;;  %v2467_v51 = vshll.u32 %v10265_v9, 16  ;;  %v2472_v57 = vshrl.u32 %v2259_v34, 16 }
 0x264   :  { %v2456_v21 = vsel %vm9693_vm12, %v2451_v22, %v2455_v41  ;;  %v3280_v50 = vrot.slane %v3279_v5, 4  ;;  %v3293_v48 = vor.u32 %v3292_v13, %v3289_v58  ;;  %v2460_v38 = vrot.slane %v2458_v36, 4  ;;  %v3228_v58 = vld [vmem:[#allocation2 + $0x60] sm:$0xf]  ;;  %v3230_v36 = vld [vmem:[#allocation2 + $0x68] sm:$0xf] }
 0x265   :  { %v7841_v56 = vcombine.low %v2442_v29, %v2456_v21  ;;  %v3298_v17 = vrot.slane %v3296_v60, 5  ;;  %v2463_v55 = vrot.slane %v2461_v47, 5  ;;  %v2469_v23 = vrot.slane %v2467_v51, 5  ;;  %v10351_v51 = vld [vmem:[#allocation2 + $0x4c] sm:$0x1] }
 0x266   :  { %v3294_v37 = vrot.slane %v3293_v48, 4  ;;  %v2474_v35 = vrot.slane %v2472_v57, 4  ;;  %v2475_v1 = vshll.u32 %v2259_v34, 16  ;;  %v2481_v9 = vshll.u32 %v10271_v54, 16 }
 0x267   :  { %8664 = vmatprep.mubr.msk.bf16.mxu1 %vm195_vm0, %v7841_v56  ;;  %v2464_v10 = vor.u32 %v2463_v55, %v2460_v38  ;;  %v3301_v49 = vshrl.u32 %v3220_v11, 16  ;;  %v3304_v18 = vshll.u32 %v3220_v11, 16  ;;  %v3310_v16 = vshll.u32 %v10329_v4, 16  ;;  %v9154_v38 = vld [vmem:[#allocation2 + $0x10] ss:$8 sps:$4 sm:$0xff]  }
 0x268   :  { %v3285_v8 = vsel %vm9693_vm12, %v3280_v50, %v3284_v20  ;;  %v3299_v44 = vsel %vm9693_vm12, %v3294_v37, %v3298_v17  ;;  %v2477_v2 = vrot.slane %v2475_v1, 5  ;;  %v3315_v25 = vshrl.u32 %v3222_v31, 16  ;;  %v10353_v50 = vld [vmem:[#allocation2 + $0x64] sm:$0x1] }
 0x269   :  { %v7912_v39 = vcombine.low %v3285_v8, %v3299_v44  ;;  %v2465_v54 = vrot.slane %v2464_v10, 4  ;;  %v3303_v19 = vrot.slane %v3301_v49, 4  ;;  %v3306_v24 = vrot.slane %v3304_v18, 5  ;;  %v3232_v18 = vld [vmem:[#allocation2 + $0x70] sm:$0xf] }
 0x26a   :  { %v2478_v42 = vor.u32 %v2477_v2, %v2474_v35  ;;  %v2483_v63 = vrot.slane %v2481_v9, 5  ;;  %v3317_v53 = vrot.slane %v3315_v25, 4  ;;  %v3318_v33 = vshll.u32 %v3222_v31, 16  ;;  %v10357_v31 = vld [vmem:[#allocation2 + $0x6c] sm:$0x1] }
 0x26b   :  { %8725 = vmatmul.mubr.msk.bf16.vlgmr.msra.gmra.mxu0 %vm195_vm0, %v7912_v39  ;;  %v3307_v30 = vor.u32 %v3306_v24, %v3303_v19  ;;  %v3312_v62 = vrot.slane %v3310_v16, 5  ;;  %v3324_v46 = vshll.u32 %v10338_v7, 16  ;;  %v3329_v52 = vshrl.u32 %v3224_v0, 16  ;;  %v3234_v25 = vld [vmem:[#allocation2 + $0x78] sm:$0xf] }
 0x26c   :  { %v2470_v28 = vsel %vm9693_vm12, %v2465_v54, %v2469_v23  ;;  %v2479_v61 = vrot.slane %v2478_v42, 4  ;;  %v3320_v3 = vrot.slane %v3318_v33, 5  ;;  %v3332_v14 = vshll.u32 %v3224_v0, 16  ;;  %v9156_v42 = vld [vmem:[#allocation2 + $0x20] ss:$8 sps:$4 sm:$0xff]  }
 0x26d   :  { %v3308_v32 = vrot.slane %v3307_v30, 4  ;;  %v3331_v34 = vrot.slane %v3329_v52, 4  ;;  %v3338_v29 = vshll.u32 %v10340_v6, 16  ;;  %v3343_v41 = vshrl.u32 %v3226_v45, 16 }
 0x26e   :  { %v2484_v60 = vsel %vm9693_vm12, %v2479_v61, %v2483_v63  ;;  %v3321_v22 = vor.u32 %v3320_v3, %v3317_v53  ;;  %v3326_v5 = vrot.slane %v3324_v46, 5  ;;  %v3334_v13 = vrot.slane %v3332_v14, 5  ;;  %v10367_v53 = vld [vmem:[#allocation2 + $0x74] sm:$0x1]  ;;  %v10369_v46 = vld [vmem:[#allocation2 + $0x7c] sm:$0x1] }
 0x26f   :  { %v7842_v20 = vcombine.low %v2470_v28, %v2484_v60  ;;  %v3313_v47 = vsel %vm9693_vm12, %v3308_v32, %v3312_v62  ;;  %v3345_v57 = vrot.slane %v3343_v41, 4  ;;  %v3346_v21 = vshll.u32 %v3226_v45, 16  ;;  %v9158_v32 = vld [vmem:[#allocation7 + $0x110] sm:$0xff]  }
 0x270   :  { %v3322_v48 = vrot.slane %v3321_v22, 4  ;;  %v3335_v11 = vor.u32 %v3334_v13, %v3331_v34  ;;  %v3352_v56 = vshll.u32 %v10351_v51, 16  ;;  %v3357_v17 = vshrl.u32 %v3228_v58, 16  ;;  %v3236_v34 = vld [vmem:[#allocation2 + $0x80] sm:$0xf] }
 0x271   :  { %8665 = vmatmul.mubr.msk.bf16.gmra.mxu1 %vm195_vm0, %v7842_v20  ;;  %v3340_v55 = vrot.slane %v3338_v29, 5  ;;  %v3348_v23 = vrot.slane %v3346_v21, 5  ;;  %v3360_v37 = vshll.u32 %v3228_v58, 16  ;;  %v3371_v35 = vshrl.u32 %v3230_v36, 16  ;;  %v10374_v22 = vld [vmem:[#allocation2 + $0x84] sm:$0x1] }
 0x272   :  { %v3327_v1 = vsel %vm9693_vm12, %v3322_v48, %v3326_v5  ;;  %8700 = vmatprep.mubr.msk.bf16.mxu1 %vm195_vm0, %v9154_v38  ;;  %v3336_v9 = vrot.slane %v3335_v11, 4  ;;  %v3359_v10 = vrot.slane %v3357_v17, 4  ;;  %v3366_v49 = vshll.u32 %v10353_v50, 16  ;;  %v3238_v5 = vld [vmem:[#allocation2 + $0x88] sm:$0xf] }
 0x273   :  { %v7913_v16 = vcombine.low %v3313_v47, %v3327_v1  ;;  %v3349_v8 = vor.u32 %v3348_v23, %v3345_v57  ;;  %v3354_v44 = vrot.slane %v3352_v56, 5  ;;  %v3362_v2 = vrot.slane %v3360_v37, 5  ;;  %v9157_v13 = vld [vmem:[#allocation2 + $0x30] ss:$8 sps:$4 sm:$0xff]   ;;  %v9161_v37 = vld [vmem:[#allocation7 + $0x108] sm:$0xff]  }
 0x274   :  { %v3341_v0 = vsel %vm9693_vm12, %v3336_v9, %v3340_v55  ;;  %v3373_v39 = vrot.slane %v3371_v35, 4  ;;  %v3374_v54 = vshll.u32 %v3230_v36, 16  ;;  %v3380_v19 = vshll.u32 %v10357_v31, 16  ;;  %v3240_v23 = vld [vmem:[#allocation2 + $0x90] sm:$0xf] }
 0x275   :  { %8728 = vmatprep.mubr.msk.bf16.mxu0 %vm195_vm0, %v7913_v16  ;;  %v3350_v24 = vrot.slane %v3349_v8, 4  ;;  %v3363_v63 = vor.u32 %v3362_v2, %v3359_v10  ;;  %v3385_v33 = vshrl.u32 %v3232_v18, 16  ;;  %v3388_v45 = vshll.u32 %v3232_v18, 16 }
 0x276   :  { %v3368_v30 = vrot.slane %v3366_v49, 5  ;;  %v3376_v62 = vrot.slane %v3374_v54, 5  ;;  %v3399_v52 = vshrl.u32 %v3234_v25, 16  ;;  %v3382_v58 = vrot.slane %v3380_v19, 5  ;;  %v3242_v49 = vld [vmem:[#allocation2 + $0x98] sm:$0xf] }
 0x277   :  { %v3355_v28 = vsel %vm9693_vm12, %v3350_v24, %v3354_v44  ;;  %v3364_v61 = vrot.slane %v3363_v63, 4  ;;  %v3387_v3 = vrot.slane %v3385_v33, 4  ;;  %v3390_v14 = vrot.slane %v3388_v45, 5  ;;  %v10386_v44 = vld [vmem:[#allocation2 + $0x8c] sm:$0x1]  ;;  %v9164_v19 = vld [vmem:[#allocation7 + $0x100] sm:$0xff]  }
 0x278   :  { %v7914_v29 = vcombine.low %v3341_v0, %v3355_v28  ;;  %v3377_v41 = vor.u32 %v3376_v62, %v3373_v39  ;;  %v3394_v60 = vshll.u32 %v10367_v53, 16  ;;  %v3401_v20 = vrot.slane %v3399_v52, 4  ;;  %v10388_v39 = vld [vmem:[#allocation2 + $0x94] sm:$0x1]  ;;  %v9160_v28 = vld [vmem:[#allocation2 + $0x60] ss:$8 sps:$4 sm:$0xff]  }
 0x279   :  { %8701 = vmatmul.mubr.msk.bf16.vlgmr.msra.gmra.mxu1 %vm195_vm0, %v9156_v42  ;;  %v3391_v36 = vor.u32 %v3390_v14, %v3387_v3  ;;  %v3402_v47 = vshll.u32 %v3234_v25, 16  ;;  %v3408_v57 = vshll.u32 %v10369_v46, 16  ;;  %v3369_v21 = vsel %vm9693_vm12, %v3364_v61, %v3368_v30  ;;  %v9159_v42 = vld [vmem:[#allocation2 + $0x40] ss:$8 sps:$4 sm:$0xff]  }
 0x27a   :  { %8729 = vmatmul.mubr.msk.bf16.gmra.mxu0 %vm195_vm0, %v7914_v29  ;;  %v3378_v48 = vrot.slane %v3377_v41, 4  ;;  %8741 = vmatpush3.bf16.msra.mxu1 %v10307_v59  ;;  %v3413_v38 = vshrl.u32 %v3236_v34, 16  ;;  %v3416_v11 = vshll.u32 %v3236_v34, 16  ;;  %v3422_v17 = vshll.u32 %v10374_v22, 16 }
 0x27b   :  { %8704 = vmatprep.mubr.msk.bf16.mxu1 %vm195_vm0, %v9157_v13  ;;  %v3404_v56 = vrot.slane %v3402_v47, 5  ;;  %8742 = vmatprep.subr.bf16.mxu1 %v9158_v32  ;;  %v3427_v55 = vshrl.u32 %v3238_v5, 16  ;;  %v3396_v1 = vrot.slane %v3394_v60, 5  ;;  %v3392_v59 = vrot.slane %v3391_v36, 4 }
 0x27c   :  { %v3383_v35 = vsel %vm9693_vm12, %v3378_v48, %v3382_v58  ;;  %v3415_v9 = vrot.slane %v3413_v38, 4  ;;  %v3418_v10 = vrot.slane %v3416_v11, 5  ;;  %v3410_v8 = vrot.slane %v3408_v57, 5  ;;  %v10399_v58 = vld [vmem:[#allocation2 + $0x9c] sm:$0x1] }
 0x27d   :  { %v7915_v18 = vcombine.low %v3369_v21, %v3383_v35  ;;  %v3405_v16 = vor.u32 %v3404_v56, %v3401_v20  ;;  %v3429_v25 = vrot.slane %v3427_v55, 4  ;;  %v3430_v0 = vshll.u32 %v3238_v5, 16  ;;  %v3662_v55 = vld [vmem:[#allocation2 + $0x10] sm:$0xe] }
 0x27e   :  { %v3419_v2 = vor.u32 %v3418_v10, %v3415_v9  ;;  %8743 = vmatpush3.bf16.msra.mxu1 %v9158_v32  ;;  %v3441_v54 = vshrl.u32 %v3240_v23, 16  ;;  %v3424_v63 = vrot.slane %v3422_v17, 5  ;;  %v3444_v33 = vshll.u32 %v3240_v23, 16  ;;  %v9163_v9 = vld [vmem:[#allocation2 + $0x80] ss:$8 sps:$4 sm:$0xff]  }
 0x27f   :  { %8732 = vmatprep.mubr.msk.bf16.mxu0 %vm195_vm0, %v7915_v18  ;;  %v3406_v24 = vrot.slane %v3405_v16, 4  ;;  %v3455_v45 = vshrl.u32 %v3242_v49, 16  ;;  %8744 = vmatprep.subr.bf16.mxu1 %v9161_v37  ;;  %v3432_v62 = vrot.slane %v3430_v0, 5  ;;  %v3436_v52 = vshll.u32 %v10386_v44, 16  ;;  %v3663_v10 = vld [vmem:[#allocation2 + $0x18] sm:$0xe] }
 0x280   :  { %v3420_v30 = vrot.slane %v3419_v2, 4  ;;  %v3443_v61 = vrot.slane %v3441_v54, 4  ;;  %v3397_v3 = vsel %vm9693_vm12, %v3392_v59, %v3396_v1  ;;  %v3446_v32 = vrot.slane %v3444_v33, 5  ;;  %v3665_v0 = vld [vmem:[#allocation2 + $0x28] sm:$0xe] }
 0x281   :  { %v3411_v14 = vsel %vm9693_vm12, %v3406_v24, %v3410_v8  ;;  %8705 = vmatmul.mubr.msk.bf16.gmra.mxu1 %vm195_vm0, %v9159_v42  ;;  %v3450_v34 = vshll.u32 %v10388_v39, 16  ;;  %v3433_v41 = vor.u32 %v3432_v62, %v3429_v25  ;;  %v3457_v60 = vrot.slane %v3455_v45, 4  ;;  %v3666_v54 = vld [vmem:[#allocation2 + $0x30] sm:$0xe]  ;;  %v3664_v24 = vld [vmem:[#allocation2 + $0x20] sm:$0xe] }
 0x282   :  { %v7916_v29 = vcombine.low %v3397_v3, %v3411_v14  ;;  %8708 = vmatprep.mubr.msk.bf16.mxu1 %vm195_vm0, %v9160_v28  ;;  %v3458_v5 = vshll.u32 %v3242_v49, 16  ;;  %8745 = vmatpush3.bf16.msra.mxu1 %v9161_v37  ;;  %v3447_v13 = vor.u32 %v3446_v32, %v3443_v61  ;;  %v3464_v36 = vshll.u32 %v10399_v58, 16  ;;  %v9162_v37 = vld [vmem:[#allocation2 + $0x70] ss:$8 sps:$4 sm:$0xff]   ;;  %v3668_v14 = vld [vmem:[#allocation2 + $0x40] sm:$0xe] }
 0x283   :  { %8746 = vmatprep.subr.bf16.mxu1 %v9164_v19  ;;  %v3425_v20 = vsel %vm9693_vm12, %v3420_v30, %v3424_v63  ;;  %v3434_v47 = vrot.slane %v3433_v41, 4  ;;  %v3438_v57 = vrot.slane %v3436_v52, 5  ;;  %v3452_v11 = vrot.slane %v3450_v34, 5  ;;  %v3667_v45 = vld [vmem:[#allocation2 + $0x38] sm:$0xe] }
 0x284   :  { %8733 = vmatmul.mubr.msk.bf16.gmra.mxu0 %vm195_vm0, %v7916_v29  ;;  %v3460_v21 = vrot.slane %v3458_v5, 5  ;;  %v3448_v48 = vrot.slane %v3447_v13, 4  ;;  %v3466_v17 = vrot.slane %v3464_v36, 5  ;;  %v7931_v49 = vrot.slane %v3662_v55, 9  ;;  %v3669_v32 = vld [vmem:[#allocation2 + $0x48] sm:$0xe] }
 0x285   :  { %v3439_v38 = vsel %vm9693_vm12, %v3434_v47, %v3438_v57  ;;  %v3712_v18 = vrot.slane %v10291_v27, 5  ;;  %v7932_v8 = vrot.slane %v3663_v10, 9  ;;  %v3716_v2 = vrot.slane %v10296_v40, 5  ;;  %v3671_v36 = vld [vmem:[#allocation2 + $0x68] sm:$0xe] }
 0x286   :  { %v3461_v56 = vor.u32 %v3460_v21, %v3457_v60  ;;  %8747 = vmatpush3.bf16.msra.mxu1 %v9164_v19  ;;  %v7917_v23 = vcombine.low %v3425_v20, %v3439_v38  ;;  %v3453_v35 = vsel %vm9693_vm12, %v3448_v48, %v3452_v11  ;;  %v9165_v19 = vld [vmem:[#allocation2 + $0x90] ss:$8 sps:$4 sm:$0xff]   ;;  %v7934_v63 = vrot.slane %v3665_v0, 9  ;;  %v3674_v11 = vld [vmem:[#allocation2 + $0x80] sm:$0xe] }
 0x287   :  { %v3713_v25 = vsel %vm9700_vm13, %v7931_v49, %v3712_v18  ;;  %v3717_v27 = vsel %vm9700_vm13, %v7932_v8, %v3716_v2  ;;  %v3724_v33 = vrot.slane %v10316_v43, 5  ;;  %v7935_v40 = vrot.slane %v3666_v54, 9  ;;  %v3673_v38 = vld [vmem:[#allocation2 + $0x78] sm:$0xe] }
 0x288   :  { %v3462_v1 = vrot.slane %v3461_v56, 4  ;;  %8736 = vmatprep.mubr.msk.bf16.mxu0 %vm195_vm0, %v7917_v23  ;;  %v7947_v42 = vcombine.low %v3713_v25, %v3717_v27  ;;  %v3728_v30 = vrot.slane %v10329_v4, 5  ;;  %v7933_v62 = vrot.slane %v3664_v24, 9  ;;  %v3670_v4 = vld [vmem:[#allocation2 + $0x60] sm:$0xe] }
 0x289   :  { %8709 = vmatmul.mubr.msk.bf16.gmra.mxu1 %vm195_vm0, %v9162_v37  ;;  %v3720_v52 = vrot.slane %v10310_v26, 5  ;;  %v7936_v28 = vrot.slane %v3667_v45, 9  ;;  %v3732_v61 = vrot.slane %v10338_v7, 5  ;;  %v3725_v3 = vsel %vm9700_vm13, %v7934_v63, %v3724_v33  ;;  %v3675_v37 = vld [vmem:[#allocation2 + $0x88] sm:$0xe] }
 0x28a   :  { %v3467_v59 = vsel %vm9693_vm12, %v3462_v1, %v3466_v17  ;;  %8712 = vmatprep.mubr.msk.bf16.mxu1 %vm195_vm0, %v9163_v9  ;;  %v3729_v43 = vsel %vm9700_vm13, %v7935_v40, %v3728_v30  ;;  %v7937_v26 = vrot.slane %v3668_v14, 9  ;;  %v3736_v7 = vrot.slane %v10340_v6, 5  ;;  %v3672_v17 = vld [vmem:[#allocation2 + $0x70] sm:$0xe]  ;;  %v3677_v8 = vld [vmem:[#allocation2 + $0x98] sm:$0xe] }
 0x28b   :  { %v7918_v16 = vcombine.low %v3453_v35, %v3467_v59  ;;  %v3721_v34 = vsel %vm9700_vm13, %v7933_v62, %v3720_v52  ;;  %v3733_v41 = vsel %vm9700_vm13, %v7936_v28, %v3732_v61  ;;  %v7938_v5 = vrot.slane %v3669_v32, 9 }
 0x28c   :  { %v7948_v29 = vcombine.low %v3721_v34, %v3725_v3  ;;  %v7949_v60 = vcombine.low %v3729_v43, %v3733_v41  ;;  %v3740_v13 = vrot.slane %v10351_v51, 5  ;;  %v7939_v20 = vrot.slane %v3670_v4, 9  ;;  %v9166_v41 = vld [vmem:[%s11926_s10 + $0x18] sm:$0xff]  }
 0x28d   :  { %8737 = vmatmul.mubr.msk.bf16.gmra.mxu0 %vm195_vm0, %v7918_v16  ;;  %v3744_v47 = vrot.slane %v10353_v50, 5  ;;  %v7940_v57 = vrot.slane %v3671_v36, 9  ;;  %v3748_v21 = vrot.slane %v10357_v31, 5  ;;  %v3737_v48 = vsel %vm9700_vm13, %v7937_v26, %v3736_v7  ;;  %v3676_v16 = vld [vmem:[#allocation2 + $0x90] sm:$0xe]  ;;  %8796 = vmatprep.subr.bf16.mxu1 %v9166_v41  ;;  %v9168_v36 = vld [vmem:[%s11926_s10 + $0x8] sm:$0xff]  }
 0x28e   :  { %v3741_v6 = vsel %vm9700_vm13, %v7938_v5, %v3740_v13  ;;  %v7942_v23 = vrot.slane %v3673_v38, 9  ;;  %v3756_v31 = vrot.slane %v10369_v46, 5  ;;  %v7943_v35 = vrot.slane %v3674_v11, 9  ;;  %v9167_v26 = vld [vmem:[%s11926_s10 + $0x10] sm:$0xff]  }
 0x28f   :  { %v3745_v51 = vsel %vm9700_vm13, %v7939_v20, %v3744_v47  ;;  %v7950_v56 = vcombine.low %v3737_v48, %v3741_v6  ;;  %v3749_v50 = vsel %vm9700_vm13, %v7940_v57, %v3748_v21  ;;  %v3760_v1 = vrot.slane %v10374_v22, 5 }
 0x290   :  { %v7951_v55 = vcombine.low %v3745_v51, %v3749_v50  ;;  %v7941_v9 = vrot.slane %v3672_v17, 9  ;;  %v3752_v10 = vrot.slane %v10367_v53, 5  ;;  %v7944_v49 = vrot.slane %v3675_v37, 9  ;;  %v4044_v17 = vld [vmem:[#allocation3 + $0x18] sm:$0x1] }
 0x291   :  { %8713 = vmatmul.mubr.msk.bf16.gmra.mxu1 %vm195_vm0, %v9165_v19  ;;  %v3764_v18 = vrot.slane %v10386_v44, 5  ;;  %v3757_v59 = vsel %vm9700_vm13, %v7942_v23, %v3756_v31  ;;  %v3761_v46 = vsel %vm9700_vm13, %v7943_v35, %v3760_v1  ;;  %v7945_v0 = vrot.slane %v3676_v16, 9  ;;  %v10512_v23 = vld [vmem:[%s11921_s5] ss:$0 sm:$0xff]  ;;  %v9266_v16 = vld [vmem:[#allocation4 + $0x10] sm:$0xff] }
 0x292   :  { %8748 = vmatprep.mubr.msk.bf16.mxu1 %vm195_vm0, %v7947_v42  ;;  %v3753_v2 = vsel %vm9700_vm13, %v7941_v9, %v3752_v10  ;;  %v3768_v54 = vrot.slane %v10388_v39, 5  ;;  %v7946_v44 = vrot.slane %v3677_v8, 9  ;;  %v3772_v19 = vrot.slane %v10399_v58, 5  ;;  %v9267_v8 = vld [vmem:[#allocation4 + $0x18] sm:$0xff] }
 0x293   :  { %v7952_v22 = vcombine.low %v3753_v2, %v3757_v59  ;;  %v3765_v25 = vsel %vm9700_vm13, %v7944_v49, %v3764_v18  ;;  %v11949_v35 = vmov 0  ;;  %v4045_v9 = vsel %vm10517_vm1, 0, %v4044_v17 }
 0x294   :  { %v7953_v53 = vcombine.low %v3761_v46, %v3765_v25  ;;  %v3769_v27 = vsel %vm9700_vm13, %v7945_v0, %v3768_v54  ;;  %v3773_v24 = vsel %vm9700_vm13, %v7946_v44, %v3772_v19  ;;  %v11950_v35 = vsel %vm10517_vm1, 4294967295, %v11949_v35  ;;  %4046 = vst [vmem:[#allocation3 + $0x18] sm:$0x1] %v4045_v9  ;;  %v10541_v25 = vld [vmem:[%s11921_s5 + $0x1] ss:$0 sm:$0xff] }
 0x295   :  { %v7954_v42 = vcombine.low %v3769_v27, %v3773_v24  ;;  %11951 = vst [vmem:[#allocation16_spill] sm:$0xff] %v11950_v35  ;;  %v520_v46 = vmul.f32 %v9266_v16, %v10512_v23  ;;  %v521_v2 = vmul.f32 %v9267_v8, %v10512_v23  ;;  %v9171_v16 = vld [vmem:[#allocation9 + $0x30] sm:$0xff]   ;;  %v9172_v8 = vld [vmem:[#allocation9 + $0xb8] sm:$0xff]  }
 0x297   :  { %v541_v19 = vadd.f32 %v10541_v25, %v520_v46  ;;  %v542_v27 = vadd.f32 %v10541_v25, %v521_v2  ;;  %v4041_v2 = vld [vmem:[#allocation3 + $0x10] sm:$0x1] }
 0x299   :  { %8749 = vmatmul.mubr.msk.bf16.vlgmr.msra.gmra.mxu1 %vm195_vm0, %v7948_v29 }
 0x29a   :  { %8752 = vmatprep.mubr.msk.bf16.mxu1 %vm195_vm0, %v7949_v60  ;;  %8797 = vmatpush3.bf16.msra.mxu1 %v9166_v41 }
 0x29b   :  { %8798 = vmatprep.subr.bf16.mxu1 %v9167_v26 }
 0x29e   :  { %8799 = vmatpush3.bf16.msra.mxu1 %v9167_v26  ;;  %v4038_v26 = vld [vmem:[#allocation3 + $0x8] sm:$0x1] }
 0x29f   :  { %8800 = vmatprep.subr.bf16.mxu1 %v9168_v36 }
 0x2a1   :  { %8753 = vmatmul.mubr.msk.bf16.gmra.mxu1 %vm195_vm0, %v7950_v56 }
 0x2a2   :  { %8756 = vmatprep.mubr.msk.bf16.mxu1 %vm195_vm0, %v7951_v55  ;;  %8801 = vmatpush3.bf16.msra.mxu1 %v9168_v36  ;;  %v4093_v55 = vld [vmem:[#allocation3 + $0x1c] sm:$0x1] }
 0x2a3   :  { %v4094_v59 = vsel %vm10526_vm2, 0, %v4093_v55 }
 0x2a4   :  { %4095 = vst [vmem:[#allocation3 + $0x1c] sm:$0x1] %v4094_v59 }
 0x2a9   :  { %8757 = vmatmul.mubr.msk.bf16.gmra.mxu1 %vm195_vm0, %v7952_v22 }
 0x2aa   :  { %8760 = vmatprep.mubr.msk.bf16.mxu1 %vm195_vm0, %v7953_v53 }
 0x2b1   :  { %8761 = vmatmul.mubr.msk.bf16.gmra.mxu1 %vm195_vm0, %v7954_v42 }
 0x2b9   :  { %v8582_v63 = vpop.f32.mrf.mxu0 }
 0x2bb   :  { %v1631_v33 = vpop.f32.mrf.mxu0 }
 0x2bd   :  { %v8583_v45 = vpop.f32.mrf.mxu0 }
 0x2bf   :  { %v10472_v39 = vpop.f32.mrf.mxu0 }
 0x2c1   :  { %v8586_v40 = vpop.f32.mrf.mxu0 }
 0x2c3   :  { %v1647_v58 = vpop.f32.mrf.mxu0 }
 0x2c5   :  { %v8587_v30 = vpop.f32.mrf.mxu0 }
 0x2c7   :  { %v10474_v62 = vpop.f32.mrf.mxu0 }
 0x2cd   :  { %v8558_v52 = vpop.f32.mrf.mxu1 }
 0x2ce   :  { %v10476_v28 = vadd.f32 %v8582_v63, %v8558_v52  ;;  %v9169_v52 = vld [vmem:[#allocation9 + $0x38] sm:$0xff]  }
 0x2cf   :  { %v1446_v61 = vpop.f32.mrf.mxu1  ;;  %v8590_v3 = vpop.f32.mrf.mxu0  ;;  %8764 = vmatprep.subr.bf16.mxu0 %v9169_v52 }
 0x2d0   :  { %v10478_v14 = vadd.f32 %v1631_v33, %v1446_v61  ;;  %v9170_v61 = vld [vmem:[%s11926_s10] sm:$0xff]   ;;  %8765 = vmatpush3.bf16.msra.mxu0 %v9169_v52  ;;  %v4105_v52 = vld [vmem:[#allocation3 + $0x3c] sm:$0x1] }
 0x2d1   :  { %v8559_v43 = vpop.f32.mrf.mxu1  ;;  %v1663_v32 = vpop.f32.mrf.mxu0  ;;  %8802 = vmatprep.subr.bf16.mxu1 %v9170_v61  ;;  %8766 = vmatprep.subr.bf16.mxu0 %v9171_v16 }
 0x2d2   :  { %v10480_v34 = vadd.f32 %v8583_v45, %v8559_v43  ;;  %v9268_v45 = vld [vmem:[#allocation4] sm:$0xff]  ;;  %8803 = vmatpush3.bf16.msra.mxu1 %v9170_v61 }
 0x2d3   :  { %v10482_v4 = vpop.f32.mrf.mxu1  ;;  %v8591_v29 = vpop.f32.mrf.mxu0  ;;  %8852 = vmatprep.subr.bf16.mxu1 %v9172_v8 }
 0x2d4   :  { %8767 = vmatpush3.bf16.msra.mxu0 %v9171_v16 }
 0x2d5   :  { %v10490_v60 = vpop.f32.mrf.mxu0 }
 0x2d6   :  { %v8562_v7 = vpop.f32.mrf.mxu1 }
 0x2d7   :  { %v10492_v5 = vadd.f32 %v8586_v40, %v8562_v7  ;;  %v8594_v13 = vpop.f32.mrf.mxu0  ;;  %v518_v40 = vmul.f32 %v9268_v45, %v10512_v23  ;;  %v4087_v7 = vld [vmem:[#allocation3 + $0xc] sm:$0x1] }
 0x2d8   :  { %v1462_v20 = vpop.f32.mrf.mxu1 }
 0x2d9   :  { %v10497_v47 = vadd.f32 %v1647_v58, %v1462_v20  ;;  %v1679_v57 = vpop.f32.mrf.mxu0  ;;  %v4039_v20 = vsel %vm10517_vm1, 0, %v4038_v26 }
 0x2da   :  { %v8563_v21 = vpop.f32.mrf.mxu1  ;;  %4040 = vst [vmem:[#allocation3 + $0x8] sm:$0x1] %v4039_v20 }
 0x2db   :  { %v10499_v48 = vadd.f32 %v8587_v30, %v8563_v21  ;;  %v8595_v6 = vpop.f32.mrf.mxu0  ;;  %v4047_v21 = vld [vmem:[#allocation3 + $0x20] sm:$0x1] }
 0x2dc   :  { %v10501_v51 = vpop.f32.mrf.mxu1 }
 0x2dd   :  { %v10503_v38 = vpop.f32.mrf.mxu0 }
 0x2df   :  { %v8566_v11 = vpop.f32.mrf.mxu1  ;;  %v10505_v56 = vpop.f32.mrf.mxu0 }
 0x2e0   :  { %v10507_v50 = vadd.f32 %v8590_v3, %v8566_v11  ;;  %v9269_v3 = vld [vmem:[#allocation4 + $0x8] sm:$0xff]  ;;  %v4096_v11 = vld [vmem:[#allocation3 + $0x24] sm:$0x1] }
 0x2e1   :  { %v1478_v31 = vpop.f32.mrf.mxu1  ;;  %v10514_v37 = vpop.f32.mrf.mxu0  ;;  %v519_v43 = vmul.f32 %v9269_v3, %v10512_v23  ;;  %v4097_v17 = vsel %vm10526_vm2, 0, %v4096_v11 }
 0x2e2   :  { %v10521_v1 = vadd.f32 %v1663_v32, %v1478_v31  ;;  %v557_v32 = vmax.f32 %v541_v19, 0.0  ;;  %4098 = vst [vmem:[#allocation3 + $0x24] sm:$0x1] %v4097_v17  ;;  %v4099_v17 = vld [vmem:[#allocation3 + $0x2c] sm:$0x1] }
 0x2e3   :  { %v8567_v49 = vpop.f32.mrf.mxu1  ;;  %v10530_v18 = vpop.f32.mrf.mxu0  ;;  %v540_v59 = vadd.f32 %v10541_v25, %v519_v43  ;;  %v4100_v16 = vsel %vm10526_vm2, 0, %v4099_v17  ;;  %v9273_v17 = vld [vmem:[#allocation4 + $0x38] sm:$0xff] }
 0x2e4   :  { %v10536_v22 = vadd.f32 %v8591_v29, %v8567_v49  ;;  %v558_v29 = vmax.f32 %v542_v27, 0.0  ;;  %v539_v49 = vadd.f32 %v10541_v25, %v518_v40  ;;  %v4042_v27 = vsel %vm10517_vm1, 0, %v4041_v2  ;;  %v4056_v40 = vld [vmem:[#allocation3 + $0x38] sm:$0x1]  ;;  %v4108_v2 = vld [vmem:[#allocation3 + $0x44] sm:$0x1] }
 0x2e5   :  { %v10543_v0 = vpop.f32.mrf.mxu1  ;;  %v10545_v53 = vpop.f32.mrf.mxu0  ;;  %4043 = vst [vmem:[#allocation3 + $0x10] sm:$0x1] %v4042_v27  ;;  %4101 = vst [vmem:[#allocation3 + $0x2c] sm:$0x1] %v4100_v16 }
 0x2e6   :  { %v572_v46 = vpack.c.bf16 %v558_v29, %v557_v32  ;;  %v4057_v32 = vsel %vm10517_vm1, 0, %v4056_v40  ;;  %v9270_v40 = vld [vmem:[#allocation4 + $0x20] sm:$0xff] }
 0x2e7   :  { %v8570_v54 = vpop.f32.mrf.mxu1  ;;  %v10547_v44 = vpop.f32.mrf.mxu0  ;;  %4058 = vst [vmem:[#allocation3 + $0x38] sm:$0x1] %v4057_v32  ;;  %v9175_v32 = vld [vmem:[#allocation9 + $0x20] sm:$0xff]  }
 0x2e8   :  { %v10551_v24 = vadd.f32 %v8594_v13, %v8570_v54 }
 0x2e9   :  { %v1494_v42 = vpop.f32.mrf.mxu1  ;;  %v10553_v63 = vpop.f32.mrf.mxu0 }
 0x2ea   :  { %v10555_v33 = vadd.f32 %v1679_v57, %v1494_v42  ;;  %v4088_v57 = vsel %vm10526_vm2, 0, %v4087_v7  ;;  %v4090_v42 = vld [vmem:[#allocation3 + $0x14] sm:$0x1] }
 0x2eb   :  { %v8571_v58 = vpop.f32.mrf.mxu1  ;;  %v10558_v30 = vpop.f32.mrf.mxu0  ;;  %4089 = vst [vmem:[#allocation3 + $0xc] sm:$0x1] %v4088_v57  ;;  %v4091_v43 = vsel %vm10526_vm2, 0, %v4090_v42  ;;  %v9173_v57 = vld [vmem:[#allocation9 + $0x28] sm:$0xff]  }
 0x2ec   :  { %v10564_v41 = vadd.f32 %v8595_v6, %v8571_v58  ;;  %v4048_v6 = vsel %vm10517_vm1, 0, %v4047_v21  ;;  %v556_v58 = vmax.f32 %v540_v59, 0.0  ;;  %4092 = vst [vmem:[#allocation3 + $0x14] sm:$0x1] %v4091_v43  ;;  %v9174_v21 = vld [vmem:[#allocation9 + $0xb0] sm:$0xff]   ;;  %8768 = vmatprep.subr.bf16.mxu0 %v9173_v57 }
 0x2ed   :  { %v10566_v13 = vpop.f32.mrf.mxu1  ;;  %v10568_v36 = vpop.f32.mrf.mxu0  ;;  %4049 = vst [vmem:[#allocation3 + $0x20] sm:$0x1] %v4048_v6  ;;  %8769 = vmatpush3.bf16.msra.mxu0 %v9173_v57 }
 0x2ee   :  { %8770 = vmatprep.subr.bf16.mxu0 %v9175_v32 }
 0x2ef   :  { %v8606_v55 = vpop.f32.mrf.mxu1  ;;  %v10578_v31 = vpop.f32.mrf.mxu0 }
 0x2f0   :  { %v10581_v9 = vadd.f32 %v8606_v55, %v10476_v28  ;;  %v555_v28 = vmax.f32 %v539_v49, 0.0  ;;  %v4059_v55 = vld [vmem:[#allocation3 + $0x40] sm:$0x1] }
 0x2f1   :  { %v1924_v54 = vpop.f32.mrf.mxu1  ;;  %v10585_v19 = vpop.f32.mrf.mxu0  ;;  %8771 = vmatpush3.bf16.msra.mxu0 %v9175_v32 }
 0x2f2   :  { %v10590_v45 = vadd.f32 %v1924_v54, %v10478_v14  ;;  %v4106_v14 = vsel %vm10526_vm2, 0, %v4105_v52  ;;  %v571_v26 = vpack.c.bf16 %v556_v58, %v555_v28  ;;  %v522_v52 = vmul.f32 %v9270_v40, %v10512_v23 }
 0x2f3   :  { %v8607_v61 = vpop.f32.mrf.mxu1  ;;  %v10592_v3 = vpop.f32.mrf.mxu0  ;;  %4107 = vst [vmem:[#allocation3 + $0x3c] sm:$0x1] %v4106_v14  ;;  %v9176_v14 = vld [vmem:[#allocation9 + $0xa8] sm:$0xff]  }
 0x2f4   :  { %v10601_v29 = vadd.f32 %v8607_v61, %v10480_v34  ;;  %8804 = vmatprep.mubr.msk.bf16.mxu1 %vm195_vm0, %v571_v26  ;;  %v4050_v34 = vld [vmem:[#allocation3 + $0x28] sm:$0x1]  ;;  %v4053_v26 = vld [vmem:[#allocation3 + $0x30] sm:$0x1] }
 0x2f5   :  { %v10603_v7 = vpop.f32.mrf.mxu1  ;;  %v10605_v20 = vpop.f32.mrf.mxu0  ;;  %8805 = vmatmul.mubr.msk.bf16.vlgmr.msra.gmra.mxu1 %vm195_vm0, %v572_v46  ;;  %v4051_v59 = vsel %vm10517_vm1, 0, %v4050_v34  ;;  %v4060_v46 = vsel %vm10517_vm1, 0, %v4059_v55  ;;  %v9271_v61 = vld [vmem:[#allocation4 + $0x28] sm:$0xff]  ;;  %v4102_v55 = vld [vmem:[#allocation3 + $0x34] sm:$0x1] }
 0x2f6   :  { %8853 = vmatpush3.bf16.msra.mxu1 %v9172_v8  ;;  %4052 = vst [vmem:[#allocation3 + $0x28] sm:$0x1] %v4051_v59  ;;  %4061 = vst [vmem:[#allocation3 + $0x40] sm:$0x1] %v4060_v46  ;;  %v523_v43 = vmul.f32 %v9271_v61, %v10512_v23  ;;  %v543_v59 = vadd.f32 %v10541_v25, %v522_v52 }
 0x2f7   :  { %v8610_v11 = vpop.f32.mrf.mxu1  ;;  %v10608_v6 = vpop.f32.mrf.mxu0  ;;  %8854 = vmatprep.subr.bf16.mxu1 %v9174_v21 }
 0x2f8   :  { %v10612_v49 = vadd.f32 %v8610_v11, %v10492_v5  ;;  %v4109_v5 = vsel %vm10526_vm2, 0, %v4108_v2  ;;  %v9272_v11 = vld [vmem:[#allocation4 + $0x30] sm:$0xff]  ;;  %v544_v16 = vadd.f32 %v10541_v25, %v523_v43  ;;  %v559_v61 = vmax.f32 %v543_v59, 0.0 }
 0x2f9   :  { %v1940_v54 = vpop.f32.mrf.mxu1  ;;  %v10618_v27 = vpop.f32.mrf.mxu0  ;;  %4110 = vst [vmem:[#allocation3 + $0x44] sm:$0x1] %v4109_v5  ;;  %v524_v34 = vmul.f32 %v9272_v11, %v10512_v23 }
 0x2fa   :  { %v10625_v8 = vadd.f32 %v1940_v54, %v10497_v47  ;;  %8855 = vmatpush3.bf16.msra.mxu1 %v9174_v21  ;;  %v4054_v21 = vsel %vm10517_vm1, 0, %v4053_v26  ;;  %v560_v52 = vmax.f32 %v544_v16, 0.0  ;;  %v9177_v16 = vld [vmem:[#allocation9 + $0x18] sm:$0xff]  }
 0x2fb   :  { %v8611_v42 = vpop.f32.mrf.mxu1  ;;  %v10627_v28 = vpop.f32.mrf.mxu0  ;;  %4055 = vst [vmem:[#allocation3 + $0x30] sm:$0x1] %v4054_v21  ;;  %v545_v46 = vadd.f32 %v10541_v25, %v524_v34  ;;  %8856 = vmatprep.subr.bf16.mxu1 %v9176_v14  ;;  %8772 = vmatprep.subr.bf16.mxu0 %v9177_v16 }
 0x2fc   :  { %v10630_v58 = vadd.f32 %v8611_v42, %v10499_v48  ;;  %v525_v48 = vmul.f32 %v9273_v17, %v10512_v23  ;;  %v4103_v42 = vsel %vm10526_vm2, 0, %v4102_v55  ;;  %v573_v21 = vpack.c.bf16 %v560_v52, %v559_v61  ;;  %v4117_v55 = vld [vmem:[#allocation3 + $0x6c] sm:$0x1]  ;;  %8773 = vmatpush3.bf16.msra.mxu0 %v9177_v16  ;;  %v4120_v52 = vld [vmem:[#allocation3 + $0x74] sm:$0x1] }
 0x2fd   :  { %v10634_v47 = vpop.f32.mrf.mxu1  ;;  %v10636_v57 = vpop.f32.mrf.mxu0  ;;  %4104 = vst [vmem:[#allocation3 + $0x34] sm:$0x1] %v4103_v42  ;;  %v561_v11 = vmax.f32 %v545_v46, 0.0  ;;  %v4118_v59 = vsel %vm10526_vm2, 0, %v4117_v55  ;;  %v4062_v46 = vld [vmem:[#allocation3 + $0x58] sm:$0x1] }
 0x2fe   :  { %v546_v5 = vadd.f32 %v10541_v25, %v525_v48  ;;  %8857 = vmatpush3.bf16.msra.mxu1 %v9176_v14  ;;  %v4069_v14 = vsel %vm10517_vm1, 0, %v4068_v12  ;;  %8808 = vmatprep.mubr.msk.bf16.mxu1 %vm195_vm0, %v573_v21  ;;  %4119 = vst [vmem:[#allocation3 + $0x6c] sm:$0x1] %v4118_v59  ;;  %v4111_v12 = vld [vmem:[#allocation3 + $0x5c] sm:$0x1]  ;;  %v9276_v59 = vld [vmem:[#allocation4 + $0x50] sm:$0xff] }
 0x2ff   :  { %v8614_v2 = vpop.f32.mrf.mxu1  ;;  %v10644_v54 = vpop.f32.mrf.mxu0  ;;  %4070 = vst [vmem:[#allocation3 + $0x68] sm:$0x1] %v4069_v14  ;;  %v528_v16 = vmul.f32 %v9276_v59, %v10512_v23 }
 0x300   :  { %v1997_v40 = vadd.f32 %v8614_v2, %v10507_v50  ;;  %v562_v17 = vmax.f32 %v546_v5, 0.0  ;;  %v9178_v2 = vld [vmem:[#allocation9 + $0xa0] sm:$0xff]   ;;  %v4063_v5 = vsel %vm10517_vm1, 0, %v4062_v46  ;;  %v9277_v46 = vld [vmem:[#allocation4 + $0x58] sm:$0xff] }
 0x301   :  { %v1956_v43 = vpop.f32.mrf.mxu1  ;;  %v10651_v26 = vpop.f32.mrf.mxu0  ;;  %4064 = vst [vmem:[#allocation3 + $0x58] sm:$0x1] %v4063_v5  ;;  %8858 = vmatprep.subr.bf16.mxu1 %v9178_v2  ;;  %v529_v5 = vmul.f32 %v9277_v46, %v10512_v23  ;;  %v549_v59 = vadd.f32 %v10541_v25, %v528_v16 }
 0x302   :  { %v1995_v34 = vadd.f32 %v1956_v43, %v10521_v1  ;;  %v10655_v48 = vadd.f32 %v10578_v31, %v1997_v40  ;;  %v574_v50 = vpack.c.bf16 %v562_v17, %v561_v11  ;;  %v9274_v43 = vld [vmem:[#allocation4 + $0x40] sm:$0xff]  ;;  %v9179_v17 = vld [vmem:[#allocation9 + $0x10] sm:$0xff]   ;;  %8859 = vmatpush3.bf16.msra.mxu1 %v9178_v2 }
 0x303   :  { %v8615_v32 = vpop.f32.mrf.mxu1  ;;  %v10657_v15 = vpop.f32.mrf.mxu0  ;;  %v526_v11 = vmul.f32 %v9274_v43, %v10512_v23  ;;  %8774 = vmatprep.subr.bf16.mxu0 %v9179_v17  ;;  %v550_v46 = vadd.f32 %v10541_v25, %v529_v5 }
 0x304   :  { %v10664_v1 = vadd.f32 %v8615_v32, %v10536_v22  ;;  %v10667_v31 = vadd.f32 %v10585_v19, %v1995_v34  ;;  %8809 = vmatmul.mubr.msk.bf16.gmra.mxu1 %vm195_vm0, %v574_v50  ;;  %v4112_v22 = vsel %vm10526_vm2, 0, %v4111_v12  ;;  %v4071_v19 = vld [vmem:[#allocation3 + $0x70] sm:$0x1]  ;;  %v9180_v34 = vld [vmem:[#allocation9 + $0x98] sm:$0xff]   ;;  %v4121_v32 = vsel %vm10526_vm2, 0, %v4120_v52  ;;  %v9275_v50 = vld [vmem:[#allocation4 + $0x48] sm:$0xff]  ;;  %8775 = vmatpush3.bf16.msra.mxu0 %v9179_v17 }
 0x305   :  { %v10672_v42 = vpop.f32.mrf.mxu1  ;;  %v10674_v40 = vpop.f32.mrf.mxu0  ;;  %4113 = vst [vmem:[#allocation3 + $0x5c] sm:$0x1] %v4112_v22  ;;  %v4072_v61 = vsel %vm10517_vm1, 0, %v4071_v19  ;;  %v527_v14 = vmul.f32 %v9275_v50, %v10512_v23  ;;  %v4065_v12 = vld [vmem:[#allocation3 + $0x60] sm:$0x1]  ;;  %v547_v19 = vadd.f32 %v10541_v25, %v526_v11  ;;  %8860 = vmatprep.subr.bf16.mxu1 %v9180_v34 }
 0x306   :  { %11954 = vst [vmem:[#allocation17_spill] sm:$0xff] %v10674_v40  ;;  %4073 = vst [vmem:[#allocation3 + $0x70] sm:$0x1] %v4072_v61  ;;  %v4066_v2 = vsel %vm10517_vm1, 0, %v4065_v12  ;;  %v4114_v61 = vld [vmem:[#allocation3 + $0x64] sm:$0x1]  ;;  %8861 = vmatpush3.bf16.msra.mxu1 %v9180_v34 }
 0x307   :  { %v8618_v21 = vpop.f32.mrf.mxu1  ;;  %v10682_v55 = vpop.f32.mrf.mxu0  ;;  %4122 = vst [vmem:[#allocation3 + $0x74] sm:$0x1] %v4121_v32  ;;  %v548_v50 = vadd.f32 %v10541_v25, %v527_v14  ;;  %4067 = vst [vmem:[#allocation3 + $0x60] sm:$0x1] %v4066_v2  ;;  %v563_v32 = vmax.f32 %v547_v19, 0.0  ;;  %v565_v40 = vmax.f32 %v549_v59, 0.0 }
 0x308   :  { %11955 = vst [vmem:[#allocation18_spill] sm:$0xff] %v10682_v55  ;;  %v2001_v22 = vadd.f32 %v8618_v21, %v10551_v24  ;;  %v4115_v24 = vsel %vm10526_vm2, 0, %v4114_v61  ;;  %v4080_v12 = vld [vmem:[#allocation3 + $0x88] sm:$0x1]  ;;  %v9182_v34 = vld [vmem:[#allocation9 + $0x90] sm:$0xff]  }
 0x309   :  { %v1972_v52 = vpop.f32.mrf.mxu1  ;;  %v10693_v43 = vpop.f32.mrf.mxu0  ;;  %4116 = vst [vmem:[#allocation3 + $0x64] sm:$0x1] %v4115_v24  ;;  %v564_v16 = vmax.f32 %v548_v50, 0.0  ;;  %v4123_v50 = vld [vmem:[#allocation3 + $0x7c] sm:$0x1]  ;;  %8862 = vmatprep.subr.bf16.mxu1 %v9182_v34 }
 0x30a   :  { %11956 = vst [vmem:[#allocation19_spill] sm:$0xff] %v10693_v43  ;;  %v1999_v11 = vadd.f32 %v1972_v52, %v10555_v33  ;;  %v10702_v21 = vadd.f32 %v10608_v6, %v2001_v22  ;;  %v4129_v43 = vld [vmem:[#allocation3 + $0x8c] sm:$0x1]  ;;  %v566_v33 = vmax.f32 %v550_v46, 0.0  ;;  %v4081_v6 = vsel %vm10517_vm1, 0, %v4080_v12  ;;  %8863 = vmatpush3.bf16.msra.mxu1 %v9182_v34  ;;  %v9183_v34 = vld [vmem:[#allocation9] sm:$0xff]  }
 0x30b   :  { %v8619_v55 = vpop.f32.mrf.mxu1  ;;  %v10704_v14 = vpop.f32.mrf.mxu0  ;;  %v575_v19 = vpack.c.bf16 %v564_v16, %v563_v32  ;;  %4082 = vst [vmem:[#allocation3 + $0x88] sm:$0x1] %v4081_v6  ;;  %v4130_v61 = vsel %vm10526_vm2, 0, %v4129_v43  ;;  %v9181_v52 = vld [vmem:[#allocation9 + $0x8] sm:$0xff]   ;;  %v4124_v43 = vsel %vm10526_vm2, 0, %v4123_v50  ;;  %v9278_v6 = vld [vmem:[#allocation4 + $0x60] sm:$0xff] }
 0x30c   :  { %v2002_v5 = vadd.f32 %v8619_v55, %v10564_v41  ;;  %v10708_v2 = vadd.f32 %v10618_v27, %v1999_v11  ;;  %v576_v27 = vpack.c.bf16 %v566_v33, %v565_v40  ;;  %4131 = vst [vmem:[#allocation3 + $0x8c] sm:$0x1] %v4130_v61  ;;  %v4074_v55 = vld [vmem:[#allocation3 + $0x78] sm:$0x1]  ;;  %8776 = vmatprep.subr.bf16.mxu0 %v9181_v52  ;;  %4125 = vst [vmem:[#allocation3 + $0x7c] sm:$0x1] %v4124_v43 }
 0x30d   :  { %v10712_v22 = vpop.f32.mrf.mxu1  ;;  %v10714_v17 = vpop.f32.mrf.mxu0  ;;  %8812 = vmatprep.mubr.msk.bf16.mxu1 %vm195_vm0, %v575_v19  ;;  %v4075_v24 = vsel %vm10517_vm1, 0, %v4074_v55  ;;  %8777 = vmatpush3.bf16.msra.mxu0 %v9181_v52  ;;  %v4083_v11 = vld [vmem:[#allocation3 + $0x90] sm:$0x1]  ;;  %v4132_v32 = vld [vmem:[#allocation3 + $0x94] sm:$0x1]  ;;  %v530_v19 = vmul.f32 %v9278_v6, %v10512_v23  ;;  %v9279_v61 = vld [vmem:[#allocation4 + $0x68] sm:$0xff] }
 0x30e   :  { %11957 = vst [vmem:[#allocation20_spill] sm:$0xff] %v10714_v17  ;;  %v10719_v41 = vadd.f32 %v10627_v28, %v2002_v5  ;;  %8813 = vmatmul.mubr.msk.bf16.gmra.mxu1 %vm195_vm0, %v576_v27  ;;  %4076 = vst [vmem:[#allocation3 + $0x78] sm:$0x1] %v4075_v24  ;;  %v4084_v12 = vsel %vm10517_vm1, 0, %v4083_v11  ;;  %v4133_v16 = vsel %vm10526_vm2, 0, %v4132_v32  ;;  %v531_v52 = vmul.f32 %v9279_v61, %v10512_v23  ;;  %v9184_v27 = vld [vmem:[#allocation9 + $0x88] sm:$0xff]  }
 0x30f   :  { %v10721_v59 = vpop.f32.mrf.mxu1  ;;  %v10723_v46 = vpop.f32.mrf.mxu0  ;;  %4085 = vst [vmem:[#allocation3 + $0x90] sm:$0x1] %v4084_v12  ;;  %4134 = vst [vmem:[#allocation3 + $0x94] sm:$0x1] %v4133_v16  ;;  %v9280_v50 = vld [vmem:[#allocation4 + $0x70] sm:$0xff]  ;;  %v9281_v43 = vld [vmem:[#allocation4 + $0x78] sm:$0xff]  ;;  %v551_v12 = vadd.f32 %v10541_v25, %v530_v19  ;;  %8778 = vmatprep.subr.bf16.mxu0 %v9183_v34  ;;  %8864 = vmatprep.subr.bf16.mxu1 %v9184_v27 }
 0x310   :  { %11958 = vst [vmem:[#allocation21_spill] sm:$0xff] %v10723_v46  ;;  %v532_v24 = vmul.f32 %v9280_v50, %v10512_v23  ;;  %v533_v11 = vmul.f32 %v9281_v43, %v10512_v23  ;;  %v4077_v32 = vld [vmem:[#allocation3 + $0x80] sm:$0x1]  ;;  %v552_v16 = vadd.f32 %v10541_v25, %v531_v52  ;;  %8865 = vmatpush3.bf16.msra.mxu1 %v9184_v27  ;;  %v10761_v52 = vld [vmem:[#allocation9 + $0x78] sm:$0xff]  }
 0x311   :  { %v10731_v28 = vpop.f32.mrf.mxu1  ;;  %v10733_v40 = vpop.f32.mrf.mxu0  ;;  %v4078_v50 = vsel %vm10517_vm1, 0, %v4077_v32  ;;  %8779 = vmatpush3.bf16.msra.mxu0 %v9183_v34  ;;  %v567_v19 = vmax.f32 %v551_v12, 0.0  ;;  %11962 = vst [vmem:[#allocation25_spill] sm:$0xff] %v10761_v52  ;;  %v9190_v32 = vld [vmem:[#allocation9 + $0x138] sm:$0xff]  }
 0x312   :  { %11959 = vst [vmem:[#allocation22_spill] sm:$0xff] %v10733_v40  ;;  %v553_v40 = vadd.f32 %v10541_v25, %v532_v24  ;;  %v554_v46 = vadd.f32 %v10541_v25, %v533_v11  ;;  %v568_v43 = vmax.f32 %v552_v16, 0.0  ;;  %4079 = vst [vmem:[#allocation3 + $0x80] sm:$0x1] %v4078_v50  ;;  %8820 = vmatprep.subr.bf16.mxu0 %v10761_v52 }
 0x313   :  { %v10739_v5 = vpop.f32.mrf.mxu1  ;;  %v10741_v33 = vpop.f32.mrf.mxu0 }
 0x314   :  { %11960 = vst [vmem:[#allocation23_spill] sm:$0xff] %v10741_v33  ;;  %v4126_v33 = vld [vmem:[#allocation3 + $0x84] sm:$0x1]  ;;  %v569_v24 = vmax.f32 %v553_v40, 0.0  ;;  %v570_v25 = vmax.f32 %v554_v46, 0.0  ;;  %v577_v11 = vpack.c.bf16 %v568_v43, %v567_v19 }
 0x315   :  { %v10745_v55 = vpop.f32.mrf.mxu1  ;;  %v10753_v61 = vpop.f32.mrf.mxu0  ;;  %v4127_v23 = vsel %vm10526_vm2, 0, %v4126_v33 }
 0x316   :  { %11961 = vst [vmem:[#allocation24_spill] sm:$0xff] %v10753_v61  ;;  %4128 = vst [vmem:[#allocation3 + $0x84] sm:$0x1] %v4127_v23  ;;  %v9187_v61 = vld [vmem:[#allocation9 + $0x80] sm:$0xff]   ;;  %v578_v34 = vpack.c.bf16 %v570_v25, %v569_v24  ;;  %8816 = vmatprep.mubr.msk.bf16.mxu1 %vm195_vm0, %v577_v11 }
 0x317   :  { %v10751_v6 = vpop.f32.mrf.mxu1  ;;  %8866 = vmatprep.subr.bf16.mxu1 %v9187_v61  ;;  %v10768_v33 = vpop.f32.mrf.mxu0 }
 0x318   :  { %8867 = vmatpush3.bf16.msra.mxu1 %v9187_v61 }
 0x319   :  { %v10763_v17 = vpop.f32.mrf.mxu1  ;;  %8817 = vmatmul.mubr.msk.bf16.gmra.mxu1 %vm195_vm0, %v578_v34  ;;  %8916 = vmatprep.subr.bf16.mxu1 %v9190_v32  ;;  %v10774_v46 = vpop.f32.mrf.mxu0  ;;  %vm4343_vm0 = vcmask 1043456  }
 0x31a   :  { %11963 = vst [vmem:[#allocation26_spill] sm:$0xff] %v10774_v46  ;;  %vm10999_vm3 = vmand %vm4343_vm0, %vm708_vm4 }
 0x31b   :  { %v10766_v10 = vpop.f32.mrf.mxu1  ;;  %v10782_v23 = vpop.f32.mrf.mxu0 }
 0x31c   :  { %11964 = vst [vmem:[#allocation27_spill] sm:$0xff] %v10782_v23  ;;  %v1635_v23 = vadd.f32 %v10472_v39, %v10482_v4  ;;  %v1683_v39 = vadd.f32 %v10503_v38, %v10566_v13  ;;  %v2219_v38 = vadd.f32 %v10547_v44, %v10612_v49  ;;  %v2217_v13 = vadd.f32 %v10553_v63, %v10625_v8 }
 0x31d   :  { %v10771_v27 = vpop.f32.mrf.mxu1  ;;  %v10784_v19 = vpop.f32.mrf.mxu0  ;;  %v2224_v44 = vadd.f32 %v10592_v3, %v10664_v1 }
 0x31e   :  { %11965 = vst [vmem:[#allocation28_spill] sm:$0xff] %v10784_v19  ;;  %v2667_v3 = vadd.f32 %v10763_v17, %v2217_v13 }
 0x31f   :  { %v8662_v40 = vpop.f32.mrf.mxu1 }
 0x320   :  { %v10777_v12 = vadd.f32 %v8662_v40, %v10655_v48 }
 0x321   :  { %v2632_v16 = vpop.f32.mrf.mxu1 }
 0x322   :  { %v10780_v50 = vadd.f32 %v2632_v16, %v10667_v31 }
 0x323   :  { %v10786_v61 = vpop.f32.mrf.mxu1 }
 0x325   :  { %v10790_v24 = vpop.f32.mrf.mxu1 }
 0x32b   :  { %v10788_v43 = vpop.f32.mrf.mxu0 }
 0x32c   :  { %11966 = vst [vmem:[#allocation29_spill] sm:$0xff] %v10788_v43 }
 0x32d   :  { %v10792_v25 = vpop.f32.mrf.mxu0 }
 0x32e   :  { %11967 = vst [vmem:[#allocation30_spill] sm:$0xff] %v10792_v25 }
 0x32f   :  { %v10797_v32 = vpop.f32.mrf.mxu0 }
 0x330   :  { %11968 = vst [vmem:[#allocation31_spill] sm:$0xff] %v10797_v32 }
 0x331   :  { %v8666_v11 = vpop.f32.mrf.mxu1  ;;  %v10805_v52 = vpop.f32.mrf.mxu0 }
 0x332   :  { %v10795_v48 = vadd.f32 %v8666_v11, %v10702_v21  ;;  %11971 = vst [vmem:[#allocation34_spill] sm:$0xff] %v10805_v52 }
 0x333   :  { %v2648_v31 = vpop.f32.mrf.mxu1 }
 0x334   :  { %v10800_v34 = vadd.f32 %v2648_v31, %v10708_v2 }
 0x335   :  { %v8667_v40 = vpop.f32.mrf.mxu1 }
 0x336   :  { %11969 = vst [vmem:[#allocation32_spill] sm:$0xff] %v10800_v34  ;;  %v10803_v16 = vadd.f32 %v8667_v40, %v10719_v41 }
 0x337   :  { %v10807_v35 = vpop.f32.mrf.mxu1 }
 0x338   :  { %11970 = vst [vmem:[#allocation33_spill] sm:$0xff] %v10803_v16  ;;  %v1667_v16 = vadd.f32 %v10490_v60, %v10543_v0  ;;  %v2213_v60 = vadd.f32 %v10514_v37, %v10590_v45  ;;  %v2216_v0 = vadd.f32 %v10530_v18, %v10601_v29  ;;  %v4812_v37 = vld [vmem:[#allocation3 + $0x4] sm:$0x1]  ;;  %v2000_v18 = vadd.f32 %v10712_v22, %v1683_v39  ;;  %v5277_v29 = vld [vmem:[#allocation3] sm:$0xe] }
 0x339   :  { %v10809_v19 = vpop.f32.mrf.mxu1  ;;  %v5285_v22 = vld [vmem:[#allocation3 + $0x50] sm:$0xe] }
 0x33a   :  { %v10811_v25 = vpop.f32.mrf.mxu0  ;;  %v1996_v4 = vadd.f32 %v10672_v42, %v1667_v16  ;;  %v2663_v63 = vadd.f32 %v10731_v28, %v2213_v60  ;;  %v2666_v49 = vadd.f32 %v10739_v5, %v2216_v0  ;;  %v10876_v16 = vld [vmem:[#allocation3 + $0x54] sm:$0x1]  ;;  %v8037_v39 = vrot.slane %v5285_v22, 9  ;;  %v11976_v60 = vld [vmem:[#allocation17_spill] sm:$0xff] }
 0x33b   :  { %11972 = vst [vmem:[#allocation35_spill] sm:$0xff] %v10811_v25  ;;  %v10813_v21 = vpop.f32.mrf.mxu1 }
 0x33c   :  { %v10815_v11 = vpop.f32.mrf.mxu0  ;;  %v2222_v8 = vadd.f32 %v10605_v20, %v1996_v4  ;;  %v8029_v20 = vrot.slane %v5277_v29, 9  ;;  %v2674_v4 = vadd.f32 %v10786_v61, %v2224_v44  ;;  %v11979_v61 = vld [vmem:[#allocation20_spill] sm:$0xff] }
 0x33d   :  { %11973 = vst [vmem:[#allocation36_spill] sm:$0xff] %v10815_v11  ;;  %v10817_v32 = vpop.f32.mrf.mxu1  ;;  %v1651_v11 = vadd.f32 %v10474_v62, %v10501_v51  ;;  %v2215_v62 = vadd.f32 %v10505_v56, %v10581_v9  ;;  %v2220_v56 = vadd.f32 %v10558_v30, %v10630_v58 }
 0x33e   :  { %v10819_v2 = vpop.f32.mrf.mxu0  ;;  %v2672_v17 = vadd.f32 %v10790_v24, %v2222_v8  ;;  %v11983_v8 = vld [vmem:[#allocation23_spill] sm:$0xff] }
 0x33f   :  { %11974 = vst [vmem:[#allocation37_spill] sm:$0xff] %v10819_v2  ;;  %v10821_v31 = vpop.f32.mrf.mxu1  ;;  %v1988_v2 = vadd.f32 %v10603_v7, %v1635_v23  ;;  %v1992_v43 = vadd.f32 %v10634_v47, %v1651_v11  ;;  %v2665_v45 = vadd.f32 %v10721_v59, %v2215_v62  ;;  %v2669_v59 = vadd.f32 %v10751_v6, %v2219_v38 }
 0x340   :  { %v10825_v40 = vpop.f32.mrf.mxu0  ;;  %v2670_v1 = vadd.f32 %v10766_v10, %v2220_v56  ;;  %v5359_v6 = vrot.slane %v10876_v16, 5  ;;  %v2969_v10 = vadd.f32 %v10651_v26, %v2663_v63  ;;  %v4827_v63 = vld [vmem:[#allocation3 + $0x50] sm:$0xf]  ;;  %v2980_v22 = vadd.f32 %v11983_v8, %v2674_v4  ;;  %v11987_v4 = vld [vmem:[#allocation26_spill] sm:$0xff] }
 0x341   :  { %v10823_v41 = vpop.f32.mrf.mxu1  ;;  %11975 = vst [vmem:[#allocation38_spill] sm:$0xff] %v10825_v40  ;;  %v4811_v40 = vld [vmem:[#allocation3] sm:$0xf]  ;;  %v2214_v47 = vadd.f32 %v10545_v53, %v1988_v2  ;;  %v2218_v53 = vadd.f32 %v10568_v36, %v1992_v43  ;;  %v5327_v36 = vrot.slane %v4812_v37, 5  ;;  %v2226_v2 = vadd.f32 %v10636_v57, %v2000_v18 }
 0x342   :  { %v4844_v7 = vshrl.u32 %v4811_v40, 16  ;;  %v4847_v23 = vshll.u32 %v4811_v40, 16  ;;  %v2971_v40 = vadd.f32 %v10644_v54, %v2665_v45  ;;  %v11978_v54 = vld [vmem:[#allocation19_spill] sm:$0xff]  ;;  %v2976_v13 = vadd.f32 %v10704_v14, %v2670_v1 }
 0x343   :  { %v10827_v52 = vpop.f32.mrf.mxu1  ;;  %v2664_v30 = vadd.f32 %v10745_v55, %v2214_v47  ;;  %v2668_v28 = vadd.f32 %v10771_v27, %v2218_v53  ;;  %v2972_v27 = vadd.f32 %v10657_v15, %v2666_v49  ;;  %v4853_v47 = vshll.u32 %v4812_v37, 16  ;;  %v11981_v53 = vld [vmem:[#allocation21_spill] sm:$0xff]  ;;  %v11982_v37 = vld [vmem:[#allocation22_spill] sm:$0xff] }
 0x344   :  { %v10838_v46 = vpop.f32.mrf.mxu0  ;;  %v4846_v43 = vrot.slane %v4844_v7, 4  ;;  %v4849_v11 = vrot.slane %v4847_v23, 5  ;;  %v11977_v7 = vld [vmem:[#allocation18_spill] sm:$0xff]  ;;  %v2973_v38 = vadd.f32 %v11978_v54, %v2667_v3  ;;  %v10904_v15 = vsel %vm9700_vm13, %v8029_v20, %v5327_v36 }
 0x345   :  { %v10831_v25 = vpop.f32.mrf.mxu1  ;;  %v2970_v0 = vadd.f32 %v11976_v60, %v2664_v30  ;;  %v2975_v23 = vadd.f32 %v11977_v7, %v2669_v59  ;;  %v2974_v24 = vadd.f32 %v11979_v61, %v2668_v28  ;;  %v3198_v45 = vadd.f32 %v10809_v19, %v2971_v40  ;;  %v11984_v59 = vld [vmem:[#allocation24_spill] sm:$0xff]  ;;  %v11985_v40 = vld [vmem:[#allocation29_spill] sm:$0xff] }
 0x346   :  { %v10861_v9 = vpop.f32.mrf.mxu0  ;;  %v4850_v57 = vor.u32 %v4849_v11, %v4846_v43  ;;  %v2979_v44 = vadd.f32 %v11981_v53, %v10777_v12  ;;  %v2977_v29 = vadd.f32 %v11982_v37, %v10780_v50  ;;  %v10913_v14 = vsel %vm9700_vm13, %v8037_v39, %v5359_v6  ;;  %v11986_v6 = vld [vmem:[#allocation32_spill] sm:$0xff]  ;;  %v11996_v8 = vld [vmem:[#allocation37_spill] sm:$0xff] }
 0x347   :  { %v10840_v34 = vpop.f32.mrf.mxu1  ;;  %v2676_v49 = vadd.f32 %v10807_v35, %v2226_v2  ;;  %v3196_v30 = vadd.f32 %v10813_v21, %v2969_v10  ;;  %v2978_v36 = vadd.f32 %v11984_v59, %v2672_v17  ;;  %v3199_v43 = vadd.f32 %v10817_v32, %v2972_v27  ;;  %v11988_v10 = vld [vmem:[#allocation33_spill] sm:$0xff]  ;;  %v11995_v37 = vld [vmem:[#allocation36_spill] sm:$0xff] }
 0x348   :  { %v10882_v5 = vpop.f32.mrf.mxu0  ;;  %v3197_v12 = vadd.f32 %v10821_v31, %v2970_v0  ;;  %v10921_v11 = vrot.slane %v4850_v57, 4  ;;  %v10923_v50 = vrot.slane %v4853_v47, 5  ;;  %v3202_v3 = vadd.f32 %v10823_v41, %v2975_v23  ;;  %v11989_v41 = vld [vmem:[#allocation27_spill] sm:$0xff]  ;;  %v11993_v47 = vld [vmem:[#allocation34_spill] sm:$0xff] }
 0x349   :  { %v10848_v51 = vpop.f32.mrf.mxu1  ;;  %v3200_v1 = vadd.f32 %v10827_v52, %v2973_v38  ;;  %v4956_v21 = vshrl.u32 %v4827_v63, 16  ;;  %v4965_v20 = vshll.u32 %v10876_v16, 16  ;;  %v3203_v2 = vadd.f32 %v10831_v25, %v2976_v13  ;;  %v11990_v52 = vld [vmem:[#allocation28_spill] sm:$0xff]  ;;  %v10940_v16 = vld [vmem:[%s11920_s4] ss:$0 sm:$0xff]  ;;  %v11992_v23 = vld [vmem:[#allocation31_spill] sm:$0xff] }
 0x34a   :  { %v10899_v56 = vpop.f32.mrf.mxu0  ;;  %v2983_v32 = vadd.f32 %v10768_v33, %v10795_v48  ;;  %v3648_v31 = vadd.f32 %v11985_v40, %v3198_v45  ;;  %v4959_v39 = vshll.u32 %v4827_v63, 16  ;;  %v2981_v17 = vadd.f32 %v11987_v4, %v11986_v6  ;;  %v11991_v25 = vld [vmem:[#allocation30_spill] sm:$0xff]  ;;  %v11994_v45 = vld [vmem:[#allocation35_spill] sm:$0xff] }
 0x34b   :  { %v10863_v42 = vpop.f32.mrf.mxu1  ;;  %v2984_v27 = vadd.f32 %v11989_v41, %v11988_v10  ;;  %v2982_v60 = vadd.f32 %v11990_v52, %v2676_v49  ;;  %v3646_v7 = vadd.f32 %v11991_v25, %v3196_v30  ;;  %v3201_v33 = vadd.f32 %v10840_v34, %v2974_v24  ;;  %v10949_v13 = vld [vmem:[%s11920_s4 + $0x1] ss:$0 sm:$0xff]  ;;  %s9379_s4 = smov [#allocation10]  }
 0x34c   :  { %v3649_v57 = vadd.f32 %v11992_v23, %v3199_v43  ;;  %v3647_v54 = vadd.f32 %v11993_v47, %v3197_v12  ;;  %v3652_v53 = vadd.f32 %v11994_v45, %v3202_v3  ;;  %v3650_v63 = vadd.f32 %v11995_v37, %v3200_v1  ;;  %v11997_v4 = vld [vmem:[#allocation38_spill] sm:$0xff]  ;;  %s7681_s25 = sshll.u32 %s9379_s4, 4  ;;  %s7682_s25 = int_to_ptr.vmem [resolvable:$true] %s7681_s25 }
 0x34d   :  { %v10874_v58 = vpop.f32.mrf.mxu1  ;;  %v8738_v35 = vpop.f32.mrf.mxu0  ;;  %v10953_v49 = vrot.slane %v4956_v21, 4  ;;  %v10955_v30 = vrot.slane %v4965_v20, 5  ;;  %v3653_v59 = vadd.f32 %v11996_v8, %v3203_v2  ;;  %v10959_v43 = vrot.slane %v4959_v39, 5  ;;  %s9345_s1 = scalar_lea.vmem %s7682_s25, 2048  ;;  %p9350_p2 = scmp.lt.s32.totalorder %s7682_s25, %s7682_s25 }
 0x34e   :  { %v3206_v12 = vadd.f32 %v10848_v51, %v2979_v44  ;;  %v3204_v40 = vadd.f32 %v10863_v42, %v2977_v29  ;;  %v3207_v3 = vadd.f32 %v10874_v58, %v2980_v22  ;;  %v10968_v10 = vadd.f32 %v11997_v4, %v3201_v33  ;;  %v4348_v4 = vld [vmem:[#allocation3 + $0xc] sm:$0x1]  ;;  %p9346_p1 = scmp.ne.s32.totalorder %s7682_s25, %s9345_s1  ;;  %p9351_p3 = scmp.lt.s32.totalorder %s9345_s1, %s9345_s1 }
 0x34f   :  { %v10884_v55 = vpop.f32.mrf.mxu1  ;;  %v3631_v38 = vpop.f32.mrf.mxu0 }
 0x350   :  { %v3205_v1 = vadd.f32 %v10884_v55, %v2978_v36  ;;  %v10974_v52 = vadd.f32 %v10838_v46, %v3206_v12  ;;  %v10980_v25 = vadd.f32 %v10882_v5, %v3207_v3  ;;  %p9352_p4 = por %p9351_p3, %p9350_p2 }
 0x351   :  { %v10893_v62 = vpop.f32.mrf.mxu1  ;;  %v8739_v2 = vpop.f32.mrf.mxu0 }
 0x352   :  { %v3210_v39 = vadd.f32 %v10893_v62, %v2983_v32  ;;  %v10983_v62 = vadd.f32 %v10899_v56, %v3205_v1  ;;  %p9353_p5 = pnand %p9352_p4, %p9346_p1 }
 0x353   :  { %v3181_v18 = vpop.f32.mrf.mxu1 }
 0x354   :  { %v3208_v41 = vadd.f32 %v3181_v18, %v2981_v17  ;;  %v3634_v17 = vpop.f32.mrf.mxu0  ;;  %v10987_v46 = vadd.f32 %v8738_v35, %v3210_v39 }
 0x355   :  { %v8715_v19 = vpop.f32.mrf.mxu1 }
 0x356   :  { %v3211_v51 = vadd.f32 %v8715_v19, %v2984_v27 }
 0x357   :  { %v3184_v28 = vpop.f32.mrf.mxu1 }
 0x358   :  { %v3209_v44 = vadd.f32 %v3184_v28, %v2982_v60 }
 0x359   :  { %v8750_v0 = vpop.f32.mrf.mxu1 }
 0x35a   :  { %v3954_v48 = vadd.f32 %v8750_v0, %v3648_v31  ;;  %v10977_v0 = vadd.f32 %v10861_v9, %v3204_v40  ;;  %v10991_v9 = vadd.f32 %v8739_v2, %v3211_v51  ;;  %v10993_v56 = vadd.f32 %v3634_v17, %v3209_v44 }
 0x35b   :  { %v3889_v61 = vpop.f32.mrf.mxu1 }
 0x35c   :  { %v3975_v34 = vmul.f32 %v10940_v16, %v3954_v48  ;;  %v3952_v24 = vadd.f32 %v3889_v61, %v3646_v7  ;;  %v10989_v7 = vadd.f32 %v3631_v38, %v3208_v41 }
 0x35d   :  { %v8751_v21 = vpop.f32.mrf.mxu1 }
 0x35e   :  { %v3996_v20 = vadd.f32 %v10949_v13, %v3975_v34  ;;  %v3973_v31 = vmul.f32 %v10940_v16, %v3952_v24  ;;  %v3955_v6 = vadd.f32 %v8751_v21, %v3649_v57  ;;  %v4357_v34 = vld [vmem:[#allocation3 + $0x18] sm:$0xf]  ;;  %v4360_v24 = vld [vmem:[#allocation3 + $0x1c] sm:$0x1] }
 0x35f   :  { %v3892_v42 = vpop.f32.mrf.mxu1 }
 0x360   :  { %v4012_v29 = vmax.f32 %v3996_v20, 0.0  ;;  %v3994_v58 = vadd.f32 %v10949_v13, %v3973_v31  ;;  %v3976_v55 = vmul.f32 %v10940_v16, %v3955_v6  ;;  %v3953_v22 = vadd.f32 %v3892_v42, %v3647_v54  ;;  %v4345_v6 = vld [vmem:[#allocation3 + $0x8] sm:$0xf] }
 0x361   :  { %v8754_v36 = vpop.f32.mrf.mxu1 }
 0x362   :  { %v8207_v18 = vpack.c.bf16 %v4012_v29, %v4012_v29  ;;  %v4010_v19 = vmax.f32 %v3994_v58, 0.0  ;;  %v3997_v28 = vadd.f32 %v10949_v13, %v3976_v55  ;;  %v3974_v32 = vmul.f32 %v10940_v16, %v3953_v22 }
 0x363   :  { %v3958_v27 = vadd.f32 %v8754_v36, %v3652_v53  ;;  %v3905_v60 = vpop.f32.mrf.mxu1 }
 0x364   :  { %v4200_v5 = vshrl.u32 %v8207_v18, 16  ;;  %v8205_v33 = vpack.c.bf16 %v4010_v19, %v4010_v19  ;;  %v4013_v48 = vmax.f32 %v3997_v28, 0.0  ;;  %v4203_v23 = vshll.u32 %v8207_v18, 16 }
 0x365   :  { %v3995_v57 = vadd.f32 %v10949_v13, %v3974_v32  ;;  %v3979_v47 = vmul.f32 %v10940_v16, %v3958_v27  ;;  %v3956_v54 = vadd.f32 %v3905_v60, %v3650_v63  ;;  %v8755_v61 = vpop.f32.mrf.mxu1  ;;  %v4363_v27 = vld [vmem:[#allocation3 + $0x20] sm:$0xf]  ;;  %v4366_v60 = vld [vmem:[#allocation3 + $0x24] sm:$0x1] }
 0x366   :  { %v4202_v45 = vrot.slane %v4200_v5, 7  ;;  %v4184_v53 = vshrl.u32 %v8205_v33, 16  ;;  %v4187_v35 = vshll.u32 %v8205_v33, 16  ;;  %v8208_v37 = vpack.c.bf16 %v4013_v48, %v4013_v48 }
 0x367   :  { %v4011_v8 = vmax.f32 %v3995_v57, 0.0  ;;  %v4000_v12 = vadd.f32 %v10949_v13, %v3979_v47  ;;  %v3977_v40 = vmul.f32 %v10940_v16, %v3956_v54  ;;  %v3959_v3 = vadd.f32 %v8755_v61, %v3653_v59  ;;  %v3908_v63 = vpop.f32.mrf.mxu1  ;;  %v4351_v61 = vld [vmem:[#allocation3 + $0x10] sm:$0xf] }
 0x368   :  { %v4205_v1 = vor.u32 %v4203_v23, %v4202_v45  ;;  %v4206_v21 = vrot.slane %v4202_v45, 4  ;;  %v4186_v20 = vrot.slane %v4184_v53, 7  ;;  %v4208_v31 = vshrl.u32 %v8208_v37, 16  ;;  %v4354_v45 = vld [vmem:[#allocation3 + $0x14] sm:$0x1] }
 0x369   :  { %v4211_v2 = vshll.u32 %v8208_v37, 16  ;;  %v8206_v39 = vpack.c.bf16 %v4011_v8, %v4011_v8  ;;  %v4016_v41 = vmax.f32 %v4000_v12, 0.0  ;;  %v3998_v51 = vadd.f32 %v10949_v13, %v3977_v40  ;;  %v8758_v44 = vpop.f32.mrf.mxu1 }
 0x36a   :  { %v4358_v42 = vsel %vm10999_vm3, %v4205_v1, %v4357_v34  ;;  %v4361_v58 = vsel %vm10517_vm1, %v4206_v21, %v4360_v24  ;;  %v4189_v59 = vor.u32 %v4187_v35, %v4186_v20  ;;  %v4190_v55 = vrot.slane %v4186_v20, 4 }
 0x36b   :  { %4359 = vst [vmem:[#allocation3 + $0x18] sm:$0xf] %v4358_v42  ;;  %4362 = vst [vmem:[#allocation3 + $0x1c] sm:$0x1] %v4361_v58  ;;  %v4210_v22 = vrot.slane %v4208_v31, 7  ;;  %v4192_v36 = vshrl.u32 %v8206_v39, 16  ;;  %v8211_v19 = vpack.c.bf16 %v4016_v41, %v4016_v41  ;;  %v3921_v28 = vpop.f32.mrf.mxu1  ;;  %v3980_v33 = vmul.f32 %v10940_v16, %v3959_v3 }
 0x36c   :  { %v4195_v18 = vshll.u32 %v8206_v39, 16  ;;  %v4346_v32 = vsel %vm10999_vm3, %v4189_v59, %v4345_v6  ;;  %v4349_v17 = vsel %vm10517_vm1, %v4190_v55, %v4348_v4  ;;  %v4014_v5 = vmax.f32 %v3998_v51, 0.0  ;;  %v4384_v4 = vld [vmem:[#allocation3 + $0x3c] sm:$0x1]  ;;  %v4369_v55 = vld [vmem:[#allocation3 + $0x28] sm:$0xf] }
 0x36d   :  { %4347 = vst [vmem:[#allocation3 + $0x8] sm:$0xf] %v4346_v32  ;;  %4350 = vst [vmem:[#allocation3 + $0xc] sm:$0x1] %v4349_v17  ;;  %v4213_v48 = vor.u32 %v4211_v2, %v4210_v22  ;;  %v4214_v23 = vrot.slane %v4210_v22, 4  ;;  %v4194_v57 = vrot.slane %v4192_v36, 7  ;;  %v8759_v54 = vpop.f32.mrf.mxu1  ;;  %v4001_v37 = vadd.f32 %v10949_v13, %v3980_v33 }
 0x36e   :  { %v4232_v47 = vshrl.u32 %v8211_v19, 16  ;;  %v4235_v53 = vshll.u32 %v8211_v19, 16  ;;  %v8209_v35 = vpack.c.bf16 %v4014_v5, %v4014_v5  ;;  %v3957_v34 = vadd.f32 %v3908_v63, %v10968_v10  ;;  %v4381_v63 = vld [vmem:[#allocation3 + $0x38] sm:$0xf]  ;;  %v4372_v22 = vld [vmem:[#allocation3 + $0x2c] sm:$0x1] }
 0x36f   :  { %v4364_v24 = vsel %vm10999_vm3, %v4213_v48, %v4363_v27  ;;  %v4367_v8 = vsel %vm10517_vm1, %v4214_v23, %v4366_v60  ;;  %v4197_v12 = vor.u32 %v4195_v18, %v4194_v57  ;;  %v4198_v40 = vrot.slane %v4194_v57, 4  ;;  %v3924_v3 = vpop.f32.mrf.mxu1 }
 0x370   :  { %4365 = vst [vmem:[#allocation3 + $0x20] sm:$0xf] %v4364_v24  ;;  %4368 = vst [vmem:[#allocation3 + $0x24] sm:$0x1] %v4367_v8  ;;  %v4234_v1 = vrot.slane %v4232_v47, 7  ;;  %v4216_v21 = vshrl.u32 %v8209_v35, 16  ;;  %v3978_v2 = vmul.f32 %v10940_v16, %v3957_v34  ;;  %v3962_v39 = vadd.f32 %v8758_v44, %v10974_v52 }
 0x371   :  { %v4219_v20 = vshll.u32 %v8209_v35, 16  ;;  %v4017_v31 = vmax.f32 %v4001_v37, 0.0  ;;  %v4352_v6 = vsel %vm10999_vm3, %v4197_v12, %v4351_v61  ;;  %v4355_v10 = vsel %vm10517_vm1, %v4198_v40, %v4354_v45  ;;  %v8762_v41 = vpop.f32.mrf.mxu1  ;;  %v4387_v35 = vld [vmem:[#allocation3 + $0x40] sm:$0xf]  ;;  %v4390_v37 = vld [vmem:[#allocation3 + $0x44] sm:$0x1] }
 0x372   :  { %4353 = vst [vmem:[#allocation3 + $0x10] sm:$0xf] %v4352_v6  ;;  %4356 = vst [vmem:[#allocation3 + $0x14] sm:$0x1] %v4355_v10  ;;  %v4237_v51 = vor.u32 %v4235_v53, %v4234_v1  ;;  %v4238_v42 = vrot.slane %v4234_v1, 4  ;;  %v4218_v58 = vrot.slane %v4216_v21, 7  ;;  %v3999_v36 = vadd.f32 %v10949_v13, %v3978_v2 }
 0x373   :  { %v8212_v59 = vpack.c.bf16 %v4017_v31, %v4017_v31  ;;  %v3983_v18 = vmul.f32 %v10940_v16, %v3962_v39  ;;  %v3960_v19 = vadd.f32 %v3921_v28, %v10977_v0  ;;  %v3963_v32 = vadd.f32 %v8759_v54, %v10980_v25  ;;  %v3937_v57 = vpop.f32.mrf.mxu1  ;;  %v4375_v39 = vld [vmem:[#allocation3 + $0x30] sm:$0xf] }
 0x374   :  { %v4382_v52 = vsel %vm10999_vm3, %v4237_v51, %v4381_v63  ;;  %v4385_v44 = vsel %vm10517_vm1, %v4238_v42, %v4384_v4  ;;  %v4221_v17 = vor.u32 %v4219_v20, %v4218_v58  ;;  %v4222_v27 = vrot.slane %v4218_v58, 4  ;;  %v9185_v60 = vld [vmem:[#allocation3] ss:$8 sps:$4 sm:$0xff]  }
 0x375   :  { %4383 = vst [vmem:[#allocation3 + $0x38] sm:$0xf] %v4382_v52  ;;  %4386 = vst [vmem:[#allocation3 + $0x3c] sm:$0x1] %v4385_v44  ;;  %v4240_v5 = vshrl.u32 %v8212_v59, 16  ;;  %v4243_v33 = vshll.u32 %v8212_v59, 16  ;;  %v4004_v23 = vadd.f32 %v10949_v13, %v3983_v18  ;;  %v3981_v28 = vmul.f32 %v10940_v16, %v3960_v19  ;;  %8780 = vmatprep.mubr.bf16.mxu0 %v9185_v60 }
 0x376   :  { %v4015_v48 = vmax.f32 %v3999_v36, 0.0  ;;  %v4370_v0 = vsel %vm10999_vm3, %v4221_v17, %v4369_v55  ;;  %v4373_v25 = vsel %vm10517_vm1, %v4222_v27, %v4372_v22  ;;  %v3984_v47 = vmul.f32 %v10940_v16, %v3963_v32  ;;  %v4405_v36 = vld [vmem:[#allocation3 + $0x68] sm:$0xf]  ;;  %v12001_v32 = vld [vmem:[#allocation25_spill] sm:$0xff] }
 0x377   :  { %4371 = vst [vmem:[#allocation3 + $0x28] sm:$0xf] %v4370_v0  ;;  %4374 = vst [vmem:[#allocation3 + $0x2c] sm:$0x1] %v4373_v25  ;;  %v4242_v54 = vrot.slane %v4240_v5, 7  ;;  %v4020_v45 = vmax.f32 %v4004_v23, 0.0  ;;  %v3961_v53 = vadd.f32 %v3924_v3, %v10983_v62  ;;  %v4002_v34 = vadd.f32 %v10949_v13, %v3981_v28  ;;  %v8763_v5 = vpop.f32.mrf.mxu1 }
 0x378   :  { %v8210_v61 = vpack.c.bf16 %v4015_v48, %v4015_v48  ;;  %v4005_v24 = vadd.f32 %v10949_v13, %v3984_v47  ;;  %v3966_v8 = vadd.f32 %v8762_v41, %v10987_v46  ;;  %v3964_v12 = vadd.f32 %v3937_v57, %v10989_v7  ;;  %v9189_v3 = vld [vmem:[#allocation9 + $0x70] sm:$0xff]   ;;  %v9192_v52 = vld [vmem:[#allocation9 + $0x68] sm:$0xff]  }
 0x379   :  { %v4245_v40 = vor.u32 %v4243_v33, %v4242_v54  ;;  %v4246_v1 = vrot.slane %v4242_v54, 4  ;;  %v8215_v31 = vpack.c.bf16 %v4020_v45, %v4020_v45  ;;  %v4018_v6 = vmax.f32 %v4002_v34, 0.0  ;;  %v9188_v62 = vld [vmem:[#allocation3 + $0x10] ss:$8 sps:$4 sm:$0xff]   ;;  %v4378_v41 = vld [vmem:[#allocation3 + $0x34] sm:$0x1] }
 0x37a   :  { %v4224_v21 = vshrl.u32 %v8210_v61, 16  ;;  %v4227_v20 = vshll.u32 %v8210_v61, 16  ;;  %v4021_v10 = vmax.f32 %v4005_v24, 0.0  ;;  %v3982_v63 = vmul.f32 %v10940_v16, %v3961_v53  ;;  %8781 = vmatmul.mubr.bf16.vlgmr.msra.gmra.mxu0 %v9188_v62  ;;  %v4408_v23 = vld [vmem:[#allocation3 + $0x6c] sm:$0x1]  ;;  %v3940_v62 = vpop.f32.mrf.mxu1 }
 0x37b   :  { %v4388_v4 = vsel %vm10999_vm3, %v4245_v40, %v4387_v35  ;;  %v4391_v2 = vsel %vm10517_vm1, %v4246_v1, %v4390_v37  ;;  %v3987_v7 = vmul.f32 %v10940_v16, %v3966_v8  ;;  %v4264_v51 = vshrl.u32 %v8215_v31, 16  ;;  %8821 = vmatpush3.bf16.msra.mxu0 %v12001_v32  ;;  %v4393_v45 = vld [vmem:[#allocation3 + $0x58] sm:$0xf]  ;;  %v4396_v53 = vld [vmem:[#allocation3 + $0x5c] sm:$0x1] }
 0x37c   :  { %v4226_v46 = vrot.slane %v4224_v21, 7  ;;  %4389 = vst [vmem:[#allocation3 + $0x40] sm:$0xf] %v4388_v4  ;;  %4392 = vst [vmem:[#allocation3 + $0x44] sm:$0x1] %v4391_v2  ;;  %v4267_v42 = vshll.u32 %v8215_v31, 16  ;;  %v8213_v58 = vpack.c.bf16 %v4018_v6, %v4018_v6  ;;  %v8216_v59 = vpack.c.bf16 %v4021_v10, %v4021_v10  ;;  %8822 = vmatprep.subr.bf16.mxu0 %v9189_v3 }
 0x37d   :  { %v4003_v18 = vadd.f32 %v10949_v13, %v3982_v63  ;;  %v4008_v19 = vadd.f32 %v10949_v13, %v3987_v7  ;;  %v4266_v44 = vrot.slane %v4264_v51, 7  ;;  %v3985_v34 = vmul.f32 %v10940_v16, %v3964_v12  ;;  %v4414_v31 = vld [vmem:[#allocation3 + $0x74] sm:$0x1]  ;;  %v9195_v6 = vld [vmem:[#allocation9 + $0x60] sm:$0xff]   ;;  %v5278_v7 = vld [vmem:[#allocation3 + $0x8] sm:$0xe] }
 0x37e   :  { %v4229_v55 = vor.u32 %v4227_v20, %v4226_v46  ;;  %v4230_v22 = vrot.slane %v4226_v46, 4  ;;  %v4248_v17 = vshrl.u32 %v8213_v58, 16  ;;  %v4251_v27 = vshll.u32 %v8213_v58, 16  ;;  %v9191_v25 = vld [vmem:[#allocation3 + $0x20] ss:$8 sps:$4 sm:$0xff]  }
 0x37f   :  { %v4272_v60 = vshrl.u32 %v8216_v59, 16  ;;  %v4275_v57 = vshll.u32 %v8216_v59, 16  ;;  %v4019_v0 = vmax.f32 %v4003_v18, 0.0  ;;  %v4269_v28 = vor.u32 %v4267_v42, %v4266_v44  ;;  %8784 = vmatprep.mubr.bf16.mxu0 %v9191_v25  ;;  %8823 = vmatpush3.bf16.msra.mxu0 %v9189_v3  ;;  %v4411_v20 = vld [vmem:[#allocation3 + $0x70] sm:$0xf] }
 0x380   :  { %v4376_v33 = vsel %vm10999_vm3, %v4229_v55, %v4375_v39  ;;  %v4379_v48 = vsel %vm10517_vm1, %v4230_v22, %v4378_v41  ;;  %v4270_v47 = vrot.slane %v4266_v44, 4  ;;  %v4250_v54 = vrot.slane %v4248_v17, 7  ;;  %8824 = vmatprep.subr.bf16.mxu0 %v9192_v52  ;;  %v4399_v2 = vld [vmem:[#allocation3 + $0x60] sm:$0xf]  ;;  %v4402_v58 = vld [vmem:[#allocation3 + $0x64] sm:$0x1] }
 0x381   :  { %4377 = vst [vmem:[#allocation3 + $0x30] sm:$0xf] %v4376_v33  ;;  %4380 = vst [vmem:[#allocation3 + $0x34] sm:$0x1] %v4379_v48  ;;  %v4274_v61 = vrot.slane %v4272_v60, 7  ;;  %v8214_v35 = vpack.c.bf16 %v4019_v0, %v4019_v0  ;;  %v4024_v37 = vmax.f32 %v4008_v19, 0.0  ;;  %v3967_v24 = vadd.f32 %v8763_v5, %v10991_v9 }
 0x382   :  { %v4406_v8 = vsel %vm10999_vm3, %v4269_v28, %v4405_v36  ;;  %v4409_v40 = vsel %vm10517_vm1, %v4270_v47, %v4408_v23  ;;  %v4253_v1 = vor.u32 %v4251_v27, %v4250_v54  ;;  %v4254_v21 = vrot.slane %v4250_v54, 4  ;;  %v11076_v55 = vld [vmem:[#allocation3 + $0xc] sm:$0x1]  ;;  %v5279_v32 = vld [vmem:[#allocation3 + $0x10] sm:$0xe]  ;;  %v11079_v44 = vld [vmem:[#allocation9 + $0x58] sm:$0xff]  }
 0x383   :  { %4407 = vst [vmem:[#allocation3 + $0x68] sm:$0xf] %v4406_v8  ;;  %4410 = vst [vmem:[#allocation3 + $0x6c] sm:$0x1] %v4409_v40  ;;  %v4277_v10 = vor.u32 %v4275_v57, %v4274_v61  ;;  %v4278_v12 = vrot.slane %v4274_v61, 4  ;;  %v4256_v63 = vshrl.u32 %v8214_v35, 16  ;;  %v8219_v46 = vpack.c.bf16 %v4024_v37, %v4024_v37  ;;  %8825 = vmatpush3.bf16.msra.mxu0 %v9192_v52 }
 0x384   :  { %v4259_v9 = vshll.u32 %v8214_v35, 16  ;;  %v4394_v3 = vsel %vm10999_vm3, %v4253_v1, %v4393_v45  ;;  %v4397_v4 = vsel %vm10517_vm1, %v4254_v21, %v4396_v53  ;;  %v4006_v39 = vadd.f32 %v10949_v13, %v3985_v34  ;;  %8826 = vmatprep.subr.bf16.mxu0 %v9195_v6  ;;  %v4429_v60 = vld [vmem:[#allocation3 + $0x88] sm:$0xf]  ;;  %v4432_v52 = vld [vmem:[#allocation3 + $0x8c] sm:$0x1] }
 0x385   :  { %4395 = vst [vmem:[#allocation3 + $0x58] sm:$0xf] %v4394_v3  ;;  %4398 = vst [vmem:[#allocation3 + $0x5c] sm:$0x1] %v4397_v4  ;;  %v4412_v41 = vsel %vm10999_vm3, %v4277_v10, %v4411_v20  ;;  %v4415_v51 = vsel %vm10517_vm1, %v4278_v12, %v4414_v31  ;;  %v4258_v42 = vrot.slane %v4256_v63, 7  ;;  %v3988_v59 = vmul.f32 %v10940_v16, %v3967_v24 }
 0x386   :  { %4413 = vst [vmem:[#allocation3 + $0x70] sm:$0xf] %v4412_v41  ;;  %4416 = vst [vmem:[#allocation3 + $0x74] sm:$0x1] %v4415_v51  ;;  %v4296_v22 = vshrl.u32 %v8219_v46, 16  ;;  %v4299_v36 = vshll.u32 %v8219_v46, 16  ;;  %v3965_v19 = vadd.f32 %v3940_v62, %v10993_v56 }
 0x387   :  { %v4022_v18 = vmax.f32 %v4006_v39, 0.0  ;;  %v4261_v17 = vor.u32 %v4259_v9, %v4258_v42  ;;  %v4262_v27 = vrot.slane %v4258_v42, 4  ;;  %v4009_v5 = vadd.f32 %v10949_v13, %v3988_v59  ;;  %v11084_v28 = vld [vmem:[#allocation3 + $0x14] sm:$0x1]  ;;  %v11090_v61 = vld [vmem:[#allocation3 + $0x1c] sm:$0x1]  ;;  %8827 = vmatpush3.bf16.msra.mxu0 %v9195_v6 }
 0x388   :  { %v8030_v33 = vrot.slane %v5278_v7, 9  ;;  %v9194_v48 = vld [vmem:[#allocation3 + $0x30] ss:$8 sps:$4 sm:$0xff]   ;;  %v4298_v23 = vrot.slane %v4296_v22, 7  ;;  %v3986_v0 = vmul.f32 %v10940_v16, %v3965_v19  ;;  %v5331_v25 = vrot.slane %v11076_v55, 5  ;;  %8828 = vmatprep.subr.bf16.mxu0 %v11079_v44 }
 0x389   :  { %v8217_v57 = vpack.c.bf16 %v4022_v18, %v4022_v18  ;;  %v4400_v56 = vsel %vm10999_vm3, %v4261_v17, %v4399_v2  ;;  %v4403_v47 = vsel %vm10517_vm1, %v4262_v27, %v4402_v58  ;;  %v4025_v54 = vmax.f32 %v4009_v5, 0.0  ;;  %v5280_v45 = vld [vmem:[#allocation3 + $0x18] sm:$0xe]  ;;  %8785 = vmatmul.mubr.bf16.gmra.mxu0 %v9194_v48  ;;  %v4420_v8 = vld [vmem:[#allocation3 + $0x7c] sm:$0x1]  ;;  %v9201_v62 = vld [vmem:[#allocation9 + $0x50] sm:$0xff]  }
 0x38a   :  { %v8031_v53 = vrot.slane %v5279_v32, 9  ;;  %4401 = vst [vmem:[#allocation3 + $0x60] sm:$0xf] %v4400_v56  ;;  %4404 = vst [vmem:[#allocation3 + $0x64] sm:$0x1] %v4403_v47  ;;  %v4301_v35 = vor.u32 %v4299_v36, %v4298_v23  ;;  %v4302_v16 = vrot.slane %v4298_v23, 4  ;;  %v4007_v1 = vadd.f32 %v10949_v13, %v3986_v0 }
 0x38b   :  { %v4280_v37 = vshrl.u32 %v8217_v57, 16  ;;  %v4283_v34 = vshll.u32 %v8217_v57, 16  ;;  %v4417_v24 = vld [vmem:[#allocation3 + $0x78] sm:$0xf]  ;;  %v8220_v40 = vpack.c.bf16 %v4025_v54, %v4025_v54  ;;  %v5332_v21 = vsel %vm9700_vm13, %v8030_v33, %v5331_v25  ;;  %v11096_v31 = vld [vmem:[#allocation3 + $0x24] sm:$0x1]  ;;  %8829 = vmatpush3.bf16.msra.mxu0 %v11079_v44 }
 0x38c   :  { %v5335_v20 = vrot.slane %v11084_v28, 5  ;;  %v5281_v10 = vld [vmem:[#allocation3 + $0x20] sm:$0xe]  ;;  %v4430_v12 = vsel %vm10999_vm3, %v4301_v35, %v4429_v60  ;;  %v4433_v6 = vsel %vm10517_vm1, %v4302_v16, %v4432_v52  ;;  %v8045_v9 = vcombine.low %v10904_v15, %v5332_v21  ;;  %v9197_v13 = vld [vmem:[#allocation3 + $0x50] ss:$8 sps:$4 sm:$0xff]   ;;  %8830 = vmatprep.subr.bf16.mxu0 %v9201_v62  ;;  %v9204_v47 = vld [vmem:[#allocation9 + $0x48] sm:$0xff]  }
 0x38d   :  { %v4282_v63 = vrot.slane %v4280_v37, 7  ;;  %4431 = vst [vmem:[#allocation3 + $0x88] sm:$0xf] %v4430_v12  ;;  %4434 = vst [vmem:[#allocation3 + $0x8c] sm:$0x1] %v4433_v6  ;;  %v4304_v3 = vshrl.u32 %v8220_v40, 16  ;;  %8788 = vmatprep.mubr.bf16.mxu0 %v9197_v13 }
 0x38e   :  { %v4307_v4 = vshll.u32 %v8220_v40, 16  ;;  %v4023_v2 = vmax.f32 %v4007_v1, 0.0  ;;  %v5336_v46 = vsel %vm9700_vm13, %v8031_v53, %v5335_v20  ;;  %v11106_v39 = vld [vmem:[#allocation3 + $0x2c] sm:$0x1]  ;;  %v5282_v7 = vld [vmem:[#allocation3 + $0x28] sm:$0xe]  ;;  %8868 = vmatprep.mubr.bf16.mxu1 %v8045_v9 }
 0x38f   :  { %v4285_v41 = vor.u32 %v4283_v34, %v4282_v63  ;;  %v4286_v51 = vrot.slane %v4282_v63, 4  ;;  %v4435_v42 = vld [vmem:[#allocation3 + $0x90] sm:$0xf]  ;;  %v4438_v58 = vld [vmem:[#allocation3 + $0x94] sm:$0x1]  ;;  %v8032_v59 = vrot.slane %v5280_v45, 9  ;;  %8831 = vmatpush3.bf16.msra.mxu0 %v9201_v62 }
 0x390   :  { %v5339_v15 = vrot.slane %v11090_v61, 5  ;;  %v5283_v22 = vld [vmem:[#allocation3 + $0x30] sm:$0xe]  ;;  %v4306_v36 = vrot.slane %v4304_v3, 7  ;;  %v8218_v18 = vpack.c.bf16 %v4023_v2, %v4023_v2  ;;  %v8033_v19 = vrot.slane %v5281_v10, 9  ;;  %v9207_v3 = vld [vmem:[#allocation9 + $0x40] sm:$0xff]   ;;  %8832 = vmatprep.subr.bf16.mxu0 %v9204_v47 }
 0x391   :  { %v5343_v32 = vrot.slane %v11096_v31, 5  ;;  %v11110_v17 = vld [vmem:[#allocation3 + $0x3c] sm:$0x1]  ;;  %v5284_v27 = vld [vmem:[#allocation3 + $0x38] sm:$0xe]  ;;  %v4418_v60 = vsel %vm10999_vm3, %v4285_v41, %v4417_v24  ;;  %v4421_v5 = vsel %vm10517_vm1, %v4286_v51, %v4420_v8  ;;  %v8034_v48 = vrot.slane %v5282_v7, 9 }
 0x392   :  { %v5340_v33 = vsel %vm9700_vm13, %v8032_v59, %v5339_v15  ;;  %v11119_v23 = vld [vmem:[#allocation9 + $0x130] sm:$0xff]   ;;  %v11123_v57 = vld [vmem:[#allocation3 + $0x58] sm:$0xe]  ;;  %4419 = vst [vmem:[#allocation3 + $0x78] sm:$0xf] %v4418_v60  ;;  %v4309_v44 = vor.u32 %v4307_v4, %v4306_v36  ;;  %v4310_v0 = vrot.slane %v4306_v36, 4 }
 0x393   :  { %v11121_v52 = vld [vmem:[#allocation3 + $0x34] sm:$0x1]  ;;  %4422 = vst [vmem:[#allocation3 + $0x7c] sm:$0x1] %v4421_v5  ;;  %v4288_v25 = vshrl.u32 %v8218_v18, 16  ;;  %v4291_v56 = vshll.u32 %v8218_v18, 16  ;;  %v8046_v53 = vcombine.low %v5336_v46, %v5340_v33  ;;  %v5344_v35 = vsel %vm9700_vm13, %v8033_v19, %v5343_v32  ;;  %8833 = vmatpush3.bf16.msra.mxu0 %v9204_v47 }
 0x394   :  { %v4423_v54 = vld [vmem:[#allocation3 + $0x80] sm:$0xf]  ;;  %v4426_v45 = vld [vmem:[#allocation3 + $0x84] sm:$0x1]  ;;  %v5347_v16 = vrot.slane %v11106_v39, 5  ;;  %v8035_v37 = vrot.slane %v5283_v22, 9  ;;  %v4436_v40 = vsel %vm10999_vm3, %v4309_v44, %v4435_v42  ;;  %v4439_v1 = vsel %vm10517_vm1, %v4310_v0, %v4438_v58  ;;  %8834 = vmatprep.subr.bf16.mxu0 %v9207_v3 }
 0x395   :  { %v11128_v34 = vld [vmem:[#allocation3 + $0x5c] sm:$0x1]  ;;  %v9200_v24 = vld [vmem:[#allocation3 + $0x60] ss:$8 sps:$4 sm:$0xff]   ;;  %v4290_v21 = vrot.slane %v4288_v25, 7  ;;  %v5351_v20 = vrot.slane %v11121_v52, 5  ;;  %8869 = vmatmul.mubr.bf16.vlgmr.msra.gmra.mxu1 %v8046_v53  ;;  %v4962_v18 = vor.u32 %v10959_v43, %v10953_v49 }
 0x396   :  { %v11130_v8 = vld [vmem:[#allocation3 + $0x68] sm:$0xe]  ;;  %v11137_v10 = vld [vmem:[#allocation3 + $0x64] sm:$0x1]  ;;  %v5287_v12 = vld [vmem:[#allocation3 + $0x60] sm:$0xe]  ;;  %v5348_v6 = vsel %vm9700_vm13, %v8034_v48, %v5347_v16  ;;  %8789 = vmatmul.mubr.bf16.gmra.mxu0 %v9200_v24 }
 0x397   :  { %4437 = vst [vmem:[#allocation3 + $0x90] sm:$0xf] %v4436_v40  ;;  %4440 = vst [vmem:[#allocation3 + $0x94] sm:$0x1] %v4439_v1  ;;  %v8036_v63 = vrot.slane %v5284_v27, 9  ;;  %v5355_v9 = vrot.slane %v11110_v17, 5  ;;  %v4293_v4 = vor.u32 %v4291_v56, %v4290_v21  ;;  %v8047_v7 = vcombine.low %v5344_v35, %v5348_v6  ;;  %8835 = vmatpush3.bf16.msra.mxu0 %v9207_v3 }
 0x398   :  { %v8038_v13 = vrot.slane %v11123_v57, 9  ;;  %v4294_v2 = vrot.slane %v4290_v21, 4  ;;  %v9282_v46 = vld [vmem:[#allocation9 + $0x138] sm:$0xff]   ;;  %v5352_v62 = vsel %vm9700_vm13, %v8035_v37, %v5351_v20  ;;  %v9196_v41 = vld [vmem:[#allocation9 + $0x128] sm:$0xff]   ;;  %v5289_v42 = vld [vmem:[#allocation3 + $0x70] sm:$0xe] }
 0x399   :  { %8917 = vmatpush3.bf16.msra.mxu1 %v9282_v46  ;;  %v11145_v51 = vld [vmem:[#allocation3 + $0x6c] sm:$0x1]  ;;  %v5356_v58 = vsel %vm9700_vm13, %v8036_v63, %v5355_v9  ;;  %v5363_v59 = vrot.slane %v11128_v34, 5  ;;  %v8039_v15 = vrot.slane %v5287_v12, 9  ;;  %v11151_v22 = vld [vmem:[#allocation3 + $0x74] sm:$0x1]  ;;  %v4424_v19 = vsel %vm10999_vm3, %v4293_v4, %v4423_v54  ;;  %8872 = vmatprep.mubr.bf16.mxu1 %v8047_v7 }
 0x39a   :  { %8918 = vmatprep.subr.bf16.mxu1 %v11119_v23  ;;  %v4813_v36 = vld [vmem:[#allocation3 + $0x8] sm:$0xf]  ;;  %v4427_v32 = vsel %vm10517_vm1, %v4294_v2, %v4426_v45  ;;  %v5367_v27 = vrot.slane %v11137_v10, 5  ;;  %v8040_v60 = vrot.slane %v11130_v8, 9  ;;  %v11161_v5 = vld [vmem:[#allocation9 + $0xf8] sm:$0xff]   ;;  %v8048_v33 = vcombine.low %v5352_v62, %v5356_v58  ;;  %v9199_v43 = vld [vmem:[#allocation9 + $0x120] sm:$0xff]  }
 0x39b   :  { %4425 = vst [vmem:[#allocation3 + $0x80] sm:$0xf] %v4424_v19  ;;  %4428 = vst [vmem:[#allocation3 + $0x84] sm:$0x1] %v4427_v32  ;;  %v5364_v49 = vsel %vm9700_vm13, %v8038_v13, %v5363_v59  ;;  %v5371_v38 = vrot.slane %v11145_v51, 5  ;;  %v8041_v29 = vrot.slane %v5289_v42, 9  ;;  %8884 = vmatprep.subr.bf16.mxu0 %v11161_v5 }
 0x39c   :  { %v9203_v48 = vld [vmem:[#allocation3 + $0x70] ss:$8 sps:$4 sm:$0xff]   ;;  %v11166_v57 = vld [vmem:[#allocation3 + $0x8c] sm:$0x1]  ;;  %v5841_v44 = vld [vmem:[#allocation3 + $0x8] sm:$0xf]  ;;  %v8049_v0 = vcombine.low %v10913_v14, %v5364_v49 }
 0x39d   :  { %8919 = vmatpush3.bf16.msra.mxu1 %v11119_v23  ;;  %v11170_v25 = vld [vmem:[#allocation3 + $0x7c] sm:$0x1]  ;;  %v5290_v56 = vld [vmem:[#allocation3 + $0x78] sm:$0xe]  ;;  %v5375_v47 = vrot.slane %v11151_v22, 5  ;;  %v4858_v54 = vshrl.u32 %v4813_v36, 16  ;;  %8792 = vmatprep.mubr.bf16.mxu0 %v9203_v48  ;;  %v5368_v23 = vsel %vm9700_vm13, %v8039_v15, %v5367_v27  ;;  %v5372_v1 = vsel %vm9700_vm13, %v8040_v60, %v5371_v38 }
 0x39e   :  { %8920 = vmatprep.subr.bf16.mxu1 %v9196_v41  ;;  %v8042_v45 = vrot.slane %v5290_v56, 9  ;;  %v5379_v53 = vrot.slane %v11170_v25, 5  ;;  %v4861_v35 = vshll.u32 %v4813_v36, 16  ;;  %v5292_v16 = vld [vmem:[#allocation3 + $0x88] sm:$0xe]  ;;  %v11174_v37 = vrot.slane %v4962_v18, 4  ;;  %8873 = vmatmul.mubr.bf16.gmra.mxu1 %v8048_v33 }
 0x39f   :  { %v4860_v24 = vrot.slane %v4858_v54, 4  ;;  %v4867_v14 = vshll.u32 %v11076_v55, 16  ;;  %v5842_v8 = vld [vmem:[#allocation3 + $0xc] sm:$0x1]  ;;  %v5843_v40 = vld [vmem:[#allocation3 + $0x10] sm:$0xf]  ;;  %v5376_v21 = vsel %vm9700_vm13, %v8041_v29, %v5375_v47  ;;  %8876 = vmatprep.mubr.bf16.mxu1 %v8049_v0  ;;  %v8050_v42 = vcombine.low %v5368_v23, %v5372_v1 }
 0x3a0   :  { %v5380_v20 = vsel %vm9700_vm13, %v8042_v45, %v5379_v53  ;;  %v4863_v12 = vrot.slane %v4861_v35, 5  ;;  %v8044_v6 = vrot.slane %v5292_v16, 9  ;;  %v5387_v55 = vrot.slane %v11166_v57, 5  ;;  %v5844_v63 = vld [vmem:[#allocation3 + $0x14] sm:$0x1]  ;;  %v9202_v3 = vld [vmem:[#allocation9 + $0x118] sm:$0xff]  }
 0x3a1   :  { %8921 = vmatpush3.bf16.msra.mxu1 %v9196_v41  ;;  %v5874_v9 = vshrl.u32 %v5841_v44, 16  ;;  %v5877_v13 = vshll.u32 %v5841_v44, 16  ;;  %v4869_v2 = vrot.slane %v4867_v14, 5  ;;  %v5883_v46 = vshll.u32 %v5842_v8, 16  ;;  %v4815_v62 = vld [vmem:[#allocation3 + $0x10] sm:$0xf] }
 0x3a2   :  { %8922 = vmatprep.subr.bf16.mxu1 %v9199_v43  ;;  %v4864_v4 = vor.u32 %v4863_v12, %v4860_v24  ;;  %v5888_v7 = vshrl.u32 %v5843_v40, 16  ;;  %v8051_v58 = vcombine.low %v5376_v21, %v5380_v20  ;;  %v9206_v59 = vld [vmem:[#allocation3 + $0x80] ss:$8 sps:$4 sm:$0xff]   ;;  %v4856_v15 = vsel %vm9693_vm12, %v10921_v11, %v10923_v50  ;;  %v11191_v36 = vld [vmem:[#allocation3 + $0x84] sm:$0x1]  ;;  %v9205_v48 = vld [vmem:[#allocation9 + $0x110] sm:$0xff]  }
 0x3a3   :  { %v4968_v18 = vsel %vm9693_vm12, %v11174_v37, %v10955_v30  ;;  %v5291_v32 = vld [vmem:[#allocation3 + $0x80] sm:$0xe]  ;;  %v5383_v27 = vrot.slane %v11191_v36, 5  ;;  %v5876_v60 = vrot.slane %v5874_v9, 4  ;;  %v5879_v33 = vrot.slane %v5877_v13, 5  ;;  %8793 = vmatmul.mubr.bf16.gmra.mxu0 %v9206_v59  ;;  %v9208_v8 = vld [vmem:[#allocation9 + $0x108] sm:$0xff]  }
 0x3a4   :  { %v4865_v19 = vrot.slane %v4864_v4, 4  ;;  %v8043_v49 = vrot.slane %v5291_v32, 9  ;;  %v5388_v38 = vsel %vm9700_vm13, %v8044_v6, %v5387_v55  ;;  %v5890_v11 = vrot.slane %v5888_v7, 4  ;;  %v4817_v56 = vld [vmem:[#allocation3 + $0x18] sm:$0xf] }
 0x3a5   :  { %8923 = vmatpush3.bf16.msra.mxu1 %v9199_v43  ;;  %v5891_v50 = vshll.u32 %v5843_v40, 16  ;;  %v5880_v44 = vor.u32 %v5879_v33, %v5876_v60  ;;  %v5897_v0 = vshll.u32 %v5844_v63, 16  ;;  %v4872_v47 = vshrl.u32 %v4815_v62, 16  ;;  %v4819_v35 = vld [vmem:[#allocation3 + $0x20] sm:$0xf] }
 0x3a6   :  { %8924 = vmatprep.subr.bf16.mxu1 %v9202_v3  ;;  %v4870_v29 = vsel %vm9693_vm12, %v4865_v19, %v4869_v2  ;;  %v5384_v54 = vsel %vm9700_vm13, %v8043_v49, %v5383_v27  ;;  %v5885_v43 = vrot.slane %v5883_v46, 5  ;;  %v4875_v53 = vshll.u32 %v4815_v62, 16  ;;  %8877 = vmatmul.mubr.bf16.gmra.mxu1 %v8050_v42  ;;  %v4821_v63 = vld [vmem:[#allocation3 + $0x28] sm:$0xf]  ;;  %v5845_v46 = vld [vmem:[#allocation3 + $0x18] sm:$0xf] }
 0x3a7   :  { %v5893_v45 = vrot.slane %v5891_v50, 5  ;;  %v8013_v16 = vcombine.low %v4856_v15, %v4870_v29  ;;  %v8052_v23 = vcombine.low %v5384_v54, %v5388_v38  ;;  %v5881_v24 = vrot.slane %v5880_v44, 4  ;;  %8880 = vmatprep.mubr.bf16.mxu1 %v8051_v58  ;;  %v11208_v58 = vld [vmem:[#allocation3 + $0x1c] sm:$0x1]  ;;  %v5847_v59 = vld [vmem:[#allocation3 + $0x20] sm:$0xf] }
 0x3a8   :  { %v4874_v14 = vrot.slane %v4872_v47, 4  ;;  %v4877_v1 = vrot.slane %v4875_v53, 5  ;;  %v4881_v21 = vshll.u32 %v11084_v28, 16  ;;  %v4886_v20 = vshrl.u32 %v4817_v56, 16  ;;  %v9210_v27 = vld [vmem:[#allocation9 + $0x100] sm:$0xff]   ;;  %v11218_v54 = vld [vmem:[#allocation9 + $0x1b8] sm:$0xff]  }
 0x3a9   :  { %8925 = vmatpush3.bf16.msra.mxu1 %v9202_v3  ;;  %v5894_v40 = vor.u32 %v5893_v45, %v5890_v11  ;;  %8836 = vmatprep.mubr.bf16.mxu0 %v8013_v16  ;;  %v5899_v12 = vrot.slane %v5897_v0, 5  ;;  %v4889_v6 = vshll.u32 %v4817_v56, 16  ;;  %v4895_v55 = vshll.u32 %v11090_v61, 16  ;;  %v11216_v44 = vld [vmem:[#allocation3 + $0x24] sm:$0x1] }
 0x3aa   :  { %8926 = vmatprep.subr.bf16.mxu1 %v9205_v48  ;;  %v4900_v9 = vshrl.u32 %v4819_v35, 16  ;;  %v5886_v13 = vsel %vm9693_vm12, %v5881_v24, %v5885_v43  ;;  %v4878_v3 = vor.u32 %v4877_v1, %v4874_v14  ;;  %v4888_v2 = vrot.slane %v4886_v20, 4  ;;  %v5849_v43 = vld [vmem:[#allocation3 + $0x28] sm:$0xf]  ;;  %v11221_v24 = vld [vmem:[#allocation3 + $0x2c] sm:$0x1] }
 0x3ab   :  { %v5895_v4 = vrot.slane %v5894_v40, 4  ;;  %v4883_v7 = vrot.slane %v4881_v21, 5  ;;  %v4891_v62 = vrot.slane %v4889_v6, 5  ;;  %v4903_v28 = vshll.u32 %v4819_v35, 16  ;;  %v5851_v1 = vld [vmem:[#allocation3 + $0x30] sm:$0xf] }
 0x3ac   :  { %v4902_v42 = vrot.slane %v4900_v9, 4  ;;  %v4879_v15 = vrot.slane %v4878_v3, 4  ;;  %v4909_v19 = vshll.u32 %v11096_v31, 16  ;;  %v4914_v32 = vshrl.u32 %v4821_v63, 16 }
 0x3ad   :  { %8927 = vmatpush3.bf16.msra.mxu1 %v9205_v48  ;;  %v5900_v61 = vsel %vm9693_vm12, %v5895_v4, %v5899_v12  ;;  %v4892_v60 = vor.u32 %v4891_v62, %v4888_v2  ;;  %v4897_v33 = vrot.slane %v4895_v55, 5  ;;  %v4905_v49 = vrot.slane %v4903_v28, 5  ;;  %v9211_v12 = vld [vmem:[#allocation9 + $0xf0] sm:$0xff]  }
 0x3ae   :  { %8928 = vmatprep.subr.bf16.mxu1 %v9208_v8  ;;  %v4917_v38 = vshll.u32 %v4821_v63, 16  ;;  %v8077_v11 = vcombine.low %v5886_v13, %v5900_v61  ;;  %v4884_v50 = vsel %vm9693_vm12, %v4879_v15, %v4883_v7  ;;  %v4916_v29 = vrot.slane %v4914_v32, 4  ;;  %8881 = vmatmul.mubr.bf16.gmra.mxu1 %v8052_v23  ;;  %v11226_v4 = vld [vmem:[#allocation3 + $0x34] sm:$0x1]  ;;  %v4823_v61 = vld [vmem:[#allocation3 + $0x30] sm:$0xf] }
 0x3af   :  { %v4923_v48 = vshll.u32 %v11106_v39, 16  ;;  %v4893_v0 = vrot.slane %v4892_v60, 4  ;;  %v4906_v56 = vor.u32 %v4905_v49, %v4902_v42  ;;  %v5902_v47 = vshrl.u32 %v5845_v46, 16  ;;  %v9213_v60 = vld [vmem:[#allocation9 + $0xe8] sm:$0xff]  }
 0x3b0   :  { %v4919_v31 = vrot.slane %v4917_v38, 5  ;;  %8932 = vmatprep.mubr.bf16.mxu1 %v8077_v11  ;;  %v4911_v45 = vrot.slane %v4909_v19, 5  ;;  %v5905_v53 = vshll.u32 %v5845_v46, 16  ;;  %v5911_v35 = vshll.u32 %v11208_v58, 16 }
 0x3b1   :  { %8929 = vmatpush3.bf16.msra.mxu1 %v9208_v8  ;;  %v5916_v16 = vshrl.u32 %v5847_v59, 16  ;;  %v4898_v39 = vsel %vm9693_vm12, %v4893_v0, %v4897_v33  ;;  %v4907_v23 = vrot.slane %v4906_v56, 4  ;;  %v5904_v40 = vrot.slane %v5902_v47, 4  ;;  %v4825_v33 = vld [vmem:[#allocation3 + $0x38] sm:$0xf] }
 0x3b2   :  { %8930 = vmatprep.subr.bf16.mxu1 %v9210_v27  ;;  %v4920_v14 = vor.u32 %v4919_v31, %v4916_v29  ;;  %v8014_v21 = vcombine.low %v4884_v50, %v4898_v39  ;;  %v4925_v20 = vrot.slane %v4923_v48, 5  ;;  %v5907_v8 = vrot.slane %v5905_v53, 5  ;;  %v4829_v56 = vld [vmem:[#allocation3 + $0x58] sm:$0xf] }
 0x3b3   :  { %v5913_v6 = vrot.slane %v5911_v35, 5  ;;  %v5918_v63 = vrot.slane %v5916_v16, 4  ;;  %v5919_v9 = vshll.u32 %v5847_v59, 16  ;;  %v5925_v13 = vshll.u32 %v11216_v44, 16 }
 0x3b4   :  { %v4921_v55 = vrot.slane %v4920_v14, 4  ;;  %8837 = vmatmul.mubr.bf16.vlgmr.msra.gmra.mxu0 %v8014_v21  ;;  %v5908_v3 = vor.u32 %v5907_v8, %v5904_v40  ;;  %v5930_v2 = vshrl.u32 %v5849_v43, 16  ;;  %v5933_v46 = vshll.u32 %v5849_v43, 16  ;;  %v9214_v8 = vld [vmem:[#allocation9 + $0x1b0] sm:$0xff]  }
 0x3b5   :  { %8931 = vmatpush3.bf16.msra.mxu1 %v9210_v27  ;;  %v5939_v7 = vshll.u32 %v11221_v24, 16  ;;  %8885 = vmatpush3.bf16.msra.mxu0 %v11161_v5  ;;  %v4912_v62 = vsel %vm9693_vm12, %v4907_v23, %v4911_v45  ;;  %v5921_v28 = vrot.slane %v5919_v9, 5  ;;  %v5944_v59 = vshrl.u32 %v5851_v1, 16  ;;  %v9215_v23 = vld [vmem:[#allocation9 + $0xe0] sm:$0xff]   ;;  %v11241_v9 = vld [vmem:[#allocation3 + $0x3c] sm:$0x1] }
 0x3b6   :  { %v4926_v42 = vsel %vm9693_vm12, %v4921_v55, %v4925_v20  ;;  %8980 = vmatprep.subr.bf16.mxu1 %v11218_v54  ;;  %8886 = vmatprep.subr.bf16.mxu0 %v9211_v12  ;;  %v5909_v19 = vrot.slane %v5908_v3, 4  ;;  %v5932_v32 = vrot.slane %v5930_v2, 4  ;;  %v5935_v27 = vrot.slane %v5933_v46, 5  ;;  %v5853_v20 = vld [vmem:[#allocation3 + $0x38] sm:$0xf] }
 0x3b7   :  { %v8015_v15 = vcombine.low %v4912_v62, %v4926_v42  ;;  %v5922_v49 = vor.u32 %v5921_v28, %v5918_v63  ;;  %v5927_v5 = vrot.slane %v5925_v13, 5  ;;  %v5946_v38 = vrot.slane %v5944_v59, 4  ;;  %v5855_v46 = vld [vmem:[#allocation3 + $0x40] sm:$0xf]  ;;  %v11246_v28 = vld [vmem:[#allocation3 + $0x44] sm:$0x1] }
 0x3b8   :  { %v5947_v11 = vshll.u32 %v5851_v1, 16  ;;  %v5936_v50 = vor.u32 %v5935_v27, %v5932_v32  ;;  %v5941_v29 = vrot.slane %v5939_v7, 5  ;;  %v5953_v48 = vshll.u32 %v11226_v4, 16  ;;  %v9216_v27 = vld [vmem:[#allocation9 + $0x1a8] sm:$0xff]  }
 0x3b9   :  { %8840 = vmatprep.mubr.bf16.mxu0 %v8015_v15  ;;  %v4928_v0 = vshrl.u32 %v4823_v61, 16  ;;  %v5923_v31 = vrot.slane %v5922_v49, 4  ;;  %8887 = vmatpush3.bf16.msra.mxu0 %v9211_v12  ;;  %v4931_v43 = vshll.u32 %v4823_v61, 16  ;;  %v4937_v45 = vshll.u32 %v11121_v52, 16  ;;  %v9217_v61 = vld [vmem:[#allocation9 + $0xd8] sm:$0xff]  }
 0x3ba   :  { %v5949_v47 = vrot.slane %v5947_v11, 5  ;;  %v5914_v53 = vsel %vm9693_vm12, %v5909_v19, %v5913_v6  ;;  %v5937_v35 = vrot.slane %v5936_v50, 4  ;;  %8888 = vmatprep.subr.bf16.mxu0 %v9213_v60  ;;  %v4942_v39 = vshrl.u32 %v4825_v33, 16 }
 0x3bb   :  { %v4930_v16 = vrot.slane %v4928_v0, 4  ;;  %v5928_v14 = vsel %vm9693_vm12, %v5923_v31, %v5927_v5  ;;  %v5955_v1 = vrot.slane %v5953_v48, 5  ;;  %v4933_v21 = vrot.slane %v4931_v43, 5  ;;  %v9219_v43 = vld [vmem:[#allocation9 + $0xd0] sm:$0xff]  }
 0x3bc   :  { %v5950_v40 = vor.u32 %v5949_v47, %v5946_v38  ;;  %v8078_v12 = vcombine.low %v5914_v53, %v5928_v14  ;;  %v4939_v55 = vrot.slane %v4937_v45, 5  ;;  %v4944_v63 = vrot.slane %v4942_v39, 4  ;;  %v9218_v47 = vld [vmem:[#allocation9 + $0x1a0] sm:$0xff]  }
 0x3bd   :  { %v4945_v52 = vshll.u32 %v4825_v33, 16  ;;  %v4934_v13 = vor.u32 %v4933_v21, %v4930_v16  ;;  %v4951_v3 = vshll.u32 %v11110_v17, 16  ;;  %8889 = vmatpush3.bf16.msra.mxu0 %v9213_v60  ;;  %v4970_v2 = vshrl.u32 %v4829_v56, 16  ;;  %v5857_v60 = vld [vmem:[#allocation3 + $0x58] sm:$0xf] }
 0x3be   :  { %v5951_v6 = vrot.slane %v5950_v40, 4  ;;  %8933 = vmatmul.mubr.bf16.vlgmr.msra.gmra.mxu1 %v8078_v12  ;;  %v5942_v7 = vsel %vm9693_vm12, %v5937_v35, %v5941_v29  ;;  %v4973_v42 = vshll.u32 %v4829_v56, 16  ;;  %8890 = vmatprep.subr.bf16.mxu0 %v9215_v23  ;;  %v5958_v59 = vshrl.u32 %v5853_v20, 16  ;;  %v5859_v16 = vld [vmem:[#allocation3 + $0x60] sm:$0xf] }
 0x3bf   :  { %v4947_v62 = vrot.slane %v4945_v52, 5  ;;  %8981 = vmatpush3.bf16.msra.mxu1 %v11218_v54  ;;  %v4935_v17 = vrot.slane %v4934_v13, 4  ;;  %v4972_v19 = vrot.slane %v4970_v2, 4  ;;  %v4979_v32 = vshll.u32 %v11128_v34, 16  ;;  %v11255_v54 = vld [vmem:[#allocation3 + $0x5c] sm:$0x1] }
 0x3c0   :  { %v5956_v15 = vsel %vm9693_vm12, %v5951_v6, %v5955_v1  ;;  %8982 = vmatprep.subr.bf16.mxu1 %v9214_v8  ;;  %v4953_v5 = vrot.slane %v4951_v3, 5  ;;  %v4975_v38 = vrot.slane %v4973_v42, 5  ;;  %v5960_v50 = vrot.slane %v5958_v59, 4  ;;  %v11260_v21 = vld [vmem:[#allocation3 + $0x64] sm:$0x1] }
 0x3c1   :  { %v8079_v33 = vcombine.low %v5942_v7, %v5956_v15  ;;  %v4948_v49 = vor.u32 %v4947_v62, %v4944_v63  ;;  %v4940_v11 = vsel %vm9693_vm12, %v4935_v17, %v4939_v55  ;;  %v5961_v29 = vshll.u32 %v5853_v20, 16  ;;  %8891 = vmatpush3.bf16.msra.mxu0 %v9215_v23  ;;  %v9221_v20 = vld [vmem:[#allocation9 + $0xc8] sm:$0xff]   ;;  %v4831_v52 = vld [vmem:[#allocation3 + $0x60] sm:$0xf] }
 0x3c2   :  { %v5967_v48 = vshll.u32 %v11241_v9, 16  ;;  %v4976_v34 = vor.u32 %v4975_v38, %v4972_v19  ;;  %v5972_v56 = vshrl.u32 %v5855_v46, 16  ;;  %v5975_v31 = vshll.u32 %v5855_v46, 16  ;;  %8892 = vmatprep.subr.bf16.mxu0 %v9217_v61  ;;  %v4833_v59 = vld [vmem:[#allocation3 + $0x68] sm:$0xf] }
 0x3c3   :  { %8936 = vmatprep.mubr.bf16.mxu1 %v8079_v33  ;;  %v4949_v0 = vrot.slane %v4948_v49, 4  ;;  %8983 = vmatpush3.bf16.msra.mxu1 %v9214_v8  ;;  %v4981_v45 = vrot.slane %v4979_v32, 5  ;;  %v5963_v53 = vrot.slane %v5961_v29, 5  ;;  %v5981_v35 = vshll.u32 %v11246_v28, 16  ;;  %v4835_v38 = vld [vmem:[#allocation3 + $0x70] sm:$0xf] }
 0x3c4   :  { %v5986_v39 = vshrl.u32 %v5857_v60, 16  ;;  %v4977_v14 = vrot.slane %v4976_v34, 4  ;;  %v5974_v40 = vrot.slane %v5972_v56, 4  ;;  %v5977_v1 = vrot.slane %v5975_v31, 5  ;;  %8984 = vmatprep.subr.bf16.mxu1 %v9216_v27  ;;  %v9222_v34 = vld [vmem:[#allocation9 + $0x190] sm:$0xff]  }
 0x3c5   :  { %v4954_v23 = vsel %vm9693_vm12, %v4949_v0, %v4953_v5  ;;  %v5964_v55 = vor.u32 %v5963_v53, %v5960_v50  ;;  %v5969_v63 = vrot.slane %v5967_v48, 5  ;;  %8893 = vmatpush3.bf16.msra.mxu0 %v9217_v61  ;;  %v5989_v3 = vshll.u32 %v5857_v60, 16  ;;  %v9220_v61 = vld [vmem:[#allocation9 + $0x198] sm:$0xff]  }
 0x3c6   :  { %v8016_v12 = vcombine.low %v4940_v11, %v4954_v23  ;;  %v5988_v8 = vrot.slane %v5986_v39, 4  ;;  %v4982_v6 = vsel %vm9693_vm12, %v4977_v14, %v4981_v45  ;;  %v5978_v13 = vor.u32 %v5977_v1, %v5974_v40  ;;  %8894 = vmatprep.subr.bf16.mxu0 %v9219_v43  ;;  %v9224_v11 = vld [vmem:[#allocation9 + $0xc0] sm:$0xff]   ;;  %v4837_v53 = vld [vmem:[#allocation3 + $0x78] sm:$0xf] }
 0x3c7   :  { %v5995_v2 = vshll.u32 %v11255_v54, 16  ;;  %v8017_v46 = vcombine.low %v4968_v18, %v4982_v6  ;;  %v5965_v7 = vrot.slane %v5964_v55, 4  ;;  %v6000_v62 = vshrl.u32 %v5859_v16, 16  ;;  %8985 = vmatpush3.bf16.msra.mxu1 %v9216_v27 }
 0x3c8   :  { %8841 = vmatmul.mubr.bf16.gmra.mxu0 %v8016_v12  ;;  %v6003_v42 = vshll.u32 %v5859_v16, 16  ;;  %v5979_v15 = vrot.slane %v5978_v13, 4  ;;  %v5983_v17 = vrot.slane %v5981_v35, 5  ;;  %v5991_v19 = vrot.slane %v5989_v3, 5  ;;  %8986 = vmatprep.subr.bf16.mxu1 %v9218_v47  ;;  %v9225_v3 = vld [vmem:[#allocation9 + $0x188] sm:$0xff]  }
 0x3c9   :  { %v5997_v32 = vrot.slane %v5995_v2, 5  ;;  %8844 = vmatprep.mubr.bf16.mxu0 %v8017_v46  ;;  %v6002_v60 = vrot.slane %v6000_v62, 4  ;;  %v6009_v49 = vshll.u32 %v11260_v21, 16  ;;  %v4984_v5 = vshrl.u32 %v4831_v52, 16  ;;  %8895 = vmatpush3.bf16.msra.mxu0 %v9219_v43 }
 0x3ca   :  { %v6005_v33 = vrot.slane %v6003_v42, 5  ;;  %v5970_v30 = vsel %vm9693_vm12, %v5965_v7, %v5969_v63  ;;  %v5984_v37 = vsel %vm9693_vm12, %v5979_v15, %v5983_v17  ;;  %v5992_v18 = vor.u32 %v5991_v19, %v5988_v8  ;;  %8896 = vmatprep.subr.bf16.mxu0 %v9221_v20  ;;  %v5863_v42 = vld [vmem:[#allocation3 + $0x70] sm:$0xf] }
 0x3cb   :  { %v4987_v27 = vshll.u32 %v4831_v52, 16  ;;  %v8080_v50 = vcombine.low %v5970_v30, %v5984_v37  ;;  %v4986_v48 = vrot.slane %v4984_v5, 4  ;;  %v4993_v0 = vshll.u32 %v11137_v10, 16  ;;  %8987 = vmatpush3.bf16.msra.mxu1 %v9218_v47  ;;  %v11277_v10 = vld [vmem:[#allocation9 + $0x178] sm:$0xff]   ;;  %v5861_v52 = vld [vmem:[#allocation3 + $0x68] sm:$0xf] }
 0x3cc   :  { %v6006_v29 = vor.u32 %v6005_v33, %v6002_v60  ;;  %v5993_v56 = vrot.slane %v5992_v18, 4  ;;  %v4998_v43 = vshrl.u32 %v4833_v59, 16  ;;  %v5001_v45 = vshll.u32 %v4833_v59, 16  ;;  %8988 = vmatprep.subr.bf16.mxu1 %v9220_v61  ;;  %v11288_v60 = vld [vmem:[#allocation3 + $0x6c] sm:$0x1] }
 0x3cd   :  { %v4989_v31 = vrot.slane %v4987_v27, 5  ;;  %8937 = vmatmul.mubr.bf16.gmra.mxu1 %v8080_v50  ;;  %v6011_v16 = vrot.slane %v6009_v49, 5  ;;  %v5007_v39 = vshll.u32 %v11145_v51, 16  ;;  %v5012_v23 = vshrl.u32 %v4835_v38, 16  ;;  %8897 = vmatpush3.bf16.msra.mxu0 %v9221_v20  ;;  %v11290_v33 = vld [vmem:[#allocation3 + $0x74] sm:$0x1] }
 0x3ce   :  { %v6007_v35 = vrot.slane %v6006_v29, 4  ;;  %v4995_v40 = vrot.slane %v4993_v0, 5  ;;  %v5000_v1 = vrot.slane %v4998_v43, 4  ;;  %v5003_v12 = vrot.slane %v5001_v45, 5  ;;  %8898 = vmatprep.subr.bf16.mxu0 %v9224_v11  ;;  %v5865_v18 = vld [vmem:[#allocation3 + $0x78] sm:$0xf] }
 0x3cf   :  { %v4990_v14 = vor.u32 %v4989_v31, %v4986_v48  ;;  %v5998_v47 = vsel %vm9693_vm12, %v5993_v56, %v5997_v32  ;;  %v5014_v63 = vrot.slane %v5012_v23, 4  ;;  %v5015_v8 = vshll.u32 %v4835_v38, 16  ;;  %8989 = vmatpush3.bf16.msra.mxu1 %v9220_v61  ;;  %v11294_v29 = vld [vmem:[#allocation3 + $0x7c] sm:$0x1]  ;;  %v5867_v31 = vld [vmem:[#allocation3 + $0x80] sm:$0xf] }
 0x3d0   :  { %v6012_v55 = vsel %vm9693_vm12, %v6007_v35, %v6011_v16  ;;  %v5004_v20 = vor.u32 %v5003_v12, %v5000_v1  ;;  %v5021_v13 = vshll.u32 %v11151_v22, 16  ;;  %8990 = vmatprep.subr.bf16.mxu1 %v9222_v34  ;;  %v5009_v2 = vrot.slane %v5007_v39, 5  ;;  %v11302_v1 = vld [vmem:[#allocation9 + $0x238] sm:$0xff]  }
 0x3d1   :  { %v8081_v51 = vcombine.low %v5998_v47, %v6012_v55  ;;  %v4991_v6 = vrot.slane %v4990_v14, 4  ;;  %v5017_v46 = vrot.slane %v5015_v8, 5  ;;  %v5026_v7 = vshrl.u32 %v4837_v53, 16  ;;  %8899 = vmatpush3.bf16.msra.mxu0 %v9224_v11  ;;  %v11300_v14 = vld [vmem:[#allocation3 + $0x84] sm:$0x1] }
 0x3d2   :  { %v5029_v62 = vshll.u32 %v4837_v53, 16  ;;  %v5005_v15 = vrot.slane %v5004_v20, 4  ;;  %v5035_v61 = vshll.u32 %v11170_v25, 16  ;;  %v6014_v17 = vshrl.u32 %v5861_v52, 16  ;;  %8948 = vmatprep.subr.bf16.mxu0 %v11277_v10  ;;  %v9228_v25 = vld [vmem:[#allocation9 + $0x180] sm:$0xff]  }
 0x3d3   :  { %8940 = vmatprep.mubr.bf16.mxu1 %v8081_v51  ;;  %v4996_v59 = vsel %vm9693_vm12, %v4991_v6, %v4995_v40  ;;  %v5018_v19 = vor.u32 %v5017_v46, %v5014_v63  ;;  %v5028_v22 = vrot.slane %v5026_v7, 4  ;;  %8991 = vmatpush3.bf16.msra.mxu1 %v9222_v34  ;;  %v5023_v5 = vrot.slane %v5021_v13, 5  ;;  %v4839_v8 = vld [vmem:[#allocation3 + $0x80] sm:$0xf]  ;;  %v4841_v7 = vld [vmem:[#allocation3 + $0x88] sm:$0xf] }
 0x3d4   :  { %v5031_v32 = vrot.slane %v5029_v62, 5  ;;  %v5010_v49 = vsel %vm9693_vm12, %v5005_v15, %v5009_v2  ;;  %v6016_v30 = vrot.slane %v6014_v17, 4  ;;  %v6017_v37 = vshll.u32 %v5861_v52, 16  ;;  %8992 = vmatprep.subr.bf16.mxu1 %v9225_v3 }
 0x3d5   :  { %v8018_v27 = vcombine.low %v4996_v59, %v5010_v49  ;;  %v5019_v38 = vrot.slane %v5018_v19, 4  ;;  %v6028_v50 = vshrl.u32 %v5863_v42, 16  ;;  %v5037_v48 = vrot.slane %v5035_v61, 5 }
 0x3d6   :  { %v5032_v11 = vor.u32 %v5031_v32, %v5028_v22  ;;  %v6019_v0 = vrot.slane %v6017_v37, 5  ;;  %v6023_v56 = vshll.u32 %v11288_v60, 16  ;;  %v6031_v34 = vshll.u32 %v5863_v42, 16  ;;  %v5869_v37 = vld [vmem:[#allocation3 + $0x88] sm:$0xf] }
 0x3d7   :  { %8845 = vmatmul.mubr.bf16.gmra.mxu0 %v8018_v27  ;;  %v6030_v45 = vrot.slane %v6028_v50, 4  ;;  %v6037_v53 = vshll.u32 %v11290_v33, 16  ;;  %v6042_v35 = vshrl.u32 %v5865_v18, 16  ;;  %8993 = vmatpush3.bf16.msra.mxu1 %v9225_v3  ;;  %v5024_v16 = vsel %vm9693_vm12, %v5019_v38, %v5023_v5 }
 0x3d8   :  { %v5033_v43 = vrot.slane %v5032_v11, 4  ;;  %v6020_v39 = vor.u32 %v6019_v0, %v6016_v30  ;;  %v6033_v23 = vrot.slane %v6031_v34, 5  ;;  %v6045_v40 = vshll.u32 %v5865_v18, 16  ;;  %8994 = vmatprep.subr.bf16.mxu1 %v9228_v25  ;;  %v5871_v11 = vld [vmem:[#allocation3 + $0x90] sm:$0xf] }
 0x3d9   :  { %v6044_v47 = vrot.slane %v6042_v35, 4  ;;  %v6051_v55 = vshll.u32 %v11294_v29, 16  ;;  %v6056_v63 = vshrl.u32 %v5867_v31, 16  ;;  %v6025_v13 = vrot.slane %v6023_v56, 5 }
 0x3da   :  { %v5038_v12 = vsel %vm9693_vm12, %v5033_v43, %v5037_v48  ;;  %v6021_v51 = vrot.slane %v6020_v39, 4  ;;  %v6034_v6 = vor.u32 %v6033_v23, %v6030_v45  ;;  %v6047_v20 = vrot.slane %v6045_v40, 5  ;;  %v11321_v40 = vld [vmem:[#allocation3 + $0x94] sm:$0x1] }
 0x3db   :  { %v8019_v52 = vcombine.low %v5024_v16, %v5038_v12  ;;  %v6058_v3 = vrot.slane %v6056_v63, 4  ;;  %v6059_v2 = vshll.u32 %v5867_v31, 16  ;;  %v6065_v46 = vshll.u32 %v11300_v14, 16  ;;  %8995 = vmatpush3.bf16.msra.mxu1 %v9228_v25  ;;  %v11317_v16 = vld [vmem:[#allocation3 + $0x8c] sm:$0x1] }
 0x3dc   :  { %v6035_v62 = vrot.slane %v6034_v6, 4  ;;  %v6039_v42 = vrot.slane %v6037_v53, 5  ;;  %v6048_v59 = vor.u32 %v6047_v20, %v6044_v47  ;;  %v5040_v15 = vshrl.u32 %v4839_v8, 16  ;;  %9076 = vmatprep.subr.bf16.mxu1 %v11302_v1 }
 0x3dd   :  { %8848 = vmatprep.mubr.bf16.mxu0 %v8019_v52  ;;  %v6026_v61 = vsel %vm9693_vm12, %v6021_v51, %v6025_v13  ;;  %v6053_v17 = vrot.slane %v6051_v55, 5  ;;  %v6061_v19 = vrot.slane %v6059_v2, 5  ;;  %v5043_v22 = vshll.u32 %v4839_v8, 16 }
 0x3de   :  { %v6040_v32 = vsel %vm9693_vm12, %v6035_v62, %v6039_v42  ;;  %v6049_v49 = vrot.slane %v6048_v59, 4  ;;  %v5042_v5 = vrot.slane %v5040_v15, 4  ;;  %v5054_v30 = vshrl.u32 %v4841_v7, 16  ;;  %v6309_v62 = vld [vmem:[#allocation3 + $0x18] sm:$0xe] }
 0x3df   :  { %v8082_v18 = vcombine.low %v6026_v61, %v6040_v32  ;;  %v6062_v25 = vor.u32 %v6061_v19, %v6058_v3  ;;  %v6067_v27 = vrot.slane %v6065_v46, 5  ;;  %v5045_v38 = vrot.slane %v5043_v22, 5  ;;  %v6310_v42 = vld [vmem:[#allocation3 + $0x20] sm:$0xe]  ;;  %v9223_v19 = vld [vmem:[#allocation3 + $0x8] ss:$8 sps:$4 sm:$0xff]  }
 0x3e0   :  { %v5049_v50 = vshll.u32 %v11191_v36, 16  ;;  %v5056_v48 = vrot.slane %v5054_v30, 4  ;;  %v5057_v0 = vshll.u32 %v4841_v7, 16  ;;  %v5063_v56 = vshll.u32 %v11166_v57, 16 }
 0x3e1   :  { %8941 = vmatmul.mubr.bf16.gmra.mxu1 %v8082_v18  ;;  %v6063_v34 = vrot.slane %v6062_v25, 4  ;;  %v5046_v31 = vor.u32 %v5045_v38, %v5042_v5  ;;  %v6070_v43 = vshrl.u32 %v5869_v37, 16  ;;  %v6073_v45 = vshll.u32 %v5869_v37, 16 }
 0x3e2   :  { %v6054_v53 = vsel %vm9693_vm12, %v6049_v49, %v6053_v17  ;;  %v5059_v35 = vrot.slane %v5057_v0, 5  ;;  %v6084_v39 = vshrl.u32 %v5871_v11, 16  ;;  %v5051_v55 = vrot.slane %v5049_v50, 5  ;;  %v6311_v17 = vld [vmem:[#allocation3 + $0x28] sm:$0xe] }
 0x3e3   :  { %v6068_v23 = vsel %vm9693_vm12, %v6063_v34, %v6067_v27  ;;  %v5047_v36 = vrot.slane %v5046_v31, 4  ;;  %v6072_v12 = vrot.slane %v6070_v43, 4  ;;  %v6075_v57 = vrot.slane %v6073_v45, 5  ;;  %v6312_v49 = vld [vmem:[#allocation3 + $0x30] sm:$0xe] }
 0x3e4   :  { %v8083_v47 = vcombine.low %v6054_v53, %v6068_v23  ;;  %v5060_v63 = vor.u32 %v5059_v35, %v5056_v48  ;;  %v5065_v8 = vrot.slane %v5063_v56, 5  ;;  %v6086_v51 = vrot.slane %v6084_v39, 4  ;;  %v9226_v34 = vld [vmem:[#allocation3 + $0x10] ss:$8 sps:$4 sm:$0xff]   ;;  %v6314_v53 = vld [vmem:[#allocation3 + $0x40] sm:$0xe] }
 0x3e5   :  { %v6076_v52 = vor.u32 %v6075_v57, %v6072_v12  ;;  %v6087_v6 = vshll.u32 %v5871_v11, 16  ;;  %v5052_v20 = vsel %vm9693_vm12, %v5047_v36, %v5051_v55  ;;  %v6079_v3 = vshll.u32 %v11317_v16, 16  ;;  %v6313_v31 = vld [vmem:[#allocation3 + $0x38] sm:$0xe]  ;;  %v9231_v39 = vld [vmem:[#allocation9 + $0x170] sm:$0xff]  }
 0x3e6   :  { %8944 = vmatprep.mubr.bf16.mxu1 %v8083_v47  ;;  %v5061_v13 = vrot.slane %v5060_v63, 4  ;;  %v6093_v2 = vshll.u32 %v11321_v40, 16  ;;  %v8095_v30 = vrot.slane %v6309_v62, 9  ;;  %v6365_v37 = vrot.slane %v11208_v58, 5  ;;  %v9229_v35 = vld [vmem:[#allocation3 + $0x18] ss:$8 sps:$4 sm:$0xff]  }
 0x3e7   :  { %v6089_v46 = vrot.slane %v6087_v6, 5  ;;  %v6077_v15 = vrot.slane %v6076_v52, 4  ;;  %v6081_v22 = vrot.slane %v6079_v3, 5  ;;  %v8096_v18 = vrot.slane %v6310_v42, 9  ;;  %v6315_v23 = vld [vmem:[#allocation3 + $0x58] sm:$0xe] }
 0x3e8   :  { %v5066_v7 = vsel %vm9693_vm12, %v5061_v13, %v5065_v8  ;;  %v6095_v32 = vrot.slane %v6093_v2, 5  ;;  %v6369_v25 = vrot.slane %v11216_v44, 5  ;;  %v8097_v27 = vrot.slane %v6311_v17, 9  ;;  %v9230_v36 = vld [vmem:[#allocation3 + $0x28] ss:$8 sps:$4 sm:$0xff]   ;;  %v9261_v42 = vld [vmem:[#allocation9 + $0x1e0] sm:$0xff]  }
 0x3e9   :  { %v8020_v59 = vcombine.low %v5052_v20, %v5066_v7  ;;  %v6090_v61 = vor.u32 %v6089_v46, %v6086_v51  ;;  %v6373_v38 = vrot.slane %v11221_v24, 5  ;;  %v6082_v11 = vsel %vm9693_vm12, %v6077_v15, %v6081_v22  ;;  %v6316_v47 = vld [vmem:[#allocation3 + $0x60] sm:$0xe]  ;;  %v9235_v51 = vld [vmem:[#allocation9 + $0x168] sm:$0xff]   ;;  %v11370_v3 = vld [vmem:[#allocation9 + $0x230] sm:$0xff]  }
 0x3ea   :  { %v8098_v48 = vrot.slane %v6312_v49, 9  ;;  %v11338_v56 = vsel %vm9700_vm13, %v8095_v30, %v6365_v37  ;;  %v11342_v58 = vsel %vm9700_vm13, %v8096_v18, %v6369_v25  ;;  %v6377_v44 = vrot.slane %v11226_v4, 5  ;;  %v9234_v2 = vld [vmem:[#allocation3 + $0x30] ss:$8 sps:$4 sm:$0xff]  }
 0x3eb   :  { %8849 = vmatmul.mubr.bf16.gmra.mxu0 %v8020_v59  ;;  %v6091_v5 = vrot.slane %v6090_v61, 4  ;;  %v8110_v24 = vcombine.low %v11338_v56, %v11342_v58  ;;  %v11349_v43 = vsel %vm9700_vm13, %v8097_v27, %v6373_v38  ;;  %v8099_v12 = vrot.slane %v6313_v31, 9  ;;  %v6318_v62 = vld [vmem:[#allocation3 + $0x70] sm:$0xe]  ;;  %v6319_v59 = vld [vmem:[#allocation3 + $0x78] sm:$0xe] }
 0x3ec   :  { %8900 = vmatprep.mubr.bf16.mxu0 %v9223_v19  ;;  %v11353_v45 = vsel %vm9700_vm13, %v8098_v48, %v6377_v44  ;;  %v6381_v57 = vrot.slane %v11241_v9, 5  ;;  %v8100_v55 = vrot.slane %v6314_v53, 9  ;;  %v6385_v63 = vrot.slane %v11246_v28, 5  ;;  %v9232_v28 = vld [vmem:[#allocation3 + $0x20] ss:$8 sps:$4 sm:$0xff]   ;;  %v9243_v38 = vld [vmem:[#allocation9 + $0x158] sm:$0xff]  }
 0x3ed   :  { %v6096_v50 = vsel %vm9693_vm12, %v6091_v5, %v6095_v32  ;;  %v8111_v4 = vcombine.low %v11349_v43, %v11353_v45  ;;  %v8101_v8 = vrot.slane %v6315_v23, 9  ;;  %v6389_v52 = vrot.slane %v11255_v54, 5  ;;  %v6317_v54 = vld [vmem:[#allocation3 + $0x68] sm:$0xe]  ;;  %v9237_v15 = vld [vmem:[#allocation3 + $0x38] ss:$8 sps:$4 sm:$0xff]  }
 0x3ee   :  { %v8084_v0 = vcombine.low %v6082_v11, %v6096_v50  ;;  %v11363_v6 = vsel %vm9700_vm13, %v8099_v12, %v6381_v57  ;;  %v11367_v9 = vsel %vm9700_vm13, %v8100_v55, %v6385_v63  ;;  %v8102_v20 = vrot.slane %v6316_v47, 9  ;;  %v6320_v19 = vld [vmem:[#allocation3 + $0x80] sm:$0xe]  ;;  %v11387_v32 = vld [vmem:[#allocation9 + $0x228] sm:$0xff]   ;;  %v6308_v44 = vld [vmem:[#allocation3 + $0x10] sm:$0xe] }
 0x3ef   :  { %v6393_v13 = vrot.slane %v11260_v21, 5  ;;  %v11376_v46 = vsel %vm9700_vm13, %v8101_v8, %v6389_v52  ;;  %v9239_v21 = vld [vmem:[#allocation9 + $0x160] sm:$0xff]   ;;  %v8103_v61 = vrot.slane %v6317_v54, 9  ;;  %v6397_v17 = vrot.slane %v11288_v60, 5  ;;  %v9247_v31 = vld [vmem:[#allocation9 + $0x150] sm:$0xff]  }
 0x3f0   :  { %8945 = vmatmul.mubr.bf16.gmra.mxu1 %v8084_v0  ;;  %v9238_v22 = vld [vmem:[#allocation3 + $0x58] ss:$8 sps:$4 sm:$0xff]   ;;  %v8104_v49 = vrot.slane %v6318_v62, 9  ;;  %v6401_v5 = vrot.slane %v11290_v33, 5  ;;  %v8105_v30 = vrot.slane %v6319_v59, 9  ;;  %v6405_v37 = vrot.slane %v11294_v29, 5 }
 0x3f1   :  { %8996 = vmatprep.mubr.bf16.mxu1 %v9226_v34  ;;  %v11380_v7 = vsel %vm9700_vm13, %v8102_v20, %v6393_v13  ;;  %v11393_v18 = vsel %vm9700_vm13, %v8103_v61, %v6397_v17  ;;  %v8106_v25 = vrot.slane %v6320_v19, 9  ;;  %v6409_v27 = vrot.slane %v11300_v14, 5  ;;  %v9240_v29 = vld [vmem:[#allocation3 + $0x40] ss:$8 sps:$4 sm:$0xff]   ;;  %v9284_v47 = vld [vmem:[#allocation3 + $0xc] sm:$0x1] }
 0x3f2   :  { %v11397_v60 = vsel %vm9700_vm13, %v8104_v49, %v6401_v5  ;;  %v11404_v11 = vld [vmem:[#allocation9 + $0x220] sm:$0xff]   ;;  %v11408_v50 = vsel %vm9700_vm13, %v8105_v30, %v6405_v37  ;;  %v9245_v34 = vld [vmem:[#allocation3 + $0x68] ss:$8 sps:$4 sm:$0xff]   ;;  %v8094_v23 = vrot.slane %v6308_v44, 9  ;;  %v6357_v55 = vrot.slane %v9284_v47, 5 }
 0x3f3   :  { %8901 = vmatmul.mubr.bf16.vlgmr.msra.gmra.mxu0 %v9229_v35  ;;  %v11412_v48 = vsel %vm9700_vm13, %v8106_v25, %v6409_v27  ;;  %v9242_v14 = vld [vmem:[#allocation3 + $0x60] ss:$8 sps:$4 sm:$0xff]   ;;  %v11418_v35 = vld [vmem:[#allocation9 + $0x218] sm:$0xff]   ;;  %v11421_v63 = vld [vmem:[#allocation3 + $0x34] sm:$0x1] }
 0x3f4   :  { %8949 = vmatpush3.bf16.msra.mxu0 %v11277_v10  ;;  %8904 = vmatprep.mubr.bf16.mxu0 %v9230_v36  ;;  %v9246_v53 = vld [vmem:[#allocation3 + $0x78] ss:$8 sps:$4 sm:$0xff]   ;;  %v9283_v36 = vld [vmem:[#allocation3 + $0x14] sm:$0x1]  ;;  %v7342_v8 = vld [vmem:[#allocation3 + $0x30] sm:$0xe] }
 0x3f5   :  { %8950 = vmatprep.subr.bf16.mxu0 %v9231_v39  ;;  %v6361_v12 = vrot.slane %v9283_v36, 5  ;;  %v9248_v52 = vld [vmem:[#allocation3 + $0x70] ss:$8 sps:$4 sm:$0xff]   ;;  %v9250_v13 = vld [vmem:[#allocation3 + $0x80] ss:$8 sps:$4 sm:$0xff]   ;;  %v7404_v61 = vrot.slane %v11421_v63, 5 }
 0x3f6   :  { %v11424_v20 = vld [vmem:[#allocation9 + $0x210] sm:$0xff]   ;;  %v9254_v54 = vld [vmem:[#allocation9 + $0x140] sm:$0xff]   ;;  %v7343_v62 = vld [vmem:[#allocation3 + $0x38] sm:$0xe] }
 0x3f7   :  { %v11430_v59 = vld [vmem:[#allocation9 + $0x208] sm:$0xff]   ;;  %v11433_v17 = vld [vmem:[#allocation3 + $0x44] sm:$0x1]  ;;  %v7344_v49 = vld [vmem:[#allocation3 + $0x40] sm:$0xe]  ;;  %v8162_v37 = vrot.slane %v7343_v62, 9 }
 0x3f8   :  { %8997 = vmatmul.mubr.bf16.vlgmr.msra.gmra.mxu1 %v9232_v28  ;;  %8951 = vmatpush3.bf16.msra.mxu0 %v9231_v39  ;;  %v6307_v39 = vld [vmem:[#allocation3 + $0x8] sm:$0xe]  ;;  %v6362_v28 = vsel %vm9700_vm13, %v8094_v23, %v6361_v12  ;;  %v11442_v27 = vld [vmem:[#allocation3 + $0x64] sm:$0x1]  ;;  %v7412_v44 = vrot.slane %v11433_v17, 5 }
 0x3f9   :  { %9000 = vmatprep.mubr.bf16.mxu1 %v9234_v2  ;;  %9084 = vmatpush3.bf16.msra.mxu1 %v11302_v1  ;;  %v8093_v57 = vrot.slane %v6307_v39, 9  ;;  %v11428_v2 = vld [vmem:[#allocation3 + $0x3c] sm:$0x1]  ;;  %v7345_v5 = vld [vmem:[#allocation3 + $0x48] sm:$0xe]  ;;  %v11450_v39 = vld [vmem:[#allocation9 + $0x200] sm:$0xff]  }
 0x3fa   :  { %8952 = vmatprep.subr.bf16.mxu0 %v9235_v51  ;;  %9077 = vmatprep.subr.bf16.mxu1 %v11370_v3  ;;  %v7408_v25 = vrot.slane %v11428_v2, 5  ;;  %12003 = vst [vmem:[#allocation17_spill] sm:$0xff] %v11450_v39  ;;  %v8164_v23 = vrot.slane %v7345_v5, 9  ;;  %v9255_v47 = vld [vmem:[#allocation3 + $0x90] ss:$8 sps:$4 sm:$0xff]  }
 0x3fb   :  { %8905 = vmatmul.mubr.bf16.gmra.mxu0 %v9237_v15  ;;  %v8161_v15 = vrot.slane %v7342_v8, 9  ;;  %v6358_v19 = vsel %vm9700_vm13, %v8093_v57, %v6357_v55  ;;  %v7420_v57 = vrot.slane %v11442_v27, 5  ;;  %v11457_v8 = vld [vmem:[#allocation3 + $0x74] sm:$0x1]  ;;  %v11460_v62 = vld [vmem:[#allocation3 + $0x7c] sm:$0x1] }
 0x3fc   :  { %8953 = vmatpush3.bf16.msra.mxu0 %v9235_v51  ;;  %8908 = vmatprep.mubr.bf16.mxu0 %v9238_v22  ;;  %v9251_v51 = vld [vmem:[#allocation9 + $0x148] sm:$0xff]   ;;  %v8109_v30 = vcombine.low %v6358_v19, %v6362_v28  ;;  %v7409_v55 = vsel %vm9700_vm13, %v8162_v37, %v7408_v25  ;;  %v11464_v19 = vld [vmem:[#allocation3 + $0x84] sm:$0x1]  ;;  %v7428_v25 = vrot.slane %v11457_v8, 5  ;;  %v6876_v33 = vld [vmem:[#allocation3 + $0x20] sm:$0xf] }
 0x3fd   :  { %9085 = vmatpush3.bf16.msra.mxu1 %v11370_v3  ;;  %8954 = vmatprep.subr.bf16.mxu0 %v9239_v21  ;;  %v11438_v22 = vld [vmem:[#allocation3 + $0x4c] sm:$0x1]  ;;  %v6878_v58 = vld [vmem:[#allocation3 + $0x28] sm:$0xf] }
 0x3fe   :  { %9078 = vmatprep.subr.bf16.mxu1 %v11387_v32  ;;  %v7416_v36 = vrot.slane %v11438_v22, 5 }
 0x400   :  { %9001 = vmatmul.mubr.bf16.gmra.mxu1 %v9240_v29  ;;  %8955 = vmatpush3.bf16.msra.mxu0 %v9239_v21  ;;  %v9253_v21 = vld [vmem:[#allocation3 + $0x88] ss:$8 sps:$4 sm:$0xff]   ;;  %v7346_v29 = vld [vmem:[#allocation3 + $0x60] sm:$0xe]  ;;  %v7417_v5 = vsel %vm9700_vm13, %v8164_v23, %v7416_v36 }
 0x401   :  { %9004 = vmatprep.mubr.bf16.mxu1 %v9242_v14  ;;  %9086 = vmatpush3.bf16.msra.mxu1 %v11387_v32  ;;  %v8163_v14 = vrot.slane %v7344_v49, 9  ;;  %v8165_v12 = vrot.slane %v7346_v29, 9  ;;  %v7350_v49 = vld [vmem:[#allocation3 + $0x80] sm:$0xe]  ;;  %v7351_v29 = vld [vmem:[#allocation3 + $0x88] sm:$0xe] }
 0x402   :  { %8956 = vmatprep.subr.bf16.mxu0 %v9243_v38  ;;  %9079 = vmatprep.subr.bf16.mxu1 %v11404_v11  ;;  %v8169_v36 = vrot.slane %v7350_v49, 9 }
 0x403   :  { %8909 = vmatmul.mubr.bf16.gmra.mxu0 %v9245_v34  ;;  %v11447_v34 = vld [vmem:[#allocation3 + $0x6c] sm:$0x1] }
 0x404   :  { %8957 = vmatpush3.bf16.msra.mxu0 %v9243_v38  ;;  %8912 = vmatprep.mubr.bf16.mxu0 %v9246_v53  ;;  %v7405_v38 = vsel %vm9700_vm13, %v8161_v15, %v7404_v61  ;;  %v9257_v53 = vld [vmem:[#allocation9 + $0x1f8] sm:$0xff]   ;;  %v7424_v28 = vrot.slane %v11447_v34, 5  ;;  %v9259_v15 = vld [vmem:[#allocation9 + $0x1f0] sm:$0xff]   ;;  %v7413_v61 = vsel %vm9700_vm13, %v8163_v14, %v7412_v44  ;;  %v7432_v44 = vrot.slane %v11460_v62, 5 }
 0x405   :  { %9087 = vmatpush3.bf16.msra.mxu1 %v11404_v11  ;;  %8958 = vmatprep.subr.bf16.mxu0 %v9247_v31 }
 0x406   :  { %9080 = vmatprep.subr.bf16.mxu1 %v11418_v35 }
 0x408   :  { %9005 = vmatmul.mubr.bf16.gmra.mxu1 %v9248_v52  ;;  %8959 = vmatpush3.bf16.msra.mxu0 %v9247_v31  ;;  %v7347_v31 = vld [vmem:[#allocation3 + $0x68] sm:$0xe]  ;;  %v7348_v52 = vld [vmem:[#allocation3 + $0x70] sm:$0xe] }
 0x409   :  { %9008 = vmatprep.mubr.bf16.mxu1 %v9250_v13  ;;  %9088 = vmatpush3.bf16.msra.mxu1 %v11418_v35  ;;  %v8166_v13 = vrot.slane %v7347_v31, 9  ;;  %v8167_v37 = vrot.slane %v7348_v52, 9  ;;  %v11476_v31 = vld [vmem:[#allocation3 + $0x94] sm:$0x1]  ;;  %v8176_v52 = vcombine.low %v7413_v61, %v7417_v5 }
 0x40a   :  { %8960 = vmatprep.subr.bf16.mxu0 %v9251_v51  ;;  %9081 = vmatprep.subr.bf16.mxu1 %v11424_v20  ;;  %v7444_v61 = vrot.slane %v11476_v31, 5 }
 0x40b   :  { %8913 = vmatmul.mubr.bf16.gmra.mxu0 %v9253_v21  ;;  %v7349_v21 = vld [vmem:[#allocation3 + $0x78] sm:$0xe]  ;;  %v7425_v23 = vsel %vm9700_vm13, %v8166_v13, %v7424_v28  ;;  %v11492_v13 = vsel %vm9700_vm13, %v8167_v37, %v7428_v25  ;;  %v8170_v28 = vrot.slane %v7351_v29, 9  ;;  %v6947_v37 = vshrl.u32 %v6878_v58, 16  ;;  %v11502_v29 = vpop.f32.mrf.mxu1 }
 0x40c   :  { %8961 = vmatpush3.bf16.msra.mxu0 %v9251_v51  ;;  %8964 = vmatprep.mubr.bf16.mxu0 %v8109_v30  ;;  %v8175_v51 = vcombine.low %v7405_v38, %v7409_v55  ;;  %v7421_v30 = vsel %vm9700_vm13, %v8165_v12, %v7420_v57  ;;  %v6872_v38 = vld [vmem:[#allocation3 + $0x10] sm:$0xf]  ;;  %v8168_v14 = vrot.slane %v7349_v21, 9  ;;  %v7436_v12 = vrot.slane %v11464_v19, 5  ;;  %v11484_v57 = vld [vmem:[#allocation3 + $0x9c] sm:$0x1] }
 0x40d   :  { %9089 = vmatpush3.bf16.msra.mxu1 %v11424_v20  ;;  %8962 = vmatprep.subr.bf16.mxu0 %v9254_v54  ;;  %v7352_v55 = vld [vmem:[#allocation3 + $0x90] sm:$0xe]  ;;  %v7353_v21 = vld [vmem:[#allocation3 + $0x98] sm:$0xe]  ;;  %v6905_v0 = vshrl.u32 %v6872_v38, 16  ;;  %v6908_v56 = vshll.u32 %v6872_v38, 16 }
 0x40e   :  { %9082 = vmatprep.subr.bf16.mxu1 %v11430_v59  ;;  %v7433_v43 = vsel %vm9700_vm13, %v8168_v14, %v7432_v44  ;;  %v11500_v5 = vsel %vm9700_vm13, %v8169_v36, %v7436_v12  ;;  %v6321_v38 = vld [vmem:[#allocation3 + $0x88] sm:$0xe]  ;;  %v6950_v25 = vshll.u32 %v6878_v58, 16  ;;  %12004 = vst [vmem:[#allocation18_spill] sm:$0xff] %v11502_v29  ;;  %v6322_v14 = vld [vmem:[#allocation3 + $0x90] sm:$0xe]  ;;  %v12005_v29 = vcombine.low %v11363_v6, %v11367_v9 }
 0x40f   :  { %v6907_v44 = vrot.slane %v6905_v0, 4  ;;  %v8178_v36 = vcombine.low %v11492_v13, %v7433_v43  ;;  %v11506_v12 = vld [vmem:[#allocation3 + $0x14] sm:$0x1]  ;;  %v6936_v58 = vshll.u32 %v6876_v33, 16  ;;  %v8107_v0 = vrot.slane %v6321_v38, 9 }
 0x410   :  { %9009 = vmatmul.mubr.bf16.gmra.mxu1 %v9255_v47  ;;  %8963 = vmatpush3.bf16.msra.mxu0 %v9254_v54  ;;  %v11472_v54 = vld [vmem:[#allocation3 + $0x8c] sm:$0x1]  ;;  %v6874_v47 = vld [vmem:[#allocation3 + $0x18] sm:$0xf]  ;;  %v8108_v13 = vrot.slane %v6322_v14, 9  ;;  %v6914_v9 = vshll.u32 %v11506_v12, 16 }
 0x411   :  { %9090 = vmatpush3.bf16.msra.mxu1 %v11430_v59  ;;  %9064 = vmatprep.mubr.bf16.mxu1 %v8175_v51  ;;  %v8177_v51 = vcombine.low %v7421_v30, %v7425_v23  ;;  %v6922_v49 = vshll.u32 %v6874_v47, 16  ;;  %v7440_v45 = vrot.slane %v11472_v54, 5  ;;  %v8172_v30 = vrot.slane %v7353_v21, 9  ;;  %v6882_v43 = vld [vmem:[#allocation3 + $0x38] sm:$0xf] }
 0x412   :  { %9012 = vmatprep.subr.bf16.mxu0 %v9257_v53  ;;  %9083 = vmatprep.subr.bf16.mxu1 %v11450_v39  ;;  %v6910_v23 = vrot.slane %v6908_v56, 5  ;;  %v6413_v56 = vrot.slane %v11317_v16, 5 }
 0x413   :  { %8965 = vmatmul.mubr.bf16.vlgmr.msra.gmra.mxu0 %v8110_v24  ;;  %v9260_v24 = vld [vmem:[#allocation9 + $0x1e8] sm:$0xff]   ;;  %v6924_v10 = vrot.slane %v6922_v49, 5  ;;  %v6949_v49 = vrot.slane %v6947_v37, 4  ;;  %v6938_v37 = vrot.slane %v6936_v58, 5  ;;  %v6916_v58 = vrot.slane %v6914_v9, 5 }
 0x414   :  { %9013 = vmatpush3.bf16.msra.mxu0 %v9257_v53  ;;  %8968 = vmatprep.mubr.bf16.mxu0 %v8111_v4  ;;  %v6919_v53 = vshrl.u32 %v6874_v47, 16  ;;  %v8171_v4 = vrot.slane %v7352_v55, 9  ;;  %v7448_v47 = vrot.slane %v11484_v57, 5  ;;  %v6933_v55 = vshrl.u32 %v6876_v33, 16 }
 0x415   :  { %9091 = vmatpush3.bf16.msra.mxu1 %v11450_v39  ;;  %9014 = vmatprep.subr.bf16.mxu0 %v9259_v15  ;;  %v6952_v33 = vrot.slane %v6950_v25, 5  ;;  %v11519_v39 = vpop.f32.mrf.mxu1  ;;  %v6911_v6 = vor.u32 %v6910_v23, %v6907_v44 }
 0x416   :  { %v6921_v21 = vrot.slane %v6919_v53, 4  ;;  %v6417_v53 = vrot.slane %v11321_v40, 5  ;;  %12006 = vst [vmem:[#allocation19_spill] sm:$0xff] %v11519_v39  ;;  %v11526_v16 = vsel %vm9700_vm13, %v8172_v30, %v7448_v47  ;;  %v11531_v40 = vld [vmem:[#allocation3 + $0x24] sm:$0x1]  ;;  %v11538_v30 = vsel %vm9700_vm13, %v8107_v0, %v6413_v56 }
 0x417   :  { %v6978_v47 = vshll.u32 %v6882_v43, 16  ;;  %v6953_v23 = vor.u32 %v6952_v33, %v6949_v49  ;;  %v6886_v56 = vld [vmem:[#allocation3 + $0x48] sm:$0xf]  ;;  %v6888_v49 = vld [vmem:[#allocation3 + $0x60] sm:$0xf] }
 0x418   :  { %9065 = vmatmul.mubr.bf16.vlgmr.msra.gmra.mxu1 %v8176_v52  ;;  %9015 = vmatpush3.bf16.msra.mxu0 %v9259_v15  ;;  %v7441_v52 = vsel %vm9700_vm13, %v8170_v28, %v7440_v45  ;;  %v11512_v15 = vsel %vm9700_vm13, %v8171_v4, %v7444_v61  ;;  %v12007_v28 = vcombine.low %v11376_v46, %v11380_v7  ;;  %v11528_v45 = vld [vmem:[#allocation3 + $0x1c] sm:$0x1]  ;;  %v6935_v4 = vrot.slane %v6933_v55, 4  ;;  %v6884_v55 = vld [vmem:[#allocation3 + $0x40] sm:$0xf] }
 0x419   :  { %9068 = vmatprep.mubr.bf16.mxu1 %v8177_v51  ;;  %9016 = vmatprep.subr.bf16.mxu0 %v9260_v24  ;;  %v6880_v51 = vld [vmem:[#allocation3 + $0x30] sm:$0xf]  ;;  %v9262_v61 = vld [vmem:[#allocation9 + $0x1d8] sm:$0xff]   ;;  %v6925_v38 = vor.u32 %v6924_v10, %v6921_v21  ;;  %v8179_v25 = vcombine.low %v11500_v5, %v7441_v52  ;;  %v8180_v14 = vcombine.low %v11512_v15, %v11526_v16  ;;  %v6928_v10 = vshll.u32 %v11528_v45, 16  ;;  %v11547_v21 = vpop.f32.mrf.mxu1 }
 0x41a   :  { %v6961_v46 = vshrl.u32 %v6880_v51, 16  ;;  %v6964_v7 = vshll.u32 %v6880_v51, 16  ;;  %v11544_v44 = vsel %vm9700_vm13, %v8108_v13, %v6417_v53  ;;  %12008 = vst [vmem:[#allocation20_spill] sm:$0xff] %v11547_v21  ;;  %v6912_v5 = vrot.slane %v6911_v6, 4  ;;  %v9263_v15 = vld [vmem:[#allocation9 + $0x1d0] sm:$0xff]  }
 0x41b   :  { %8969 = vmatmul.mubr.bf16.gmra.mxu0 %v12005_v29  ;;  %v6975_v29 = vshrl.u32 %v6882_v43, 16  ;;  %v6942_v52 = vshll.u32 %v11531_v40, 16  ;;  %v6926_v51 = vrot.slane %v6925_v38, 4  ;;  %v6939_v13 = vor.u32 %v6938_v37, %v6935_v4 }
 0x41c   :  { %9017 = vmatpush3.bf16.msra.mxu0 %v9260_v24  ;;  %8972 = vmatprep.mubr.bf16.mxu0 %v12007_v28  ;;  %v11533_v24 = vld [vmem:[#allocation3 + $0x2c] sm:$0x1]  ;;  %v6963_v53 = vrot.slane %v6961_v46, 4  ;;  %v6966_v43 = vrot.slane %v6964_v7, 5  ;;  %v6980_v28 = vrot.slane %v6978_v47, 5  ;;  %v6989_v16 = vshrl.u32 %v6884_v55, 16 }
 0x41d   :  { %9018 = vmatprep.subr.bf16.mxu0 %v9261_v42  ;;  %v6956_v0 = vshll.u32 %v11533_v24, 16  ;;  %v6977_v33 = vrot.slane %v6975_v29, 4  ;;  %v6930_v6 = vrot.slane %v6928_v10, 5  ;;  %v6954_v9 = vrot.slane %v6953_v23, 4 }
 0x41e   :  { %v7003_v21 = vshrl.u32 %v6886_v56, 16  ;;  %v7006_v39 = vshll.u32 %v6886_v56, 16  ;;  %v12010_v4 = vcombine.low %v11408_v50, %v11412_v48  ;;  %v6917_v38 = vsel %vm9693_vm12, %v6912_v5, %v6916_v58 }
 0x41f   :  { %v6944_v37 = vrot.slane %v6942_v52, 5  ;;  %v7017_v46 = vshrl.u32 %v6888_v49, 16  ;;  %v7020_v7 = vshll.u32 %v6888_v49, 16  ;;  %v6958_v29 = vrot.slane %v6956_v0, 5 }
 0x420   :  { %9069 = vmatmul.mubr.bf16.gmra.mxu1 %v8178_v36  ;;  %9019 = vmatpush3.bf16.msra.mxu0 %v9261_v42  ;;  %v6992_v36 = vshll.u32 %v6884_v55, 16  ;;  %v12009_v42 = vcombine.low %v11393_v18, %v11397_v60  ;;  %v9264_v18 = vld [vmem:[#allocation9 + $0x1c8] sm:$0xff]   ;;  %v6931_v60 = vsel %vm9693_vm12, %v6926_v51, %v6930_v6  ;;  %v6967_v47 = vor.u32 %v6966_v43, %v6963_v53 }
 0x421   :  { %9072 = vmatprep.mubr.bf16.mxu1 %v8179_v25  ;;  %9020 = vmatprep.subr.bf16.mxu0 %v9262_v61  ;;  %v11554_v25 = vpop.f32.mrf.mxu1  ;;  %v6970_v10 = vshll.u32 %v11421_v63, 16  ;;  %v6940_v23 = vrot.slane %v6939_v13, 4  ;;  %v6981_v55 = vor.u32 %v6980_v28, %v6977_v33  ;;  %v6991_v50 = vrot.slane %v6989_v16, 4  ;;  %v9265_v33 = vld [vmem:[#allocation9 + $0x1c0] sm:$0xff]  }
 0x422   :  { %v6994_v48 = vrot.slane %v6992_v36, 5  ;;  %v6959_v5 = vsel %vm9693_vm12, %v6954_v9, %v6958_v29  ;;  %v6984_v58 = vshll.u32 %v11428_v2, 16  ;;  %v7005_v52 = vrot.slane %v7003_v21, 4 }
 0x423   :  { %8973 = vmatmul.mubr.bf16.gmra.mxu0 %v12009_v42  ;;  %v7008_v56 = vrot.slane %v7006_v39, 5  ;;  %v11567_v49 = vpop.f32.mrf.mxu1  ;;  %v7019_v0 = vrot.slane %v7017_v46, 4  ;;  %v7022_v51 = vrot.slane %v7020_v7, 5  ;;  %v8116_v13 = vcombine.low %v11538_v30, %v11544_v44 }
 0x424   :  { %9021 = vmatpush3.bf16.msra.mxu0 %v9262_v61  ;;  %8976 = vmatprep.mubr.bf16.mxu0 %v12010_v4  ;;  %v6890_v61 = vld [vmem:[#allocation3 + $0x68] sm:$0xf]  ;;  %v8141_v43 = vcombine.low %v6917_v38, %v6931_v60  ;;  %v6968_v28 = vrot.slane %v6967_v47, 4  ;;  %v6998_v16 = vshll.u32 %v11433_v17, 16  ;;  %v6945_v2 = vsel %vm9693_vm12, %v6940_v23, %v6944_v37  ;;  %v6896_v38 = vld [vmem:[#allocation3 + $0x80] sm:$0xf] }
 0x425   :  { %9022 = vmatprep.subr.bf16.mxu0 %v9263_v15  ;;  %v7031_v53 = vshrl.u32 %v6890_v61, 16  ;;  %v7034_v63 = vshll.u32 %v6890_v61, 16  ;;  %v6982_v39 = vrot.slane %v6981_v55, 4  ;;  %v6995_v21 = vor.u32 %v6994_v48, %v6991_v50  ;;  %v11575_v9 = vpop.f32.mrf.mxu1  ;;  %v6898_v61 = vld [vmem:[#allocation3 + $0x88] sm:$0xf] }
 0x426   :  { %v8142_v36 = vcombine.low %v6945_v2, %v6959_v5  ;;  %v6972_v42 = vrot.slane %v6970_v10, 5  ;;  %v7009_v6 = vor.u32 %v7008_v56, %v7005_v52  ;;  %v6986_v30 = vrot.slane %v6984_v58, 5 }
 0x427   :  { %v7023_v44 = vor.u32 %v7022_v51, %v7019_v0  ;;  %v7033_v4 = vrot.slane %v7031_v53, 4  ;;  %v7036_v17 = vrot.slane %v7034_v63, 5  ;;  %v7000_v46 = vrot.slane %v6998_v16, 5  ;;  %v11583_v5 = vpop.f32.mrf.mxu1 }
 0x428   :  { %9073 = vmatmul.mubr.bf16.gmra.mxu1 %v8180_v14  ;;  %9023 = vmatpush3.bf16.msra.mxu0 %v9263_v15  ;;  %v7012_v14 = vshll.u32 %v11438_v22, 16  ;;  %v6894_v15 = vld [vmem:[#allocation3 + $0x78] sm:$0xf]  ;;  %v6973_v37 = vsel %vm9693_vm12, %v6968_v28, %v6972_v42  ;;  %v6892_v22 = vld [vmem:[#allocation3 + $0x70] sm:$0xf]  ;;  %v6987_v29 = vsel %vm9693_vm12, %v6982_v39, %v6986_v30  ;;  %v6996_v47 = vrot.slane %v6995_v21, 4 }
 0x429   :  { %9024 = vmatprep.subr.bf16.mxu0 %v9264_v18  ;;  %v7059_v7 = vshrl.u32 %v6894_v15, 16  ;;  %v7062_v60 = vshll.u32 %v6894_v15, 16  ;;  %v7010_v23 = vrot.slane %v7009_v6, 4  ;;  %v7040_v55 = vshll.u32 %v11447_v34, 16  ;;  %v6900_v28 = vld [vmem:[#allocation3 + $0x90] sm:$0xf]  ;;  %v11588_v21 = vpop.f32.mrf.mxu1 }
 0x42a   :  { %v7014_v10 = vrot.slane %v7012_v14, 5  ;;  %v7073_v50 = vshrl.u32 %v6896_v38, 16  ;;  %v7076_v48 = vshll.u32 %v6896_v38, 16  ;;  %v7024_v58 = vrot.slane %v7023_v44, 4  ;;  %v6902_v39 = vld [vmem:[#allocation3 + $0x98] sm:$0xf] }
 0x42b   :  { %8977 = vmatmul.mubr.bf16.gmra.mxu0 %v8116_v13  ;;  %v7037_v52 = vor.u32 %v7036_v17, %v7033_v4  ;;  %v7045_v56 = vshrl.u32 %v6892_v22, 16  ;;  %v7048_v0 = vshll.u32 %v6892_v22, 16  ;;  %v7061_v51 = vrot.slane %v7059_v7, 4  ;;  %v11597_v7 = vpop.f32.mrf.mxu1 }
 0x42c   :  { %9025 = vmatpush3.bf16.msra.mxu0 %v9264_v18  ;;  %9028 = vmatprep.mubr.bf16.mxu0 %v8141_v43  ;;  %v7026_v18 = vshll.u32 %v11442_v27, 16  ;;  %v7064_v53 = vrot.slane %v7062_v60, 5  ;;  %v7087_v63 = vshrl.u32 %v6898_v61, 16  ;;  %v7090_v13 = vshll.u32 %v6898_v61, 16 }
 0x42d   :  { %9026 = vmatprep.subr.bf16.mxu0 %v9265_v33  ;;  %v8143_v27 = vcombine.low %v6973_v37, %v6987_v29  ;;  %v7001_v34 = vsel %vm9693_vm12, %v6996_v47, %v7000_v46  ;;  %v7042_v16 = vrot.slane %v7040_v55, 5  ;;  %v7075_v2 = vrot.slane %v7073_v50, 4 }
 0x42e   :  { %v7028_v43 = vrot.slane %v7026_v18, 5  ;;  %v7015_v14 = vsel %vm9693_vm12, %v7010_v23, %v7014_v10  ;;  %v7038_v15 = vrot.slane %v7037_v52, 4  ;;  %v7047_v42 = vrot.slane %v7045_v56, 4  ;;  %v11606_v56 = vpop.f32.mrf.mxu1 }
 0x42f   :  { %v7050_v6 = vrot.slane %v7048_v0, 5  ;;  %v7065_v30 = vor.u32 %v7064_v53, %v7061_v51  ;;  %v7089_v44 = vrot.slane %v7087_v63, 4  ;;  %v7092_v4 = vrot.slane %v7090_v13, 5 }
 0x430   :  { %9027 = vmatpush3.bf16.msra.mxu0 %v9265_v33  ;;  %v7078_v33 = vrot.slane %v7076_v48, 5  ;;  %v7101_v17 = vshrl.u32 %v6900_v28, 16  ;;  %v7104_v38 = vshll.u32 %v6900_v28, 16  ;;  %v7115_v37 = vshrl.u32 %v6902_v39, 16 }
 0x431   :  { %9044 = vmatprep.subr.bf16.mxu0 %v11302_v1  ;;  %v7118_v46 = vshll.u32 %v6902_v39, 16  ;;  %v8144_v60 = vcombine.low %v7001_v34, %v7015_v14  ;;  %v7043_v29 = vsel %vm9693_vm12, %v7038_v15, %v7042_v16  ;;  %v7051_v47 = vor.u32 %v7050_v6, %v7047_v42 }
 0x432   :  { %v7079_v22 = vor.u32 %v7078_v33, %v7075_v2  ;;  %v7068_v10 = vshll.u32 %v11460_v62, 16  ;;  %v7066_v61 = vrot.slane %v7065_v30, 4  ;;  %v7082_v23 = vshll.u32 %v11464_v19, 16  ;;  %v7338_v33 = vld [vmem:[#allocation3 + $0x10] sm:$0xe] }
 0x433   :  { %9029 = vmatmul.mubr.bf16.vlgmr.msra.gmra.mxu0 %v8142_v36  ;;  %v7029_v36 = vsel %vm9693_vm12, %v7024_v58, %v7028_v43  ;;  %v7093_v55 = vor.u32 %v7092_v4, %v7089_v44  ;;  %v7106_v50 = vrot.slane %v7104_v38, 5  ;;  %v7117_v48 = vrot.slane %v7115_v37, 4  ;;  %v7339_v30 = vld [vmem:[#allocation3 + $0x18] sm:$0xe] }
 0x434   :  { %9045 = vmatpush3.bf16.msra.mxu0 %v11302_v1  ;;  %9032 = vmatprep.mubr.bf16.mxu0 %v8143_v27  ;;  %v7054_v1 = vshll.u32 %v11457_v8, 16  ;;  %v8145_v18 = vcombine.low %v7029_v36, %v7043_v29  ;;  %v7103_v8 = vrot.slane %v7101_v17, 4  ;;  %v7120_v58 = vrot.slane %v7118_v46, 5 }
 0x435   :  { %9046 = vmatprep.subr.bf16.mxu0 %v11370_v3  ;;  %v7096_v52 = vshll.u32 %v11472_v54, 16  ;;  %v7052_v62 = vrot.slane %v7051_v47, 4  ;;  %v7070_v0 = vrot.slane %v7068_v10, 5  ;;  %v7084_v19 = vrot.slane %v7082_v23, 5  ;;  %v7340_v47 = vld [vmem:[#allocation3 + $0x20] sm:$0xe] }
 0x436   :  { %v7056_v51 = vrot.slane %v7054_v1, 5  ;;  %v7094_v53 = vrot.slane %v7093_v55, 4  ;;  %v7107_v13 = vor.u32 %v7106_v50, %v7103_v8  ;;  %v7121_v27 = vor.u32 %v7120_v58, %v7117_v48  ;;  %v12011_v8 = vld [vmem:[#allocation17_spill] sm:$0xff] }
 0x437   :  { %v7071_v63 = vsel %vm9693_vm12, %v7066_v61, %v7070_v0  ;;  %v7124_v43 = vshll.u32 %v11484_v57, 16  ;;  %v7098_v28 = vrot.slane %v7096_v52, 5  ;;  %v7110_v2 = vshll.u32 %v11476_v31, 16 }
 0x438   :  { %9047 = vmatpush3.bf16.msra.mxu0 %v11370_v3  ;;  %v7080_v3 = vrot.slane %v7079_v22, 4  ;;  %v7057_v16 = vsel %vm9693_vm12, %v7052_v62, %v7056_v51  ;;  %v7108_v42 = vrot.slane %v7107_v13, 4  ;;  %v7122_v6 = vrot.slane %v7121_v27, 4  ;;  %v7341_v22 = vld [vmem:[#allocation3 + $0x28] sm:$0xe] }
 0x439   :  { %9048 = vmatprep.subr.bf16.mxu0 %v11387_v32  ;;  %v8146_v39 = vcombine.low %v7057_v16, %v7071_v63  ;;  %v7099_v57 = vsel %vm9693_vm12, %v7094_v53, %v7098_v28  ;;  %v7126_v36 = vrot.slane %v7124_v43, 5  ;;  %v7388_v44 = vrot.slane %v11506_v12, 5 }
 0x43a   :  { %v7085_v54 = vsel %vm9693_vm12, %v7080_v3, %v7084_v19  ;;  %v11617_v34 = vpop.f32.mrf.mxu0  ;;  %v7112_v31 = vrot.slane %v7110_v2, 5  ;;  %v8158_v38 = vrot.slane %v7339_v30, 9  ;;  %v7392_v37 = vrot.slane %v11528_v45, 5 }
 0x43b   :  { %9033 = vmatmul.mubr.bf16.gmra.mxu0 %v8144_v60  ;;  %v8147_v15 = vcombine.low %v7085_v54, %v7099_v57  ;;  %v7127_v1 = vsel %vm9693_vm12, %v7122_v6, %v7126_v36  ;;  %v7400_v41 = vrot.slane %v11533_v24, 5  ;;  %v8159_v23 = vrot.slane %v7340_v47, 9 }
 0x43c   :  { %9049 = vmatpush3.bf16.msra.mxu0 %v11387_v32  ;;  %9036 = vmatprep.mubr.bf16.mxu0 %v8145_v18  ;;  %v11615_v32 = vpop.f32.mrf.mxu1  ;;  %v11626_v14 = vpop.f32.mrf.mxu0  ;;  %v7113_v46 = vsel %vm9693_vm12, %v7108_v42, %v7112_v31  ;;  %v7393_v45 = vsel %vm9700_vm13, %v8158_v38, %v7392_v37  ;;  %v8160_v18 = vrot.slane %v7341_v22, 9  ;;  %v12013_v38 = vld [vmem:[#allocation19_spill] sm:$0xff]  ;;  %v12014_v22 = vld [vmem:[#allocation20_spill] sm:$0xff] }
 0x43d   :  { %9050 = vmatprep.subr.bf16.mxu0 %v11404_v11  ;;  %v8148_v29 = vcombine.low %v7113_v46, %v7127_v1  ;;  %v4749_v37 = vadd.f32 %v12013_v38, %v11626_v14 }
 0x43e   :  { %v11629_v4 = vpop.f32.mrf.mxu1  ;;  %v11632_v17 = vpop.f32.mrf.mxu0  ;;  %v7401_v50 = vsel %vm9700_vm13, %v8160_v18, %v7400_v41 }
 0x440   :  { %9051 = vmatpush3.bf16.msra.mxu0 %v11404_v11  ;;  %v8157_v11 = vrot.slane %v7338_v33, 9  ;;  %v4606_v60 = vpop.f32.mrf.mxu0 }
 0x441   :  { %9052 = vmatprep.subr.bf16.mxu0 %v11418_v35  ;;  %v4752_v18 = vadd.f32 %v11554_v25, %v4606_v60 }
 0x442   :  { %v7389_v12 = vsel %vm9700_vm13, %v8157_v11, %v7388_v44  ;;  %v12012_v11 = vld [vmem:[#allocation18_spill] sm:$0xff] }
 0x443   :  { %9037 = vmatmul.mubr.bf16.gmra.mxu0 %v8146_v39  ;;  %v8173_v10 = vcombine.low %v7389_v12, %v7393_v45  ;;  %v4757_v44 = vadd.f32 %v12012_v11, %v11617_v34 }
 0x444   :  { %9053 = vmatpush3.bf16.msra.mxu0 %v11418_v35  ;;  %9040 = vmatprep.mubr.bf16.mxu0 %v8147_v15  ;;  %v11642_v35 = vpop.f32.mrf.mxu1 }
 0x445   :  { %9054 = vmatprep.subr.bf16.mxu0 %v11424_v20 }
 0x446   :  { %v11649_v61 = vpop.f32.mrf.mxu1 }
 0x448   :  { %9055 = vmatpush3.bf16.msra.mxu0 %v11424_v20  ;;  %v7396_v20 = vrot.slane %v11531_v40, 5  ;;  %v11656_v58 = vpop.f32.mrf.mxu1 }
 0x449   :  { %9056 = vmatprep.subr.bf16.mxu0 %v11430_v59  ;;  %v8786_v55 = vpop.f32.mrf.mxu0 }
 0x44a   :  { %v7397_v24 = vsel %vm9700_vm13, %v8159_v23, %v7396_v20  ;;  %v4799_v52 = vpop.f32.mrf.mxu1 }
 0x44b   :  { %9041 = vmatmul.mubr.bf16.gmra.mxu0 %v8148_v29  ;;  %v4619_v48 = vpop.f32.mrf.mxu0  ;;  %v4760_v29 = vadd.f32 %v12014_v22, %v11632_v17 }
 0x44c   :  { %9057 = vmatpush3.bf16.msra.mxu0 %v11430_v59  ;;  %9060 = vmatprep.mubr.bf16.mxu0 %v8173_v10  ;;  %v8174_v59 = vcombine.low %v7397_v24, %v7401_v50  ;;  %v4765_v60 = vadd.f32 %v11575_v9, %v4619_v48 }
 0x44d   :  { %9058 = vmatprep.subr.bf16.mxu0 %v12011_v8  ;;  %v8787_v3 = vpop.f32.mrf.mxu0 }
 0x44f   :  { %v4622_v62 = vpop.f32.mrf.mxu0 }
 0x450   :  { %9059 = vmatpush3.bf16.msra.mxu0 %v12011_v8 }
 0x453   :  { %9061 = vmatmul.mubr.bf16.vlgmr.msra.gmra.mxu0 %v8174_v59 }
 0x455   :  { %v8870_v40 = vpop.f32.mrf.mxu1 }
 0x456   :  { %v8790_v0 = vpop.f32.mrf.mxu0 }
 0x457   :  { %v5520_v51 = vpop.f32.mrf.mxu1 }
 0x458   :  { %v4635_v19 = vpop.f32.mrf.mxu0 }
 0x459   :  { %v8871_v53 = vpop.f32.mrf.mxu1 }
 0x45a   :  { %v11661_v63 = vpop.f32.mrf.mxu0 }
 0x45b   :  { %v5523_v13 = vpop.f32.mrf.mxu1 }
 0x45c   :  { %v11663_v43 = vpop.f32.mrf.mxu0 }
 0x45e   :  { %v8874_v27 = vpop.f32.mrf.mxu1 }
 0x460   :  { %v5536_v54 = vpop.f32.mrf.mxu1 }
 0x462   :  { %v8875_v28 = vpop.f32.mrf.mxu1 }
 0x463   :  { %v11665_v26 = vpop.f32.mrf.mxu0 }
 0x464   :  { %v5539_v16 = vpop.f32.mrf.mxu1 }
 0x465   :  { %v11667_v2 = vpop.f32.mrf.mxu0 }
 0x466   :  { %v8878_v33 = vpop.f32.mrf.mxu1 }
 0x467   :  { %v11669_v39 = vpop.f32.mrf.mxu0 }
 0x468   :  { %v5552_v57 = vpop.f32.mrf.mxu1 }
 0x469   :  { %v4654_v15 = vpop.f32.mrf.mxu0 }
 0x46a   :  { %v8879_v42 = vpop.f32.mrf.mxu1  ;;  %v11671_v6 = vadd.f32 %v4799_v52, %v4654_v15  ;;  %v4773_v52 = vadd.f32 %v11567_v49, %v8786_v55 }
 0x46c   :  { %v5555_v36 = vpop.f32.mrf.mxu1 }
 0x46e   :  { %v11673_v30 = vpop.f32.mrf.mxu1 }
 0x470   :  { %v11679_v46 = vpop.f32.mrf.mxu1 }
 0x472   :  { %v11686_v41 = vpop.f32.mrf.mxu1 }
 0x474   :  { %v8838_v31 = vpop.f32.mrf.mxu0  ;;  %v11692_v50 = vpop.f32.mrf.mxu1 }
 0x475   :  { %v5263_v1 = vadd.f32 %v8838_v31, %v4757_v44  ;;  %v4768_v31 = vadd.f32 %v11588_v21, %v4622_v62  ;;  %v4781_v21 = vadd.f32 %v11606_v56, %v4635_v19 }
 0x476   :  { %v5198_v12 = vpop.f32.mrf.mxu0 }
 0x477   :  { %v5261_v45 = vadd.f32 %v5198_v12, %v4749_v37  ;;  %v11683_v47 = vadd.f32 %v8870_v40, %v5263_v1 }
 0x478   :  { %v8839_v10 = vpop.f32.mrf.mxu0 }
 0x479   :  { %v5264_v34 = vadd.f32 %v8839_v10, %v4760_v29  ;;  %v11688_v23 = vadd.f32 %v5520_v51, %v5261_v45  ;;  %v4792_v29 = vadd.f32 %v11615_v32, %v11661_v63  ;;  %v4784_v10 = vadd.f32 %v11629_v4, %v11663_v43 }
 0x47a   :  { %v5201_v20 = vpop.f32.mrf.mxu0  ;;  %v4805_v4 = vadd.f32 %v11642_v35, %v11665_v26 }
 0x47b   :  { %v5262_v14 = vadd.f32 %v5201_v20, %v4752_v18  ;;  %v11690_v8 = vadd.f32 %v8871_v53, %v5264_v34  ;;  %v4776_v53 = vadd.f32 %v11583_v5, %v8787_v3  ;;  %v4789_v3 = vadd.f32 %v11597_v7, %v8790_v0 }
 0x47d   :  { %v11694_v24 = vadd.f32 %v5523_v13, %v5262_v14 }
 0x47e   :  { %v11696_v17 = vpop.f32.mrf.mxu1 }
 0x480   :  { %v11698_v59 = vpop.f32.mrf.mxu1 }
 0x482   :  { %v11702_v51 = vpop.f32.mrf.mxu1 }
 0x484   :  { %v11710_v1 = vpop.f32.mrf.mxu1 }
 0x488   :  { %v8842_v25 = vpop.f32.mrf.mxu0 }
 0x489   :  { %v5267_v40 = vadd.f32 %v8842_v25, %v4773_v52 }
 0x48a   :  { %v5214_v15 = vpop.f32.mrf.mxu0 }
 0x48b   :  { %v5265_v11 = vadd.f32 %v5214_v15, %v4765_v60  ;;  %v11705_v44 = vadd.f32 %v8874_v27, %v5267_v40 }
 0x48c   :  { %v8843_v13 = vpop.f32.mrf.mxu0 }
 0x48d   :  { %v5268_v38 = vadd.f32 %v8843_v13, %v4776_v53  ;;  %v11708_v37 = vadd.f32 %v5536_v54, %v5265_v11  ;;  %v11716_v12 = vpop.f32.mrf.mxu1 }
 0x48e   :  { %v5217_v49 = vpop.f32.mrf.mxu0 }
 0x48f   :  { %v5266_v55 = vadd.f32 %v5217_v49, %v4768_v31  ;;  %v11712_v9 = vadd.f32 %v8875_v28, %v5268_v38  ;;  %v11718_v5 = vpop.f32.mrf.mxu1 }
 0x491   :  { %v11714_v48 = vadd.f32 %v5539_v16, %v5266_v55  ;;  %v11722_v54 = vpop.f32.mrf.mxu1 }
 0x493   :  { %v11732_v7 = vpop.f32.mrf.mxu1 }
 0x497   :  { %v8846_v27 = vpop.f32.mrf.mxu0 }
 0x498   :  { %v5271_v62 = vadd.f32 %v8846_v27, %v4789_v3 }
 0x499   :  { %v5230_v22 = vpop.f32.mrf.mxu0 }
 0x49a   :  { %v5269_v28 = vadd.f32 %v5230_v22, %v4781_v21  ;;  %v11726_v45 = vadd.f32 %v8878_v33, %v5271_v62  ;;  %v4797_v33 = vadd.f32 %v11649_v61, %v11667_v2 }
 0x49b   :  { %v8847_v16 = vpop.f32.mrf.mxu0 }
 0x49c   :  { %v5272_v18 = vadd.f32 %v8847_v16, %v4792_v29  ;;  %v11730_v34 = vadd.f32 %v5552_v57, %v5269_v28 }
 0x49d   :  { %v5233_v56 = vpop.f32.mrf.mxu0 }
 0x49e   :  { %v5270_v0 = vadd.f32 %v5233_v56, %v4784_v10  ;;  %v11734_v19 = vadd.f32 %v8879_v42, %v5272_v18 }
 0x4a0   :  { %v11736_v20 = vadd.f32 %v5555_v36, %v5270_v0  ;;  %v4808_v36 = vadd.f32 %v11656_v58, %v11669_v39 }
 0x4a1   :  { %v11738_v14 = vpop.f32.mrf.mxu1 }
 0x4a3   :  { %v11740_v32 = vpop.f32.mrf.mxu1 }
 0x4a5   :  { %v11742_v63 = vpop.f32.mrf.mxu1 }
 0x4a7   :  { %v11748_v52 = vpop.f32.mrf.mxu1 }
 0x4ab   :  { %v8850_v43 = vpop.f32.mrf.mxu0 }
 0x4ac   :  { %v5275_v57 = vadd.f32 %v8850_v43, %v4805_v4 }
 0x4ad   :  { %v5246_v42 = vpop.f32.mrf.mxu0 }
 0x4ae   :  { %v5273_v25 = vadd.f32 %v5246_v42, %v4797_v33  ;;  %v11753_v60 = vadd.f32 %v11673_v30, %v5275_v57 }
 0x4af   :  { %v8851_v40 = vpop.f32.mrf.mxu0 }
 0x4b0   :  { %v11755_v15 = vpop.f32.mrf.mxu1  ;;  %v5276_v53 = vadd.f32 %v8851_v40, %v4808_v36  ;;  %v11758_v35 = vadd.f32 %v11679_v46, %v5273_v25 }
 0x4b1   :  { %v5249_v26 = vpop.f32.mrf.mxu0 }
 0x4b2   :  { %v11760_v61 = vpop.f32.mrf.mxu1  ;;  %v5274_v2 = vadd.f32 %v5249_v26, %v11671_v6  ;;  %v11764_v11 = vadd.f32 %v11686_v41, %v5276_v53 }
 0x4b3   :  { %v8902_v58 = vpop.f32.mrf.mxu0 }
 0x4b4   :  { %v11766_v39 = vpop.f32.mrf.mxu1  ;;  %v5827_v30 = vadd.f32 %v8902_v58, %v11683_v47  ;;  %v11770_v13 = vadd.f32 %v11692_v50, %v5274_v2 }
 0x4b5   :  { %12015 = vst [vmem:[#allocation15_spill] sm:$0xff] %v11766_v39  ;;  %v5762_v31 = vpop.f32.mrf.mxu0 }
 0x4b6   :  { %v11772_v38 = vpop.f32.mrf.mxu1  ;;  %v5825_v46 = vadd.f32 %v5762_v31, %v11688_v23  ;;  %v11776_v49 = vadd.f32 %v11696_v17, %v5827_v30 }
 0x4b7   :  { %12016 = vst [vmem:[#allocation21_spill] sm:$0xff] %v11772_v38  ;;  %v8903_v6 = vpop.f32.mrf.mxu0 }
 0x4b8   :  { %12017 = vst [vmem:[#allocation22_spill] sm:$0xff] %v11776_v49  ;;  %v11778_v55 = vpop.f32.mrf.mxu1  ;;  %v5828_v41 = vadd.f32 %v8903_v6, %v11690_v8  ;;  %v11782_v3 = vadd.f32 %v11698_v59, %v5825_v46 }
 0x4b9   :  { %12018 = vst [vmem:[#allocation23_spill] sm:$0xff] %v11778_v55  ;;  %v5765_v47 = vpop.f32.mrf.mxu0 }
 0x4ba   :  { %12019 = vst [vmem:[#allocation24_spill] sm:$0xff] %v11782_v3  ;;  %v11784_v27 = vpop.f32.mrf.mxu1  ;;  %v5826_v50 = vadd.f32 %v5765_v47, %v11694_v24  ;;  %v11788_v21 = vadd.f32 %v11702_v51, %v5828_v41 }
 0x4bb   :  { %12020 = vst [vmem:[#allocation29_spill] sm:$0xff] %v11784_v27  ;;  %v8906_v23 = vpop.f32.mrf.mxu0 }
 0x4bc   :  { %12021 = vst [vmem:[#allocation32_spill] sm:$0xff] %v11788_v21  ;;  %v11790_v62 = vpop.f32.mrf.mxu1  ;;  %v11793_v17 = vadd.f32 %v11710_v1, %v5826_v50 }
 0x4bd   :  { %12022 = vst [vmem:[#allocation26_spill] sm:$0xff] %v11790_v62  ;;  %v5778_v22 = vpop.f32.mrf.mxu0 }
 0x4be   :  { %12023 = vst [vmem:[#allocation33_spill] sm:$0xff] %v11793_v17  ;;  %v11795_v29 = vpop.f32.mrf.mxu1 }
 0x4bf   :  { %12024 = vst [vmem:[#allocation27_spill] sm:$0xff] %v11795_v29  ;;  %v8907_v8 = vpop.f32.mrf.mxu0 }
 0x4c0   :  { %v9002_v59 = vpop.f32.mrf.mxu1 }
 0x4c1   :  { %v5781_v28 = vpop.f32.mrf.mxu0 }
 0x4c2   :  { %v11797_v16 = vpop.f32.mrf.mxu1 }
 0x4c3   :  { %v8910_v10 = vpop.f32.mrf.mxu0 }
 0x4c4   :  { %v11799_v18 = vpop.f32.mrf.mxu1 }
 0x4c5   :  { %v5794_v24 = vpop.f32.mrf.mxu0 }
 0x4c6   :  { %v11801_v51 = vpop.f32.mrf.mxu1 }
 0x4c7   :  { %v8911_v56 = vpop.f32.mrf.mxu0 }
 0x4c8   :  { %v11803_v0 = vpop.f32.mrf.mxu1 }
 0x4c9   :  { %v5797_v4 = vpop.f32.mrf.mxu0 }
 0x4ca   :  { %v11805_v1 = vpop.f32.mrf.mxu1 }
 0x4cb   :  { %v11807_v43 = vpop.f32.mrf.mxu0 }
 0x4cc   :  { %v11811_v57 = vpop.f32.mrf.mxu1 }
 0x4cd   :  { %v11809_v33 = vpop.f32.mrf.mxu0  ;;  %12025 = vst [vmem:[#allocation28_spill] sm:$0xff] %v11811_v57 }
 0x4ce   :  { %v11817_v25 = vpop.f32.mrf.mxu1 }
 0x4cf   :  { %v11813_v42 = vpop.f32.mrf.mxu0  ;;  %12026 = vst [vmem:[#allocation30_spill] sm:$0xff] %v11817_v25 }
 0x4d0   :  { %v11823_v26 = vpop.f32.mrf.mxu1 }
 0x4d1   :  { %v11815_v36 = vpop.f32.mrf.mxu0  ;;  %12029 = vst [vmem:[#allocation35_spill] sm:$0xff] %v11823_v26  ;;  %v5832_v26 = vadd.f32 %v8907_v8, %v11712_v9 }
 0x4d2   :  { %v11829_v30 = vpop.f32.mrf.mxu1 }
 0x4d3   :  { %v11819_v40 = vpop.f32.mrf.mxu0  ;;  %12032 = vst [vmem:[#allocation38_spill] sm:$0xff] %v11829_v30  ;;  %v5831_v30 = vadd.f32 %v8906_v23, %v11705_v44  ;;  %v5835_v23 = vadd.f32 %v8910_v10, %v11726_v45 }
 0x4d4   :  { %12027 = vst [vmem:[#allocation31_spill] sm:$0xff] %v11819_v40  ;;  %v11831_v6 = vpop.f32.mrf.mxu1  ;;  %v5829_v40 = vadd.f32 %v5778_v22, %v11708_v37  ;;  %v6298_v22 = vadd.f32 %v11722_v54, %v5832_v26  ;;  %v5834_v54 = vadd.f32 %v5797_v4, %v11736_v20 }
 0x4d5   :  { %v11821_v53 = vpop.f32.mrf.mxu0  ;;  %12033 = vst [vmem:[#allocation16_spill] sm:$0xff] %v11831_v6  ;;  %v6297_v38 = vadd.f32 %v11716_v12, %v5831_v30 }
 0x4d6   :  { %12028 = vst [vmem:[#allocation34_spill] sm:$0xff] %v11821_v53  ;;  %v11833_v50 = vpop.f32.mrf.mxu1 }
 0x4d7   :  { %v11825_v2 = vpop.f32.mrf.mxu0  ;;  %12034 = vst [vmem:[#allocation25_spill] sm:$0xff] %v11833_v50 }
 0x4d8   :  { %12030 = vst [vmem:[#allocation36_spill] sm:$0xff] %v11825_v2  ;;  %v9066_v17 = vpop.f32.mrf.mxu1 }
 0x4d9   :  { %v11827_v58 = vpop.f32.mrf.mxu0 }
 0x4da   :  { %12031 = vst [vmem:[#allocation37_spill] sm:$0xff] %v11827_v58  ;;  %v7597_v55 = vpop.f32.mrf.mxu1 }
 0x4db   :  { %v8970_v31 = vpop.f32.mrf.mxu0 }
 0x4dc   :  { %v9067_v58 = vpop.f32.mrf.mxu1  ;;  %v6619_v39 = vadd.f32 %v8970_v31, %v6297_v38 }
 0x4dd   :  { %v6566_v46 = vpop.f32.mrf.mxu0 }
 0x4de   :  { %v7600_v50 = vpop.f32.mrf.mxu1  ;;  %v6862_v30 = vadd.f32 %v9002_v59, %v6619_v39 }
 0x4df   :  { %v8971_v41 = vpop.f32.mrf.mxu0 }
 0x4e0   :  { %v9070_v57 = vpop.f32.mrf.mxu1  ;;  %v6620_v12 = vadd.f32 %v8971_v41, %v6298_v22  ;;  %v12038_v41 = vld [vmem:[#allocation28_spill] sm:$0xff] }
 0x4e1   :  { %v6569_v47 = vpop.f32.mrf.mxu0 }
 0x4e2   :  { %v7613_v38 = vpop.f32.mrf.mxu1 }
 0x4e3   :  { %v8974_v29 = vpop.f32.mrf.mxu0 }
 0x4e4   :  { %v9071_v39 = vpop.f32.mrf.mxu1 }
 0x4e5   :  { %v6582_v62 = vpop.f32.mrf.mxu0 }
 0x4e7   :  { %v8975_v27 = vpop.f32.mrf.mxu0 }
 0x4e9   :  { %v6585_v21 = vpop.f32.mrf.mxu0 }
 0x4eb   :  { %v11835_v53 = vpop.f32.mrf.mxu0 }
 0x4ed   :  { %v11837_v2 = vpop.f32.mrf.mxu0 }
 0x4ee   :  { %12035 = vst [vmem:[#allocation14_spill] sm:$0xff] %v11837_v2  ;;  %v5830_v2 = vadd.f32 %v5781_v28, %v11714_v48  ;;  %v5836_v48 = vadd.f32 %v8911_v56, %v11734_v19  ;;  %v5839_v19 = vadd.f32 %v11807_v43, %v11753_v60 }
 0x4ef   :  { %v11839_v3 = vpop.f32.mrf.mxu0 }
 0x4f0   :  { %12036 = vst [vmem:[#allocation17_spill] sm:$0xff] %v11839_v3  ;;  %v6295_v3 = vadd.f32 %v11718_v5, %v5829_v40  ;;  %v6296_v8 = vadd.f32 %v11732_v7, %v5830_v2  ;;  %v6301_v40 = vadd.f32 %v11738_v14, %v5835_v23  ;;  %v6863_v7 = vadd.f32 %v11799_v18, %v6620_v12 }
 0x4f1   :  { %v11842_v6 = vpop.f32.mrf.mxu0  ;;  %v6302_v59 = vadd.f32 %v11742_v63, %v5836_v48  ;;  %v5840_v63 = vadd.f32 %v11813_v42, %v11764_v11 }
 0x4f2   :  { %v6617_v37 = vadd.f32 %v6566_v46, %v6295_v3  ;;  %v6618_v28 = vadd.f32 %v6569_v47, %v6296_v8  ;;  %v6623_v10 = vadd.f32 %v8974_v29, %v6301_v40 }
 0x4f3   :  { %v11845_v49 = vpop.f32.mrf.mxu0  ;;  %v6624_v29 = vadd.f32 %v8975_v27, %v6302_v59  ;;  %v5838_v27 = vadd.f32 %v11815_v36, %v11770_v13  ;;  %v12041_v13 = vld [vmem:[#allocation30_spill] sm:$0xff] }
 0x4f4   :  { %12037 = vst [vmem:[#allocation18_spill] sm:$0xff] %v11845_v49  ;;  %v5833_v49 = vadd.f32 %v5794_v24, %v11730_v34  ;;  %v6860_v45 = vadd.f32 %v11797_v16, %v6617_v37  ;;  %v6861_v20 = vadd.f32 %v11801_v51, %v6618_v28  ;;  %v6866_v4 = vadd.f32 %v11803_v0, %v6623_v10  ;;  %v12044_v28 = vld [vmem:[#allocation35_spill] sm:$0xff]  ;;  %v12049_v59 = vld [vmem:[#allocation34_spill] sm:$0xff] }
 0x4f5   :  { %v11849_v25 = vpop.f32.mrf.mxu0  ;;  %v12040_v37 = vld [vmem:[#allocation14_spill] sm:$0xff] }
 0x4f6   :  { %v6299_v34 = vadd.f32 %v11740_v32, %v5833_v49  ;;  %v5837_v32 = vadd.f32 %v11809_v33, %v11758_v35  ;;  %v6300_v49 = vadd.f32 %v11748_v52, %v5834_v54 }
 0x4f7   :  { %v11853_v44 = vpop.f32.mrf.mxu0 }
 0x4f8   :  { %v6621_v56 = vadd.f32 %v6582_v62, %v6299_v34  ;;  %v7616_v62 = vpop.f32.mrf.mxu1  ;;  %v6622_v51 = vadd.f32 %v6585_v21, %v6300_v49  ;;  %v6303_v33 = vadd.f32 %v11760_v61, %v5837_v32  ;;  %v12039_v21 = vld [vmem:[#allocation15_spill] sm:$0xff]  ;;  %v12042_v61 = vld [vmem:[#allocation21_spill] sm:$0xff] }
 0x4f9   :  { %v11858_v9 = vpop.f32.mrf.mxu0  ;;  %v6306_v23 = vadd.f32 %v12039_v21, %v5840_v63  ;;  %v6304_v8 = vadd.f32 %v12042_v61, %v5838_v27  ;;  %v12051_v49 = vld [vmem:[#allocation23_spill] sm:$0xff] }
 0x4fa   :  { %v6864_v52 = vadd.f32 %v11805_v1, %v6621_v56  ;;  %v9074_v47 = vpop.f32.mrf.mxu1  ;;  %v6625_v22 = vadd.f32 %v12040_v37, %v6303_v33  ;;  %v6865_v36 = vadd.f32 %v12041_v13, %v6622_v51 }
 0x4fb   :  { %v9034_v5 = vpop.f32.mrf.mxu0  ;;  %v12058_v33 = vld [vmem:[#allocation18_spill] sm:$0xff] }
 0x4fc   :  { %v7328_v31 = vadd.f32 %v9034_v5, %v6862_v30  ;;  %v7629_v34 = vpop.f32.mrf.mxu1 }
 0x4fd   :  { %v7275_v3 = vpop.f32.mrf.mxu0 }
 0x4fe   :  { %v7650_v24 = vadd.f32 %v9066_v17, %v7328_v31  ;;  %v7326_v26 = vadd.f32 %v7275_v3, %v6860_v45  ;;  %v12045_v31 = vld [vmem:[#allocation22_spill] sm:$0xff]  ;;  %v12046_v45 = vld [vmem:[#allocation31_spill] sm:$0xff]  ;;  %v9075_v32 = vpop.f32.mrf.mxu1 }
 0x4ff   :  { %v9035_v14 = vpop.f32.mrf.mxu0  ;;  %v6615_v54 = vadd.f32 %v12046_v45, %v12045_v31 }
 0x500   :  { %7666 = vst [vmem:[#allocation10 + $0x30] sm:$0xff] %v7650_v24  ;;  %v7648_v16 = vadd.f32 %v7597_v55, %v7326_v26  ;;  %v7329_v2 = vadd.f32 %v9035_v14, %v6863_v7  ;;  %v6305_v55 = vadd.f32 %v11755_v15, %v5839_v19  ;;  %v6867_v15 = vadd.f32 %v12038_v41, %v6624_v29  ;;  %v12047_v26 = vld [vmem:[#allocation38_spill] sm:$0xff]  ;;  %v12048_v19 = vld [vmem:[#allocation24_spill] sm:$0xff] }
 0x501   :  { %v7278_v17 = vpop.f32.mrf.mxu0  ;;  %v6868_v7 = vadd.f32 %v12047_v26, %v6625_v22  ;;  %v6613_v14 = vadd.f32 %v12049_v59, %v12048_v19 }
 0x502   :  { %7664 = vst [vmem:[#allocation10 + $0x20] sm:$0xff] %v7648_v16  ;;  %v7651_v18 = vadd.f32 %v9067_v58, %v7329_v2  ;;  %v7327_v60 = vadd.f32 %v7278_v17, %v6861_v20  ;;  %v6627_v0 = vadd.f32 %v11835_v53, %v6305_v55  ;;  %v12043_v53 = vld [vmem:[#allocation17_spill] sm:$0xff]  ;;  %v12050_v2 = vld [vmem:[#allocation16_spill] sm:$0xff]  ;;  %v6858_v17 = vadd.f32 %v12051_v49, %v6615_v54 }
 0x503   :  { %v9038_v43 = vpop.f32.mrf.mxu0  ;;  %v6628_v48 = vadd.f32 %v12043_v53, %v6306_v23 }
 0x504   :  { %7667 = vst [vmem:[#allocation10 + $0x38] sm:$0xff] %v7651_v18  ;;  %v7649_v46 = vadd.f32 %v7600_v50, %v7327_v60  ;;  %v7332_v35 = vadd.f32 %v9038_v43, %v6866_v4  ;;  %v6870_v40 = vadd.f32 %v12044_v28, %v6627_v0  ;;  %v12052_v18 = vld [vmem:[#allocation32_spill] sm:$0xff]  ;;  %v12055_v43 = vld [vmem:[#allocation29_spill] sm:$0xff] }
 0x505   :  { %v7291_v58 = vpop.f32.mrf.mxu0  ;;  %v6871_v20 = vadd.f32 %v12050_v2, %v6628_v48  ;;  %v6856_v51 = vadd.f32 %v12055_v43, %v6613_v14 }
 0x506   :  { %7665 = vst [vmem:[#allocation10 + $0x28] sm:$0xff] %v7649_v46  ;;  %v7654_v11 = vadd.f32 %v9070_v57, %v7332_v35  ;;  %v7330_v42 = vadd.f32 %v7291_v58, %v6864_v52  ;;  %v12056_v35 = vld [vmem:[#allocation33_spill] sm:$0xff]  ;;  %v7324_v58 = vadd.f32 %v12058_v33, %v6858_v17 }
 0x507   :  { %v9039_v50 = vpop.f32.mrf.mxu0  ;;  %v12057_v52 = vld [vmem:[#allocation37_spill] sm:$0xff] }
 0x508   :  { %7670 = vst [vmem:[#allocation10 + $0x50] sm:$0xff] %v7654_v11  ;;  %v7652_v1 = vadd.f32 %v7613_v38, %v7330_v42  ;;  %v7333_v12 = vadd.f32 %v9039_v50, %v6867_v15  ;;  %v6626_v38 = vadd.f32 %v11842_v6, %v6304_v8  ;;  %v12053_v6 = vld [vmem:[#allocation36_spill] sm:$0xff]  ;;  %v6614_v27 = vadd.f32 %v12057_v52, %v12056_v35  ;;  %v7632_v42 = vpop.f32.mrf.mxu1 }
 0x509   :  { %v7294_v30 = vpop.f32.mrf.mxu0  ;;  %v6616_v60 = vadd.f32 %v12053_v6, %v12052_v18  ;;  %v7322_v15 = vadd.f32 %v11849_v25, %v6856_v51 }
 0x50a   :  { %7668 = vst [vmem:[#allocation10 + $0x40] sm:$0xff] %v7652_v1  ;;  %v7655_v57 = vadd.f32 %v9071_v39, %v7333_v12  ;;  %v7331_v5 = vadd.f32 %v7294_v30, %v6865_v36  ;;  %v12060_v1 = vld [vmem:[#allocation27_spill] sm:$0xff] }
 0x50b   :  { %v9042_v3 = vpop.f32.mrf.mxu0  ;;  %v6857_v12 = vadd.f32 %v12060_v1, %v6614_v27 }
 0x50c   :  { %7671 = vst [vmem:[#allocation10 + $0x58] sm:$0xff] %v7655_v57  ;;  %v7653_v10 = vadd.f32 %v7616_v62, %v7331_v5  ;;  %v7336_v24 = vadd.f32 %v9042_v3, %v6870_v40  ;;  %v12054_v62 = vld [vmem:[#allocation25_spill] sm:$0xff] }
 0x50d   :  { %v7307_v56 = vpop.f32.mrf.mxu0  ;;  %v6869_v55 = vadd.f32 %v12054_v62, %v6626_v38  ;;  %v7323_v61 = vadd.f32 %v11858_v9, %v6857_v12 }
 0x50e   :  { %7669 = vst [vmem:[#allocation10 + $0x48] sm:$0xff] %v7653_v10  ;;  %v7658_v39 = vadd.f32 %v9074_v47, %v7336_v24  ;;  %v7334_v16 = vadd.f32 %v7307_v56, %v6868_v7  ;;  %v12059_v47 = vld [vmem:[#allocation26_spill] sm:$0xff] }
 0x50f   :  { %v9043_v29 = vpop.f32.mrf.mxu0  ;;  %v6859_v21 = vadd.f32 %v12059_v47, %v6616_v60 }
 0x510   :  { %7674 = vst [vmem:[#allocation10 + $0x70] sm:$0xff] %v7658_v39  ;;  %v7656_v4 = vadd.f32 %v7629_v34, %v7334_v16  ;;  %v7337_v63 = vadd.f32 %v9043_v29, %v6871_v20 }
 0x511   :  { %v7310_v46 = vpop.f32.mrf.mxu0  ;;  %v7325_v22 = vadd.f32 %v11853_v44, %v6859_v21 }
 0x512   :  { %7672 = vst [vmem:[#allocation10 + $0x60] sm:$0xff] %v7656_v4  ;;  %v7659_v0 = vadd.f32 %v9075_v32, %v7337_v63  ;;  %v7335_v11 = vadd.f32 %v7310_v46, %v6869_v55 }
 0x513   :  { %v9062_v41 = vpop.f32.mrf.mxu0 }
 0x514   :  { %7675 = vst [vmem:[#allocation10 + $0x78] sm:$0xff] %v7659_v0  ;;  %v7657_v23 = vadd.f32 %v7632_v42, %v7335_v11  ;;  %v7646_v50 = vadd.f32 %v9062_v41, %v7324_v58 }
 0x515   :  { %v7581_v37 = vpop.f32.mrf.mxu0 }
 0x516   :  { %7673 = vst [vmem:[#allocation10 + $0x68] sm:$0xff] %v7657_v23  ;;  %7662 = vst [vmem:[#allocation10 + $0x10] sm:$0xff] %v7646_v50  ;;  %v7644_v13 = vadd.f32 %v7581_v37, %v7322_v15 }
 0x517   :  { %v9063_v36 = vpop.f32.mrf.mxu0 }
 0x518   :  { %7660 = vst [vmem:[#allocation10] sm:$0xff] %v7644_v13  ;;  %v7647_v25 = vadd.f32 %v9063_v36, %v7325_v22 }
 0x519   :  { %v7584_v8 = vpop.f32.mrf.mxu0 }
 0x51a   :  { %7663 = vst [vmem:[#allocation10 + $0x18] sm:$0xff] %v7647_v25  ;;  %v7645_v30 = vadd.f32 %v7584_v8, %v7323_v61 }
 0x51c   :  { %7661 = vst [vmem:[#allocation10 + $0x8] sm:$0xff] %v7645_v30 }
 0x51d   :  { %9356 = shalt.err (!%p9353_p5)
}
 0x51e   :  { %7687 = dma.vmem_to_hbm [thread:$0]  %s7682_s25, 2048, %s11927_s11, [#allocation6], %s9375_s27, %s9375_s27, %s9376_s28  }
 0x51f   :  { %9369 = dma.done.wait [#allocation6], 2048  }
 0x520   :  { %9370 = vsyncadd [#allocation6], 4294965248 }
 0x521   :  { %7691 = vsyncpa [#allocation5], 1 }
 0x522   :  { %7692 = vsyncpa [#allocation8], 1 }
 0x523   :  { %7693 = vsyncpa [#allocation6], 1 }

</bundles_post_ra>
